<compile_context>
chip_gen: v6e
topology: v6e:2x2x1
jax: 0.10.0
libtpu: 0.0.40
codegen_flags: <defaults>
</compile_context>

<pallas_src>
import jax
import jax.numpy as jnp
from jax.experimental import pallas as pl
from jax.experimental.pallas import tpu as pltpu


# ----------------------------------------------------------------------------
# Pallas kernel 1: fused  out = relu(x @ w + b)   (used for conv1-3 GEMMs)
# ----------------------------------------------------------------------------
def _matmul_bias_relu_kernel(x_ref, w_ref, b_ref, o_ref):
    acc = jnp.dot(x_ref[...].astype(jnp.bfloat16), w_ref[...],
                  preferred_element_type=jnp.float32)
    o_ref[...] = jnp.maximum(acc + b_ref[...], 0.0)


def _pick_row_tile(m, target=2048):
    """Largest row tile <= target that divides m and is a multiple of 8.
    Falls back to the full m (always a legal block)."""
    if m <= target:
        return m
    tm = target - target % 8
    while tm >= 8:
        if m % tm == 0:
            return tm
        tm -= 8
    return m


def pallas_matmul_bias_relu(x, w, b):
    """relu(x @ w + b).  x:(M,K) f32, w:(K,N) bf16, b:(1,N) f32 -> (M,N) f32."""
    M, K = x.shape
    N = w.shape[1]
    tm = _pick_row_tile(M)
    return pl.pallas_call(
        _matmul_bias_relu_kernel,
        out_shape=jax.ShapeDtypeStruct((M, N), jnp.float32),
        grid=(M // tm,),
        in_specs=[
            pl.BlockSpec((tm, K), lambda i: (i, 0)),
            pl.BlockSpec((K, N), lambda i: (0, 0)),
            pl.BlockSpec((1, N), lambda i: (0, 0)),
        ],
        out_specs=pl.BlockSpec((tm, N), lambda i: (i, 0)),
        compiler_params=pltpu.CompilerParams(
            dimension_semantics=("parallel",)),
    )(x, w, b)


# ----------------------------------------------------------------------------
# Pallas kernel 2: fused classifier  conv4(as dense) -> fc1 -> fc2 -> fc3
# All weights live in VMEM; intermediates stay in vregs, never hit HBM.
# ----------------------------------------------------------------------------
def _classifier_kernel(x_ref, w4_ref, b4_ref, w1_ref, b1_ref,
                       w2_ref, b2_ref, w3_ref, b3_ref, o_ref):
    def layer(h, w_ref, b_ref):
        acc = jnp.dot(h.astype(jnp.bfloat16), w_ref[...],
                      preferred_element_type=jnp.float32)
        return jnp.maximum(acc + b_ref[...], 0.0)

    h = layer(x_ref[...], w4_ref, b4_ref)   # conv4 (dense form) + ReLU: (B, 576)
    h = layer(h, w1_ref, b1_ref)            # fc1 + ReLU: (B, 288)
    h = layer(h, w2_ref, b2_ref)            # fc2 + ReLU: (B, 144)
    o_ref[...] = layer(h, w3_ref, b3_ref)   # fc3 (+ ReLU per LinearBlock): (B, 10)


def pallas_classifier(x, w4, b4, w1, b1, w2, b2, w3, b3):
    B = x.shape[0]
    n_out = w3.shape[1]
    args = (x, w4, b4, w1, b1, w2, b2, w3, b3)
    return pl.pallas_call(
        _classifier_kernel,
        out_shape=jax.ShapeDtypeStruct((B, n_out), jnp.float32),
        grid=(1,),
        in_specs=[pl.BlockSpec(a.shape, lambda i: (0, 0)) for a in args],
        out_specs=pl.BlockSpec((B, n_out), lambda i: (0, 0)),
    )(*args)


# ----------------------------------------------------------------------------
# XLA-side glue: NHWC im2col (cheap: channels already on the minor axis)
# ----------------------------------------------------------------------------
def conv_relu_nhwc(x, w2d, b, stride, k=3):
    """x: (N, H, W, Cin) f32, w2d: (k*k*Cin, Cout) bf16 (order kh,kw,cin)."""
    N, H, W, C = x.shape
    OH = (H - k) // stride + 1
    OW = (W - k) // stride + 1
    cols = [x[:, i:i + stride * OH:stride, j:j + stride * OW:stride, :]
            for i in range(k) for j in range(k)]
    col = jnp.stack(cols, axis=3).reshape(N * OH * OW, k * k * C)
    out = pallas_matmul_bias_relu(col, w2d, b)
    return out.reshape(N, OH, OW, -1)        # free reshape (layout-preserving)


# ----------------------------------------------------------------------------
# Parameter preparation (done once, outside the jitted forward)
# ----------------------------------------------------------------------------
def _conv4_as_dense(w4):
    """(Cout=64, Cin=128, 3, 3) -> dense (5*5*128, 3*3*64) so that
    flatten(conv4(x)) == flatten(x) @ dense  (NHWC / (oh,ow,c) flatten order)."""
    w_hwio = jnp.transpose(w4, (2, 3, 1, 0))            # (kh, kw, cin, cout)
    dense = jnp.zeros((5, 5, 128, 3, 3, 64), jnp.float32)
    for oh in range(3):
        for ow in range(3):
            dense = dense.at[oh:oh + 3, ow:ow + 3, :, oh, ow, :].set(w_hwio)
    return dense.reshape(5 * 5 * 128, 3 * 3 * 64).astype(jnp.bfloat16)


def prepare_params(params):
    """Pack PyTorch-layout params into kernel-ready (bf16 weights, f32 biases)."""
    def conv2d_w(w):                                     # (Cout,Cin,k,k) -> (k*k*Cin, Cout)
        cout, cin, k, _ = w.shape
        return (jnp.transpose(w, (2, 3, 1, 0))
                .reshape(k * k * cin, cout).astype(jnp.bfloat16))

    p = {}
    for name in ("conv1", "conv2", "conv3"):
        p[name + "_w"] = conv2d_w(params[name + "_w"])
        p[name + "_b"] = params[name + "_b"].reshape(1, -1).astype(jnp.float32)
    p["conv4_w"] = _conv4_as_dense(params["conv4_w"])
    p["conv4_b"] = jnp.tile(params["conv4_b"], 9).reshape(1, -1).astype(jnp.float32)
    for name in ("fc1", "fc2", "fc3"):
        p[name + "_w"] = params[name + "_w"].T.astype(jnp.bfloat16)
        p[name + "_b"] = params[name + "_b"].reshape(1, -1).astype(jnp.float32)
    return p


# ----------------------------------------------------------------------------
# Raw parameters (deterministic, PyTorch-style uniform(-1/sqrt(fan_in), +..))
# ----------------------------------------------------------------------------
def _uniform(key, shape, fan_in):
    bound = 1.0 / jnp.sqrt(jnp.float32(fan_in))
    return jax.random.uniform(key, shape, jnp.float32, -bound, bound)


def init_params(key):
    specs = {
        "conv1": ((16, 1, 3, 3), 1 * 9),
        "conv2": ((32, 16, 3, 3), 16 * 9),
        "conv3": ((64, 32, 3, 3), 32 * 9),
        "conv4": ((64, 128, 3, 3), 128 * 9),
        "fc1": ((288, 576), 576),
        "fc2": ((144, 288), 288),
        "fc3": ((10, 144), 144),
    }
    params = {}
    keys = jax.random.split(key, 2 * len(specs))
    for idx, (name, (wshape, fan_in)) in enumerate(specs.items()):
        params[name + "_w"] = _uniform(keys[2 * idx], wshape, fan_in)
        params[name + "_b"] = _uniform(keys[2 * idx + 1], (wshape[0],), fan_in)
    return params


# ----------------------------------------------------------------------------
# TwoTowerModel forward (tower-batched featnet + fused classifier)
# ----------------------------------------------------------------------------
def two_tower_forward(p, input1, input2):
    B = input1.shape[0]
    x = jnp.concatenate([input1, input2], axis=0)        # both towers in one batch
    x = jnp.transpose(x, (0, 2, 3, 1))                   # NCHW -> NHWC (2B,28,28,1)
    x = conv_relu_nhwc(x, p["conv1_w"], p["conv1_b"], 1)  # (2B,26,26,16)
    x = conv_relu_nhwc(x, p["conv2_w"], p["conv2_b"], 2)  # (2B,12,12,32)
    x = conv_relu_nhwc(x, p["conv3_w"], p["conv3_b"], 2)  # (2B, 5, 5,64)
    feats = jnp.concatenate([x[:B], x[B:]], axis=-1)      # channel concat (B,5,5,128)
    x_flat = feats.reshape(B, -1)                         # (B, 3200)
    return pallas_classifier(x_flat,
                             p["conv4_w"], p["conv4_b"],
                             p["fc1_w"], p["fc1_b"],
                             p["fc2_w"], p["fc2_b"],
                             p["fc3_w"], p["fc3_b"])      # (B, 10)


# ----------------------------------------------------------------------------
if __name__ == "__main__":
    key = jax.random.PRNGKey(0)
    k_params, k_x1, k_x2 = jax.random.split(key, 3)

    params = init_params(k_params)
    prep = prepare_params(params)   # one-time weight packing (bf16 / dense conv4)

    # Shapes implied by the module: 28x28 single-channel inputs (3*3*64 flatten).
    input1 = jax.random.normal(k_x1, (2, 1, 28, 28), jnp.float32)
    input2 = jax.random.normal(k_x2, (2, 1, 28, 28), jnp.float32)

    fwd = jax.jit(two_tower_forward)
    out = fwd(prep, input1, input2)
    jax.block_until_ready(out)

    assert out.shape == (2, 10), out.shape
    print("KERNEL_OK")
</pallas_src>

<mosaic_0001>
module attributes {stable_mosaic.version = 11 : i64} {
  func.func @_matmul_bias_relu_kernel(%arg0: i32, %arg1: memref<1352x9xf32, #tpu.memory_space<vmem>>, %arg2: memref<9x16xbf16, #tpu.memory_space<vmem>>, %arg3: memref<1x16xf32, #tpu.memory_space<vmem>>, %arg4: memref<1352x16xf32, #tpu.memory_space<vmem>>) attributes {dimension_semantics = [#tpu.dimension_semantics<parallel>], iteration_bounds = array<i64: 2>, scalar_prefetch = 0 : i64, scratch_operands = 0 : i64, tpu.core_type = #tpu.core_type<tc>, window_params = [{transform_indices = @transform_0, window_bounds = array<i64: 1352, 9>}, {pipeline_mode = #tpu.pipeline_mode<synchronous>, transform_indices = @transform_1, window_bounds = array<i64: 9, 16>}, {pipeline_mode = #tpu.pipeline_mode<synchronous>, transform_indices = @transform_2, window_bounds = array<i64: 1, 16>}, {transform_indices = @transform_3, window_bounds = array<i64: 1352, 16>}]} {
    %c0 = arith.constant 0 : index
    %c0_0 = arith.constant 0 : index
    %0 = vector.load %arg1[%c0, %c0_0] : memref<1352x9xf32, #tpu.memory_space<vmem>>, vector<1352x9xf32>
    %1 = arith.truncf %0 : vector<1352x9xf32> to vector<1352x9xbf16>
    %c0_1 = arith.constant 0 : index
    %c0_2 = arith.constant 0 : index
    %2 = vector.load %arg2[%c0_1, %c0_2] : memref<9x16xbf16, #tpu.memory_space<vmem>>, vector<9x16xbf16>
    %cst = arith.constant dense<0.000000e+00> : vector<1352x16xf32>
    %3 = tpu.matmul %1, %2, %cst {dimension_numbers = #tpu.dot_dimension_numbers<[1], [0], [0], [1], [0, 0, 1, 1], [], []>} : vector<1352x9xbf16>, vector<9x16xbf16>, vector<1352x16xf32> -> vector<1352x16xf32>
    %c0_3 = arith.constant 0 : index
    %c0_4 = arith.constant 0 : index
    %4 = vector.load %arg3[%c0_3, %c0_4] : memref<1x16xf32, #tpu.memory_space<vmem>>, vector<1x16xf32>
    %5 = vector.broadcast %4 : vector<1x16xf32> to vector<1352x16xf32>
    %6 = arith.addf %3, %5 : vector<1352x16xf32>
    %cst_5 = arith.constant 0.000000e+00 : f32
    %7 = vector.broadcast %cst_5 : f32 to vector<1352x16xf32>
    %8 = arith.maximumf %6, %7 : vector<1352x16xf32>
    %c0_6 = arith.constant 0 : index
    %c0_7 = arith.constant 0 : index
    %9 = vector.load %arg4[%c0_6, %c0_7] : memref<1352x16xf32, #tpu.memory_space<vmem>>, vector<1352x16xf32>
    tpu.vector_store %arg4[%c0_6, %c0_7], %8 {strides = array<i32>} : memref<1352x16xf32, #tpu.memory_space<vmem>>, vector<1352x16xf32>,
    return
  }
  func.func @transform_0(%arg0: i32) -> (i32, i32) {
    %c0_i32 = arith.constant 0 : i32
    %c0_i32_0 = arith.constant 0 : i32
    return %arg0, %c0_i32 : i32, i32
  }
  func.func @transform_1(%arg0: i32) -> (i32, i32) {
    %c0_i32 = arith.constant 0 : i32
    %c0_i32_0 = arith.constant 0 : i32
    %c0_i32_1 = arith.constant 0 : i32
    return %c0_i32, %c0_i32_0 : i32, i32
  }
  func.func @transform_2(%arg0: i32) -> (i32, i32) {
    %c0_i32 = arith.constant 0 : i32
    %c0_i32_0 = arith.constant 0 : i32
    %c0_i32_1 = arith.constant 0 : i32
    return %c0_i32, %c0_i32_0 : i32, i32
  }
  func.func @transform_3(%arg0: i32) -> (i32, i32) {
    %c0_i32 = arith.constant 0 : i32
    %c0_i32_0 = arith.constant 0 : i32
    return %arg0, %c0_i32 : i32, i32
  }
}

module attributes {stable_mosaic.version = 11 : i64} {
  func.func @_matmul_bias_relu_kernel(%arg0: i32, %arg1: memref<576x144xf32, #tpu.memory_space<vmem>>, %arg2: memref<144x32xbf16, #tpu.memory_space<vmem>>, %arg3: memref<1x32xf32, #tpu.memory_space<vmem>>, %arg4: memref<576x32xf32, #tpu.memory_space<vmem>>) attributes {dimension_semantics = [#tpu.dimension_semantics<parallel>], iteration_bounds = array<i64: 1>, scalar_prefetch = 0 : i64, scratch_operands = 0 : i64, tpu.core_type = #tpu.core_type<tc>, window_params = [{transform_indices = @transform_0, window_bounds = array<i64: 576, 144>}, {pipeline_mode = #tpu.pipeline_mode<synchronous>, transform_indices = @transform_1, window_bounds = array<i64: 144, 32>}, {pipeline_mode = #tpu.pipeline_mode<synchronous>, transform_indices = @transform_2, window_bounds = array<i64: 1, 32>}, {transform_indices = @transform_3, window_bounds = array<i64: 576, 32>}]} {
    %c0 = arith.constant 0 : index
    %c0_0 = arith.constant 0 : index
    %0 = vector.load %arg1[%c0, %c0_0] : memref<576x144xf32, #tpu.memory_space<vmem>>, vector<576x144xf32>
    %1 = arith.truncf %0 : vector<576x144xf32> to vector<576x144xbf16>
    %c0_1 = arith.constant 0 : index
    %c0_2 = arith.constant 0 : index
    %2 = vector.load %arg2[%c0_1, %c0_2] : memref<144x32xbf16, #tpu.memory_space<vmem>>, vector<144x32xbf16>
    %cst = arith.constant dense<0.000000e+00> : vector<576x32xf32>
    %3 = tpu.matmul %1, %2, %cst {dimension_numbers = #tpu.dot_dimension_numbers<[1], [0], [0], [1], [0, 0, 1, 1], [], []>} : vector<576x144xbf16>, vector<144x32xbf16>, vector<576x32xf32> -> vector<576x32xf32>
    %c0_3 = arith.constant 0 : index
    %c0_4 = arith.constant 0 : index
    %4 = vector.load %arg3[%c0_3, %c0_4] : memref<1x32xf32, #tpu.memory_space<vmem>>, vector<1x32xf32>
    %5 = vector.broadcast %4 : vector<1x32xf32> to vector<576x32xf32>
    %6 = arith.addf %3, %5 : vector<576x32xf32>
    %cst_5 = arith.constant 0.000000e+00 : f32
    %7 = vector.broadcast %cst_5 : f32 to vector<576x32xf32>
    %8 = arith.maximumf %6, %7 : vector<576x32xf32>
    %c0_6 = arith.constant 0 : index
    %c0_7 = arith.constant 0 : index
    %9 = vector.load %arg4[%c0_6, %c0_7] : memref<576x32xf32, #tpu.memory_space<vmem>>, vector<576x32xf32>
    tpu.vector_store %arg4[%c0_6, %c0_7], %8 {strides = array<i32>} : memref<576x32xf32, #tpu.memory_space<vmem>>, vector<576x32xf32>,
    return
  }
  func.func @transform_0(%arg0: i32) -> (i32, i32) {
    %c0_i32 = arith.constant 0 : i32
    %c0_i32_0 = arith.constant 0 : i32
    return %arg0, %c0_i32 : i32, i32
  }
  func.func @transform_1(%arg0: i32) -> (i32, i32) {
    %c0_i32 = arith.constant 0 : i32
    %c0_i32_0 = arith.constant 0 : i32
    %c0_i32_1 = arith.constant 0 : i32
    return %c0_i32, %c0_i32_0 : i32, i32
  }
  func.func @transform_2(%arg0: i32) -> (i32, i32) {
    %c0_i32 = arith.constant 0 : i32
    %c0_i32_0 = arith.constant 0 : i32
    %c0_i32_1 = arith.constant 0 : i32
    return %c0_i32, %c0_i32_0 : i32, i32
  }
  func.func @transform_3(%arg0: i32) -> (i32, i32) {
    %c0_i32 = arith.constant 0 : i32
    %c0_i32_0 = arith.constant 0 : i32
    return %arg0, %c0_i32 : i32, i32
  }
}

module attributes {stable_mosaic.version = 11 : i64} {
  func.func @_matmul_bias_relu_kernel(%arg0: i32, %arg1: memref<100x288xf32, #tpu.memory_space<vmem>>, %arg2: memref<288x64xbf16, #tpu.memory_space<vmem>>, %arg3: memref<1x64xf32, #tpu.memory_space<vmem>>, %arg4: memref<100x64xf32, #tpu.memory_space<vmem>>) attributes {dimension_semantics = [#tpu.dimension_semantics<parallel>], iteration_bounds = array<i64: 1>, scalar_prefetch = 0 : i64, scratch_operands = 0 : i64, tpu.core_type = #tpu.core_type<tc>, window_params = [{transform_indices = @transform_0, window_bounds = array<i64: 100, 288>}, {pipeline_mode = #tpu.pipeline_mode<synchronous>, transform_indices = @transform_1, window_bounds = array<i64: 288, 64>}, {pipeline_mode = #tpu.pipeline_mode<synchronous>, transform_indices = @transform_2, window_bounds = array<i64: 1, 64>}, {transform_indices = @transform_3, window_bounds = array<i64: 100, 64>}]} {
    %c0 = arith.constant 0 : index
    %c0_0 = arith.constant 0 : index
    %0 = vector.load %arg1[%c0, %c0_0] : memref<100x288xf32, #tpu.memory_space<vmem>>, vector<100x288xf32>
    %1 = arith.truncf %0 : vector<100x288xf32> to vector<100x288xbf16>
    %c0_1 = arith.constant 0 : index
    %c0_2 = arith.constant 0 : index
    %2 = vector.load %arg2[%c0_1, %c0_2] : memref<288x64xbf16, #tpu.memory_space<vmem>>, vector<288x64xbf16>
    %cst = arith.constant dense<0.000000e+00> : vector<100x64xf32>
    %3 = tpu.matmul %1, %2, %cst {dimension_numbers = #tpu.dot_dimension_numbers<[1], [0], [0], [1], [0, 0, 1, 1], [], []>} : vector<100x288xbf16>, vector<288x64xbf16>, vector<100x64xf32> -> vector<100x64xf32>
    %c0_3 = arith.constant 0 : index
    %c0_4 = arith.constant 0 : index
    %4 = vector.load %arg3[%c0_3, %c0_4] : memref<1x64xf32, #tpu.memory_space<vmem>>, vector<1x64xf32>
    %5 = vector.broadcast %4 : vector<1x64xf32> to vector<100x64xf32>
    %6 = arith.addf %3, %5 : vector<100x64xf32>
    %cst_5 = arith.constant 0.000000e+00 : f32
    %7 = vector.broadcast %cst_5 : f32 to vector<100x64xf32>
    %8 = arith.maximumf %6, %7 : vector<100x64xf32>
    %c0_6 = arith.constant 0 : index
    %c0_7 = arith.constant 0 : index
    %9 = vector.load %arg4[%c0_6, %c0_7] : memref<100x64xf32, #tpu.memory_space<vmem>>, vector<100x64xf32>
    tpu.vector_store %arg4[%c0_6, %c0_7], %8 {strides = array<i32>} : memref<100x64xf32, #tpu.memory_space<vmem>>, vector<100x64xf32>,
    return
  }
  func.func @transform_0(%arg0: i32) -> (i32, i32) {
    %c0_i32 = arith.constant 0 : i32
    %c0_i32_0 = arith.constant 0 : i32
    return %arg0, %c0_i32 : i32, i32
  }
  func.func @transform_1(%arg0: i32) -> (i32, i32) {
    %c0_i32 = arith.constant 0 : i32
    %c0_i32_0 = arith.constant 0 : i32
    %c0_i32_1 = arith.constant 0 : i32
    return %c0_i32, %c0_i32_0 : i32, i32
  }
  func.func @transform_2(%arg0: i32) -> (i32, i32) {
    %c0_i32 = arith.constant 0 : i32
    %c0_i32_0 = arith.constant 0 : i32
    %c0_i32_1 = arith.constant 0 : i32
    return %c0_i32, %c0_i32_0 : i32, i32
  }
  func.func @transform_3(%arg0: i32) -> (i32, i32) {
    %c0_i32 = arith.constant 0 : i32
    %c0_i32_0 = arith.constant 0 : i32
    return %arg0, %c0_i32 : i32, i32
  }
}

module attributes {stable_mosaic.version = 11 : i64} {
  func.func @_classifier_kernel(%arg0: i32, %arg1: memref<2x3200xf32, #tpu.memory_space<vmem>>, %arg2: memref<3200x576xbf16, #tpu.memory_space<vmem>>, %arg3: memref<1x576xf32, #tpu.memory_space<vmem>>, %arg4: memref<576x288xbf16, #tpu.memory_space<vmem>>, %arg5: memref<1x288xf32, #tpu.memory_space<vmem>>, %arg6: memref<288x144xbf16, #tpu.memory_space<vmem>>, %arg7: memref<1x144xf32, #tpu.memory_space<vmem>>, %arg8: memref<144x10xbf16, #tpu.memory_space<vmem>>, %arg9: memref<1x10xf32, #tpu.memory_space<vmem>>, %arg10: memref<2x10xf32, #tpu.memory_space<vmem>>) attributes {dimension_semantics = [#tpu.dimension_semantics<arbitrary>], iteration_bounds = array<i64: 1>, scalar_prefetch = 0 : i64, scratch_operands = 0 : i64, tpu.core_type = #tpu.core_type<tc>, window_params = [{pipeline_mode = #tpu.pipeline_mode<synchronous>, transform_indices = @transform_0, window_bounds = array<i64: 2, 3200>}, {pipeline_mode = #tpu.pipeline_mode<synchronous>, transform_indices = @transform_1, window_bounds = array<i64: 3200, 576>}, {pipeline_mode = #tpu.pipeline_mode<synchronous>, transform_indices = @transform_2, window_bounds = array<i64: 1, 576>}, {pipeline_mode = #tpu.pipeline_mode<synchronous>, transform_indices = @transform_3, window_bounds = array<i64: 576, 288>}, {pipeline_mode = #tpu.pipeline_mode<synchronous>, transform_indices = @transform_4, window_bounds = array<i64: 1, 288>}, {pipeline_mode = #tpu.pipeline_mode<synchronous>, transform_indices = @transform_5, window_bounds = array<i64: 288, 144>}, {pipeline_mode = #tpu.pipeline_mode<synchronous>, transform_indices = @transform_6, window_bounds = array<i64: 1, 144>}, {pipeline_mode = #tpu.pipeline_mode<synchronous>, transform_indices = @transform_7, window_bounds = array<i64: 144, 10>}, {pipeline_mode = #tpu.pipeline_mode<synchronous>, transform_indices = @transform_8, window_bounds = array<i64: 1, 10>}, {pipeline_mode = #tpu.pipeline_mode<synchronous>, transform_indices = @transform_9, window_bounds = array<i64: 2, 10>}]} {
    %c0 = arith.constant 0 : index
    %c0_0 = arith.constant 0 : index
    %0 = vector.load %arg1[%c0, %c0_0] : memref<2x3200xf32, #tpu.memory_space<vmem>>, vector<2x3200xf32>
    %1 = arith.truncf %0 : vector<2x3200xf32> to vector<2x3200xbf16>
    %c0_1 = arith.constant 0 : index
    %c0_2 = arith.constant 0 : index
    %2 = vector.load %arg2[%c0_1, %c0_2] : memref<3200x576xbf16, #tpu.memory_space<vmem>>, vector<3200x576xbf16>
    %cst = arith.constant dense<0.000000e+00> : vector<2x576xf32>
    %3 = tpu.matmul %1, %2, %cst {dimension_numbers = #tpu.dot_dimension_numbers<[1], [0], [0], [1], [0, 0, 1, 1], [], []>} : vector<2x3200xbf16>, vector<3200x576xbf16>, vector<2x576xf32> -> vector<2x576xf32>
    %c0_3 = arith.constant 0 : index
    %c0_4 = arith.constant 0 : index
    %4 = vector.load %arg3[%c0_3, %c0_4] : memref<1x576xf32, #tpu.memory_space<vmem>>, vector<1x576xf32>
    %5 = vector.broadcast %4 : vector<1x576xf32> to vector<2x576xf32>
    %6 = arith.addf %3, %5 : vector<2x576xf32>
    %cst_5 = arith.constant 0.000000e+00 : f32
    %7 = vector.broadcast %cst_5 : f32 to vector<2x576xf32>
    %8 = arith.maximumf %6, %7 : vector<2x576xf32>
    %9 = arith.truncf %8 : vector<2x576xf32> to vector<2x576xbf16>
    %c0_6 = arith.constant 0 : index
    %c0_7 = arith.constant 0 : index
    %10 = vector.load %arg4[%c0_6, %c0_7] : memref<576x288xbf16, #tpu.memory_space<vmem>>, vector<576x288xbf16>
    %cst_8 = arith.constant dense<0.000000e+00> : vector<2x288xf32>
    %11 = tpu.matmul %9, %10, %cst_8 {dimension_numbers = #tpu.dot_dimension_numbers<[1], [0], [0], [1], [0, 0, 1, 1], [], []>} : vector<2x576xbf16>, vector<576x288xbf16>, vector<2x288xf32> -> vector<2x288xf32>
    %c0_9 = arith.constant 0 : index
    %c0_10 = arith.constant 0 : index
    %12 = vector.load %arg5[%c0_9, %c0_10] : memref<1x288xf32, #tpu.memory_space<vmem>>, vector<1x288xf32>
    %13 = vector.broadcast %12 : vector<1x288xf32> to vector<2x288xf32>
    %14 = arith.addf %11, %13 : vector<2x288xf32>
    %cst_11 = arith.constant 0.000000e+00 : f32
    %15 = vector.broadcast %cst_11 : f32 to vector<2x288xf32>
    %16 = arith.maximumf %14, %15 : vector<2x288xf32>
    %17 = arith.truncf %16 : vector<2x288xf32> to vector<2x288xbf16>
    %c0_12 = arith.constant 0 : index
    %c0_13 = arith.constant 0 : index
    %18 = vector.load %arg6[%c0_12, %c0_13] : memref<288x144xbf16, #tpu.memory_space<vmem>>, vector<288x144xbf16>
    %cst_14 = arith.constant dense<0.000000e+00> : vector<2x144xf32>
    %19 = tpu.matmul %17, %18, %cst_14 {dimension_numbers = #tpu.dot_dimension_numbers<[1], [0], [0], [1], [0, 0, 1, 1], [], []>} : vector<2x288xbf16>, vector<288x144xbf16>, vector<2x144xf32> -> vector<2x144xf32>
    %c0_15 = arith.constant 0 : index
    %c0_16 = arith.constant 0 : index
    %20 = vector.load %arg7[%c0_15, %c0_16] : memref<1x144xf32, #tpu.memory_space<vmem>>, vector<1x144xf32>
    %21 = vector.broadcast %20 : vector<1x144xf32> to vector<2x144xf32>
    %22 = arith.addf %19, %21 : vector<2x144xf32>
    %cst_17 = arith.constant 0.000000e+00 : f32
    %23 = vector.broadcast %cst_17 : f32 to vector<2x144xf32>
    %24 = arith.maximumf %22, %23 : vector<2x144xf32>
    %25 = arith.truncf %24 : vector<2x144xf32> to vector<2x144xbf16>
    %c0_18 = arith.constant 0 : index
    %c0_19 = arith.constant 0 : index
    %26 = vector.load %arg8[%c0_18, %c0_19] : memref<144x10xbf16, #tpu.memory_space<vmem>>, vector<144x10xbf16>
    %cst_20 = arith.constant dense<0.000000e+00> : vector<2x10xf32>
    %27 = tpu.matmul %25, %26, %cst_20 {dimension_numbers = #tpu.dot_dimension_numbers<[1], [0], [0], [1], [0, 0, 1, 1], [], []>} : vector<2x144xbf16>, vector<144x10xbf16>, vector<2x10xf32> -> vector<2x10xf32>
    %c0_21 = arith.constant 0 : index
    %c0_22 = arith.constant 0 : index
    %28 = vector.load %arg9[%c0_21, %c0_22] : memref<1x10xf32, #tpu.memory_space<vmem>>, vector<1x10xf32>
    %29 = vector.broadcast %28 : vector<1x10xf32> to vector<2x10xf32>
    %30 = arith.addf %27, %29 : vector<2x10xf32>
    %cst_23 = arith.constant 0.000000e+00 : f32
    %31 = vector.broadcast %cst_23 : f32 to vector<2x10xf32>
    %32 = arith.maximumf %30, %31 : vector<2x10xf32>
    %c0_24 = arith.constant 0 : index
    %c0_25 = arith.constant 0 : index
    %33 = vector.load %arg10[%c0_24, %c0_25] : memref<2x10xf32, #tpu.memory_space<vmem>>, vector<2x10xf32>
    tpu.vector_store %arg10[%c0_24, %c0_25], %32 {strides = array<i32>} : memref<2x10xf32, #tpu.memory_space<vmem>>, vector<2x10xf32>,
    return
  }
  func.func @transform_0(%arg0: i32) -> (i32, i32) {
    %c0_i32 = arith.constant 0 : i32
    %c0_i32_0 = arith.constant 0 : i32
    %c0_i32_1 = arith.constant 0 : i32
    return %c0_i32, %c0_i32_0 : i32, i32
  }
  func.func @transform_1(%arg0: i32) -> (i32, i32) {
    %c0_i32 = arith.constant 0 : i32
    %c0_i32_0 = arith.constant 0 : i32
    %c0_i32_1 = arith.constant 0 : i32
    return %c0_i32, %c0_i32_0 : i32, i32
  }
  func.func @transform_2(%arg0: i32) -> (i32, i32) {
    %c0_i32 = arith.constant 0 : i32
    %c0_i32_0 = arith.constant 0 : i32
    %c0_i32_1 = arith.constant 0 : i32
    return %c0_i32, %c0_i32_0 : i32, i32
  }
  func.func @transform_3(%arg0: i32) -> (i32, i32) {
    %c0_i32 = arith.constant 0 : i32
    %c0_i32_0 = arith.constant 0 : i32
    %c0_i32_1 = arith.constant 0 : i32
    return %c0_i32, %c0_i32_0 : i32, i32
  }
  func.func @transform_4(%arg0: i32) -> (i32, i32) {
    %c0_i32 = arith.constant 0 : i32
    %c0_i32_0 = arith.constant 0 : i32
    %c0_i32_1 = arith.constant 0 : i32
    return %c0_i32, %c0_i32_0 : i32, i32
  }
  func.func @transform_5(%arg0: i32) -> (i32, i32) {
    %c0_i32 = arith.constant 0 : i32
    %c0_i32_0 = arith.constant 0 : i32
    %c0_i32_1 = arith.constant 0 : i32
    return %c0_i32, %c0_i32_0 : i32, i32
  }
  func.func @transform_6(%arg0: i32) -> (i32, i32) {
    %c0_i32 = arith.constant 0 : i32
    %c0_i32_0 = arith.constant 0 : i32
    %c0_i32_1 = arith.constant 0 : i32
    return %c0_i32, %c0_i32_0 : i32, i32
  }
  func.func @transform_7(%arg0: i32) -> (i32, i32) {
    %c0_i32 = arith.constant 0 : i32
    %c0_i32_0 = arith.constant 0 : i32
    %c0_i32_1 = arith.constant 0 : i32
    return %c0_i32, %c0_i32_0 : i32, i32
  }
  func.func @transform_8(%arg0: i32) -> (i32, i32) {
    %c0_i32 = arith.constant 0 : i32
    %c0_i32_0 = arith.constant 0 : i32
    %c0_i32_1 = arith.constant 0 : i32
    return %c0_i32, %c0_i32_0 : i32, i32
  }
  func.func @transform_9(%arg0: i32) -> (i32, i32) {
    %c0_i32 = arith.constant 0 : i32
    %c0_i32_0 = arith.constant 0 : i32
    %c0_i32_1 = arith.constant 0 : i32
    return %c0_i32, %c0_i32_0 : i32, i32
  }
}

</mosaic_0001>

<bundles_post_ra>
// kernel: two_tower_forward.4
= control target key start
LH: loop header
LB: loop body
LE: loop exit
PB: predicated region body
PF: predicated region fallthrough
CT: control target
= control target key end

     0   :  { %8 = vsyncpa [#allocation3], 0  ;;  %s3537_s0 = inlined_call_operand.vmem [shape: f32[2704,9], index: 0, kind: input, shape index: {}]   ;;  %s3538_s1 = inlined_call_operand.hbm [shape: bf16[9,16], index: 1, kind: input, shape index: {}]   ;;  %s3539_s2 = inlined_call_operand.hbm [shape: f32[1,16], index: 2, kind: input, shape index: {}]   ;;  %s3540_s3 = inlined_call_operand.vmem [shape: f32[2704,16], index: 3, kind: output, shape index: {}]  }
   0x1   :  { %9 = vsyncpa [#allocation5], 0  ;;  %s2524_s12 = smov 0  }
   0x2 LB: > { %s1863_s13 = sadd.s32 4294967295, %s2495_s12   ;;  %p1865_p0 = scmp.ge.s32.totalorder %s2495_s12, 1  ;;  %s2495_s12 = sphi %s2524_s12, %s15_s12  }
   0x3   : > { %p114_p1 = scmp.lt.s32.totalorder %s2495_s12, 3  ;;  %s2497_s14 = smov [#allocation2]  }
   0x4   : > { %s126_s15 = sshll.u32 %s2497_s14, 4  ;;  %p2538_p3 = scmp.eq.s32.totalorder %s1863_s13, 0  ;;  %s127_s15 = int_to_ptr.vmem [resolvable:$true] %s126_s15 }
   0x5   : > { %p2532_p2 = pnand %p1865_p0, %p114_p1  ;;  %s2498_s18 = smov [#allocation4]  }
   0x6   : > { %s140_s19 = sshll.u32 %s2498_s18, 4  ;;  %s2440_s21 = scalar_lea.vmem %s127_s15, 128  ;;  %s141_s19 = int_to_ptr.vmem [resolvable:$true] %s140_s19 }
   0x7   : > { %p2401_p4 = pneg %p2532_p2  ;;  %p2441_p7 = scmp.ne.s32.totalorder %s127_s15, %s2440_s21 }
   0x8   : > { %p2448_p10 = scmp.lt.s32.totalorder %s127_s15, %s127_s15  ;;  %p2449_p11 = scmp.lt.s32.totalorder %s2440_s21, %s2440_s21 }
   0x9   : > { %p2546_p5 = pnand %p2538_p3, %p2401_p4 }
   0xa   : > { %p2450_p12 = por %p2449_p11, %p2448_p10 }
   0xb   : > { %p2431_p6 = pneg %p2546_p5 }
   0xd   : > { %p2443_p8 = pnand %p2441_p7, %p2431_p6 }
   0xf   : > { %p2444_p9 = pneg %p2443_p8 }
  0x11   : > { %p2451_p13 = pnand %p2450_p12, %p2444_p9 }
  0x13   : > { %2454 = shalt.err (!%p2451_p13)
}
  0x14   : > { %s2499_s22 = smov 64   ;;  %s2500_s23 = smov 4  }
  0x15   : > { %2404 = dma.hbm_to_vmem [thread:$0]  (!%p2546_p5), %s3538_s1, 128, %s127_s15, [#allocation3], %s2499_s22, %s2499_s22, %s2500_s23  }
  0x16   : > { %s2466_s26 = scalar_lea.vmem %s141_s19, 16  ;;  %s2473_s27 = scalar_lea.vmem %s141_s19, 32 }
  0x17   : > { %p2467_p0 = scmp.ne.s32.totalorder %s141_s19, %s2466_s26  ;;  %p2474_p7 = scmp.lt.s32.totalorder %s141_s19, %s141_s19 }
  0x18   : > { %p2475_p8 = scmp.lt.s32.totalorder %s2473_s27, %s2466_s26 }
  0x19   : > { %p2469_p1 = pnand %p2467_p0, %p2431_p6 }
  0x1a   : > { %p2476_p9 = por %p2475_p8, %p2474_p7 }
  0x1b   : > { %p2470_p4 = pneg %p2469_p1 }
  0x1d   : > { %p2477_p10 = pnand %p2476_p9, %p2470_p4 }
  0x1f   : > { %2480 = shalt.err (!%p2477_p10)
}
  0x20   : > { %2407 = dma.hbm_to_vmem [thread:$0]  (!%p2546_p5), %s3539_s2, 16, %s141_s19, [#allocation5]  }
  0x21   : > { %162 = sbr.rel (%p2532_p2) target bundleno = 589 (0x24d), region = 32 }
  0x26   : > { %2486 = dma.done.wait (%p2538_p3), [#allocation3], 128  }
  0x27   : > { %2488 = vsyncadd (%p2538_p3), [#allocation3], 4294967168 }
  0x28   : > { %2490 = dma.done.wait (%p2538_p3), [#allocation5], 16  }
  0x29   : > { %2492 = vsyncadd (%p2538_p3), [#allocation5], 4294967280  ;;  %vm727_vm0 = vcmask 1043456   ;;  %v2501_v0 = vmov 0.0   ;;  %s190_s30 = smul.u32 169, %s1863_s13  ;;  %vm2502_vm1 = vmmov 0  }
  0x2a   : > { %2049 = vmatprep.subr.bf16.mxu0 %v2501_v0  ;;  %2391 = vmatprep.subr.bf16.mxu1 %v2501_v0  ;;  %vm728_vm2 = vcmask 1044480   ;;  %v2503_v1 = vmov 65535   ;;  %v2427_v4 = vld [vmem:[#allocation2] sm:$0x1f]   ;;  %vm471_vm3 = vcmask 72704   ;;  %vm1615_vm4 = vcmask 130048  }
  0x2b   : > { %2051 = vmatprep.mubr.msk.bf16.mxu0 %vm2502_vm1, %v2501_v0  ;;  %2223 = vmatprep.mubr.msk.bf16.mxu1 %vm2502_vm1, %v2501_v0  ;;  %v729_v2 = vsel %vm727_vm0, 4294967295, %v2503_v1  ;;  %p191_p2 = scmp.lt.s32.totalorder %s190_s30, 337 }
  0x2c   : > { %v730_v3 = vsel %vm728_vm2, %v729_v2, 0 }
  0x2d   : > { %s3545_s30 = smov (!%p191_p2, %s190_s30), 337  ;;  %v732_v5 = vand.u32 %v2427_v4, %v730_v3 }
  0x2e   : > { %s1872_s4 = sshll.u32 %s3545_s30, 3 }
  0x2f   : > { %s2594_s7 = scalar_lea.vmem %s3537_s0, %s1872_s4  ;;  %2050 = vmatpush3.bf16.msra.mxu0 %v732_v5  ;;  %2392 = vmatpush3.bf16.msra.mxu1 %v732_v5  ;;  %s2859_s10 = scalar_lea.vmem %s3540_s3, %s1872_s4 }
  0x30   : > { %v203_v6 = vld [vmem:[%s2594_s7] sm:$0xff]  ;;  %v204_v7 = vld [vmem:[%s2594_s7 + $0x8] sm:$0xff]  ;;  %v289_v8 = vld [vmem:[%s2594_s7 + $0x2b0] sm:$0xff] }
  0x31   : > { %v372_v9 = vpack.c.bf16 %v204_v7, %v203_v6  ;;  %v290_v10 = vld [vmem:[%s2594_s7 + $0x2b8] sm:$0xff]  ;;  %v205_v12 = vld [vmem:[%s2594_s7 + $0x10] sm:$0xff]  ;;  %v291_v14 = vld [vmem:[%s2594_s7 + $0x2c0] sm:$0xff] }
  0x32   : > { %v415_v11 = vpack.c.bf16 %v290_v10, %v289_v8  ;;  %v206_v13 = vld [vmem:[%s2594_s7 + $0x18] sm:$0xff]  ;;  %v292_v15 = vld [vmem:[%s2594_s7 + $0x2c8] sm:$0xff]  ;;  %v207_v18 = vld [vmem:[%s2594_s7 + $0x20] sm:$0xff] }
  0x33   : > { %2052 = vmatmul.mubr.msk.bf16.vlgmr.msra.gmra.mxu0 %vm471_vm3, %v372_v9  ;;  %v373_v16 = vpack.c.bf16 %v206_v13, %v205_v12  ;;  %v416_v17 = vpack.c.bf16 %v292_v15, %v291_v14  ;;  %v208_v19 = vld [vmem:[%s2594_s7 + $0x28] sm:$0xff]  ;;  %v293_v20 = vld [vmem:[%s2594_s7 + $0x2d0] sm:$0xff]  ;;  %v294_v21 = vld [vmem:[%s2594_s7 + $0x2d8] sm:$0xff] }
  0x34   : > { %2224 = vmatmul.mubr.msk.bf16.vlgmr.msra.gmra.mxu1 %vm471_vm3, %v415_v11  ;;  %2055 = vmatprep.mubr.msk.bf16.mxu0 %vm2502_vm1, %v2501_v0  ;;  %v374_v22 = vpack.c.bf16 %v208_v19, %v207_v18  ;;  %v417_v23 = vpack.c.bf16 %v294_v21, %v293_v20  ;;  %v209_v24 = vld [vmem:[%s2594_s7 + $0x30] sm:$0xff]  ;;  %v210_v25 = vld [vmem:[%s2594_s7 + $0x38] sm:$0xff]  ;;  %v295_v26 = vld [vmem:[%s2594_s7 + $0x2e0] sm:$0xff] }
  0x35   : > { %2227 = vmatprep.mubr.msk.bf16.mxu1 %vm2502_vm1, %v2501_v0  ;;  %v296_v27 = vld [vmem:[%s2594_s7 + $0x2e8] sm:$0xff]  ;;  %v375_v28 = vpack.c.bf16 %v210_v25, %v209_v24  ;;  %v211_v30 = vld [vmem:[%s2594_s7 + $0x40] sm:$0xff]  ;;  %v297_v32 = vld [vmem:[%s2594_s7 + $0x2f0] sm:$0xff] }
  0x36   : > { %v418_v29 = vpack.c.bf16 %v296_v27, %v295_v26  ;;  %v212_v31 = vld [vmem:[%s2594_s7 + $0x48] sm:$0xff]  ;;  %v298_v33 = vld [vmem:[%s2594_s7 + $0x2f8] sm:$0xff]  ;;  %v213_v36 = vld [vmem:[%s2594_s7 + $0x50] sm:$0xff] }
  0x37   : > { %v376_v34 = vpack.c.bf16 %v212_v31, %v211_v30  ;;  %v419_v35 = vpack.c.bf16 %v298_v33, %v297_v32  ;;  %v214_v37 = vld [vmem:[%s2594_s7 + $0x58] sm:$0xff]  ;;  %v299_v38 = vld [vmem:[%s2594_s7 + $0x300] sm:$0xff]  ;;  %v300_v39 = vld [vmem:[%s2594_s7 + $0x308] sm:$0xff] }
  0x38   : > { %v377_v40 = vpack.c.bf16 %v214_v37, %v213_v36  ;;  %v420_v41 = vpack.c.bf16 %v300_v39, %v299_v38  ;;  %v215_v42 = vld [vmem:[%s2594_s7 + $0x60] sm:$0xff]  ;;  %v216_v43 = vld [vmem:[%s2594_s7 + $0x68] sm:$0xff]  ;;  %v301_v44 = vld [vmem:[%s2594_s7 + $0x310] sm:$0xff] }
  0x39   : > { %v302_v45 = vld [vmem:[%s2594_s7 + $0x318] sm:$0xff]  ;;  %v378_v46 = vpack.c.bf16 %v216_v43, %v215_v42  ;;  %v217_v48 = vld [vmem:[%s2594_s7 + $0x70] sm:$0xff]  ;;  %v303_v50 = vld [vmem:[%s2594_s7 + $0x320] sm:$0xff] }
  0x3a   : > { %v421_v47 = vpack.c.bf16 %v302_v45, %v301_v44  ;;  %v218_v49 = vld [vmem:[%s2594_s7 + $0x78] sm:$0xff]  ;;  %v304_v51 = vld [vmem:[%s2594_s7 + $0x328] sm:$0xff]  ;;  %v219_v54 = vld [vmem:[%s2594_s7 + $0x80] sm:$0xff] }
  0x3b   : > { %2056 = vmatmul.mubr.msk.bf16.gmra.mxu0 %vm471_vm3, %v373_v16  ;;  %v379_v52 = vpack.c.bf16 %v218_v49, %v217_v48  ;;  %v422_v53 = vpack.c.bf16 %v304_v51, %v303_v50  ;;  %v220_v55 = vld [vmem:[%s2594_s7 + $0x88] sm:$0xff]  ;;  %v305_v56 = vld [vmem:[%s2594_s7 + $0x330] sm:$0xff]  ;;  %v306_v57 = vld [vmem:[%s2594_s7 + $0x338] sm:$0xff] }
  0x3c   : > { %2228 = vmatmul.mubr.msk.bf16.gmra.mxu1 %vm471_vm3, %v416_v17  ;;  %2059 = vmatprep.mubr.msk.bf16.mxu0 %vm2502_vm1, %v2501_v0  ;;  %v380_v58 = vpack.c.bf16 %v220_v55, %v219_v54  ;;  %v423_v59 = vpack.c.bf16 %v306_v57, %v305_v56  ;;  %v221_v60 = vld [vmem:[%s2594_s7 + $0x90] sm:$0xff]  ;;  %v222_v61 = vld [vmem:[%s2594_s7 + $0x98] sm:$0xff]  ;;  %v307_v62 = vld [vmem:[%s2594_s7 + $0x340] sm:$0xff] }
  0x3d   : > { %2231 = vmatprep.mubr.msk.bf16.mxu1 %vm2502_vm1, %v2501_v0  ;;  %v308_v63 = vld [vmem:[%s2594_s7 + $0x348] sm:$0xff]  ;;  %v381_v1 = vpack.c.bf16 %v222_v61, %v221_v60  ;;  %v223_v3 = vld [vmem:[%s2594_s7 + $0xa0] sm:$0xff]  ;;  %v309_v5 = vld [vmem:[%s2594_s7 + $0x350] sm:$0xff] }
  0x3e   : > { %v424_v2 = vpack.c.bf16 %v308_v63, %v307_v62  ;;  %v224_v4 = vld [vmem:[%s2594_s7 + $0xa8] sm:$0xff]  ;;  %v310_v6 = vld [vmem:[%s2594_s7 + $0x358] sm:$0xff]  ;;  %v225_v9 = vld [vmem:[%s2594_s7 + $0xb0] sm:$0xff] }
  0x3f   : > { %v382_v7 = vpack.c.bf16 %v224_v4, %v223_v3  ;;  %v425_v8 = vpack.c.bf16 %v310_v6, %v309_v5  ;;  %v226_v10 = vld [vmem:[%s2594_s7 + $0xb8] sm:$0xff]  ;;  %v311_v11 = vld [vmem:[%s2594_s7 + $0x360] sm:$0xff]  ;;  %v312_v12 = vld [vmem:[%s2594_s7 + $0x368] sm:$0xff] }
  0x40   : > { %v383_v13 = vpack.c.bf16 %v226_v10, %v225_v9  ;;  %v426_v14 = vpack.c.bf16 %v312_v12, %v311_v11  ;;  %v227_v15 = vld [vmem:[%s2594_s7 + $0xc0] sm:$0xff]  ;;  %v228_v16 = vld [vmem:[%s2594_s7 + $0xc8] sm:$0xff]  ;;  %v313_v17 = vld [vmem:[%s2594_s7 + $0x370] sm:$0xff] }
  0x41   : > { %v314_v18 = vld [vmem:[%s2594_s7 + $0x378] sm:$0xff]  ;;  %v384_v19 = vpack.c.bf16 %v228_v16, %v227_v15  ;;  %v229_v21 = vld [vmem:[%s2594_s7 + $0xd0] sm:$0xff]  ;;  %v316_v24 = vld [vmem:[%s2594_s7 + $0x388] sm:$0xff] }
  0x42   : > { %v427_v20 = vpack.c.bf16 %v314_v18, %v313_v17  ;;  %v231_v27 = vld [vmem:[%s2594_s7 + $0xe0] sm:$0xff]  ;;  %v318_v30 = vld [vmem:[%s2594_s7 + $0x398] sm:$0xff]  ;;  %v233_v33 = vld [vmem:[%s2594_s7 + $0xf0] sm:$0xff] }
  0x43   : > { %2060 = vmatmul.mubr.msk.bf16.gmra.mxu0 %vm471_vm3, %v374_v22  ;;  %v230_v22 = vld [vmem:[%s2594_s7 + $0xd8] sm:$0xff]  ;;  %v320_v36 = vld [vmem:[%s2594_s7 + $0x3a8] sm:$0xff]  ;;  %v235_v39 = vld [vmem:[%s2594_s7 + $0x100] sm:$0xff] }
  0x44   : > { %2232 = vmatmul.mubr.msk.bf16.gmra.mxu1 %vm471_vm3, %v417_v23  ;;  %2063 = vmatprep.mubr.msk.bf16.mxu0 %vm2502_vm1, %v2501_v0  ;;  %v315_v23 = vld [vmem:[%s2594_s7 + $0x380] sm:$0xff]  ;;  %v385_v25 = vpack.c.bf16 %v230_v22, %v229_v21  ;;  %v322_v42 = vld [vmem:[%s2594_s7 + $0x3b8] sm:$0xff]  ;;  %v237_v45 = vld [vmem:[%s2594_s7 + $0x110] sm:$0xff] }
  0x45   : > { %2235 = vmatprep.mubr.msk.bf16.mxu1 %vm2502_vm1, %v2501_v0  ;;  %v428_v26 = vpack.c.bf16 %v316_v24, %v315_v23  ;;  %v324_v48 = vld [vmem:[%s2594_s7 + $0x3c8] sm:$0xff]  ;;  %v239_v51 = vld [vmem:[%s2594_s7 + $0x120] sm:$0xff]  ;;  %v326_v54 = vld [vmem:[%s2594_s7 + $0x3d8] sm:$0xff] }
  0x46   : > { %v241_v57 = vld [vmem:[%s2594_s7 + $0x130] sm:$0xff]  ;;  %v328_v60 = vld [vmem:[%s2594_s7 + $0x3e8] sm:$0xff]  ;;  %v243_v63 = vld [vmem:[%s2594_s7 + $0x140] sm:$0xff] }
  0x47   : > { %v330_v3 = vld [vmem:[%s2594_s7 + $0x3f8] sm:$0xff]  ;;  %v245_v6 = vld [vmem:[%s2594_s7 + $0x150] sm:$0xff]  ;;  %v332_v9 = vld [vmem:[%s2594_s7 + $0x408] sm:$0xff] }
  0x48   : > { %v247_v12 = vld [vmem:[%s2594_s7 + $0x160] sm:$0xff]  ;;  %v334_v15 = vld [vmem:[%s2594_s7 + $0x418] sm:$0xff]  ;;  %v249_v18 = vld [vmem:[%s2594_s7 + $0x170] sm:$0xff] }
  0x49   : > { %v336_v21 = vld [vmem:[%s2594_s7 + $0x428] sm:$0xff]  ;;  %v251_v24 = vld [vmem:[%s2594_s7 + $0x180] sm:$0xff] }
  0x4b   : > { %2064 = vmatmul.mubr.msk.bf16.gmra.mxu0 %vm471_vm3, %v375_v28  ;;  %v232_v28 = vld [vmem:[%s2594_s7 + $0xe8] sm:$0xff] }
  0x4c   : > { %2236 = vmatmul.mubr.msk.bf16.gmra.mxu1 %vm471_vm3, %v418_v29  ;;  %2067 = vmatprep.mubr.msk.bf16.mxu0 %vm2502_vm1, %v2501_v0  ;;  %v317_v29 = vld [vmem:[%s2594_s7 + $0x390] sm:$0xff]  ;;  %v386_v31 = vpack.c.bf16 %v232_v28, %v231_v27  ;;  %v338_v27 = vld [vmem:[%s2594_s7 + $0x438] sm:$0xff] }
  0x4d   : > { %2239 = vmatprep.mubr.msk.bf16.mxu1 %vm2502_vm1, %v2501_v0  ;;  %v429_v32 = vpack.c.bf16 %v318_v30, %v317_v29  ;;  %v2840_v30 = vld [vmem:[#allocation4] ss:$0 sm:$0xff] }
  0x53   : > { %2068 = vmatmul.mubr.msk.bf16.gmra.mxu0 %vm471_vm3, %v376_v34  ;;  %v234_v34 = vld [vmem:[%s2594_s7 + $0xf8] sm:$0xff] }
  0x54   : > { %2240 = vmatmul.mubr.msk.bf16.gmra.mxu1 %vm471_vm3, %v419_v35  ;;  %2071 = vmatprep.mubr.msk.bf16.mxu0 %vm2502_vm1, %v2501_v0  ;;  %v319_v35 = vld [vmem:[%s2594_s7 + $0x3a0] sm:$0xff]  ;;  %v387_v37 = vpack.c.bf16 %v234_v34, %v233_v33  ;;  %v253_v33 = vld [vmem:[%s2594_s7 + $0x190] sm:$0xff] }
  0x55   : > { %2243 = vmatprep.mubr.msk.bf16.mxu1 %vm2502_vm1, %v2501_v0  ;;  %v430_v38 = vpack.c.bf16 %v320_v36, %v319_v35  ;;  %v254_v36 = vld [vmem:[%s2594_s7 + $0x198] sm:$0xff] }
  0x5b   : > { %2072 = vmatmul.mubr.msk.bf16.gmra.mxu0 %vm471_vm3, %v377_v40  ;;  %v236_v40 = vld [vmem:[%s2594_s7 + $0x108] sm:$0xff] }
  0x5c   : > { %2244 = vmatmul.mubr.msk.bf16.gmra.mxu1 %vm471_vm3, %v420_v41  ;;  %2075 = vmatprep.mubr.msk.bf16.mxu0 %vm2502_vm1, %v2501_v0  ;;  %v321_v41 = vld [vmem:[%s2594_s7 + $0x3b0] sm:$0xff]  ;;  %v388_v43 = vpack.c.bf16 %v236_v40, %v235_v39 }
  0x5d   : > { %2247 = vmatprep.mubr.msk.bf16.mxu1 %vm2502_vm1, %v2501_v0  ;;  %v431_v44 = vpack.c.bf16 %v322_v42, %v321_v41 }
  0x63   : > { %2076 = vmatmul.mubr.msk.bf16.gmra.mxu0 %vm471_vm3, %v378_v46  ;;  %v238_v46 = vld [vmem:[%s2594_s7 + $0x118] sm:$0xff] }
  0x64   : > { %2248 = vmatmul.mubr.msk.bf16.gmra.mxu1 %vm471_vm3, %v421_v47  ;;  %2079 = vmatprep.mubr.msk.bf16.mxu0 %vm2502_vm1, %v2501_v0  ;;  %v323_v47 = vld [vmem:[%s2594_s7 + $0x3c0] sm:$0xff]  ;;  %v389_v49 = vpack.c.bf16 %v238_v46, %v237_v45 }
  0x65   : > { %2251 = vmatprep.mubr.msk.bf16.mxu1 %vm2502_vm1, %v2501_v0  ;;  %v432_v50 = vpack.c.bf16 %v324_v48, %v323_v47 }
  0x6b   : > { %2080 = vmatmul.mubr.msk.bf16.gmra.mxu0 %vm471_vm3, %v379_v52  ;;  %v240_v52 = vld [vmem:[%s2594_s7 + $0x128] sm:$0xff] }
  0x6c   : > { %2252 = vmatmul.mubr.msk.bf16.gmra.mxu1 %vm471_vm3, %v422_v53  ;;  %2083 = vmatprep.mubr.msk.bf16.mxu0 %vm2502_vm1, %v2501_v0  ;;  %v325_v53 = vld [vmem:[%s2594_s7 + $0x3d0] sm:$0xff]  ;;  %v390_v55 = vpack.c.bf16 %v240_v52, %v239_v51 }
  0x6d   : > { %2255 = vmatprep.mubr.msk.bf16.mxu1 %vm2502_vm1, %v2501_v0  ;;  %v433_v56 = vpack.c.bf16 %v326_v54, %v325_v53 }
  0x73   : > { %2084 = vmatmul.mubr.msk.bf16.gmra.mxu0 %vm471_vm3, %v380_v58  ;;  %v242_v58 = vld [vmem:[%s2594_s7 + $0x138] sm:$0xff] }
  0x74   : > { %2256 = vmatmul.mubr.msk.bf16.gmra.mxu1 %vm471_vm3, %v423_v59  ;;  %2087 = vmatprep.mubr.msk.bf16.mxu0 %vm2502_vm1, %v2501_v0  ;;  %v327_v59 = vld [vmem:[%s2594_s7 + $0x3e0] sm:$0xff]  ;;  %v391_v61 = vpack.c.bf16 %v242_v58, %v241_v57  ;;  %v256_v58 = vld [vmem:[%s2594_s7 + $0x1a8] sm:$0xff] }
  0x75   : > { %2259 = vmatprep.mubr.msk.bf16.mxu1 %vm2502_vm1, %v2501_v0  ;;  %v434_v62 = vpack.c.bf16 %v328_v60, %v327_v59  ;;  %v341_v59 = vld [vmem:[%s2594_s7 + $0x450] sm:$0xff]  ;;  %v342_v60 = vld [vmem:[%s2594_s7 + $0x458] sm:$0xff] }
  0x7b   : > { %2088 = vmatmul.mubr.msk.bf16.gmra.mxu0 %vm471_vm3, %v381_v1  ;;  %v244_v1 = vld [vmem:[%s2594_s7 + $0x148] sm:$0xff] }
  0x7c   : > { %2260 = vmatmul.mubr.msk.bf16.gmra.mxu1 %vm471_vm3, %v424_v2  ;;  %2091 = vmatprep.mubr.msk.bf16.mxu0 %vm2502_vm1, %v2501_v0  ;;  %v329_v2 = vld [vmem:[%s2594_s7 + $0x3f0] sm:$0xff]  ;;  %v392_v4 = vpack.c.bf16 %v244_v1, %v243_v63 }
  0x7d   : > { %2263 = vmatprep.mubr.msk.bf16.mxu1 %vm2502_vm1, %v2501_v0  ;;  %v435_v5 = vpack.c.bf16 %v330_v3, %v329_v2 }
  0x83   : > { %2092 = vmatmul.mubr.msk.bf16.gmra.mxu0 %vm471_vm3, %v382_v7  ;;  %v246_v7 = vld [vmem:[%s2594_s7 + $0x158] sm:$0xff] }
  0x84   : > { %2264 = vmatmul.mubr.msk.bf16.gmra.mxu1 %vm471_vm3, %v425_v8  ;;  %2095 = vmatprep.mubr.msk.bf16.mxu0 %vm2502_vm1, %v2501_v0  ;;  %v331_v8 = vld [vmem:[%s2594_s7 + $0x400] sm:$0xff]  ;;  %v393_v10 = vpack.c.bf16 %v246_v7, %v245_v6 }
  0x85   : > { %2267 = vmatprep.mubr.msk.bf16.mxu1 %vm2502_vm1, %v2501_v0  ;;  %v436_v11 = vpack.c.bf16 %v332_v9, %v331_v8 }
  0x8b   : > { %2096 = vmatmul.mubr.msk.bf16.gmra.mxu0 %vm471_vm3, %v383_v13  ;;  %v248_v13 = vld [vmem:[%s2594_s7 + $0x168] sm:$0xff] }
  0x8c   : > { %2268 = vmatmul.mubr.msk.bf16.gmra.mxu1 %vm471_vm3, %v426_v14  ;;  %2099 = vmatprep.mubr.msk.bf16.mxu0 %vm2502_vm1, %v2501_v0  ;;  %v333_v14 = vld [vmem:[%s2594_s7 + $0x410] sm:$0xff]  ;;  %v394_v16 = vpack.c.bf16 %v248_v13, %v247_v12 }
  0x8d   : > { %2271 = vmatprep.mubr.msk.bf16.mxu1 %vm2502_vm1, %v2501_v0  ;;  %v437_v17 = vpack.c.bf16 %v334_v15, %v333_v14  ;;  %v257_v14 = vld [vmem:[%s2594_s7 + $0x1b0] sm:$0xff] }
  0x93   : > { %2100 = vmatmul.mubr.msk.bf16.gmra.mxu0 %vm471_vm3, %v384_v19  ;;  %v250_v19 = vld [vmem:[%s2594_s7 + $0x178] sm:$0xff] }
  0x94   : > { %2272 = vmatmul.mubr.msk.bf16.gmra.mxu1 %vm471_vm3, %v427_v20  ;;  %2103 = vmatprep.mubr.msk.bf16.mxu0 %vm2502_vm1, %v2501_v0  ;;  %v335_v20 = vld [vmem:[%s2594_s7 + $0x420] sm:$0xff]  ;;  %v395_v22 = vpack.c.bf16 %v250_v19, %v249_v18  ;;  %v344_v19 = vld [vmem:[%s2594_s7 + $0x468] sm:$0xff] }
  0x95   : > { %2275 = vmatprep.mubr.msk.bf16.mxu1 %vm2502_vm1, %v2501_v0  ;;  %v438_v23 = vpack.c.bf16 %v336_v21, %v335_v20  ;;  %v343_v18 = vld [vmem:[%s2594_s7 + $0x460] sm:$0xff] }
  0x9b   : > { %2104 = vmatmul.mubr.msk.bf16.gmra.mxu0 %vm471_vm3, %v385_v25  ;;  %v252_v25 = vld [vmem:[%s2594_s7 + $0x188] sm:$0xff] }
  0x9c   : > { %2276 = vmatmul.mubr.msk.bf16.gmra.mxu1 %vm471_vm3, %v428_v26  ;;  %2107 = vmatprep.mubr.msk.bf16.mxu0 %vm2502_vm1, %v2501_v0  ;;  %v337_v26 = vld [vmem:[%s2594_s7 + $0x430] sm:$0xff]  ;;  %v396_v28 = vpack.c.bf16 %v252_v25, %v251_v24 }
  0x9d   : > { %2279 = vmatprep.mubr.msk.bf16.mxu1 %vm2502_vm1, %v2501_v0  ;;  %v439_v29 = vpack.c.bf16 %v338_v27, %v337_v26  ;;  %v442_v27 = vpack.c.bf16 %v344_v19, %v343_v18  ;;  %v263_v18 = vld [vmem:[%s2594_s7 + $0x1e0] sm:$0xff] }
  0xa3   : > { %2108 = vmatmul.mubr.msk.bf16.gmra.mxu0 %vm471_vm3, %v386_v31 }
  0xa4   : > { %2280 = vmatmul.mubr.msk.bf16.gmra.mxu1 %vm471_vm3, %v429_v32  ;;  %2111 = vmatprep.mubr.msk.bf16.mxu0 %vm2502_vm1, %v2501_v0 }
  0xa5   : > { %2283 = vmatprep.mubr.msk.bf16.mxu1 %vm2502_vm1, %v2501_v0 }
  0xab   : > { %2112 = vmatmul.mubr.msk.bf16.gmra.mxu0 %vm471_vm3, %v387_v37  ;;  %v339_v37 = vld [vmem:[%s2594_s7 + $0x440] sm:$0xff] }
  0xac   : > { %2284 = vmatmul.mubr.msk.bf16.gmra.mxu1 %vm471_vm3, %v430_v38  ;;  %2115 = vmatprep.mubr.msk.bf16.mxu0 %vm2502_vm1, %v2501_v0  ;;  %v340_v38 = vld [vmem:[%s2594_s7 + $0x448] sm:$0xff] }
  0xad   : > { %2287 = vmatprep.mubr.msk.bf16.mxu1 %vm2502_vm1, %v2501_v0  ;;  %v440_v46 = vpack.c.bf16 %v340_v38, %v339_v37  ;;  %v259_v37 = vld [vmem:[%s2594_s7 + $0x1c0] sm:$0xff] }
  0xb3   : > { %2116 = vmatmul.mubr.msk.bf16.gmra.mxu0 %vm471_vm3, %v388_v43 }
  0xb4   : > { %2288 = vmatmul.mubr.msk.bf16.gmra.mxu1 %vm471_vm3, %v431_v44  ;;  %2119 = vmatprep.mubr.msk.bf16.mxu0 %vm2502_vm1, %v2501_v0  ;;  %v397_v44 = vpack.c.bf16 %v254_v36, %v253_v33 }
  0xb5   : > { %2291 = vmatprep.mubr.msk.bf16.mxu1 %vm2502_vm1, %v2501_v0 }
  0xbb   : > { %2120 = vmatmul.mubr.msk.bf16.gmra.mxu0 %vm471_vm3, %v389_v49 }
  0xbc   : > { %2292 = vmatmul.mubr.msk.bf16.gmra.mxu1 %vm471_vm3, %v432_v50  ;;  %2123 = vmatprep.mubr.msk.bf16.mxu0 %vm2502_vm1, %v2501_v0 }
  0xbd   : > { %2295 = vmatprep.mubr.msk.bf16.mxu1 %vm2502_vm1, %v2501_v0 }
  0xc3   : > { %2124 = vmatmul.mubr.msk.bf16.gmra.mxu0 %vm471_vm3, %v390_v55  ;;  %v255_v55 = vld [vmem:[%s2594_s7 + $0x1a0] sm:$0xff] }
  0xc4   : > { %2296 = vmatmul.mubr.msk.bf16.gmra.mxu1 %vm471_vm3, %v433_v56  ;;  %2127 = vmatprep.mubr.msk.bf16.mxu0 %vm2502_vm1, %v2501_v0  ;;  %v398_v3 = vpack.c.bf16 %v256_v58, %v255_v55 }
  0xc5   : > { %2299 = vmatprep.mubr.msk.bf16.mxu1 %vm2502_vm1, %v2501_v0 }
  0xcb   : > { %2128 = vmatmul.mubr.msk.bf16.gmra.mxu0 %vm471_vm3, %v391_v61 }
  0xcc   : > { %2300 = vmatmul.mubr.msk.bf16.gmra.mxu1 %vm471_vm3, %v434_v62  ;;  %2131 = vmatprep.mubr.msk.bf16.mxu0 %vm2502_vm1, %v2501_v0 }
  0xcd   : > { %2303 = vmatprep.mubr.msk.bf16.mxu1 %vm2502_vm1, %v2501_v0 }
  0xd3   : > { %2132 = vmatmul.mubr.msk.bf16.gmra.mxu0 %vm471_vm3, %v392_v4 }
  0xd4   : > { %2304 = vmatmul.mubr.msk.bf16.gmra.mxu1 %vm471_vm3, %v435_v5  ;;  %2135 = vmatprep.mubr.msk.bf16.mxu0 %vm2502_vm1, %v2501_v0  ;;  %v441_v5 = vpack.c.bf16 %v342_v60, %v341_v59  ;;  %v261_v59 = vld [vmem:[%s2594_s7 + $0x1d0] sm:$0xff] }
  0xd5   : > { %2307 = vmatprep.mubr.msk.bf16.mxu1 %vm2502_vm1, %v2501_v0 }
  0xdb   : > { %2136 = vmatmul.mubr.msk.bf16.gmra.mxu0 %vm471_vm3, %v393_v10 }
  0xdc   : > { %2308 = vmatmul.mubr.msk.bf16.gmra.mxu1 %vm471_vm3, %v436_v11  ;;  %2139 = vmatprep.mubr.msk.bf16.mxu0 %vm2502_vm1, %v2501_v0 }
  0xdd   : > { %2311 = vmatprep.mubr.msk.bf16.mxu1 %vm2502_vm1, %v2501_v0 }
  0xe3   : > { %2140 = vmatmul.mubr.msk.bf16.gmra.mxu0 %vm471_vm3, %v394_v16 }
  0xe4   : > { %2312 = vmatmul.mubr.msk.bf16.gmra.mxu1 %vm471_vm3, %v437_v17  ;;  %2143 = vmatprep.mubr.msk.bf16.mxu0 %vm2502_vm1, %v2501_v0  ;;  %v258_v17 = vld [vmem:[%s2594_s7 + $0x1b8] sm:$0xff] }
  0xe5   : > { %2315 = vmatprep.mubr.msk.bf16.mxu1 %vm2502_vm1, %v2501_v0  ;;  %v399_v25 = vpack.c.bf16 %v258_v17, %v257_v14 }
  0xeb   : > { %2144 = vmatmul.mubr.msk.bf16.gmra.mxu0 %vm471_vm3, %v395_v22 }
  0xec   : > { %2316 = vmatmul.mubr.msk.bf16.gmra.mxu1 %vm471_vm3, %v438_v23  ;;  %2147 = vmatprep.mubr.msk.bf16.mxu0 %vm2502_vm1, %v2501_v0 }
  0xed   : > { %2319 = vmatprep.mubr.msk.bf16.mxu1 %vm2502_vm1, %v2501_v0 }
  0xf3   : > { %v768_v31 = vpop.f32.mrf.mxu0  ;;  %2148 = vmatmul.mubr.msk.bf16.gmra.mxu0 %vm471_vm3, %v396_v28 }
  0xf4   : > { %v1112_v32 = vpop.f32.mrf.mxu1  ;;  %2320 = vmatmul.mubr.msk.bf16.gmra.mxu1 %vm471_vm3, %v439_v29  ;;  %v769_v34 = vadd.f32 %v2840_v30, %v768_v31  ;;  %2151 = vmatprep.mubr.msk.bf16.mxu0 %vm2502_vm1, %v2501_v0 }
  0xf5   : > { %v1113_v35 = vadd.f32 %v2840_v30, %v1112_v32  ;;  %2323 = vmatprep.mubr.msk.bf16.mxu1 %vm2502_vm1, %v2501_v0  ;;  %v2053_v39 = vpop.f32.mrf.mxu0 }
  0xf6   : > { %v2225_v40 = vpop.f32.mrf.mxu1  ;;  %v1446_v41 = vmax.f32 %v769_v34, 0.0 }
  0xf7   : > { %v1532_v42 = vmax.f32 %v1113_v35, 0.0  ;;  %v771_v43 = vpop.f32.mrf.mxu0  ;;  %v260_v40 = vld [vmem:[%s2594_s7 + $0x1c8] sm:$0xff] }
  0xf8   : > { %v1115_v45 = vpop.f32.mrf.mxu1  ;;  %1616 = vst.msk [vmem:[%s2859_s10] sm:$0xff] %vm1615_vm4, %v1446_v41  ;;  %v772_v47 = vadd.f32 %v2840_v30, %v771_v43  ;;  %v345_v41 = vld [vmem:[%s2594_s7 + $0x470] sm:$0xff] }
  0xf9   : > { %1702 = vst.msk [vmem:[%s2859_s10 + $0x2b0] sm:$0xff] %vm1615_vm4, %v1532_v42  ;;  %v1116_v48 = vadd.f32 %v2840_v30, %v1115_v45  ;;  %v2054_v49 = vpop.f32.mrf.mxu0  ;;  %v346_v42 = vld [vmem:[%s2594_s7 + $0x478] sm:$0xff] }
  0xfa   : > { %v2226_v50 = vpop.f32.mrf.mxu1  ;;  %v1447_v51 = vmax.f32 %v772_v47, 0.0 }
  0xfb   : > { %v1533_v52 = vmax.f32 %v1116_v48, 0.0  ;;  %v776_v53 = vpop.f32.mrf.mxu0  ;;  %2152 = vmatmul.mubr.msk.bf16.gmra.mxu0 %vm471_vm3, %v397_v44  ;;  %v400_v48 = vpack.c.bf16 %v260_v40, %v259_v37  ;;  %v443_v50 = vpack.c.bf16 %v346_v42, %v345_v41  ;;  %v265_v41 = vld [vmem:[%s2594_s7 + $0x1f0] sm:$0xff] }
  0xfc   : > { %v1120_v54 = vpop.f32.mrf.mxu1  ;;  %2324 = vmatmul.mubr.msk.bf16.gmra.mxu1 %vm471_vm3, %v440_v46  ;;  %1617 = vst.msk [vmem:[%s2859_s10 + $0x8] sm:$0xff] %vm1615_vm4, %v1447_v51  ;;  %v777_v56 = vadd.f32 %v2840_v30, %v776_v53  ;;  %2155 = vmatprep.mubr.msk.bf16.mxu0 %vm2502_vm1, %v2501_v0 }
  0xfd   : > { %1703 = vst.msk [vmem:[%s2859_s10 + $0x2b8] sm:$0xff] %vm1615_vm4, %v1533_v52  ;;  %v1121_v57 = vadd.f32 %v2840_v30, %v1120_v54  ;;  %2327 = vmatprep.mubr.msk.bf16.mxu1 %vm2502_vm1, %v2501_v0  ;;  %v2057_v61 = vpop.f32.mrf.mxu0 }
  0xfe   : > { %v2229_v62 = vpop.f32.mrf.mxu1  ;;  %v1448_v63 = vmax.f32 %v777_v56, 0.0 }
  0xff   : > { %v1534_v1 = vmax.f32 %v1121_v57, 0.0  ;;  %v779_v2 = vpop.f32.mrf.mxu0  ;;  %v262_v62 = vld [vmem:[%s2594_s7 + $0x1d8] sm:$0xff] }
 0x100   : > { %v1123_v4 = vpop.f32.mrf.mxu1  ;;  %1618 = vst.msk [vmem:[%s2859_s10 + $0x10] sm:$0xff] %vm1615_vm4, %v1448_v63  ;;  %v780_v6 = vadd.f32 %v2840_v30, %v779_v2  ;;  %v347_v63 = vld [vmem:[%s2594_s7 + $0x480] sm:$0xff] }
 0x101   : > { %1704 = vst.msk [vmem:[%s2859_s10 + $0x2c0] sm:$0xff] %vm1615_vm4, %v1534_v1  ;;  %v1124_v7 = vadd.f32 %v2840_v30, %v1123_v4  ;;  %v2058_v8 = vpop.f32.mrf.mxu0  ;;  %v348_v1 = vld [vmem:[%s2594_s7 + $0x488] sm:$0xff] }
 0x102   : > { %v2230_v9 = vpop.f32.mrf.mxu1  ;;  %v1449_v10 = vmax.f32 %v780_v6, 0.0 }
 0x103   : > { %v1535_v11 = vmax.f32 %v1124_v7, 0.0  ;;  %v784_v12 = vpop.f32.mrf.mxu0  ;;  %2156 = vmatmul.mubr.msk.bf16.gmra.mxu0 %vm471_vm3, %v398_v3  ;;  %v401_v7 = vpack.c.bf16 %v262_v62, %v261_v59  ;;  %v444_v9 = vpack.c.bf16 %v348_v1, %v347_v63  ;;  %v267_v63 = vld [vmem:[%s2594_s7 + $0x200] sm:$0xff] }
 0x104   : > { %v1128_v13 = vpop.f32.mrf.mxu1  ;;  %2328 = vmatmul.mubr.msk.bf16.gmra.mxu1 %vm471_vm3, %v441_v5  ;;  %1619 = vst.msk [vmem:[%s2859_s10 + $0x18] sm:$0xff] %vm1615_vm4, %v1449_v10  ;;  %v785_v15 = vadd.f32 %v2840_v30, %v784_v12  ;;  %2159 = vmatprep.mubr.msk.bf16.mxu0 %vm2502_vm1, %v2501_v0 }
 0x105   : > { %1705 = vst.msk [vmem:[%s2859_s10 + $0x2c8] sm:$0xff] %vm1615_vm4, %v1535_v11  ;;  %v1129_v16 = vadd.f32 %v2840_v30, %v1128_v13  ;;  %2331 = vmatprep.mubr.msk.bf16.mxu1 %vm2502_vm1, %v2501_v0  ;;  %v2061_v20 = vpop.f32.mrf.mxu0 }
 0x106   : > { %v2233_v21 = vpop.f32.mrf.mxu1  ;;  %v1450_v22 = vmax.f32 %v785_v15, 0.0 }
 0x107   : > { %v1536_v23 = vmax.f32 %v1129_v16, 0.0  ;;  %v787_v24 = vpop.f32.mrf.mxu0  ;;  %v264_v21 = vld [vmem:[%s2594_s7 + $0x1e8] sm:$0xff] }
 0x108   : > { %v1131_v26 = vpop.f32.mrf.mxu1  ;;  %1620 = vst.msk [vmem:[%s2859_s10 + $0x20] sm:$0xff] %vm1615_vm4, %v1450_v22  ;;  %v788_v28 = vadd.f32 %v2840_v30, %v787_v24  ;;  %v349_v22 = vld [vmem:[%s2594_s7 + $0x490] sm:$0xff] }
 0x109   : > { %1706 = vst.msk [vmem:[%s2859_s10 + $0x2d0] sm:$0xff] %vm1615_vm4, %v1536_v23  ;;  %v1132_v29 = vadd.f32 %v2840_v30, %v1131_v26  ;;  %v2062_v31 = vpop.f32.mrf.mxu0  ;;  %v350_v23 = vld [vmem:[%s2594_s7 + $0x498] sm:$0xff] }
 0x10a   : > { %v2234_v32 = vpop.f32.mrf.mxu1  ;;  %v1451_v33 = vmax.f32 %v788_v28, 0.0 }
 0x10b   : > { %v1537_v34 = vmax.f32 %v1132_v29, 0.0  ;;  %v792_v35 = vpop.f32.mrf.mxu0  ;;  %2160 = vmatmul.mubr.msk.bf16.gmra.mxu0 %vm471_vm3, %v399_v25  ;;  %v402_v29 = vpack.c.bf16 %v264_v21, %v263_v18  ;;  %v445_v32 = vpack.c.bf16 %v350_v23, %v349_v22  ;;  %v269_v22 = vld [vmem:[%s2594_s7 + $0x210] sm:$0xff] }
 0x10c   : > { %v1136_v36 = vpop.f32.mrf.mxu1  ;;  %2332 = vmatmul.mubr.msk.bf16.gmra.mxu1 %vm471_vm3, %v442_v27  ;;  %1621 = vst.msk [vmem:[%s2859_s10 + $0x28] sm:$0xff] %vm1615_vm4, %v1451_v33  ;;  %v793_v38 = vadd.f32 %v2840_v30, %v792_v35  ;;  %2163 = vmatprep.mubr.msk.bf16.mxu0 %vm2502_vm1, %v2501_v0 }
 0x10d   : > { %1707 = vst.msk [vmem:[%s2859_s10 + $0x2d8] sm:$0xff] %vm1615_vm4, %v1537_v34  ;;  %v1137_v39 = vadd.f32 %v2840_v30, %v1136_v36  ;;  %2335 = vmatprep.mubr.msk.bf16.mxu1 %vm2502_vm1, %v2501_v0  ;;  %v2065_v43 = vpop.f32.mrf.mxu0 }
 0x10e   : > { %v2237_v44 = vpop.f32.mrf.mxu1  ;;  %v1452_v45 = vmax.f32 %v793_v38, 0.0 }
 0x10f   : > { %v1538_v46 = vmax.f32 %v1137_v39, 0.0  ;;  %v795_v47 = vpop.f32.mrf.mxu0  ;;  %v266_v44 = vld [vmem:[%s2594_s7 + $0x1f8] sm:$0xff] }
 0x110   : > { %v1139_v49 = vpop.f32.mrf.mxu1  ;;  %1622 = vst.msk [vmem:[%s2859_s10 + $0x30] sm:$0xff] %vm1615_vm4, %v1452_v45  ;;  %v796_v51 = vadd.f32 %v2840_v30, %v795_v47  ;;  %v351_v45 = vld [vmem:[%s2594_s7 + $0x4a0] sm:$0xff] }
 0x111   : > { %1708 = vst.msk [vmem:[%s2859_s10 + $0x2e0] sm:$0xff] %vm1615_vm4, %v1538_v46  ;;  %v1140_v52 = vadd.f32 %v2840_v30, %v1139_v49  ;;  %v2066_v53 = vpop.f32.mrf.mxu0  ;;  %v352_v46 = vld [vmem:[%s2594_s7 + $0x4a8] sm:$0xff] }
 0x112   : > { %v2238_v54 = vpop.f32.mrf.mxu1  ;;  %v1453_v55 = vmax.f32 %v796_v51, 0.0 }
 0x113   : > { %v1539_v56 = vmax.f32 %v1140_v52, 0.0  ;;  %v800_v57 = vpop.f32.mrf.mxu0  ;;  %2164 = vmatmul.mubr.msk.bf16.gmra.mxu0 %vm471_vm3, %v400_v48  ;;  %v403_v52 = vpack.c.bf16 %v266_v44, %v265_v41  ;;  %v446_v54 = vpack.c.bf16 %v352_v46, %v351_v45  ;;  %v271_v45 = vld [vmem:[%s2594_s7 + $0x220] sm:$0xff] }
 0x114   : > { %v1144_v58 = vpop.f32.mrf.mxu1  ;;  %2336 = vmatmul.mubr.msk.bf16.gmra.mxu1 %vm471_vm3, %v443_v50  ;;  %1623 = vst.msk [vmem:[%s2859_s10 + $0x38] sm:$0xff] %vm1615_vm4, %v1453_v55  ;;  %v801_v60 = vadd.f32 %v2840_v30, %v800_v57  ;;  %2167 = vmatprep.mubr.msk.bf16.mxu0 %vm2502_vm1, %v2501_v0 }
 0x115   : > { %1709 = vst.msk [vmem:[%s2859_s10 + $0x2e8] sm:$0xff] %vm1615_vm4, %v1539_v56  ;;  %v1145_v61 = vadd.f32 %v2840_v30, %v1144_v58  ;;  %2339 = vmatprep.mubr.msk.bf16.mxu1 %vm2502_vm1, %v2501_v0  ;;  %v2069_v2 = vpop.f32.mrf.mxu0 }
 0x116   : > { %v2241_v3 = vpop.f32.mrf.mxu1  ;;  %v1454_v4 = vmax.f32 %v801_v60, 0.0 }
 0x117   : > { %v1540_v5 = vmax.f32 %v1145_v61, 0.0  ;;  %v803_v6 = vpop.f32.mrf.mxu0  ;;  %v268_v3 = vld [vmem:[%s2594_s7 + $0x208] sm:$0xff] }
 0x118   : > { %v1147_v8 = vpop.f32.mrf.mxu1  ;;  %1624 = vst.msk [vmem:[%s2859_s10 + $0x40] sm:$0xff] %vm1615_vm4, %v1454_v4  ;;  %v804_v10 = vadd.f32 %v2840_v30, %v803_v6  ;;  %v353_v4 = vld [vmem:[%s2594_s7 + $0x4b0] sm:$0xff] }
 0x119   : > { %1710 = vst.msk [vmem:[%s2859_s10 + $0x2f0] sm:$0xff] %vm1615_vm4, %v1540_v5  ;;  %v1148_v11 = vadd.f32 %v2840_v30, %v1147_v8  ;;  %v2070_v12 = vpop.f32.mrf.mxu0  ;;  %v354_v5 = vld [vmem:[%s2594_s7 + $0x4b8] sm:$0xff] }
 0x11a   : > { %v2242_v13 = vpop.f32.mrf.mxu1  ;;  %v1455_v14 = vmax.f32 %v804_v10, 0.0 }
 0x11b   : > { %v1541_v15 = vmax.f32 %v1148_v11, 0.0  ;;  %v808_v16 = vpop.f32.mrf.mxu0  ;;  %2168 = vmatmul.mubr.msk.bf16.gmra.mxu0 %vm471_vm3, %v401_v7  ;;  %v404_v11 = vpack.c.bf16 %v268_v3, %v267_v63  ;;  %v447_v13 = vpack.c.bf16 %v354_v5, %v353_v4  ;;  %v273_v4 = vld [vmem:[%s2594_s7 + $0x230] sm:$0xff] }
 0x11c   : > { %v1152_v17 = vpop.f32.mrf.mxu1  ;;  %2340 = vmatmul.mubr.msk.bf16.gmra.mxu1 %vm471_vm3, %v444_v9  ;;  %1625 = vst.msk [vmem:[%s2859_s10 + $0x48] sm:$0xff] %vm1615_vm4, %v1455_v14  ;;  %v809_v19 = vadd.f32 %v2840_v30, %v808_v16  ;;  %2171 = vmatprep.mubr.msk.bf16.mxu0 %vm2502_vm1, %v2501_v0 }
 0x11d   : > { %1711 = vst.msk [vmem:[%s2859_s10 + $0x2f8] sm:$0xff] %vm1615_vm4, %v1541_v15  ;;  %v1153_v20 = vadd.f32 %v2840_v30, %v1152_v17  ;;  %2343 = vmatprep.mubr.msk.bf16.mxu1 %vm2502_vm1, %v2501_v0  ;;  %v2073_v24 = vpop.f32.mrf.mxu0 }
 0x11e   : > { %v2245_v25 = vpop.f32.mrf.mxu1  ;;  %v1456_v26 = vmax.f32 %v809_v19, 0.0 }
 0x11f   : > { %v1542_v27 = vmax.f32 %v1153_v20, 0.0  ;;  %v811_v28 = vpop.f32.mrf.mxu0  ;;  %v270_v25 = vld [vmem:[%s2594_s7 + $0x218] sm:$0xff] }
 0x120   : > { %v1155_v31 = vpop.f32.mrf.mxu1  ;;  %1626 = vst.msk [vmem:[%s2859_s10 + $0x50] sm:$0xff] %vm1615_vm4, %v1456_v26  ;;  %v812_v33 = vadd.f32 %v2840_v30, %v811_v28  ;;  %v355_v26 = vld [vmem:[%s2594_s7 + $0x4c0] sm:$0xff] }
 0x121   : > { %1712 = vst.msk [vmem:[%s2859_s10 + $0x300] sm:$0xff] %vm1615_vm4, %v1542_v27  ;;  %v1156_v34 = vadd.f32 %v2840_v30, %v1155_v31  ;;  %v2074_v35 = vpop.f32.mrf.mxu0  ;;  %v356_v27 = vld [vmem:[%s2594_s7 + $0x4c8] sm:$0xff] }
 0x122   : > { %v2246_v36 = vpop.f32.mrf.mxu1  ;;  %v1457_v37 = vmax.f32 %v812_v33, 0.0 }
 0x123   : > { %v1543_v38 = vmax.f32 %v1156_v34, 0.0  ;;  %v816_v39 = vpop.f32.mrf.mxu0  ;;  %2172 = vmatmul.mubr.msk.bf16.gmra.mxu0 %vm471_vm3, %v402_v29  ;;  %v405_v34 = vpack.c.bf16 %v270_v25, %v269_v22  ;;  %v448_v36 = vpack.c.bf16 %v356_v27, %v355_v26  ;;  %v275_v26 = vld [vmem:[%s2594_s7 + $0x240] sm:$0xff] }
 0x124   : > { %v1160_v40 = vpop.f32.mrf.mxu1  ;;  %2344 = vmatmul.mubr.msk.bf16.gmra.mxu1 %vm471_vm3, %v445_v32  ;;  %1627 = vst.msk [vmem:[%s2859_s10 + $0x58] sm:$0xff] %vm1615_vm4, %v1457_v37  ;;  %v817_v42 = vadd.f32 %v2840_v30, %v816_v39  ;;  %2175 = vmatprep.mubr.msk.bf16.mxu0 %vm2502_vm1, %v2501_v0 }
 0x125   : > { %1713 = vst.msk [vmem:[%s2859_s10 + $0x308] sm:$0xff] %vm1615_vm4, %v1543_v38  ;;  %v1161_v43 = vadd.f32 %v2840_v30, %v1160_v40  ;;  %2347 = vmatprep.mubr.msk.bf16.mxu1 %vm2502_vm1, %v2501_v0  ;;  %v2077_v47 = vpop.f32.mrf.mxu0 }
 0x126   : > { %v2249_v48 = vpop.f32.mrf.mxu1  ;;  %v1458_v49 = vmax.f32 %v817_v42, 0.0 }
 0x127   : > { %v1544_v50 = vmax.f32 %v1161_v43, 0.0  ;;  %v819_v51 = vpop.f32.mrf.mxu0  ;;  %v272_v48 = vld [vmem:[%s2594_s7 + $0x228] sm:$0xff] }
 0x128   : > { %v1163_v53 = vpop.f32.mrf.mxu1  ;;  %1628 = vst.msk [vmem:[%s2859_s10 + $0x60] sm:$0xff] %vm1615_vm4, %v1458_v49  ;;  %v820_v55 = vadd.f32 %v2840_v30, %v819_v51  ;;  %v357_v49 = vld [vmem:[%s2594_s7 + $0x4d0] sm:$0xff] }
 0x129   : > { %1714 = vst.msk [vmem:[%s2859_s10 + $0x310] sm:$0xff] %vm1615_vm4, %v1544_v50  ;;  %v1164_v56 = vadd.f32 %v2840_v30, %v1163_v53  ;;  %v2078_v57 = vpop.f32.mrf.mxu0  ;;  %v358_v50 = vld [vmem:[%s2594_s7 + $0x4d8] sm:$0xff] }
 0x12a   : > { %v2250_v58 = vpop.f32.mrf.mxu1  ;;  %v1459_v59 = vmax.f32 %v820_v55, 0.0 }
 0x12b   : > { %v1545_v60 = vmax.f32 %v1164_v56, 0.0  ;;  %v824_v61 = vpop.f32.mrf.mxu0  ;;  %2176 = vmatmul.mubr.msk.bf16.gmra.mxu0 %vm471_vm3, %v403_v52  ;;  %v406_v56 = vpack.c.bf16 %v272_v48, %v271_v45  ;;  %v449_v58 = vpack.c.bf16 %v358_v50, %v357_v49  ;;  %v277_v49 = vld [vmem:[%s2594_s7 + $0x250] sm:$0xff] }
 0x12c   : > { %v1168_v62 = vpop.f32.mrf.mxu1  ;;  %2348 = vmatmul.mubr.msk.bf16.gmra.mxu1 %vm471_vm3, %v446_v54  ;;  %1629 = vst.msk [vmem:[%s2859_s10 + $0x68] sm:$0xff] %vm1615_vm4, %v1459_v59  ;;  %v825_v1 = vadd.f32 %v2840_v30, %v824_v61  ;;  %2179 = vmatprep.mubr.msk.bf16.mxu0 %vm2502_vm1, %v2501_v0 }
 0x12d   : > { %1715 = vst.msk [vmem:[%s2859_s10 + $0x318] sm:$0xff] %vm1615_vm4, %v1545_v60  ;;  %v1169_v2 = vadd.f32 %v2840_v30, %v1168_v62  ;;  %2351 = vmatprep.mubr.msk.bf16.mxu1 %vm2502_vm1, %v2501_v0  ;;  %v2081_v6 = vpop.f32.mrf.mxu0 }
 0x12e   : > { %v2253_v7 = vpop.f32.mrf.mxu1  ;;  %v1460_v8 = vmax.f32 %v825_v1, 0.0 }
 0x12f   : > { %v1546_v9 = vmax.f32 %v1169_v2, 0.0  ;;  %v827_v10 = vpop.f32.mrf.mxu0  ;;  %v274_v7 = vld [vmem:[%s2594_s7 + $0x238] sm:$0xff] }
 0x130   : > { %v1171_v12 = vpop.f32.mrf.mxu1  ;;  %1630 = vst.msk [vmem:[%s2859_s10 + $0x70] sm:$0xff] %vm1615_vm4, %v1460_v8  ;;  %v828_v14 = vadd.f32 %v2840_v30, %v827_v10  ;;  %v359_v8 = vld [vmem:[%s2594_s7 + $0x4e0] sm:$0xff] }
 0x131   : > { %1716 = vst.msk [vmem:[%s2859_s10 + $0x320] sm:$0xff] %vm1615_vm4, %v1546_v9  ;;  %v1172_v15 = vadd.f32 %v2840_v30, %v1171_v12  ;;  %v2082_v16 = vpop.f32.mrf.mxu0  ;;  %v360_v9 = vld [vmem:[%s2594_s7 + $0x4e8] sm:$0xff] }
 0x132   : > { %v2254_v17 = vpop.f32.mrf.mxu1  ;;  %v1461_v18 = vmax.f32 %v828_v14, 0.0 }
 0x133   : > { %v1547_v19 = vmax.f32 %v1172_v15, 0.0  ;;  %v832_v20 = vpop.f32.mrf.mxu0  ;;  %2180 = vmatmul.mubr.msk.bf16.gmra.mxu0 %vm471_vm3, %v404_v11  ;;  %v407_v15 = vpack.c.bf16 %v274_v7, %v273_v4  ;;  %v450_v17 = vpack.c.bf16 %v360_v9, %v359_v8  ;;  %v279_v8 = vld [vmem:[%s2594_s7 + $0x260] sm:$0xff] }
 0x134   : > { %v1176_v21 = vpop.f32.mrf.mxu1  ;;  %2352 = vmatmul.mubr.msk.bf16.gmra.mxu1 %vm471_vm3, %v447_v13  ;;  %1631 = vst.msk [vmem:[%s2859_s10 + $0x78] sm:$0xff] %vm1615_vm4, %v1461_v18  ;;  %v833_v23 = vadd.f32 %v2840_v30, %v832_v20  ;;  %2183 = vmatprep.mubr.msk.bf16.mxu0 %vm2502_vm1, %v2501_v0 }
 0x135   : > { %1717 = vst.msk [vmem:[%s2859_s10 + $0x328] sm:$0xff] %vm1615_vm4, %v1547_v19  ;;  %v1177_v24 = vadd.f32 %v2840_v30, %v1176_v21  ;;  %2355 = vmatprep.mubr.msk.bf16.mxu1 %vm2502_vm1, %v2501_v0  ;;  %v2085_v28 = vpop.f32.mrf.mxu0 }
 0x136   : > { %v2257_v29 = vpop.f32.mrf.mxu1  ;;  %v1462_v31 = vmax.f32 %v833_v23, 0.0 }
 0x137   : > { %v1548_v32 = vmax.f32 %v1177_v24, 0.0  ;;  %v835_v33 = vpop.f32.mrf.mxu0  ;;  %v276_v29 = vld [vmem:[%s2594_s7 + $0x248] sm:$0xff] }
 0x138   : > { %v1179_v35 = vpop.f32.mrf.mxu1  ;;  %1632 = vst.msk [vmem:[%s2859_s10 + $0x80] sm:$0xff] %vm1615_vm4, %v1462_v31  ;;  %v836_v37 = vadd.f32 %v2840_v30, %v835_v33  ;;  %v361_v31 = vld [vmem:[%s2594_s7 + $0x4f0] sm:$0xff] }
 0x139   : > { %1718 = vst.msk [vmem:[%s2859_s10 + $0x330] sm:$0xff] %vm1615_vm4, %v1548_v32  ;;  %v1180_v38 = vadd.f32 %v2840_v30, %v1179_v35  ;;  %v2086_v39 = vpop.f32.mrf.mxu0  ;;  %v362_v32 = vld [vmem:[%s2594_s7 + $0x4f8] sm:$0xff] }
 0x13a   : > { %v2258_v40 = vpop.f32.mrf.mxu1  ;;  %v1463_v41 = vmax.f32 %v836_v37, 0.0 }
 0x13b   : > { %v1549_v42 = vmax.f32 %v1180_v38, 0.0  ;;  %v840_v43 = vpop.f32.mrf.mxu0  ;;  %2184 = vmatmul.mubr.msk.bf16.gmra.mxu0 %vm471_vm3, %v405_v34  ;;  %v408_v38 = vpack.c.bf16 %v276_v29, %v275_v26  ;;  %v451_v40 = vpack.c.bf16 %v362_v32, %v361_v31  ;;  %v281_v31 = vld [vmem:[%s2594_s7 + $0x270] sm:$0xff] }
 0x13c   : > { %v1184_v44 = vpop.f32.mrf.mxu1  ;;  %2356 = vmatmul.mubr.msk.bf16.gmra.mxu1 %vm471_vm3, %v448_v36  ;;  %1633 = vst.msk [vmem:[%s2859_s10 + $0x88] sm:$0xff] %vm1615_vm4, %v1463_v41  ;;  %v841_v46 = vadd.f32 %v2840_v30, %v840_v43  ;;  %2187 = vmatprep.mubr.msk.bf16.mxu0 %vm2502_vm1, %v2501_v0 }
 0x13d   : > { %1719 = vst.msk [vmem:[%s2859_s10 + $0x338] sm:$0xff] %vm1615_vm4, %v1549_v42  ;;  %v1185_v47 = vadd.f32 %v2840_v30, %v1184_v44  ;;  %2359 = vmatprep.mubr.msk.bf16.mxu1 %vm2502_vm1, %v2501_v0  ;;  %v2089_v51 = vpop.f32.mrf.mxu0 }
 0x13e   : > { %v2261_v52 = vpop.f32.mrf.mxu1  ;;  %v1464_v53 = vmax.f32 %v841_v46, 0.0 }
 0x13f   : > { %v1550_v54 = vmax.f32 %v1185_v47, 0.0  ;;  %v843_v55 = vpop.f32.mrf.mxu0  ;;  %v278_v52 = vld [vmem:[%s2594_s7 + $0x258] sm:$0xff] }
 0x140   : > { %v1187_v57 = vpop.f32.mrf.mxu1  ;;  %1634 = vst.msk [vmem:[%s2859_s10 + $0x90] sm:$0xff] %vm1615_vm4, %v1464_v53  ;;  %v844_v59 = vadd.f32 %v2840_v30, %v843_v55  ;;  %v363_v53 = vld [vmem:[%s2594_s7 + $0x500] sm:$0xff] }
 0x141   : > { %1720 = vst.msk [vmem:[%s2859_s10 + $0x340] sm:$0xff] %vm1615_vm4, %v1550_v54  ;;  %v1188_v60 = vadd.f32 %v2840_v30, %v1187_v57  ;;  %v2090_v61 = vpop.f32.mrf.mxu0  ;;  %v364_v54 = vld [vmem:[%s2594_s7 + $0x508] sm:$0xff] }
 0x142   : > { %v2262_v62 = vpop.f32.mrf.mxu1  ;;  %v1465_v63 = vmax.f32 %v844_v59, 0.0 }
 0x143   : > { %v1551_v1 = vmax.f32 %v1188_v60, 0.0  ;;  %v848_v2 = vpop.f32.mrf.mxu0  ;;  %2188 = vmatmul.mubr.msk.bf16.gmra.mxu0 %vm471_vm3, %v406_v56  ;;  %v409_v60 = vpack.c.bf16 %v278_v52, %v277_v49  ;;  %v452_v62 = vpack.c.bf16 %v364_v54, %v363_v53  ;;  %v283_v53 = vld [vmem:[%s2594_s7 + $0x280] sm:$0xff] }
 0x144   : > { %v1192_v3 = vpop.f32.mrf.mxu1  ;;  %2360 = vmatmul.mubr.msk.bf16.gmra.mxu1 %vm471_vm3, %v449_v58  ;;  %1635 = vst.msk [vmem:[%s2859_s10 + $0x98] sm:$0xff] %vm1615_vm4, %v1465_v63  ;;  %v849_v5 = vadd.f32 %v2840_v30, %v848_v2  ;;  %2191 = vmatprep.mubr.msk.bf16.mxu0 %vm2502_vm1, %v2501_v0 }
 0x145   : > { %1721 = vst.msk [vmem:[%s2859_s10 + $0x348] sm:$0xff] %vm1615_vm4, %v1551_v1  ;;  %v1193_v6 = vadd.f32 %v2840_v30, %v1192_v3  ;;  %2363 = vmatprep.mubr.msk.bf16.mxu1 %vm2502_vm1, %v2501_v0  ;;  %v2093_v10 = vpop.f32.mrf.mxu0 }
 0x146   : > { %v2265_v11 = vpop.f32.mrf.mxu1  ;;  %v1466_v12 = vmax.f32 %v849_v5, 0.0 }
 0x147   : > { %v1552_v13 = vmax.f32 %v1193_v6, 0.0  ;;  %v851_v14 = vpop.f32.mrf.mxu0  ;;  %v280_v11 = vld [vmem:[%s2594_s7 + $0x268] sm:$0xff] }
 0x148   : > { %v1195_v16 = vpop.f32.mrf.mxu1  ;;  %1636 = vst.msk [vmem:[%s2859_s10 + $0xa0] sm:$0xff] %vm1615_vm4, %v1466_v12  ;;  %v852_v18 = vadd.f32 %v2840_v30, %v851_v14  ;;  %v365_v12 = vld [vmem:[%s2594_s7 + $0x510] sm:$0xff] }
 0x149   : > { %1722 = vst.msk [vmem:[%s2859_s10 + $0x350] sm:$0xff] %vm1615_vm4, %v1552_v13  ;;  %v1196_v19 = vadd.f32 %v2840_v30, %v1195_v16  ;;  %v2094_v20 = vpop.f32.mrf.mxu0  ;;  %v366_v13 = vld [vmem:[%s2594_s7 + $0x518] sm:$0xff] }
 0x14a   : > { %v2266_v21 = vpop.f32.mrf.mxu1  ;;  %v1467_v22 = vmax.f32 %v852_v18, 0.0 }
 0x14b   : > { %v1553_v23 = vmax.f32 %v1196_v19, 0.0  ;;  %v856_v24 = vpop.f32.mrf.mxu0  ;;  %2192 = vmatmul.mubr.msk.bf16.gmra.mxu0 %vm471_vm3, %v407_v15  ;;  %v410_v19 = vpack.c.bf16 %v280_v11, %v279_v8  ;;  %v453_v21 = vpack.c.bf16 %v366_v13, %v365_v12 }
 0x14c   : > { %v1200_v25 = vpop.f32.mrf.mxu1  ;;  %2364 = vmatmul.mubr.msk.bf16.gmra.mxu1 %vm471_vm3, %v450_v17  ;;  %1637 = vst.msk [vmem:[%s2859_s10 + $0xa8] sm:$0xff] %vm1615_vm4, %v1467_v22  ;;  %v857_v27 = vadd.f32 %v2840_v30, %v856_v24  ;;  %2195 = vmatprep.mubr.msk.bf16.mxu0 %vm2502_vm1, %v2501_v0 }
 0x14d   : > { %1723 = vst.msk [vmem:[%s2859_s10 + $0x358] sm:$0xff] %vm1615_vm4, %v1553_v23  ;;  %v1201_v28 = vadd.f32 %v2840_v30, %v1200_v25  ;;  %2367 = vmatprep.mubr.msk.bf16.mxu1 %vm2502_vm1, %v2501_v0  ;;  %v2097_v33 = vpop.f32.mrf.mxu0 }
 0x14e   : > { %v2269_v34 = vpop.f32.mrf.mxu1  ;;  %v1468_v35 = vmax.f32 %v857_v27, 0.0 }
 0x14f   : > { %v1554_v36 = vmax.f32 %v1201_v28, 0.0  ;;  %v859_v37 = vpop.f32.mrf.mxu0  ;;  %v282_v34 = vld [vmem:[%s2594_s7 + $0x278] sm:$0xff] }
 0x150   : > { %v1203_v39 = vpop.f32.mrf.mxu1  ;;  %1638 = vst.msk [vmem:[%s2859_s10 + $0xb0] sm:$0xff] %vm1615_vm4, %v1468_v35  ;;  %v860_v41 = vadd.f32 %v2840_v30, %v859_v37  ;;  %v367_v35 = vld [vmem:[%s2594_s7 + $0x520] sm:$0xff] }
 0x151   : > { %1724 = vst.msk [vmem:[%s2859_s10 + $0x360] sm:$0xff] %vm1615_vm4, %v1554_v36  ;;  %v1204_v42 = vadd.f32 %v2840_v30, %v1203_v39  ;;  %v2098_v43 = vpop.f32.mrf.mxu0  ;;  %v368_v36 = vld [vmem:[%s2594_s7 + $0x528] sm:$0xff] }
 0x152   : > { %v2270_v44 = vpop.f32.mrf.mxu1  ;;  %v1469_v45 = vmax.f32 %v860_v41, 0.0 }
 0x153   : > { %v1555_v46 = vmax.f32 %v1204_v42, 0.0  ;;  %v864_v47 = vpop.f32.mrf.mxu0  ;;  %2196 = vmatmul.mubr.msk.bf16.gmra.mxu0 %vm471_vm3, %v408_v38  ;;  %v411_v42 = vpack.c.bf16 %v282_v34, %v281_v31  ;;  %v454_v44 = vpack.c.bf16 %v368_v36, %v367_v35  ;;  %v3222_v34 = vld [vmem:[#allocation4] ss:$0 sm:$0xff]  ;;  %v287_v36 = vld [vmem:[%s2594_s7 + $0x2a0] sm:$0xff] }
 0x154   : > { %v1208_v48 = vpop.f32.mrf.mxu1  ;;  %2368 = vmatmul.mubr.msk.bf16.gmra.mxu1 %vm471_vm3, %v451_v40  ;;  %1639 = vst.msk [vmem:[%s2859_s10 + $0xb8] sm:$0xff] %vm1615_vm4, %v1469_v45  ;;  %v865_v50 = vadd.f32 %v2840_v30, %v864_v47  ;;  %2199 = vmatprep.mubr.msk.bf16.mxu0 %vm2502_vm1, %v2501_v0 }
 0x155   : > { %1725 = vst.msk [vmem:[%s2859_s10 + $0x368] sm:$0xff] %vm1615_vm4, %v1555_v46  ;;  %v1209_v51 = vadd.f32 %v2840_v30, %v1208_v48  ;;  %2371 = vmatprep.mubr.msk.bf16.mxu1 %vm2502_vm1, %v2501_v0  ;;  %v2101_v55 = vpop.f32.mrf.mxu0 }
 0x156   : > { %v2273_v56 = vpop.f32.mrf.mxu1  ;;  %v1470_v57 = vmax.f32 %v865_v50, 0.0 }
 0x157   : > { %v1556_v58 = vmax.f32 %v1209_v51, 0.0  ;;  %v867_v59 = vpop.f32.mrf.mxu0  ;;  %v284_v56 = vld [vmem:[%s2594_s7 + $0x288] sm:$0xff] }
 0x158   : > { %v1211_v61 = vpop.f32.mrf.mxu1  ;;  %1640 = vst.msk [vmem:[%s2859_s10 + $0xc0] sm:$0xff] %vm1615_vm4, %v1470_v57  ;;  %v868_v63 = vadd.f32 %v2840_v30, %v867_v59  ;;  %v369_v57 = vld [vmem:[%s2594_s7 + $0x530] sm:$0xff] }
 0x159   : > { %1726 = vst.msk [vmem:[%s2859_s10 + $0x370] sm:$0xff] %vm1615_vm4, %v1556_v58  ;;  %v1212_v1 = vadd.f32 %v2840_v30, %v1211_v61  ;;  %v2102_v2 = vpop.f32.mrf.mxu0  ;;  %v370_v58 = vld [vmem:[%s2594_s7 + $0x538] sm:$0xff] }
 0x15a   : > { %v2274_v3 = vpop.f32.mrf.mxu1  ;;  %v1471_v4 = vmax.f32 %v868_v63, 0.0 }
 0x15b   : > { %v1557_v5 = vmax.f32 %v1212_v1, 0.0  ;;  %v872_v6 = vpop.f32.mrf.mxu0  ;;  %2200 = vmatmul.mubr.msk.bf16.gmra.mxu0 %vm471_vm3, %v409_v60  ;;  %v412_v1 = vpack.c.bf16 %v284_v56, %v283_v53  ;;  %v455_v3 = vpack.c.bf16 %v370_v58, %v369_v57 }
 0x15c   : > { %v1216_v7 = vpop.f32.mrf.mxu1  ;;  %2372 = vmatmul.mubr.msk.bf16.gmra.mxu1 %vm471_vm3, %v452_v62  ;;  %1641 = vst.msk [vmem:[%s2859_s10 + $0xc8] sm:$0xff] %vm1615_vm4, %v1471_v4  ;;  %v873_v9 = vadd.f32 %v2840_v30, %v872_v6  ;;  %2203 = vmatprep.mubr.msk.bf16.mxu0 %vm2502_vm1, %v2501_v0 }
 0x15d   : > { %1727 = vst.msk [vmem:[%s2859_s10 + $0x378] sm:$0xff] %vm1615_vm4, %v1557_v5  ;;  %v1217_v10 = vadd.f32 %v2840_v30, %v1216_v7  ;;  %2375 = vmatprep.mubr.msk.bf16.mxu1 %vm2502_vm1, %v2501_v0  ;;  %v2105_v14 = vpop.f32.mrf.mxu0 }
 0x15e   : > { %v2277_v15 = vpop.f32.mrf.mxu1  ;;  %v1472_v16 = vmax.f32 %v873_v9, 0.0  ;;  %v285_v14 = vld [vmem:[%s2594_s7 + $0x290] sm:$0xff] }
 0x15f   : > { %v1558_v17 = vmax.f32 %v1217_v10, 0.0  ;;  %v875_v18 = vpop.f32.mrf.mxu0  ;;  %v286_v15 = vld [vmem:[%s2594_s7 + $0x298] sm:$0xff] }
 0x160   : > { %v1219_v20 = vpop.f32.mrf.mxu1  ;;  %1642 = vst.msk [vmem:[%s2859_s10 + $0xd0] sm:$0xff] %vm1615_vm4, %v1472_v16  ;;  %v876_v22 = vadd.f32 %v2840_v30, %v875_v18  ;;  %v371_v16 = vld [vmem:[%s2594_s7 + $0x540] sm:$0xff] }
 0x161   : > { %1728 = vst.msk [vmem:[%s2859_s10 + $0x380] sm:$0xff] %vm1615_vm4, %v1558_v17  ;;  %v1220_v23 = vadd.f32 %v2840_v30, %v1219_v20  ;;  %v2106_v24 = vpop.f32.mrf.mxu0 }
 0x162   : > { %v2278_v25 = vpop.f32.mrf.mxu1  ;;  %v1473_v26 = vmax.f32 %v876_v22, 0.0  ;;  %v413_v22 = vpack.c.bf16 %v286_v15, %v285_v14  ;;  %v456_v24 = vpack.c.bf16 %v371_v16, %v371_v16 }
 0x163   : > { %v1559_v27 = vmax.f32 %v1220_v23, 0.0  ;;  %v880_v28 = vpop.f32.mrf.mxu0  ;;  %2204 = vmatmul.mubr.msk.bf16.gmra.mxu0 %vm471_vm3, %v410_v19 }
 0x164   : > { %v1224_v29 = vpop.f32.mrf.mxu1  ;;  %2376 = vmatmul.mubr.msk.bf16.gmra.mxu1 %vm471_vm3, %v453_v21  ;;  %1643 = vst.msk [vmem:[%s2859_s10 + $0xd8] sm:$0xff] %vm1615_vm4, %v1473_v26  ;;  %v881_v32 = vadd.f32 %v2840_v30, %v880_v28  ;;  %2207 = vmatprep.mubr.msk.bf16.mxu0 %vm2502_vm1, %v2501_v0 }
 0x165   : > { %1729 = vst.msk [vmem:[%s2859_s10 + $0x388] sm:$0xff] %vm1615_vm4, %v1559_v27  ;;  %v1225_v33 = vadd.f32 %v2840_v30, %v1224_v29  ;;  %2379 = vmatprep.mubr.msk.bf16.mxu1 %vm2502_vm1, %v2501_v0  ;;  %v2109_v37 = vpop.f32.mrf.mxu0 }
 0x166   : > { %v2281_v38 = vpop.f32.mrf.mxu1  ;;  %v1474_v39 = vmax.f32 %v881_v32, 0.0  ;;  %v288_v37 = vld [vmem:[%s2594_s7 + $0x2a8] sm:$0xff] }
 0x167   : > { %v1560_v40 = vmax.f32 %v1225_v33, 0.0  ;;  %v883_v41 = vpop.f32.mrf.mxu0 }
 0x168   : > { %v1227_v43 = vpop.f32.mrf.mxu1  ;;  %1644 = vst.msk [vmem:[%s2859_s10 + $0xe0] sm:$0xff] %vm1615_vm4, %v1474_v39  ;;  %v884_v45 = vadd.f32 %v2840_v30, %v883_v41 }
 0x169   : > { %1730 = vst.msk [vmem:[%s2859_s10 + $0x390] sm:$0xff] %vm1615_vm4, %v1560_v40  ;;  %v1228_v46 = vadd.f32 %v2840_v30, %v1227_v43  ;;  %v2110_v47 = vpop.f32.mrf.mxu0  ;;  %v414_v43 = vpack.c.bf16 %v288_v37, %v287_v36 }
 0x16a   : > { %v2282_v48 = vpop.f32.mrf.mxu1  ;;  %v1475_v49 = vmax.f32 %v884_v45, 0.0 }
 0x16b   : > { %v1561_v50 = vmax.f32 %v1228_v46, 0.0  ;;  %v888_v51 = vpop.f32.mrf.mxu0  ;;  %2208 = vmatmul.mubr.msk.bf16.gmra.mxu0 %vm471_vm3, %v411_v42 }
 0x16c   : > { %v1232_v52 = vpop.f32.mrf.mxu1  ;;  %2380 = vmatmul.mubr.msk.bf16.gmra.mxu1 %vm471_vm3, %v454_v44  ;;  %1645 = vst.msk [vmem:[%s2859_s10 + $0xe8] sm:$0xff] %vm1615_vm4, %v1475_v49  ;;  %v889_v54 = vadd.f32 %v2840_v30, %v888_v51  ;;  %2211 = vmatprep.mubr.msk.bf16.mxu0 %vm2502_vm1, %v2501_v0 }
 0x16d   : > { %1731 = vst.msk [vmem:[%s2859_s10 + $0x398] sm:$0xff] %vm1615_vm4, %v1561_v50  ;;  %v1233_v55 = vadd.f32 %v2840_v30, %v1232_v52  ;;  %2383 = vmatprep.mubr.msk.bf16.mxu1 %vm2502_vm1, %v2501_v0  ;;  %v2113_v59 = vpop.f32.mrf.mxu0 }
 0x16e   : > { %v2285_v60 = vpop.f32.mrf.mxu1  ;;  %v1476_v61 = vmax.f32 %v889_v54, 0.0 }
 0x16f   : > { %v1562_v62 = vmax.f32 %v1233_v55, 0.0  ;;  %v891_v63 = vpop.f32.mrf.mxu0 }
 0x170   : > { %v1235_v2 = vpop.f32.mrf.mxu1  ;;  %1646 = vst.msk [vmem:[%s2859_s10 + $0xf0] sm:$0xff] %vm1615_vm4, %v1476_v61  ;;  %v892_v4 = vadd.f32 %v2840_v30, %v891_v63 }
 0x171   : > { %1732 = vst.msk [vmem:[%s2859_s10 + $0x3a0] sm:$0xff] %vm1615_vm4, %v1562_v62  ;;  %v1236_v5 = vadd.f32 %v2840_v30, %v1235_v2  ;;  %v2114_v6 = vpop.f32.mrf.mxu0 }
 0x172   : > { %v2286_v7 = vpop.f32.mrf.mxu1  ;;  %v1477_v8 = vmax.f32 %v892_v4, 0.0 }
 0x173   : > { %v1563_v9 = vmax.f32 %v1236_v5, 0.0  ;;  %v896_v10 = vpop.f32.mrf.mxu0  ;;  %2212 = vmatmul.mubr.msk.bf16.gmra.mxu0 %vm471_vm3, %v412_v1 }
 0x174   : > { %v1240_v11 = vpop.f32.mrf.mxu1  ;;  %2384 = vmatmul.mubr.msk.bf16.gmra.mxu1 %vm471_vm3, %v455_v3  ;;  %1647 = vst.msk [vmem:[%s2859_s10 + $0xf8] sm:$0xff] %vm1615_vm4, %v1477_v8  ;;  %v897_v12 = vadd.f32 %v2840_v30, %v896_v10  ;;  %2215 = vmatprep.mubr.msk.bf16.mxu0 %vm2502_vm1, %v2501_v0 }
 0x175   : > { %1733 = vst.msk [vmem:[%s2859_s10 + $0x3a8] sm:$0xff] %vm1615_vm4, %v1563_v9  ;;  %v1241_v13 = vadd.f32 %v2840_v30, %v1240_v11  ;;  %2387 = vmatprep.mubr.msk.bf16.mxu1 %vm2502_vm1, %v2501_v0  ;;  %v2117_v17 = vpop.f32.mrf.mxu0 }
 0x176   : > { %v2289_v18 = vpop.f32.mrf.mxu1  ;;  %v1478_v19 = vmax.f32 %v897_v12, 0.0 }
 0x177   : > { %v1564_v20 = vmax.f32 %v1241_v13, 0.0  ;;  %v899_v21 = vpop.f32.mrf.mxu0 }
 0x178   : > { %v1243_v23 = vpop.f32.mrf.mxu1  ;;  %1648 = vst.msk [vmem:[%s2859_s10 + $0x100] sm:$0xff] %vm1615_vm4, %v1478_v19  ;;  %v900_v25 = vadd.f32 %v2840_v30, %v899_v21 }
 0x179   : > { %1734 = vst.msk [vmem:[%s2859_s10 + $0x3b0] sm:$0xff] %vm1615_vm4, %v1564_v20  ;;  %v1244_v26 = vadd.f32 %v2840_v30, %v1243_v23  ;;  %v2118_v27 = vpop.f32.mrf.mxu0 }
 0x17a   : > { %v2290_v28 = vpop.f32.mrf.mxu1  ;;  %v1479_v29 = vmax.f32 %v900_v25, 0.0 }
 0x17b   : > { %v1565_v31 = vmax.f32 %v1244_v26, 0.0  ;;  %v904_v32 = vpop.f32.mrf.mxu0  ;;  %2216 = vmatmul.mubr.msk.bf16.gmra.mxu0 %vm471_vm3, %v413_v22 }
 0x17c   : > { %v1248_v33 = vpop.f32.mrf.mxu1  ;;  %2388 = vmatmul.mubr.msk.bf16.gmra.mxu1 %vm471_vm3, %v456_v24  ;;  %1649 = vst.msk [vmem:[%s2859_s10 + $0x108] sm:$0xff] %vm1615_vm4, %v1479_v29  ;;  %v905_v35 = vadd.f32 %v3222_v34, %v904_v32  ;;  %2219 = vmatprep.mubr.msk.bf16.mxu0 %vm2502_vm1, %v2501_v0 }
 0x17d   : > { %1735 = vst.msk [vmem:[%s2859_s10 + $0x3b8] sm:$0xff] %vm1615_vm4, %v1565_v31  ;;  %v1249_v30 = vadd.f32 %v3222_v34, %v1248_v33  ;;  %v2121_v38 = vpop.f32.mrf.mxu0 }
 0x17e   : > { %v2293_v39 = vpop.f32.mrf.mxu1  ;;  %v1480_v40 = vmax.f32 %v905_v35, 0.0 }
 0x17f   : > { %v1566_v41 = vmax.f32 %v1249_v30, 0.0  ;;  %v907_v42 = vpop.f32.mrf.mxu0 }
 0x180   : > { %v1251_v44 = vpop.f32.mrf.mxu1  ;;  %1650 = vst.msk [vmem:[%s2859_s10 + $0x110] sm:$0xff] %vm1615_vm4, %v1480_v40  ;;  %v908_v45 = vadd.f32 %v3222_v34, %v907_v42 }
 0x181   : > { %1736 = vst.msk [vmem:[%s2859_s10 + $0x3c0] sm:$0xff] %vm1615_vm4, %v1566_v41  ;;  %v1252_v46 = vadd.f32 %v3222_v34, %v1251_v44  ;;  %v2122_v0 = vpop.f32.mrf.mxu0 }
 0x182   : > { %v2294_v47 = vpop.f32.mrf.mxu1  ;;  %v1481_v48 = vmax.f32 %v908_v45, 0.0 }
 0x183   : > { %v1567_v49 = vmax.f32 %v1252_v46, 0.0  ;;  %v912_v50 = vpop.f32.mrf.mxu0  ;;  %2220 = vmatmul.mubr.msk.bf16.gmra.mxu0 %vm471_vm3, %v414_v43 }
 0x184   : > { %v1256_v51 = vpop.f32.mrf.mxu1  ;;  %1651 = vst.msk [vmem:[%s2859_s10 + $0x118] sm:$0xff] %vm1615_vm4, %v1481_v48  ;;  %v913_v52 = vadd.f32 %v3222_v34, %v912_v50 }
 0x185   : > { %1737 = vst.msk [vmem:[%s2859_s10 + $0x3c8] sm:$0xff] %vm1615_vm4, %v1567_v49  ;;  %v1257_v53 = vadd.f32 %v3222_v34, %v1256_v51  ;;  %v2125_v54 = vpop.f32.mrf.mxu0 }
 0x186   : > { %v2297_v55 = vpop.f32.mrf.mxu1  ;;  %v1482_v56 = vmax.f32 %v913_v52, 0.0 }
 0x187   : > { %v1568_v57 = vmax.f32 %v1257_v53, 0.0  ;;  %v915_v58 = vpop.f32.mrf.mxu0 }
 0x188   : > { %v1259_v59 = vpop.f32.mrf.mxu1  ;;  %1652 = vst.msk [vmem:[%s2859_s10 + $0x120] sm:$0xff] %vm1615_vm4, %v1482_v56  ;;  %v916_v60 = vadd.f32 %v3222_v34, %v915_v58 }
 0x189   : > { %1738 = vst.msk [vmem:[%s2859_s10 + $0x3d0] sm:$0xff] %vm1615_vm4, %v1568_v57  ;;  %v1260_v61 = vadd.f32 %v3222_v34, %v1259_v59  ;;  %v2126_v62 = vpop.f32.mrf.mxu0 }
 0x18a   : > { %v2298_v63 = vpop.f32.mrf.mxu1  ;;  %v1483_v1 = vmax.f32 %v916_v60, 0.0 }
 0x18b   : > { %v1569_v2 = vmax.f32 %v1260_v61, 0.0  ;;  %v920_v3 = vpop.f32.mrf.mxu0 }
 0x18c   : > { %v1264_v4 = vpop.f32.mrf.mxu1  ;;  %1653 = vst.msk [vmem:[%s2859_s10 + $0x128] sm:$0xff] %vm1615_vm4, %v1483_v1  ;;  %v921_v5 = vadd.f32 %v3222_v34, %v920_v3 }
 0x18d   : > { %1739 = vst.msk [vmem:[%s2859_s10 + $0x3d8] sm:$0xff] %vm1615_vm4, %v1569_v2  ;;  %v1265_v6 = vadd.f32 %v3222_v34, %v1264_v4  ;;  %v2129_v7 = vpop.f32.mrf.mxu0 }
 0x18e   : > { %v2301_v8 = vpop.f32.mrf.mxu1  ;;  %v1484_v9 = vmax.f32 %v921_v5, 0.0 }
 0x18f   : > { %v1570_v10 = vmax.f32 %v1265_v6, 0.0  ;;  %v923_v11 = vpop.f32.mrf.mxu0 }
 0x190   : > { %v1267_v12 = vpop.f32.mrf.mxu1  ;;  %1654 = vst.msk [vmem:[%s2859_s10 + $0x130] sm:$0xff] %vm1615_vm4, %v1484_v9  ;;  %v924_v13 = vadd.f32 %v3222_v34, %v923_v11 }
 0x191   : > { %1740 = vst.msk [vmem:[%s2859_s10 + $0x3e0] sm:$0xff] %vm1615_vm4, %v1570_v10  ;;  %v1268_v14 = vadd.f32 %v3222_v34, %v1267_v12  ;;  %v2130_v15 = vpop.f32.mrf.mxu0 }
 0x192   : > { %v2302_v16 = vpop.f32.mrf.mxu1  ;;  %v1485_v17 = vmax.f32 %v924_v13, 0.0 }
 0x193   : > { %v1571_v18 = vmax.f32 %v1268_v14, 0.0  ;;  %v928_v19 = vpop.f32.mrf.mxu0 }
 0x194   : > { %v1272_v20 = vpop.f32.mrf.mxu1  ;;  %1655 = vst.msk [vmem:[%s2859_s10 + $0x138] sm:$0xff] %vm1615_vm4, %v1485_v17  ;;  %v929_v21 = vadd.f32 %v3222_v34, %v928_v19 }
 0x195   : > { %1741 = vst.msk [vmem:[%s2859_s10 + $0x3e8] sm:$0xff] %vm1615_vm4, %v1571_v18  ;;  %v1273_v22 = vadd.f32 %v3222_v34, %v1272_v20  ;;  %v2133_v23 = vpop.f32.mrf.mxu0 }
 0x196   : > { %v2305_v24 = vpop.f32.mrf.mxu1  ;;  %v1486_v25 = vmax.f32 %v929_v21, 0.0 }
 0x197   : > { %v1572_v26 = vmax.f32 %v1273_v22, 0.0  ;;  %v931_v27 = vpop.f32.mrf.mxu0 }
 0x198   : > { %v1275_v28 = vpop.f32.mrf.mxu1  ;;  %1656 = vst.msk [vmem:[%s2859_s10 + $0x140] sm:$0xff] %vm1615_vm4, %v1486_v25  ;;  %v932_v29 = vadd.f32 %v3222_v34, %v931_v27 }
 0x199   : > { %1742 = vst.msk [vmem:[%s2859_s10 + $0x3f0] sm:$0xff] %vm1615_vm4, %v1572_v26  ;;  %v1276_v31 = vadd.f32 %v3222_v34, %v1275_v28  ;;  %v2134_v32 = vpop.f32.mrf.mxu0 }
 0x19a   : > { %v2306_v33 = vpop.f32.mrf.mxu1  ;;  %v1487_v35 = vmax.f32 %v932_v29, 0.0 }
 0x19b   : > { %v1573_v30 = vmax.f32 %v1276_v31, 0.0  ;;  %v936_v36 = vpop.f32.mrf.mxu0 }
 0x19c   : > { %v1280_v37 = vpop.f32.mrf.mxu1  ;;  %1657 = vst.msk [vmem:[%s2859_s10 + $0x148] sm:$0xff] %vm1615_vm4, %v1487_v35  ;;  %v937_v38 = vadd.f32 %v3222_v34, %v936_v36 }
 0x19d   : > { %1743 = vst.msk [vmem:[%s2859_s10 + $0x3f8] sm:$0xff] %vm1615_vm4, %v1573_v30  ;;  %v1281_v39 = vadd.f32 %v3222_v34, %v1280_v37  ;;  %v2137_v40 = vpop.f32.mrf.mxu0 }
 0x19e   : > { %v2309_v41 = vpop.f32.mrf.mxu1  ;;  %v1488_v42 = vmax.f32 %v937_v38, 0.0 }
 0x19f   : > { %v1574_v43 = vmax.f32 %v1281_v39, 0.0  ;;  %v939_v44 = vpop.f32.mrf.mxu0 }
 0x1a0   : > { %v1283_v45 = vpop.f32.mrf.mxu1  ;;  %1658 = vst.msk [vmem:[%s2859_s10 + $0x150] sm:$0xff] %vm1615_vm4, %v1488_v42  ;;  %v940_v46 = vadd.f32 %v3222_v34, %v939_v44 }
 0x1a1   : > { %1744 = vst.msk [vmem:[%s2859_s10 + $0x400] sm:$0xff] %vm1615_vm4, %v1574_v43  ;;  %v1284_v0 = vadd.f32 %v3222_v34, %v1283_v45  ;;  %v2138_v47 = vpop.f32.mrf.mxu0 }
 0x1a2   : > { %v2310_v48 = vpop.f32.mrf.mxu1  ;;  %v1489_v49 = vmax.f32 %v940_v46, 0.0 }
 0x1a3   : > { %v1575_v50 = vmax.f32 %v1284_v0, 0.0  ;;  %v944_v51 = vpop.f32.mrf.mxu0 }
 0x1a4   : > { %v1288_v52 = vpop.f32.mrf.mxu1  ;;  %1659 = vst.msk [vmem:[%s2859_s10 + $0x158] sm:$0xff] %vm1615_vm4, %v1489_v49  ;;  %v945_v53 = vadd.f32 %v3222_v34, %v944_v51 }
 0x1a5   : > { %1745 = vst.msk [vmem:[%s2859_s10 + $0x408] sm:$0xff] %vm1615_vm4, %v1575_v50  ;;  %v1289_v54 = vadd.f32 %v3222_v34, %v1288_v52  ;;  %v2141_v55 = vpop.f32.mrf.mxu0 }
 0x1a6   : > { %v2313_v56 = vpop.f32.mrf.mxu1  ;;  %v1490_v57 = vmax.f32 %v945_v53, 0.0 }
 0x1a7   : > { %v1576_v58 = vmax.f32 %v1289_v54, 0.0  ;;  %v947_v59 = vpop.f32.mrf.mxu0 }
 0x1a8   : > { %v1291_v60 = vpop.f32.mrf.mxu1  ;;  %1660 = vst.msk [vmem:[%s2859_s10 + $0x160] sm:$0xff] %vm1615_vm4, %v1490_v57  ;;  %v948_v61 = vadd.f32 %v3222_v34, %v947_v59 }
 0x1a9   : > { %1746 = vst.msk [vmem:[%s2859_s10 + $0x410] sm:$0xff] %vm1615_vm4, %v1576_v58  ;;  %v1292_v62 = vadd.f32 %v3222_v34, %v1291_v60  ;;  %v2142_v63 = vpop.f32.mrf.mxu0 }
 0x1aa   : > { %v2314_v1 = vpop.f32.mrf.mxu1  ;;  %v1491_v2 = vmax.f32 %v948_v61, 0.0 }
 0x1ab   : > { %v1577_v3 = vmax.f32 %v1292_v62, 0.0  ;;  %v952_v4 = vpop.f32.mrf.mxu0 }
 0x1ac   : > { %v1296_v5 = vpop.f32.mrf.mxu1  ;;  %1661 = vst.msk [vmem:[%s2859_s10 + $0x168] sm:$0xff] %vm1615_vm4, %v1491_v2  ;;  %v953_v6 = vadd.f32 %v3222_v34, %v952_v4 }
 0x1ad   : > { %1747 = vst.msk [vmem:[%s2859_s10 + $0x418] sm:$0xff] %vm1615_vm4, %v1577_v3  ;;  %v1297_v7 = vadd.f32 %v3222_v34, %v1296_v5  ;;  %v2145_v8 = vpop.f32.mrf.mxu0 }
 0x1ae   : > { %v2317_v9 = vpop.f32.mrf.mxu1  ;;  %v1492_v10 = vmax.f32 %v953_v6, 0.0 }
 0x1af   : > { %v1578_v11 = vmax.f32 %v1297_v7, 0.0  ;;  %v955_v12 = vpop.f32.mrf.mxu0 }
 0x1b0   : > { %v1299_v13 = vpop.f32.mrf.mxu1  ;;  %1662 = vst.msk [vmem:[%s2859_s10 + $0x170] sm:$0xff] %vm1615_vm4, %v1492_v10  ;;  %v956_v14 = vadd.f32 %v3222_v34, %v955_v12 }
 0x1b1   : > { %1748 = vst.msk [vmem:[%s2859_s10 + $0x420] sm:$0xff] %vm1615_vm4, %v1578_v11  ;;  %v1300_v15 = vadd.f32 %v3222_v34, %v1299_v13  ;;  %v2146_v16 = vpop.f32.mrf.mxu0 }
 0x1b2   : > { %v2318_v17 = vpop.f32.mrf.mxu1  ;;  %v1493_v18 = vmax.f32 %v956_v14, 0.0 }
 0x1b3   : > { %v1579_v19 = vmax.f32 %v1300_v15, 0.0  ;;  %v960_v20 = vpop.f32.mrf.mxu0 }
 0x1b4   : > { %v1304_v21 = vpop.f32.mrf.mxu1  ;;  %1663 = vst.msk [vmem:[%s2859_s10 + $0x178] sm:$0xff] %vm1615_vm4, %v1493_v18  ;;  %v961_v22 = vadd.f32 %v3222_v34, %v960_v20 }
 0x1b5   : > { %1749 = vst.msk [vmem:[%s2859_s10 + $0x428] sm:$0xff] %vm1615_vm4, %v1579_v19  ;;  %v1305_v23 = vadd.f32 %v3222_v34, %v1304_v21  ;;  %v2149_v24 = vpop.f32.mrf.mxu0 }
 0x1b6   : > { %v2321_v25 = vpop.f32.mrf.mxu1  ;;  %v1494_v26 = vmax.f32 %v961_v22, 0.0 }
 0x1b7   : > { %v1580_v27 = vmax.f32 %v1305_v23, 0.0  ;;  %v963_v28 = vpop.f32.mrf.mxu0 }
 0x1b8   : > { %v1307_v29 = vpop.f32.mrf.mxu1  ;;  %1664 = vst.msk [vmem:[%s2859_s10 + $0x180] sm:$0xff] %vm1615_vm4, %v1494_v26  ;;  %v964_v31 = vadd.f32 %v3222_v34, %v963_v28 }
 0x1b9   : > { %1750 = vst.msk [vmem:[%s2859_s10 + $0x430] sm:$0xff] %vm1615_vm4, %v1580_v27  ;;  %v1308_v32 = vadd.f32 %v3222_v34, %v1307_v29  ;;  %v2150_v33 = vpop.f32.mrf.mxu0 }
 0x1ba   : > { %v2322_v35 = vpop.f32.mrf.mxu1  ;;  %v1495_v30 = vmax.f32 %v964_v31, 0.0 }
 0x1bb   : > { %v1581_v36 = vmax.f32 %v1308_v32, 0.0  ;;  %v968_v37 = vpop.f32.mrf.mxu0 }
 0x1bc   : > { %v1312_v38 = vpop.f32.mrf.mxu1  ;;  %1665 = vst.msk [vmem:[%s2859_s10 + $0x188] sm:$0xff] %vm1615_vm4, %v1495_v30  ;;  %v969_v39 = vadd.f32 %v3222_v34, %v968_v37 }
 0x1bd   : > { %1751 = vst.msk [vmem:[%s2859_s10 + $0x438] sm:$0xff] %vm1615_vm4, %v1581_v36  ;;  %v1313_v40 = vadd.f32 %v3222_v34, %v1312_v38  ;;  %v2153_v41 = vpop.f32.mrf.mxu0 }
 0x1be   : > { %v2325_v42 = vpop.f32.mrf.mxu1  ;;  %v1496_v43 = vmax.f32 %v969_v39, 0.0 }
 0x1bf   : > { %v1582_v44 = vmax.f32 %v1313_v40, 0.0  ;;  %v971_v45 = vpop.f32.mrf.mxu0 }
 0x1c0   : > { %v1315_v46 = vpop.f32.mrf.mxu1  ;;  %1666 = vst.msk [vmem:[%s2859_s10 + $0x190] sm:$0xff] %vm1615_vm4, %v1496_v43  ;;  %v972_v0 = vadd.f32 %v3222_v34, %v971_v45 }
 0x1c1   : > { %1752 = vst.msk [vmem:[%s2859_s10 + $0x440] sm:$0xff] %vm1615_vm4, %v1582_v44  ;;  %v1316_v47 = vadd.f32 %v3222_v34, %v1315_v46  ;;  %v2154_v48 = vpop.f32.mrf.mxu0 }
 0x1c2   : > { %v2326_v49 = vpop.f32.mrf.mxu1  ;;  %v1497_v50 = vmax.f32 %v972_v0, 0.0 }
 0x1c3   : > { %v1583_v51 = vmax.f32 %v1316_v47, 0.0  ;;  %v976_v52 = vpop.f32.mrf.mxu0 }
 0x1c4   : > { %v1320_v53 = vpop.f32.mrf.mxu1  ;;  %1667 = vst.msk [vmem:[%s2859_s10 + $0x198] sm:$0xff] %vm1615_vm4, %v1497_v50  ;;  %v977_v54 = vadd.f32 %v3222_v34, %v976_v52 }
 0x1c5   : > { %1753 = vst.msk [vmem:[%s2859_s10 + $0x448] sm:$0xff] %vm1615_vm4, %v1583_v51  ;;  %v1321_v55 = vadd.f32 %v3222_v34, %v1320_v53  ;;  %v2157_v56 = vpop.f32.mrf.mxu0 }
 0x1c6   : > { %v2329_v57 = vpop.f32.mrf.mxu1  ;;  %v1498_v58 = vmax.f32 %v977_v54, 0.0 }
 0x1c7   : > { %v1584_v59 = vmax.f32 %v1321_v55, 0.0  ;;  %v979_v60 = vpop.f32.mrf.mxu0 }
 0x1c8   : > { %v1323_v61 = vpop.f32.mrf.mxu1  ;;  %1668 = vst.msk [vmem:[%s2859_s10 + $0x1a0] sm:$0xff] %vm1615_vm4, %v1498_v58  ;;  %v980_v62 = vadd.f32 %v3222_v34, %v979_v60 }
 0x1c9   : > { %1754 = vst.msk [vmem:[%s2859_s10 + $0x450] sm:$0xff] %vm1615_vm4, %v1584_v59  ;;  %v1324_v63 = vadd.f32 %v3222_v34, %v1323_v61  ;;  %v2158_v1 = vpop.f32.mrf.mxu0 }
 0x1ca   : > { %v2330_v2 = vpop.f32.mrf.mxu1  ;;  %v1499_v3 = vmax.f32 %v980_v62, 0.0 }
 0x1cb   : > { %v1585_v4 = vmax.f32 %v1324_v63, 0.0  ;;  %v984_v5 = vpop.f32.mrf.mxu0 }
 0x1cc   : > { %v1328_v6 = vpop.f32.mrf.mxu1  ;;  %1669 = vst.msk [vmem:[%s2859_s10 + $0x1a8] sm:$0xff] %vm1615_vm4, %v1499_v3  ;;  %v985_v7 = vadd.f32 %v3222_v34, %v984_v5 }
 0x1cd   : > { %1755 = vst.msk [vmem:[%s2859_s10 + $0x458] sm:$0xff] %vm1615_vm4, %v1585_v4  ;;  %v1329_v8 = vadd.f32 %v3222_v34, %v1328_v6  ;;  %v2161_v9 = vpop.f32.mrf.mxu0 }
 0x1ce   : > { %v2333_v10 = vpop.f32.mrf.mxu1  ;;  %v1500_v11 = vmax.f32 %v985_v7, 0.0 }
 0x1cf   : > { %v1586_v12 = vmax.f32 %v1329_v8, 0.0  ;;  %v987_v13 = vpop.f32.mrf.mxu0 }
 0x1d0   : > { %v1331_v14 = vpop.f32.mrf.mxu1  ;;  %1670 = vst.msk [vmem:[%s2859_s10 + $0x1b0] sm:$0xff] %vm1615_vm4, %v1500_v11  ;;  %v988_v15 = vadd.f32 %v3222_v34, %v987_v13 }
 0x1d1   : > { %1756 = vst.msk [vmem:[%s2859_s10 + $0x460] sm:$0xff] %vm1615_vm4, %v1586_v12  ;;  %v1332_v16 = vadd.f32 %v3222_v34, %v1331_v14  ;;  %v2162_v17 = vpop.f32.mrf.mxu0 }
 0x1d2   : > { %v2334_v18 = vpop.f32.mrf.mxu1  ;;  %v1501_v19 = vmax.f32 %v988_v15, 0.0 }
 0x1d3   : > { %v1587_v20 = vmax.f32 %v1332_v16, 0.0  ;;  %v992_v21 = vpop.f32.mrf.mxu0 }
 0x1d4   : > { %v1336_v22 = vpop.f32.mrf.mxu1  ;;  %1671 = vst.msk [vmem:[%s2859_s10 + $0x1b8] sm:$0xff] %vm1615_vm4, %v1501_v19  ;;  %v993_v23 = vadd.f32 %v3222_v34, %v992_v21 }
 0x1d5   : > { %1757 = vst.msk [vmem:[%s2859_s10 + $0x468] sm:$0xff] %vm1615_vm4, %v1587_v20  ;;  %v1337_v24 = vadd.f32 %v3222_v34, %v1336_v22  ;;  %v2165_v25 = vpop.f32.mrf.mxu0 }
 0x1d6   : > { %v2337_v26 = vpop.f32.mrf.mxu1  ;;  %v1502_v27 = vmax.f32 %v993_v23, 0.0 }
 0x1d7   : > { %v1588_v28 = vmax.f32 %v1337_v24, 0.0  ;;  %v995_v29 = vpop.f32.mrf.mxu0 }
 0x1d8   : > { %v1339_v31 = vpop.f32.mrf.mxu1  ;;  %1672 = vst.msk [vmem:[%s2859_s10 + $0x1c0] sm:$0xff] %vm1615_vm4, %v1502_v27  ;;  %v996_v32 = vadd.f32 %v3222_v34, %v995_v29 }
 0x1d9   : > { %1758 = vst.msk [vmem:[%s2859_s10 + $0x470] sm:$0xff] %vm1615_vm4, %v1588_v28  ;;  %v1340_v33 = vadd.f32 %v3222_v34, %v1339_v31  ;;  %v2166_v35 = vpop.f32.mrf.mxu0 }
 0x1da   : > { %v2338_v30 = vpop.f32.mrf.mxu1  ;;  %v1503_v36 = vmax.f32 %v996_v32, 0.0 }
 0x1db   : > { %v1589_v37 = vmax.f32 %v1340_v33, 0.0  ;;  %v1000_v38 = vpop.f32.mrf.mxu0 }
 0x1dc   : > { %v1344_v39 = vpop.f32.mrf.mxu1  ;;  %1673 = vst.msk [vmem:[%s2859_s10 + $0x1c8] sm:$0xff] %vm1615_vm4, %v1503_v36  ;;  %v1001_v40 = vadd.f32 %v3222_v34, %v1000_v38 }
 0x1dd   : > { %1759 = vst.msk [vmem:[%s2859_s10 + $0x478] sm:$0xff] %vm1615_vm4, %v1589_v37  ;;  %v1345_v41 = vadd.f32 %v3222_v34, %v1344_v39  ;;  %v2169_v42 = vpop.f32.mrf.mxu0 }
 0x1de   : > { %v2341_v43 = vpop.f32.mrf.mxu1  ;;  %v1504_v44 = vmax.f32 %v1001_v40, 0.0 }
 0x1df   : > { %v1590_v45 = vmax.f32 %v1345_v41, 0.0  ;;  %v1003_v46 = vpop.f32.mrf.mxu0 }
 0x1e0   : > { %v1347_v0 = vpop.f32.mrf.mxu1  ;;  %1674 = vst.msk [vmem:[%s2859_s10 + $0x1d0] sm:$0xff] %vm1615_vm4, %v1504_v44  ;;  %v1004_v47 = vadd.f32 %v3222_v34, %v1003_v46 }
 0x1e1   : > { %1760 = vst.msk [vmem:[%s2859_s10 + $0x480] sm:$0xff] %vm1615_vm4, %v1590_v45  ;;  %v1348_v48 = vadd.f32 %v3222_v34, %v1347_v0  ;;  %v2170_v49 = vpop.f32.mrf.mxu0 }
 0x1e2   : > { %v2342_v50 = vpop.f32.mrf.mxu1  ;;  %v1505_v51 = vmax.f32 %v1004_v47, 0.0 }
 0x1e3   : > { %v1591_v52 = vmax.f32 %v1348_v48, 0.0  ;;  %v1008_v53 = vpop.f32.mrf.mxu0 }
 0x1e4   : > { %v1352_v54 = vpop.f32.mrf.mxu1  ;;  %1675 = vst.msk [vmem:[%s2859_s10 + $0x1d8] sm:$0xff] %vm1615_vm4, %v1505_v51  ;;  %v1009_v55 = vadd.f32 %v3222_v34, %v1008_v53 }
 0x1e5   : > { %1761 = vst.msk [vmem:[%s2859_s10 + $0x488] sm:$0xff] %vm1615_vm4, %v1591_v52  ;;  %v1353_v56 = vadd.f32 %v3222_v34, %v1352_v54  ;;  %v2173_v57 = vpop.f32.mrf.mxu0 }
 0x1e6   : > { %v2345_v58 = vpop.f32.mrf.mxu1  ;;  %v1506_v59 = vmax.f32 %v1009_v55, 0.0 }
 0x1e7   : > { %v1592_v60 = vmax.f32 %v1353_v56, 0.0  ;;  %v1011_v61 = vpop.f32.mrf.mxu0 }
 0x1e8   : > { %v1355_v62 = vpop.f32.mrf.mxu1  ;;  %1676 = vst.msk [vmem:[%s2859_s10 + $0x1e0] sm:$0xff] %vm1615_vm4, %v1506_v59  ;;  %v1012_v63 = vadd.f32 %v3222_v34, %v1011_v61 }
 0x1e9   : > { %1762 = vst.msk [vmem:[%s2859_s10 + $0x490] sm:$0xff] %vm1615_vm4, %v1592_v60  ;;  %v1356_v1 = vadd.f32 %v3222_v34, %v1355_v62  ;;  %v2174_v2 = vpop.f32.mrf.mxu0 }
 0x1ea   : > { %v2346_v3 = vpop.f32.mrf.mxu1  ;;  %v1507_v4 = vmax.f32 %v1012_v63, 0.0 }
 0x1eb   : > { %v1593_v5 = vmax.f32 %v1356_v1, 0.0  ;;  %v1016_v6 = vpop.f32.mrf.mxu0 }
 0x1ec   : > { %v1360_v7 = vpop.f32.mrf.mxu1  ;;  %1677 = vst.msk [vmem:[%s2859_s10 + $0x1e8] sm:$0xff] %vm1615_vm4, %v1507_v4  ;;  %v1017_v8 = vadd.f32 %v3222_v34, %v1016_v6 }
 0x1ed   : > { %1763 = vst.msk [vmem:[%s2859_s10 + $0x498] sm:$0xff] %vm1615_vm4, %v1593_v5  ;;  %v1361_v9 = vadd.f32 %v3222_v34, %v1360_v7  ;;  %v2177_v10 = vpop.f32.mrf.mxu0 }
 0x1ee   : > { %v2349_v11 = vpop.f32.mrf.mxu1  ;;  %v1508_v12 = vmax.f32 %v1017_v8, 0.0 }
 0x1ef   : > { %v1594_v13 = vmax.f32 %v1361_v9, 0.0  ;;  %v1019_v14 = vpop.f32.mrf.mxu0 }
 0x1f0   : > { %v1363_v15 = vpop.f32.mrf.mxu1  ;;  %1678 = vst.msk [vmem:[%s2859_s10 + $0x1f0] sm:$0xff] %vm1615_vm4, %v1508_v12  ;;  %v1020_v16 = vadd.f32 %v3222_v34, %v1019_v14 }
 0x1f1   : > { %1764 = vst.msk [vmem:[%s2859_s10 + $0x4a0] sm:$0xff] %vm1615_vm4, %v1594_v13  ;;  %v1364_v17 = vadd.f32 %v3222_v34, %v1363_v15  ;;  %v2178_v18 = vpop.f32.mrf.mxu0 }
 0x1f2   : > { %v2350_v19 = vpop.f32.mrf.mxu1  ;;  %v1509_v20 = vmax.f32 %v1020_v16, 0.0 }
 0x1f3   : > { %v1595_v21 = vmax.f32 %v1364_v17, 0.0  ;;  %v1024_v22 = vpop.f32.mrf.mxu0 }
 0x1f4   : > { %v1368_v23 = vpop.f32.mrf.mxu1  ;;  %1679 = vst.msk [vmem:[%s2859_s10 + $0x1f8] sm:$0xff] %vm1615_vm4, %v1509_v20  ;;  %v1025_v24 = vadd.f32 %v3222_v34, %v1024_v22 }
 0x1f5   : > { %1765 = vst.msk [vmem:[%s2859_s10 + $0x4a8] sm:$0xff] %vm1615_vm4, %v1595_v21  ;;  %v1369_v25 = vadd.f32 %v3222_v34, %v1368_v23  ;;  %v2181_v26 = vpop.f32.mrf.mxu0 }
 0x1f6   : > { %v2353_v27 = vpop.f32.mrf.mxu1  ;;  %v1510_v28 = vmax.f32 %v1025_v24, 0.0 }
 0x1f7   : > { %v1596_v29 = vmax.f32 %v1369_v25, 0.0  ;;  %v1027_v31 = vpop.f32.mrf.mxu0 }
 0x1f8   : > { %v1371_v32 = vpop.f32.mrf.mxu1  ;;  %1680 = vst.msk [vmem:[%s2859_s10 + $0x200] sm:$0xff] %vm1615_vm4, %v1510_v28  ;;  %v1028_v33 = vadd.f32 %v3222_v34, %v1027_v31 }
 0x1f9   : > { %1766 = vst.msk [vmem:[%s2859_s10 + $0x4b0] sm:$0xff] %vm1615_vm4, %v1596_v29  ;;  %v1372_v35 = vadd.f32 %v3222_v34, %v1371_v32  ;;  %v2182_v30 = vpop.f32.mrf.mxu0 }
 0x1fa   : > { %v2354_v36 = vpop.f32.mrf.mxu1  ;;  %v1511_v37 = vmax.f32 %v1028_v33, 0.0 }
 0x1fb   : > { %v1597_v38 = vmax.f32 %v1372_v35, 0.0  ;;  %v1032_v39 = vpop.f32.mrf.mxu0 }
 0x1fc   : > { %v1376_v40 = vpop.f32.mrf.mxu1  ;;  %1681 = vst.msk [vmem:[%s2859_s10 + $0x208] sm:$0xff] %vm1615_vm4, %v1511_v37  ;;  %v1033_v41 = vadd.f32 %v3222_v34, %v1032_v39 }
 0x1fd   : > { %1767 = vst.msk [vmem:[%s2859_s10 + $0x4b8] sm:$0xff] %vm1615_vm4, %v1597_v38  ;;  %v1377_v42 = vadd.f32 %v3222_v34, %v1376_v40  ;;  %v2185_v43 = vpop.f32.mrf.mxu0 }
 0x1fe   : > { %v2357_v44 = vpop.f32.mrf.mxu1  ;;  %v1512_v45 = vmax.f32 %v1033_v41, 0.0 }
 0x1ff   : > { %v1598_v46 = vmax.f32 %v1377_v42, 0.0  ;;  %v1035_v0 = vpop.f32.mrf.mxu0 }
 0x200   : > { %v1379_v47 = vpop.f32.mrf.mxu1  ;;  %1682 = vst.msk [vmem:[%s2859_s10 + $0x210] sm:$0xff] %vm1615_vm4, %v1512_v45  ;;  %v1036_v48 = vadd.f32 %v3222_v34, %v1035_v0 }
 0x201   : > { %1768 = vst.msk [vmem:[%s2859_s10 + $0x4c0] sm:$0xff] %vm1615_vm4, %v1598_v46  ;;  %v1380_v49 = vadd.f32 %v3222_v34, %v1379_v47  ;;  %v2186_v50 = vpop.f32.mrf.mxu0 }
 0x202   : > { %v2358_v51 = vpop.f32.mrf.mxu1  ;;  %v1513_v52 = vmax.f32 %v1036_v48, 0.0 }
 0x203   : > { %v1599_v53 = vmax.f32 %v1380_v49, 0.0  ;;  %v1040_v54 = vpop.f32.mrf.mxu0 }
 0x204   : > { %v1384_v55 = vpop.f32.mrf.mxu1  ;;  %1683 = vst.msk [vmem:[%s2859_s10 + $0x218] sm:$0xff] %vm1615_vm4, %v1513_v52  ;;  %v1041_v56 = vadd.f32 %v3222_v34, %v1040_v54 }
 0x205   : > { %1769 = vst.msk [vmem:[%s2859_s10 + $0x4c8] sm:$0xff] %vm1615_vm4, %v1599_v53  ;;  %v1385_v57 = vadd.f32 %v3222_v34, %v1384_v55  ;;  %v2189_v58 = vpop.f32.mrf.mxu0 }
 0x206   : > { %v2361_v59 = vpop.f32.mrf.mxu1  ;;  %v1514_v60 = vmax.f32 %v1041_v56, 0.0 }
 0x207   : > { %v1600_v61 = vmax.f32 %v1385_v57, 0.0  ;;  %v1043_v62 = vpop.f32.mrf.mxu0 }
 0x208   : > { %v1387_v63 = vpop.f32.mrf.mxu1  ;;  %1684 = vst.msk [vmem:[%s2859_s10 + $0x220] sm:$0xff] %vm1615_vm4, %v1514_v60  ;;  %v1044_v1 = vadd.f32 %v3222_v34, %v1043_v62 }
 0x209   : > { %1770 = vst.msk [vmem:[%s2859_s10 + $0x4d0] sm:$0xff] %vm1615_vm4, %v1600_v61  ;;  %v1388_v2 = vadd.f32 %v3222_v34, %v1387_v63  ;;  %v2190_v3 = vpop.f32.mrf.mxu0 }
 0x20a   : > { %v2362_v4 = vpop.f32.mrf.mxu1  ;;  %v1515_v5 = vmax.f32 %v1044_v1, 0.0 }
 0x20b   : > { %v1601_v6 = vmax.f32 %v1388_v2, 0.0  ;;  %v1048_v7 = vpop.f32.mrf.mxu0 }
 0x20c   : > { %v1392_v8 = vpop.f32.mrf.mxu1  ;;  %1685 = vst.msk [vmem:[%s2859_s10 + $0x228] sm:$0xff] %vm1615_vm4, %v1515_v5  ;;  %v1049_v9 = vadd.f32 %v3222_v34, %v1048_v7 }
 0x20d   : > { %1771 = vst.msk [vmem:[%s2859_s10 + $0x4d8] sm:$0xff] %vm1615_vm4, %v1601_v6  ;;  %v1393_v10 = vadd.f32 %v3222_v34, %v1392_v8  ;;  %v2193_v11 = vpop.f32.mrf.mxu0 }
 0x20e   : > { %v2365_v12 = vpop.f32.mrf.mxu1  ;;  %v1516_v13 = vmax.f32 %v1049_v9, 0.0 }
 0x20f   : > { %v1602_v14 = vmax.f32 %v1393_v10, 0.0  ;;  %v1051_v15 = vpop.f32.mrf.mxu0 }
 0x210   : > { %v1395_v16 = vpop.f32.mrf.mxu1  ;;  %1686 = vst.msk [vmem:[%s2859_s10 + $0x230] sm:$0xff] %vm1615_vm4, %v1516_v13  ;;  %v1052_v17 = vadd.f32 %v3222_v34, %v1051_v15 }
 0x211   : > { %1772 = vst.msk [vmem:[%s2859_s10 + $0x4e0] sm:$0xff] %vm1615_vm4, %v1602_v14  ;;  %v1396_v18 = vadd.f32 %v3222_v34, %v1395_v16  ;;  %v2194_v19 = vpop.f32.mrf.mxu0 }
 0x212   : > { %v2366_v20 = vpop.f32.mrf.mxu1  ;;  %v1517_v21 = vmax.f32 %v1052_v17, 0.0 }
 0x213   : > { %v1603_v22 = vmax.f32 %v1396_v18, 0.0  ;;  %v1056_v23 = vpop.f32.mrf.mxu0 }
 0x214   : > { %v1400_v24 = vpop.f32.mrf.mxu1  ;;  %1687 = vst.msk [vmem:[%s2859_s10 + $0x238] sm:$0xff] %vm1615_vm4, %v1517_v21  ;;  %v1057_v25 = vadd.f32 %v3222_v34, %v1056_v23 }
 0x215   : > { %1773 = vst.msk [vmem:[%s2859_s10 + $0x4e8] sm:$0xff] %vm1615_vm4, %v1603_v22  ;;  %v1401_v26 = vadd.f32 %v3222_v34, %v1400_v24  ;;  %v2197_v27 = vpop.f32.mrf.mxu0 }
 0x216   : > { %v2369_v28 = vpop.f32.mrf.mxu1  ;;  %v1518_v29 = vmax.f32 %v1057_v25, 0.0 }
 0x217   : > { %v1604_v31 = vmax.f32 %v1401_v26, 0.0  ;;  %v1059_v32 = vpop.f32.mrf.mxu0 }
 0x218   : > { %v1403_v33 = vpop.f32.mrf.mxu1  ;;  %1688 = vst.msk [vmem:[%s2859_s10 + $0x240] sm:$0xff] %vm1615_vm4, %v1518_v29  ;;  %v1060_v35 = vadd.f32 %v3222_v34, %v1059_v32 }
 0x219   : > { %1774 = vst.msk [vmem:[%s2859_s10 + $0x4f0] sm:$0xff] %vm1615_vm4, %v1604_v31  ;;  %v1404_v30 = vadd.f32 %v3222_v34, %v1403_v33  ;;  %v2198_v36 = vpop.f32.mrf.mxu0 }
 0x21a   : > { %v2370_v37 = vpop.f32.mrf.mxu1  ;;  %v1519_v38 = vmax.f32 %v1060_v35, 0.0 }
 0x21b   : > { %v1605_v39 = vmax.f32 %v1404_v30, 0.0  ;;  %v1064_v40 = vpop.f32.mrf.mxu0 }
 0x21c   : > { %v1408_v41 = vpop.f32.mrf.mxu1  ;;  %1689 = vst.msk [vmem:[%s2859_s10 + $0x248] sm:$0xff] %vm1615_vm4, %v1519_v38  ;;  %v1065_v42 = vadd.f32 %v3222_v34, %v1064_v40 }
 0x21d   : > { %1775 = vst.msk [vmem:[%s2859_s10 + $0x4f8] sm:$0xff] %vm1615_vm4, %v1605_v39  ;;  %v1409_v43 = vadd.f32 %v3222_v34, %v1408_v41  ;;  %v2201_v44 = vpop.f32.mrf.mxu0 }
 0x21e   : > { %v2373_v45 = vpop.f32.mrf.mxu1  ;;  %v1520_v46 = vmax.f32 %v1065_v42, 0.0 }
 0x21f   : > { %v1606_v0 = vmax.f32 %v1409_v43, 0.0  ;;  %v1067_v47 = vpop.f32.mrf.mxu0 }
 0x220   : > { %v1411_v48 = vpop.f32.mrf.mxu1  ;;  %1690 = vst.msk [vmem:[%s2859_s10 + $0x250] sm:$0xff] %vm1615_vm4, %v1520_v46  ;;  %v1068_v49 = vadd.f32 %v3222_v34, %v1067_v47 }
 0x221   : > { %1776 = vst.msk [vmem:[%s2859_s10 + $0x500] sm:$0xff] %vm1615_vm4, %v1606_v0  ;;  %v1412_v50 = vadd.f32 %v3222_v34, %v1411_v48  ;;  %v2202_v51 = vpop.f32.mrf.mxu0 }
 0x222   : > { %v2374_v52 = vpop.f32.mrf.mxu1  ;;  %v1521_v53 = vmax.f32 %v1068_v49, 0.0 }
 0x223   : > { %v1607_v54 = vmax.f32 %v1412_v50, 0.0  ;;  %v1072_v55 = vpop.f32.mrf.mxu0 }
 0x224   : > { %v1416_v56 = vpop.f32.mrf.mxu1  ;;  %1691 = vst.msk [vmem:[%s2859_s10 + $0x258] sm:$0xff] %vm1615_vm4, %v1521_v53  ;;  %v1073_v57 = vadd.f32 %v3222_v34, %v1072_v55 }
 0x225   : > { %1777 = vst.msk [vmem:[%s2859_s10 + $0x508] sm:$0xff] %vm1615_vm4, %v1607_v54  ;;  %v1417_v58 = vadd.f32 %v3222_v34, %v1416_v56  ;;  %v2205_v59 = vpop.f32.mrf.mxu0 }
 0x226   : > { %v2377_v60 = vpop.f32.mrf.mxu1  ;;  %v1522_v61 = vmax.f32 %v1073_v57, 0.0 }
 0x227   : > { %v1608_v62 = vmax.f32 %v1417_v58, 0.0  ;;  %v1075_v63 = vpop.f32.mrf.mxu0 }
 0x228   : > { %v1419_v1 = vpop.f32.mrf.mxu1  ;;  %1692 = vst.msk [vmem:[%s2859_s10 + $0x260] sm:$0xff] %vm1615_vm4, %v1522_v61  ;;  %v1076_v2 = vadd.f32 %v3222_v34, %v1075_v63 }
 0x229   : > { %1778 = vst.msk [vmem:[%s2859_s10 + $0x510] sm:$0xff] %vm1615_vm4, %v1608_v62  ;;  %v1420_v3 = vadd.f32 %v3222_v34, %v1419_v1  ;;  %v2206_v4 = vpop.f32.mrf.mxu0 }
 0x22a   : > { %v2378_v5 = vpop.f32.mrf.mxu1  ;;  %v1523_v6 = vmax.f32 %v1076_v2, 0.0 }
 0x22b   : > { %v1609_v7 = vmax.f32 %v1420_v3, 0.0  ;;  %v1080_v8 = vpop.f32.mrf.mxu0 }
 0x22c   : > { %v1424_v9 = vpop.f32.mrf.mxu1  ;;  %1693 = vst.msk [vmem:[%s2859_s10 + $0x268] sm:$0xff] %vm1615_vm4, %v1523_v6  ;;  %v1081_v10 = vadd.f32 %v3222_v34, %v1080_v8 }
 0x22d   : > { %1779 = vst.msk [vmem:[%s2859_s10 + $0x518] sm:$0xff] %vm1615_vm4, %v1609_v7  ;;  %v1425_v11 = vadd.f32 %v3222_v34, %v1424_v9  ;;  %v2209_v12 = vpop.f32.mrf.mxu0 }
 0x22e   : > { %v2381_v13 = vpop.f32.mrf.mxu1  ;;  %v1524_v14 = vmax.f32 %v1081_v10, 0.0 }
 0x22f   : > { %v1610_v15 = vmax.f32 %v1425_v11, 0.0  ;;  %v1083_v16 = vpop.f32.mrf.mxu0 }
 0x230   : > { %v1427_v17 = vpop.f32.mrf.mxu1  ;;  %1694 = vst.msk [vmem:[%s2859_s10 + $0x270] sm:$0xff] %vm1615_vm4, %v1524_v14  ;;  %v1084_v18 = vadd.f32 %v3222_v34, %v1083_v16 }
 0x231   : > { %1780 = vst.msk [vmem:[%s2859_s10 + $0x520] sm:$0xff] %vm1615_vm4, %v1610_v15  ;;  %v1428_v19 = vadd.f32 %v3222_v34, %v1427_v17  ;;  %v2210_v20 = vpop.f32.mrf.mxu0 }
 0x232   : > { %v2382_v21 = vpop.f32.mrf.mxu1  ;;  %v1525_v22 = vmax.f32 %v1084_v18, 0.0 }
 0x233   : > { %v1611_v23 = vmax.f32 %v1428_v19, 0.0  ;;  %v1088_v24 = vpop.f32.mrf.mxu0 }
 0x234   : > { %v1432_v25 = vpop.f32.mrf.mxu1  ;;  %1695 = vst.msk [vmem:[%s2859_s10 + $0x278] sm:$0xff] %vm1615_vm4, %v1525_v22  ;;  %v1089_v26 = vadd.f32 %v3222_v34, %v1088_v24 }
 0x235   : > { %1781 = vst.msk [vmem:[%s2859_s10 + $0x528] sm:$0xff] %vm1615_vm4, %v1611_v23  ;;  %v1433_v27 = vadd.f32 %v3222_v34, %v1432_v25  ;;  %v2213_v28 = vpop.f32.mrf.mxu0 }
 0x236   : > { %v2385_v29 = vpop.f32.mrf.mxu1  ;;  %v1526_v31 = vmax.f32 %v1089_v26, 0.0 }
 0x237   : > { %v1612_v32 = vmax.f32 %v1433_v27, 0.0  ;;  %v1091_v33 = vpop.f32.mrf.mxu0 }
 0x238   : > { %v1435_v35 = vpop.f32.mrf.mxu1  ;;  %1696 = vst.msk [vmem:[%s2859_s10 + $0x280] sm:$0xff] %vm1615_vm4, %v1526_v31  ;;  %v1092_v30 = vadd.f32 %v3222_v34, %v1091_v33 }
 0x239   : > { %1782 = vst.msk [vmem:[%s2859_s10 + $0x530] sm:$0xff] %vm1615_vm4, %v1612_v32  ;;  %v1436_v36 = vadd.f32 %v3222_v34, %v1435_v35  ;;  %v2214_v37 = vpop.f32.mrf.mxu0 }
 0x23a   : > { %v2386_v38 = vpop.f32.mrf.mxu1  ;;  %v1527_v39 = vmax.f32 %v1092_v30, 0.0 }
 0x23b   : > { %v1613_v40 = vmax.f32 %v1436_v36, 0.0  ;;  %v1096_v41 = vpop.f32.mrf.mxu0 }
 0x23c   : > { %v1440_v42 = vpop.f32.mrf.mxu1  ;;  %1697 = vst.msk [vmem:[%s2859_s10 + $0x288] sm:$0xff] %vm1615_vm4, %v1527_v39  ;;  %v1097_v43 = vadd.f32 %v3222_v34, %v1096_v41 }
 0x23d   : > { %1783 = vst.msk [vmem:[%s2859_s10 + $0x538] sm:$0xff] %vm1615_vm4, %v1613_v40  ;;  %v1441_v44 = vadd.f32 %v3222_v34, %v1440_v42  ;;  %v2217_v45 = vpop.f32.mrf.mxu0 }
 0x23e   : > { %v2389_v46 = vpop.f32.mrf.mxu1  ;;  %v1528_v0 = vmax.f32 %v1097_v43, 0.0 }
 0x23f   : > { %v1614_v47 = vmax.f32 %v1441_v44, 0.0  ;;  %v1099_v48 = vpop.f32.mrf.mxu0 }
 0x240   : > { %v1443_v49 = vpop.f32.mrf.mxu1  ;;  %1698 = vst.msk [vmem:[%s2859_s10 + $0x290] sm:$0xff] %vm1615_vm4, %v1528_v0  ;;  %v1100_v50 = vadd.f32 %v3222_v34, %v1099_v48 }
 0x241   : > { %1784 = vst.msk [vmem:[%s2859_s10 + $0x540] sm:$0xff] %vm1615_vm4, %v1614_v47  ;;  %v2218_v51 = vpop.f32.mrf.mxu0 }
 0x242   : > { %v2390_v52 = vpop.f32.mrf.mxu1  ;;  %v1529_v53 = vmax.f32 %v1100_v50, 0.0 }
 0x243   : > { %v1104_v54 = vpop.f32.mrf.mxu0 }
 0x244   : > { %1699 = vst.msk [vmem:[%s2859_s10 + $0x298] sm:$0xff] %vm1615_vm4, %v1529_v53  ;;  %v1105_v55 = vadd.f32 %v3222_v34, %v1104_v54 }
 0x245   : > { %v2221_v56 = vpop.f32.mrf.mxu0 }
 0x246   : > { %v1530_v57 = vmax.f32 %v1105_v55, 0.0 }
 0x247   : > { %v1107_v58 = vpop.f32.mrf.mxu0 }
 0x248   : > { %1700 = vst.msk [vmem:[%s2859_s10 + $0x2a0] sm:$0xff] %vm1615_vm4, %v1530_v57  ;;  %v1108_v59 = vadd.f32 %v3222_v34, %v1107_v58 }
 0x249   : > { %v2222_v60 = vpop.f32.mrf.mxu0 }
 0x24a   : > { %v1531_v61 = vmax.f32 %v1108_v59, 0.0 }
 0x24c   : > { %1701 = vst.msk [vmem:[%s2859_s10 + $0x2a8] sm:$0xff] %vm1615_vm4, %v1531_v61 }
 0x24d PF: > { %s15_s12 = sadd.s32 1, %s2495_s12  }
 0x24e   : > { %p12_p3 = scmp.ge.s32.totalorder %s15_s12, 4  }
 0x250   :  { %14 = sbr.rel (!%p12_p3) target bundleno = 2 (0x2), region = 71 }
 0x255   :  { %1807 = vsyncpa [#allocation3], 1 }
 0x256   :  { %1809 = vsyncpa [#allocation3 + $0x1], 1 }
 0x257   :  { %1810 = vsyncpa [#allocation5], 1 }

// kernel: two_tower_forward.5
= control target key start
LH: loop header
LB: loop body
LE: loop exit
PB: predicated region body
PF: predicated region fallthrough
CT: control target
= control target key end

     0   :  { %v963_v0 = vmov 0   ;;  %vm310_vm0 = vcmask 130048   ;;  %vm812_vm1 = vcmask 261120   ;;  %s1844_s1 = inlined_call_operand.vmem [shape: bf16[144,32], index: 1, kind: input, shape index: {}]   ;;  %s1845_s0 = inlined_call_operand.vmem [shape: f32[576,144], index: 0, kind: input, shape index: {}]   ;;  %s1846_s2 = inlined_call_operand.vmem [shape: f32[1,32], index: 2, kind: input, shape index: {}]   ;;  %s1847_s3 = inlined_call_operand.vmem [shape: f32[576,32], index: 3, kind: output, shape index: {}]  }
   0x1   :  { %419 = vmatprep.subr.bf16.mxu0 %v963_v0  ;;  %935 = vmatprep.subr.bf16.mxu1 %v963_v0  ;;  %v954_v1 = vld [vmem:[%s1844_s1 + $0x38] sm:$0xff]   ;;  %v955_v2 = vld [vmem:[%s1844_s1 + $0x30] sm:$0xff]   ;;  %v956_v3 = vld [vmem:[%s1844_s1 + $0x28] sm:$0xff]  }
   0x2   :  { %420 = vmatpush1.bf16.msra.mxu0 %v954_v1  ;;  %944 = vmatpush1.bf16.msra.mxu1 %v954_v1  ;;  %v16_v4 = vld [vmem:[%s1845_s0 + $0x8] sm:$0xff]  ;;  %v18_v5 = vld [vmem:[%s1845_s0 + $0x18] sm:$0xff]  ;;  %v957_v7 = vld [vmem:[%s1844_s1 + $0x20] sm:$0xff]  }
   0x3   :  { %421 = vmatprep.subr.bf16.mxu0 %v963_v0  ;;  %936 = vmatprep.subr.bf16.mxu1 %v963_v0  ;;  %v88_v6 = vld [vmem:[%s1845_s0 + $0x248] sm:$0xff]  ;;  %v160_v8 = vpack.c.bf16 %v18_v5, %v16_v4  ;;  %v90_v9 = vld [vmem:[%s1845_s0 + $0x258] sm:$0xff]  ;;  %v959_v12 = vld [vmem:[%s1844_s1 + $0x10] sm:$0xff]  }
   0x4   :  { %v196_v10 = vpack.c.bf16 %v90_v9, %v88_v6  ;;  %v958_v11 = vld [vmem:[%s1844_s1 + $0x18] sm:$0xff]   ;;  %v960_v13 = vld [vmem:[%s1844_s1 + $0x8] sm:$0xff]   ;;  %v961_v14 = vld [vmem:[%s1844_s1] sm:$0xff]  }
   0x5   :  { %899 = vmatprep.mubr.msk.bf16.mxu0 %vm310_vm0, %v160_v8  ;;  %v962_v15 = vld [vmem:[%s1844_s1 + $0x40] sm:$0xff]   ;;  %v17_v17 = vld [vmem:[%s1845_s0 + $0x10] sm:$0xff]  ;;  %v20_v20 = vld [vmem:[%s1845_s0 + $0x28] sm:$0xff] }
   0x6   :  { %422 = vmatpush1.bf16.msra.mxu0 %v955_v2  ;;  %945 = vmatpush1.bf16.msra.mxu1 %v955_v2  ;;  %v15_v16 = vld [vmem:[%s1845_s0] sm:$0xff]  ;;  %v89_v19 = vld [vmem:[%s1845_s0 + $0x250] sm:$0xff]  ;;  %v22_v21 = vld [vmem:[%s1845_s0 + $0x38] sm:$0xff] }
   0x7   :  { %423 = vmatprep.subr.bf16.mxu0 %v963_v0  ;;  %937 = vmatprep.subr.bf16.mxu1 %v963_v0  ;;  %v87_v18 = vld [vmem:[%s1845_s0 + $0x240] sm:$0xff]  ;;  %v92_v22 = vld [vmem:[%s1845_s0 + $0x268] sm:$0xff]  ;;  %v94_v23 = vld [vmem:[%s1845_s0 + $0x278] sm:$0xff]  ;;  %v159_v24 = vpack.c.bf16 %v17_v17, %v15_v16  ;;  %v162_v26 = vpack.c.bf16 %v22_v21, %v20_v20 }
   0x8   :  { %917 = vmatprep.mubr.msk.bf16.mxu1 %vm310_vm0, %v196_v10  ;;  %v195_v25 = vpack.c.bf16 %v89_v19, %v87_v18  ;;  %v198_v27 = vpack.c.bf16 %v94_v23, %v92_v22  ;;  %v19_v28 = vld [vmem:[%s1845_s0 + $0x20] sm:$0xff]  ;;  %v21_v29 = vld [vmem:[%s1845_s0 + $0x30] sm:$0xff]  ;;  %v24_v32 = vld [vmem:[%s1845_s0 + $0x48] sm:$0xff] }
   0x9   :  { %v91_v30 = vld [vmem:[%s1845_s0 + $0x260] sm:$0xff]  ;;  %v93_v31 = vld [vmem:[%s1845_s0 + $0x270] sm:$0xff]  ;;  %v26_v33 = vld [vmem:[%s1845_s0 + $0x58] sm:$0xff]  ;;  %v161_v36 = vpack.c.bf16 %v21_v29, %v19_v28 }
   0xa   :  { %424 = vmatpush1.bf16.msra.mxu0 %v956_v3  ;;  %946 = vmatpush1.bf16.msra.mxu1 %v956_v3  ;;  %v96_v34 = vld [vmem:[%s1845_s0 + $0x288] sm:$0xff]  ;;  %v98_v35 = vld [vmem:[%s1845_s0 + $0x298] sm:$0xff]  ;;  %v197_v37 = vpack.c.bf16 %v93_v31, %v91_v30  ;;  %v164_v38 = vpack.c.bf16 %v26_v33, %v24_v32  ;;  %v23_v40 = vld [vmem:[%s1845_s0 + $0x40] sm:$0xff] }
   0xb   :  { %425 = vmatprep.subr.bf16.mxu0 %v963_v0  ;;  %938 = vmatprep.subr.bf16.mxu1 %v963_v0  ;;  %v200_v39 = vpack.c.bf16 %v98_v35, %v96_v34  ;;  %v25_v41 = vld [vmem:[%s1845_s0 + $0x50] sm:$0xff]  ;;  %v95_v42 = vld [vmem:[%s1845_s0 + $0x280] sm:$0xff]  ;;  %v28_v44 = vld [vmem:[%s1845_s0 + $0x68] sm:$0xff] }
   0xc   :  { %v97_v43 = vld [vmem:[%s1845_s0 + $0x290] sm:$0xff]  ;;  %v30_v45 = vld [vmem:[%s1845_s0 + $0x78] sm:$0xff]  ;;  %v100_v46 = vld [vmem:[%s1845_s0 + $0x2a8] sm:$0xff]  ;;  %v163_v48 = vpack.c.bf16 %v25_v41, %v23_v40 }
   0xd   :  { %v102_v47 = vld [vmem:[%s1845_s0 + $0x2b8] sm:$0xff]  ;;  %v199_v49 = vpack.c.bf16 %v97_v43, %v95_v42  ;;  %v166_v50 = vpack.c.bf16 %v30_v45, %v28_v44  ;;  %v27_v52 = vld [vmem:[%s1845_s0 + $0x60] sm:$0xff]  ;;  %v29_v53 = vld [vmem:[%s1845_s0 + $0x70] sm:$0xff] }
   0xe   :  { %426 = vmatpush1.bf16.msra.mxu0 %v957_v7  ;;  %947 = vmatpush1.bf16.msra.mxu1 %v957_v7  ;;  %v202_v51 = vpack.c.bf16 %v102_v47, %v100_v46  ;;  %v99_v54 = vld [vmem:[%s1845_s0 + $0x2a0] sm:$0xff]  ;;  %v101_v55 = vld [vmem:[%s1845_s0 + $0x2b0] sm:$0xff]  ;;  %v32_v56 = vld [vmem:[%s1845_s0 + $0x88] sm:$0xff]  ;;  %v165_v60 = vpack.c.bf16 %v29_v53, %v27_v52 }
   0xf   :  { %427 = vmatprep.subr.bf16.mxu0 %v963_v0  ;;  %939 = vmatprep.subr.bf16.mxu1 %v963_v0  ;;  %v34_v57 = vld [vmem:[%s1845_s0 + $0x98] sm:$0xff]  ;;  %v104_v58 = vld [vmem:[%s1845_s0 + $0x2c8] sm:$0xff]  ;;  %v201_v61 = vpack.c.bf16 %v101_v55, %v99_v54  ;;  %v33_v1 = vld [vmem:[%s1845_s0 + $0x90] sm:$0xff] }
  0x10   :  { %v106_v59 = vld [vmem:[%s1845_s0 + $0x2d8] sm:$0xff]  ;;  %v168_v62 = vpack.c.bf16 %v34_v57, %v32_v56  ;;  %v103_v2 = vld [vmem:[%s1845_s0 + $0x2c0] sm:$0xff]  ;;  %v105_v3 = vld [vmem:[%s1845_s0 + $0x2d0] sm:$0xff] }
  0x11   :  { %v204_v63 = vpack.c.bf16 %v106_v59, %v104_v58  ;;  %v36_v4 = vld [vmem:[%s1845_s0 + $0xa8] sm:$0xff]  ;;  %v38_v5 = vld [vmem:[%s1845_s0 + $0xb8] sm:$0xff]  ;;  %v203_v9 = vpack.c.bf16 %v105_v3, %v103_v2 }
  0x12   :  { %428 = vmatpush1.bf16.msra.mxu0 %v958_v11  ;;  %948 = vmatpush1.bf16.msra.mxu1 %v958_v11  ;;  %v108_v6 = vld [vmem:[%s1845_s0 + $0x2e8] sm:$0xff]  ;;  %v110_v7 = vld [vmem:[%s1845_s0 + $0x2f8] sm:$0xff]  ;;  %v170_v10 = vpack.c.bf16 %v38_v5, %v36_v4 }
  0x13   :  { %429 = vmatprep.subr.bf16.mxu0 %v963_v0  ;;  %940 = vmatprep.subr.bf16.mxu1 %v963_v0  ;;  %v206_v11 = vpack.c.bf16 %v110_v7, %v108_v6  ;;  %v40_v16 = vld [vmem:[%s1845_s0 + $0xc8] sm:$0xff]  ;;  %v42_v17 = vld [vmem:[%s1845_s0 + $0xd8] sm:$0xff] }
  0x14   :  { %v112_v18 = vld [vmem:[%s1845_s0 + $0x308] sm:$0xff]  ;;  %v114_v19 = vld [vmem:[%s1845_s0 + $0x318] sm:$0xff]  ;;  %v172_v22 = vpack.c.bf16 %v42_v17, %v40_v16 }
  0x15   :  { %v208_v23 = vpack.c.bf16 %v114_v19, %v112_v18  ;;  %v44_v28 = vld [vmem:[%s1845_s0 + $0xe8] sm:$0xff]  ;;  %v46_v29 = vld [vmem:[%s1845_s0 + $0xf8] sm:$0xff] }
  0x16   :  { %430 = vmatpush1.bf16.msra.mxu0 %v959_v12  ;;  %949 = vmatpush1.bf16.msra.mxu1 %v959_v12  ;;  %v35_v12 = vld [vmem:[%s1845_s0 + $0xa0] sm:$0xff]  ;;  %v116_v30 = vld [vmem:[%s1845_s0 + $0x328] sm:$0xff]  ;;  %v118_v31 = vld [vmem:[%s1845_s0 + $0x338] sm:$0xff]  ;;  %v174_v34 = vpack.c.bf16 %v46_v29, %v44_v28 }
  0x17   :  { %431 = vmatprep.subr.bf16.mxu0 %v963_v0  ;;  %941 = vmatprep.subr.bf16.mxu1 %v963_v0  ;;  %v210_v35 = vpack.c.bf16 %v118_v31, %v116_v30  ;;  %v48_v40 = vld [vmem:[%s1845_s0 + $0x108] sm:$0xff]  ;;  %v50_v41 = vld [vmem:[%s1845_s0 + $0x118] sm:$0xff] }
  0x18   :  { %v120_v42 = vld [vmem:[%s1845_s0 + $0x348] sm:$0xff]  ;;  %v122_v43 = vld [vmem:[%s1845_s0 + $0x358] sm:$0xff]  ;;  %v176_v46 = vpack.c.bf16 %v50_v41, %v48_v40 }
  0x19   :  { %v212_v47 = vpack.c.bf16 %v122_v43, %v120_v42  ;;  %v52_v52 = vld [vmem:[%s1845_s0 + $0x128] sm:$0xff]  ;;  %v54_v53 = vld [vmem:[%s1845_s0 + $0x138] sm:$0xff] }
  0x1a   :  { %432 = vmatpush1.bf16.msra.mxu0 %v960_v13  ;;  %950 = vmatpush1.bf16.msra.mxu1 %v960_v13  ;;  %v37_v13 = vld [vmem:[%s1845_s0 + $0xb0] sm:$0xff]  ;;  %v124_v54 = vld [vmem:[%s1845_s0 + $0x368] sm:$0xff]  ;;  %v126_v55 = vld [vmem:[%s1845_s0 + $0x378] sm:$0xff]  ;;  %v178_v58 = vpack.c.bf16 %v54_v53, %v52_v52 }
  0x1b   :  { %433 = vmatprep.subr.bf16.mxu0 %v963_v0  ;;  %942 = vmatprep.subr.bf16.mxu1 %v963_v0  ;;  %v169_v20 = vpack.c.bf16 %v37_v13, %v35_v12  ;;  %v214_v59 = vpack.c.bf16 %v126_v55, %v124_v54  ;;  %v128_v2 = vld [vmem:[%s1845_s0 + $0x388] sm:$0xff]  ;;  %v130_v3 = vld [vmem:[%s1845_s0 + $0x398] sm:$0xff] }
  0x1c   :  { %v216_v7 = vpack.c.bf16 %v130_v3, %v128_v2  ;;  %v60_v12 = vld [vmem:[%s1845_s0 + $0x168] sm:$0xff]  ;;  %v62_v13 = vld [vmem:[%s1845_s0 + $0x178] sm:$0xff] }
  0x1d   :  { %v182_v18 = vpack.c.bf16 %v62_v13, %v60_v12 }
  0x1e   :  { %434 = vmatpush1.bf16.msra.mxu0 %v961_v14  ;;  %951 = vmatpush1.bf16.msra.mxu1 %v961_v14  ;;  %v107_v14 = vld [vmem:[%s1845_s0 + $0x2e0] sm:$0xff] }
  0x1f   :  { %449 = vmatprep.subr.bf16.mxu0 %v963_v0  ;;  %943 = vmatprep.subr.bf16.mxu1 %v963_v0  ;;  %v31_v0 = vld [vmem:[%s1845_s0 + $0x80] sm:$0xff] }
  0x20   :  { %v167_v8 = vpack.c.bf16 %v33_v1, %v31_v0  ;;  %v56_v0 = vld [vmem:[%s1845_s0 + $0x148] sm:$0xff]  ;;  %v58_v1 = vld [vmem:[%s1845_s0 + $0x158] sm:$0xff] }
  0x21   :  { %v180_v6 = vpack.c.bf16 %v58_v1, %v56_v0 }
  0x22   :  { %450 = vmatpush2.bf16.msra.mxu0 %v962_v15  ;;  %952 = vmatpush2.bf16.msra.mxu1 %v962_v15  ;;  %v109_v15 = vld [vmem:[%s1845_s0 + $0x2f0] sm:$0xff] }
  0x23   :  { %v205_v21 = vpack.c.bf16 %v109_v15, %v107_v14  ;;  %v132_v14 = vld [vmem:[%s1845_s0 + $0x3a8] sm:$0xff]  ;;  %v134_v15 = vld [vmem:[%s1845_s0 + $0x3b8] sm:$0xff] }
  0x24   :  { %v218_v19 = vpack.c.bf16 %v134_v15, %v132_v14 }
  0x25   :  { %452 = vmatmul.mubr.bf16.vlgmr.msra.gmra.mxu0 %v159_v24  ;;  %596 = vmatmul.mubr.bf16.vlgmr.msra.gmra.mxu1 %v195_v25  ;;  %v39_v24 = vld [vmem:[%s1845_s0 + $0xc0] sm:$0xff]  ;;  %v41_v25 = vld [vmem:[%s1845_s0 + $0xd0] sm:$0xff] }
  0x26   :  { %900 = vmatprep.mubr.msk.bf16.mxu0 %vm310_vm0, %v162_v26  ;;  %918 = vmatprep.mubr.msk.bf16.mxu1 %vm310_vm0, %v198_v27  ;;  %v111_v26 = vld [vmem:[%s1845_s0 + $0x300] sm:$0xff]  ;;  %v113_v27 = vld [vmem:[%s1845_s0 + $0x310] sm:$0xff]  ;;  %v171_v32 = vpack.c.bf16 %v41_v25, %v39_v24  ;;  %v64_v24 = vld [vmem:[%s1845_s0 + $0x188] sm:$0xff] }
  0x27   :  { %v207_v33 = vpack.c.bf16 %v113_v27, %v111_v26  ;;  %v66_v25 = vld [vmem:[%s1845_s0 + $0x198] sm:$0xff]  ;;  %v136_v26 = vld [vmem:[%s1845_s0 + $0x3c8] sm:$0xff] }
  0x28   :  { %v138_v27 = vld [vmem:[%s1845_s0 + $0x3d8] sm:$0xff]  ;;  %v184_v30 = vpack.c.bf16 %v66_v25, %v64_v24 }
  0x29   :  { %v220_v31 = vpack.c.bf16 %v138_v27, %v136_v26 }
  0x2d   :  { %460 = vmatmul.mubr.bf16.gmra.mxu0 %v161_v36  ;;  %604 = vmatmul.mubr.bf16.gmra.mxu1 %v197_v37  ;;  %v43_v36 = vld [vmem:[%s1845_s0 + $0xe0] sm:$0xff]  ;;  %v45_v37 = vld [vmem:[%s1845_s0 + $0xf0] sm:$0xff] }
  0x2e   :  { %901 = vmatprep.mubr.msk.bf16.mxu0 %vm310_vm0, %v164_v38  ;;  %919 = vmatprep.mubr.msk.bf16.mxu1 %vm310_vm0, %v200_v39  ;;  %v115_v38 = vld [vmem:[%s1845_s0 + $0x320] sm:$0xff]  ;;  %v117_v39 = vld [vmem:[%s1845_s0 + $0x330] sm:$0xff]  ;;  %v173_v44 = vpack.c.bf16 %v45_v37, %v43_v36  ;;  %v68_v36 = vld [vmem:[%s1845_s0 + $0x1a8] sm:$0xff] }
  0x2f   :  { %v209_v45 = vpack.c.bf16 %v117_v39, %v115_v38  ;;  %v70_v37 = vld [vmem:[%s1845_s0 + $0x1b8] sm:$0xff]  ;;  %v140_v38 = vld [vmem:[%s1845_s0 + $0x3e8] sm:$0xff] }
  0x30   :  { %v142_v39 = vld [vmem:[%s1845_s0 + $0x3f8] sm:$0xff]  ;;  %v186_v42 = vpack.c.bf16 %v70_v37, %v68_v36 }
  0x31   :  { %v222_v43 = vpack.c.bf16 %v142_v39, %v140_v38 }
  0x35   :  { %468 = vmatmul.mubr.bf16.gmra.mxu0 %v163_v48  ;;  %612 = vmatmul.mubr.bf16.gmra.mxu1 %v199_v49  ;;  %v47_v48 = vld [vmem:[%s1845_s0 + $0x100] sm:$0xff]  ;;  %v49_v49 = vld [vmem:[%s1845_s0 + $0x110] sm:$0xff] }
  0x36   :  { %902 = vmatprep.mubr.msk.bf16.mxu0 %vm310_vm0, %v166_v50  ;;  %920 = vmatprep.mubr.msk.bf16.mxu1 %vm310_vm0, %v202_v51  ;;  %v119_v50 = vld [vmem:[%s1845_s0 + $0x340] sm:$0xff]  ;;  %v121_v51 = vld [vmem:[%s1845_s0 + $0x350] sm:$0xff]  ;;  %v175_v56 = vpack.c.bf16 %v49_v49, %v47_v48  ;;  %v72_v48 = vld [vmem:[%s1845_s0 + $0x1c8] sm:$0xff] }
  0x37   :  { %v211_v57 = vpack.c.bf16 %v121_v51, %v119_v50  ;;  %v74_v49 = vld [vmem:[%s1845_s0 + $0x1d8] sm:$0xff]  ;;  %v144_v50 = vld [vmem:[%s1845_s0 + $0x408] sm:$0xff] }
  0x38   :  { %v146_v51 = vld [vmem:[%s1845_s0 + $0x418] sm:$0xff]  ;;  %v188_v54 = vpack.c.bf16 %v74_v49, %v72_v48 }
  0x39   :  { %v224_v55 = vpack.c.bf16 %v146_v51, %v144_v50 }
  0x3d   :  { %476 = vmatmul.mubr.bf16.gmra.mxu0 %v165_v60  ;;  %620 = vmatmul.mubr.bf16.gmra.mxu1 %v201_v61  ;;  %v51_v60 = vld [vmem:[%s1845_s0 + $0x120] sm:$0xff]  ;;  %v53_v61 = vld [vmem:[%s1845_s0 + $0x130] sm:$0xff] }
  0x3e   :  { %903 = vmatprep.mubr.msk.bf16.mxu0 %vm310_vm0, %v168_v62  ;;  %921 = vmatprep.mubr.msk.bf16.mxu1 %vm310_vm0, %v204_v63  ;;  %v123_v62 = vld [vmem:[%s1845_s0 + $0x360] sm:$0xff]  ;;  %v125_v63 = vld [vmem:[%s1845_s0 + $0x370] sm:$0xff]  ;;  %v177_v4 = vpack.c.bf16 %v53_v61, %v51_v60  ;;  %v76_v60 = vld [vmem:[%s1845_s0 + $0x1e8] sm:$0xff] }
  0x3f   :  { %v213_v5 = vpack.c.bf16 %v125_v63, %v123_v62  ;;  %v78_v61 = vld [vmem:[%s1845_s0 + $0x1f8] sm:$0xff]  ;;  %v148_v62 = vld [vmem:[%s1845_s0 + $0x428] sm:$0xff] }
  0x40   :  { %v150_v63 = vld [vmem:[%s1845_s0 + $0x438] sm:$0xff]  ;;  %v190_v2 = vpack.c.bf16 %v78_v61, %v76_v60 }
  0x41   :  { %v226_v3 = vpack.c.bf16 %v150_v63, %v148_v62 }
  0x45   :  { %484 = vmatmul.mubr.bf16.gmra.mxu0 %v167_v8  ;;  %628 = vmatmul.mubr.bf16.gmra.mxu1 %v203_v9  ;;  %v55_v8 = vld [vmem:[%s1845_s0 + $0x140] sm:$0xff]  ;;  %v57_v9 = vld [vmem:[%s1845_s0 + $0x150] sm:$0xff] }
  0x46   :  { %904 = vmatprep.mubr.msk.bf16.mxu0 %vm310_vm0, %v170_v10  ;;  %922 = vmatprep.mubr.msk.bf16.mxu1 %vm310_vm0, %v206_v11  ;;  %v127_v10 = vld [vmem:[%s1845_s0 + $0x380] sm:$0xff]  ;;  %v129_v11 = vld [vmem:[%s1845_s0 + $0x390] sm:$0xff]  ;;  %v179_v16 = vpack.c.bf16 %v57_v9, %v55_v8  ;;  %v80_v8 = vld [vmem:[%s1845_s0 + $0x208] sm:$0xff] }
  0x47   :  { %v215_v17 = vpack.c.bf16 %v129_v11, %v127_v10  ;;  %v82_v9 = vld [vmem:[%s1845_s0 + $0x218] sm:$0xff]  ;;  %v152_v10 = vld [vmem:[%s1845_s0 + $0x448] sm:$0xff] }
  0x48   :  { %v154_v11 = vld [vmem:[%s1845_s0 + $0x458] sm:$0xff]  ;;  %v192_v14 = vpack.c.bf16 %v82_v9, %v80_v8 }
  0x49   :  { %v228_v15 = vpack.c.bf16 %v154_v11, %v152_v10 }
  0x4d   :  { %492 = vmatmul.mubr.bf16.gmra.mxu0 %v169_v20  ;;  %636 = vmatmul.mubr.bf16.gmra.mxu1 %v205_v21  ;;  %v59_v20 = vld [vmem:[%s1845_s0 + $0x160] sm:$0xff]  ;;  %v61_v21 = vld [vmem:[%s1845_s0 + $0x170] sm:$0xff] }
  0x4e   :  { %905 = vmatprep.mubr.msk.bf16.mxu0 %vm310_vm0, %v172_v22  ;;  %923 = vmatprep.mubr.msk.bf16.mxu1 %vm310_vm0, %v208_v23  ;;  %v131_v22 = vld [vmem:[%s1845_s0 + $0x3a0] sm:$0xff]  ;;  %v133_v23 = vld [vmem:[%s1845_s0 + $0x3b0] sm:$0xff]  ;;  %v181_v28 = vpack.c.bf16 %v61_v21, %v59_v20  ;;  %v84_v20 = vld [vmem:[%s1845_s0 + $0x228] sm:$0xff] }
  0x4f   :  { %v217_v29 = vpack.c.bf16 %v133_v23, %v131_v22  ;;  %v86_v21 = vld [vmem:[%s1845_s0 + $0x238] sm:$0xff]  ;;  %v156_v22 = vld [vmem:[%s1845_s0 + $0x468] sm:$0xff] }
  0x50   :  { %v158_v23 = vld [vmem:[%s1845_s0 + $0x478] sm:$0xff]  ;;  %v194_v26 = vpack.c.bf16 %v86_v21, %v84_v20 }
  0x51   :  { %v230_v27 = vpack.c.bf16 %v158_v23, %v156_v22 }
  0x55   :  { %500 = vmatmul.mubr.bf16.gmra.mxu0 %v171_v32  ;;  %644 = vmatmul.mubr.bf16.gmra.mxu1 %v207_v33  ;;  %v63_v32 = vld [vmem:[%s1845_s0 + $0x180] sm:$0xff]  ;;  %v65_v33 = vld [vmem:[%s1845_s0 + $0x190] sm:$0xff] }
  0x56   :  { %906 = vmatprep.mubr.msk.bf16.mxu0 %vm310_vm0, %v174_v34  ;;  %924 = vmatprep.mubr.msk.bf16.mxu1 %vm310_vm0, %v210_v35  ;;  %v135_v34 = vld [vmem:[%s1845_s0 + $0x3c0] sm:$0xff]  ;;  %v137_v35 = vld [vmem:[%s1845_s0 + $0x3d0] sm:$0xff]  ;;  %v183_v40 = vpack.c.bf16 %v65_v33, %v63_v32 }
  0x57   :  { %v219_v41 = vpack.c.bf16 %v137_v35, %v135_v34  ;;  %v1482_v34 = vld [vmem:[%s1846_s2] ss:$0 sm:$0xff] }
  0x5d   :  { %508 = vmatmul.mubr.bf16.gmra.mxu0 %v173_v44  ;;  %652 = vmatmul.mubr.bf16.gmra.mxu1 %v209_v45  ;;  %v67_v44 = vld [vmem:[%s1845_s0 + $0x1a0] sm:$0xff]  ;;  %v69_v45 = vld [vmem:[%s1845_s0 + $0x1b0] sm:$0xff] }
  0x5e   :  { %907 = vmatprep.mubr.msk.bf16.mxu0 %vm310_vm0, %v176_v46  ;;  %925 = vmatprep.mubr.msk.bf16.mxu1 %vm310_vm0, %v212_v47  ;;  %v139_v46 = vld [vmem:[%s1845_s0 + $0x3e0] sm:$0xff]  ;;  %v141_v47 = vld [vmem:[%s1845_s0 + $0x3f0] sm:$0xff]  ;;  %v185_v52 = vpack.c.bf16 %v69_v45, %v67_v44 }
  0x5f   :  { %v221_v53 = vpack.c.bf16 %v141_v47, %v139_v46 }
  0x65   :  { %516 = vmatmul.mubr.bf16.gmra.mxu0 %v175_v56  ;;  %660 = vmatmul.mubr.bf16.gmra.mxu1 %v211_v57  ;;  %v71_v56 = vld [vmem:[%s1845_s0 + $0x1c0] sm:$0xff]  ;;  %v73_v57 = vld [vmem:[%s1845_s0 + $0x1d0] sm:$0xff] }
  0x66   :  { %908 = vmatprep.mubr.msk.bf16.mxu0 %vm310_vm0, %v178_v58  ;;  %926 = vmatprep.mubr.msk.bf16.mxu1 %vm310_vm0, %v214_v59  ;;  %v143_v58 = vld [vmem:[%s1845_s0 + $0x400] sm:$0xff]  ;;  %v145_v59 = vld [vmem:[%s1845_s0 + $0x410] sm:$0xff]  ;;  %v187_v0 = vpack.c.bf16 %v73_v57, %v71_v56 }
  0x67   :  { %v223_v1 = vpack.c.bf16 %v145_v59, %v143_v58 }
  0x6d   :  { %524 = vmatmul.mubr.bf16.gmra.mxu0 %v177_v4  ;;  %668 = vmatmul.mubr.bf16.gmra.mxu1 %v213_v5  ;;  %v75_v4 = vld [vmem:[%s1845_s0 + $0x1e0] sm:$0xff]  ;;  %v77_v5 = vld [vmem:[%s1845_s0 + $0x1f0] sm:$0xff] }
  0x6e   :  { %909 = vmatprep.mubr.msk.bf16.mxu0 %vm310_vm0, %v180_v6  ;;  %927 = vmatprep.mubr.msk.bf16.mxu1 %vm310_vm0, %v216_v7  ;;  %v147_v6 = vld [vmem:[%s1845_s0 + $0x420] sm:$0xff]  ;;  %v149_v7 = vld [vmem:[%s1845_s0 + $0x430] sm:$0xff]  ;;  %v189_v12 = vpack.c.bf16 %v77_v5, %v75_v4 }
  0x6f   :  { %v225_v13 = vpack.c.bf16 %v149_v7, %v147_v6 }
  0x75   :  { %532 = vmatmul.mubr.bf16.gmra.mxu0 %v179_v16  ;;  %676 = vmatmul.mubr.bf16.gmra.mxu1 %v215_v17  ;;  %v79_v16 = vld [vmem:[%s1845_s0 + $0x200] sm:$0xff]  ;;  %v81_v17 = vld [vmem:[%s1845_s0 + $0x210] sm:$0xff] }
  0x76   :  { %910 = vmatprep.mubr.msk.bf16.mxu0 %vm310_vm0, %v182_v18  ;;  %928 = vmatprep.mubr.msk.bf16.mxu1 %vm310_vm0, %v218_v19  ;;  %v151_v18 = vld [vmem:[%s1845_s0 + $0x440] sm:$0xff]  ;;  %v153_v19 = vld [vmem:[%s1845_s0 + $0x450] sm:$0xff]  ;;  %v191_v24 = vpack.c.bf16 %v81_v17, %v79_v16 }
  0x77   :  { %v227_v25 = vpack.c.bf16 %v153_v19, %v151_v18 }
  0x7d   :  { %540 = vmatmul.mubr.bf16.gmra.mxu0 %v181_v28  ;;  %684 = vmatmul.mubr.bf16.gmra.mxu1 %v217_v29  ;;  %v83_v28 = vld [vmem:[%s1845_s0 + $0x220] sm:$0xff]  ;;  %v85_v29 = vld [vmem:[%s1845_s0 + $0x230] sm:$0xff] }
  0x7e   :  { %911 = vmatprep.mubr.msk.bf16.mxu0 %vm310_vm0, %v184_v30  ;;  %929 = vmatprep.mubr.msk.bf16.mxu1 %vm310_vm0, %v220_v31  ;;  %v155_v30 = vld [vmem:[%s1845_s0 + $0x460] sm:$0xff]  ;;  %v157_v31 = vld [vmem:[%s1845_s0 + $0x470] sm:$0xff]  ;;  %v193_v32 = vpack.c.bf16 %v85_v29, %v83_v28 }
  0x7f   :  { %v229_v33 = vpack.c.bf16 %v157_v31, %v155_v30 }
  0x85   :  { %548 = vmatmul.mubr.bf16.gmra.mxu0 %v183_v40  ;;  %692 = vmatmul.mubr.bf16.gmra.mxu1 %v219_v41 }
  0x86   :  { %912 = vmatprep.mubr.msk.bf16.mxu0 %vm310_vm0, %v186_v42  ;;  %930 = vmatprep.mubr.msk.bf16.mxu1 %vm310_vm0, %v222_v43 }
  0x8d   :  { %556 = vmatmul.mubr.bf16.gmra.mxu0 %v185_v52  ;;  %700 = vmatmul.mubr.bf16.gmra.mxu1 %v221_v53 }
  0x8e   :  { %913 = vmatprep.mubr.msk.bf16.mxu0 %vm310_vm0, %v188_v54  ;;  %931 = vmatprep.mubr.msk.bf16.mxu1 %vm310_vm0, %v224_v55 }
  0x95   :  { %564 = vmatmul.mubr.bf16.gmra.mxu0 %v187_v0  ;;  %708 = vmatmul.mubr.bf16.gmra.mxu1 %v223_v1 }
  0x96   :  { %914 = vmatprep.mubr.msk.bf16.mxu0 %vm310_vm0, %v190_v2  ;;  %932 = vmatprep.mubr.msk.bf16.mxu1 %vm310_vm0, %v226_v3 }
  0x9d   :  { %572 = vmatmul.mubr.bf16.gmra.mxu0 %v189_v12  ;;  %716 = vmatmul.mubr.bf16.gmra.mxu1 %v225_v13 }
  0x9e   :  { %915 = vmatprep.mubr.msk.bf16.mxu0 %vm310_vm0, %v192_v14  ;;  %933 = vmatprep.mubr.msk.bf16.mxu1 %vm310_vm0, %v228_v15 }
  0xa5   :  { %580 = vmatmul.mubr.bf16.gmra.mxu0 %v191_v24  ;;  %724 = vmatmul.mubr.bf16.gmra.mxu1 %v227_v25 }
  0xa6   :  { %916 = vmatprep.mubr.msk.bf16.mxu0 %vm310_vm0, %v194_v26  ;;  %934 = vmatprep.mubr.msk.bf16.mxu1 %vm310_vm0, %v230_v27 }
  0xad   :  { %588 = vmatmul.mubr.bf16.gmra.mxu0 %v193_v32  ;;  %732 = vmatmul.mubr.bf16.gmra.mxu1 %v229_v33 }
  0xe5   :  { %v453_v35 = vpop.f32.mrf.mxu0  ;;  %v597_v36 = vpop.f32.mrf.mxu1 }
  0xe6   :  { %v454_v37 = vadd.f32 %v1482_v34, %v453_v35  ;;  %v598_v38 = vadd.f32 %v1482_v34, %v597_v36 }
  0xe7   :  { %v455_v39 = vpop.f32.mrf.mxu0  ;;  %v599_v40 = vpop.f32.mrf.mxu1 }
  0xe8   :  { %v740_v41 = vmax.f32 %v454_v37, 0.0  ;;  %v776_v42 = vmax.f32 %v598_v38, 0.0 }
  0xe9   :  { %v456_v43 = vpop.f32.mrf.mxu0  ;;  %v600_v44 = vpop.f32.mrf.mxu1 }
  0xea   :  { %813 = vst.msk [vmem:[%s1847_s3] sm:$0xff] %vm812_vm1, %v740_v41  ;;  %849 = vst.msk [vmem:[%s1847_s3 + $0x120] sm:$0xff] %vm812_vm1, %v776_v42  ;;  %v457_v45 = vadd.f32 %v1482_v34, %v456_v43  ;;  %v601_v46 = vadd.f32 %v1482_v34, %v600_v44 }
  0xeb   :  { %v458_v47 = vpop.f32.mrf.mxu0  ;;  %v602_v48 = vpop.f32.mrf.mxu1 }
  0xec   :  { %v741_v49 = vmax.f32 %v457_v45, 0.0  ;;  %v777_v50 = vmax.f32 %v601_v46, 0.0 }
  0xed   :  { %v461_v51 = vpop.f32.mrf.mxu0  ;;  %v605_v52 = vpop.f32.mrf.mxu1 }
  0xee   :  { %814 = vst.msk [vmem:[%s1847_s3 + $0x8] sm:$0xff] %vm812_vm1, %v741_v49  ;;  %850 = vst.msk [vmem:[%s1847_s3 + $0x128] sm:$0xff] %vm812_vm1, %v777_v50  ;;  %v462_v53 = vadd.f32 %v1482_v34, %v461_v51  ;;  %v606_v54 = vadd.f32 %v1482_v34, %v605_v52 }
  0xef   :  { %v463_v55 = vpop.f32.mrf.mxu0  ;;  %v607_v56 = vpop.f32.mrf.mxu1 }
  0xf0   :  { %v742_v57 = vmax.f32 %v462_v53, 0.0  ;;  %v778_v58 = vmax.f32 %v606_v54, 0.0 }
  0xf1   :  { %v464_v59 = vpop.f32.mrf.mxu0  ;;  %v608_v60 = vpop.f32.mrf.mxu1 }
  0xf2   :  { %815 = vst.msk [vmem:[%s1847_s3 + $0x10] sm:$0xff] %vm812_vm1, %v742_v57  ;;  %851 = vst.msk [vmem:[%s1847_s3 + $0x130] sm:$0xff] %vm812_vm1, %v778_v58  ;;  %v465_v61 = vadd.f32 %v1482_v34, %v464_v59  ;;  %v609_v62 = vadd.f32 %v1482_v34, %v608_v60 }
  0xf3   :  { %v466_v63 = vpop.f32.mrf.mxu0  ;;  %v610_v0 = vpop.f32.mrf.mxu1 }
  0xf4   :  { %v743_v1 = vmax.f32 %v465_v61, 0.0  ;;  %v779_v2 = vmax.f32 %v609_v62, 0.0 }
  0xf5   :  { %v469_v3 = vpop.f32.mrf.mxu0  ;;  %v613_v4 = vpop.f32.mrf.mxu1 }
  0xf6   :  { %816 = vst.msk [vmem:[%s1847_s3 + $0x18] sm:$0xff] %vm812_vm1, %v743_v1  ;;  %852 = vst.msk [vmem:[%s1847_s3 + $0x138] sm:$0xff] %vm812_vm1, %v779_v2  ;;  %v470_v5 = vadd.f32 %v1482_v34, %v469_v3  ;;  %v614_v6 = vadd.f32 %v1482_v34, %v613_v4 }
  0xf7   :  { %v471_v7 = vpop.f32.mrf.mxu0  ;;  %v615_v8 = vpop.f32.mrf.mxu1 }
  0xf8   :  { %v744_v9 = vmax.f32 %v470_v5, 0.0  ;;  %v780_v10 = vmax.f32 %v614_v6, 0.0 }
  0xf9   :  { %v472_v11 = vpop.f32.mrf.mxu0  ;;  %v616_v12 = vpop.f32.mrf.mxu1 }
  0xfa   :  { %817 = vst.msk [vmem:[%s1847_s3 + $0x20] sm:$0xff] %vm812_vm1, %v744_v9  ;;  %853 = vst.msk [vmem:[%s1847_s3 + $0x140] sm:$0xff] %vm812_vm1, %v780_v10  ;;  %v473_v13 = vadd.f32 %v1482_v34, %v472_v11  ;;  %v617_v14 = vadd.f32 %v1482_v34, %v616_v12 }
  0xfb   :  { %v474_v15 = vpop.f32.mrf.mxu0  ;;  %v618_v16 = vpop.f32.mrf.mxu1 }
  0xfc   :  { %v745_v17 = vmax.f32 %v473_v13, 0.0  ;;  %v781_v18 = vmax.f32 %v617_v14, 0.0 }
  0xfd   :  { %v477_v19 = vpop.f32.mrf.mxu0  ;;  %v621_v20 = vpop.f32.mrf.mxu1 }
  0xfe   :  { %818 = vst.msk [vmem:[%s1847_s3 + $0x28] sm:$0xff] %vm812_vm1, %v745_v17  ;;  %854 = vst.msk [vmem:[%s1847_s3 + $0x148] sm:$0xff] %vm812_vm1, %v781_v18  ;;  %v478_v21 = vadd.f32 %v1482_v34, %v477_v19  ;;  %v622_v22 = vadd.f32 %v1482_v34, %v621_v20 }
  0xff   :  { %v479_v23 = vpop.f32.mrf.mxu0  ;;  %v623_v24 = vpop.f32.mrf.mxu1 }
 0x100   :  { %v746_v25 = vmax.f32 %v478_v21, 0.0  ;;  %v782_v26 = vmax.f32 %v622_v22, 0.0 }
 0x101   :  { %v480_v27 = vpop.f32.mrf.mxu0  ;;  %v624_v28 = vpop.f32.mrf.mxu1 }
 0x102   :  { %819 = vst.msk [vmem:[%s1847_s3 + $0x30] sm:$0xff] %vm812_vm1, %v746_v25  ;;  %855 = vst.msk [vmem:[%s1847_s3 + $0x150] sm:$0xff] %vm812_vm1, %v782_v26  ;;  %v481_v29 = vadd.f32 %v1482_v34, %v480_v27  ;;  %v625_v30 = vadd.f32 %v1482_v34, %v624_v28 }
 0x103   :  { %v482_v31 = vpop.f32.mrf.mxu0  ;;  %v626_v32 = vpop.f32.mrf.mxu1 }
 0x104   :  { %v747_v33 = vmax.f32 %v481_v29, 0.0  ;;  %v783_v35 = vmax.f32 %v625_v30, 0.0 }
 0x105   :  { %v485_v36 = vpop.f32.mrf.mxu0  ;;  %v629_v37 = vpop.f32.mrf.mxu1 }
 0x106   :  { %820 = vst.msk [vmem:[%s1847_s3 + $0x38] sm:$0xff] %vm812_vm1, %v747_v33  ;;  %856 = vst.msk [vmem:[%s1847_s3 + $0x158] sm:$0xff] %vm812_vm1, %v783_v35  ;;  %v486_v38 = vadd.f32 %v1482_v34, %v485_v36  ;;  %v630_v39 = vadd.f32 %v1482_v34, %v629_v37 }
 0x107   :  { %v487_v40 = vpop.f32.mrf.mxu0  ;;  %v631_v41 = vpop.f32.mrf.mxu1 }
 0x108   :  { %v748_v42 = vmax.f32 %v486_v38, 0.0  ;;  %v784_v43 = vmax.f32 %v630_v39, 0.0 }
 0x109   :  { %v488_v44 = vpop.f32.mrf.mxu0  ;;  %v632_v45 = vpop.f32.mrf.mxu1 }
 0x10a   :  { %821 = vst.msk [vmem:[%s1847_s3 + $0x40] sm:$0xff] %vm812_vm1, %v748_v42  ;;  %857 = vst.msk [vmem:[%s1847_s3 + $0x160] sm:$0xff] %vm812_vm1, %v784_v43  ;;  %v489_v46 = vadd.f32 %v1482_v34, %v488_v44  ;;  %v633_v47 = vadd.f32 %v1482_v34, %v632_v45 }
 0x10b   :  { %v490_v48 = vpop.f32.mrf.mxu0  ;;  %v634_v49 = vpop.f32.mrf.mxu1 }
 0x10c   :  { %v749_v50 = vmax.f32 %v489_v46, 0.0  ;;  %v785_v51 = vmax.f32 %v633_v47, 0.0 }
 0x10d   :  { %v493_v52 = vpop.f32.mrf.mxu0  ;;  %v637_v53 = vpop.f32.mrf.mxu1 }
 0x10e   :  { %822 = vst.msk [vmem:[%s1847_s3 + $0x48] sm:$0xff] %vm812_vm1, %v749_v50  ;;  %858 = vst.msk [vmem:[%s1847_s3 + $0x168] sm:$0xff] %vm812_vm1, %v785_v51  ;;  %v494_v54 = vadd.f32 %v1482_v34, %v493_v52  ;;  %v638_v55 = vadd.f32 %v1482_v34, %v637_v53 }
 0x10f   :  { %v495_v56 = vpop.f32.mrf.mxu0  ;;  %v639_v57 = vpop.f32.mrf.mxu1 }
 0x110   :  { %v750_v58 = vmax.f32 %v494_v54, 0.0  ;;  %v786_v59 = vmax.f32 %v638_v55, 0.0 }
 0x111   :  { %v496_v60 = vpop.f32.mrf.mxu0  ;;  %v640_v61 = vpop.f32.mrf.mxu1 }
 0x112   :  { %823 = vst.msk [vmem:[%s1847_s3 + $0x50] sm:$0xff] %vm812_vm1, %v750_v58  ;;  %859 = vst.msk [vmem:[%s1847_s3 + $0x170] sm:$0xff] %vm812_vm1, %v786_v59  ;;  %v497_v62 = vadd.f32 %v1482_v34, %v496_v60  ;;  %v641_v63 = vadd.f32 %v1482_v34, %v640_v61 }
 0x113   :  { %v498_v0 = vpop.f32.mrf.mxu0  ;;  %v642_v1 = vpop.f32.mrf.mxu1 }
 0x114   :  { %v751_v2 = vmax.f32 %v497_v62, 0.0  ;;  %v787_v3 = vmax.f32 %v641_v63, 0.0 }
 0x115   :  { %v501_v4 = vpop.f32.mrf.mxu0  ;;  %v645_v5 = vpop.f32.mrf.mxu1 }
 0x116   :  { %824 = vst.msk [vmem:[%s1847_s3 + $0x58] sm:$0xff] %vm812_vm1, %v751_v2  ;;  %860 = vst.msk [vmem:[%s1847_s3 + $0x178] sm:$0xff] %vm812_vm1, %v787_v3  ;;  %v502_v6 = vadd.f32 %v1482_v34, %v501_v4  ;;  %v646_v7 = vadd.f32 %v1482_v34, %v645_v5 }
 0x117   :  { %v503_v8 = vpop.f32.mrf.mxu0  ;;  %v647_v9 = vpop.f32.mrf.mxu1 }
 0x118   :  { %v752_v10 = vmax.f32 %v502_v6, 0.0  ;;  %v788_v11 = vmax.f32 %v646_v7, 0.0 }
 0x119   :  { %v504_v12 = vpop.f32.mrf.mxu0  ;;  %v648_v13 = vpop.f32.mrf.mxu1 }
 0x11a   :  { %825 = vst.msk [vmem:[%s1847_s3 + $0x60] sm:$0xff] %vm812_vm1, %v752_v10  ;;  %861 = vst.msk [vmem:[%s1847_s3 + $0x180] sm:$0xff] %vm812_vm1, %v788_v11  ;;  %v505_v14 = vadd.f32 %v1482_v34, %v504_v12  ;;  %v649_v15 = vadd.f32 %v1482_v34, %v648_v13 }
 0x11b   :  { %v506_v16 = vpop.f32.mrf.mxu0  ;;  %v650_v17 = vpop.f32.mrf.mxu1 }
 0x11c   :  { %v753_v18 = vmax.f32 %v505_v14, 0.0  ;;  %v789_v19 = vmax.f32 %v649_v15, 0.0 }
 0x11d   :  { %v509_v20 = vpop.f32.mrf.mxu0  ;;  %v653_v21 = vpop.f32.mrf.mxu1 }
 0x11e   :  { %826 = vst.msk [vmem:[%s1847_s3 + $0x68] sm:$0xff] %vm812_vm1, %v753_v18  ;;  %862 = vst.msk [vmem:[%s1847_s3 + $0x188] sm:$0xff] %vm812_vm1, %v789_v19  ;;  %v510_v22 = vadd.f32 %v1482_v34, %v509_v20  ;;  %v654_v23 = vadd.f32 %v1482_v34, %v653_v21 }
 0x11f   :  { %v511_v24 = vpop.f32.mrf.mxu0  ;;  %v655_v25 = vpop.f32.mrf.mxu1 }
 0x120   :  { %v754_v26 = vmax.f32 %v510_v22, 0.0  ;;  %v790_v27 = vmax.f32 %v654_v23, 0.0 }
 0x121   :  { %v512_v28 = vpop.f32.mrf.mxu0  ;;  %v656_v29 = vpop.f32.mrf.mxu1 }
 0x122   :  { %827 = vst.msk [vmem:[%s1847_s3 + $0x70] sm:$0xff] %vm812_vm1, %v754_v26  ;;  %863 = vst.msk [vmem:[%s1847_s3 + $0x190] sm:$0xff] %vm812_vm1, %v790_v27  ;;  %v513_v30 = vadd.f32 %v1482_v34, %v512_v28  ;;  %v657_v31 = vadd.f32 %v1482_v34, %v656_v29 }
 0x123   :  { %v514_v32 = vpop.f32.mrf.mxu0  ;;  %v658_v33 = vpop.f32.mrf.mxu1 }
 0x124   :  { %v755_v35 = vmax.f32 %v513_v30, 0.0  ;;  %v791_v36 = vmax.f32 %v657_v31, 0.0 }
 0x125   :  { %v517_v37 = vpop.f32.mrf.mxu0  ;;  %v661_v38 = vpop.f32.mrf.mxu1 }
 0x126   :  { %828 = vst.msk [vmem:[%s1847_s3 + $0x78] sm:$0xff] %vm812_vm1, %v755_v35  ;;  %864 = vst.msk [vmem:[%s1847_s3 + $0x198] sm:$0xff] %vm812_vm1, %v791_v36  ;;  %v518_v39 = vadd.f32 %v1482_v34, %v517_v37  ;;  %v662_v40 = vadd.f32 %v1482_v34, %v661_v38 }
 0x127   :  { %v519_v41 = vpop.f32.mrf.mxu0  ;;  %v663_v42 = vpop.f32.mrf.mxu1 }
 0x128   :  { %v756_v43 = vmax.f32 %v518_v39, 0.0  ;;  %v792_v44 = vmax.f32 %v662_v40, 0.0 }
 0x129   :  { %v520_v45 = vpop.f32.mrf.mxu0  ;;  %v664_v46 = vpop.f32.mrf.mxu1 }
 0x12a   :  { %829 = vst.msk [vmem:[%s1847_s3 + $0x80] sm:$0xff] %vm812_vm1, %v756_v43  ;;  %865 = vst.msk [vmem:[%s1847_s3 + $0x1a0] sm:$0xff] %vm812_vm1, %v792_v44  ;;  %v521_v47 = vadd.f32 %v1482_v34, %v520_v45  ;;  %v665_v48 = vadd.f32 %v1482_v34, %v664_v46 }
 0x12b   :  { %v522_v49 = vpop.f32.mrf.mxu0  ;;  %v666_v50 = vpop.f32.mrf.mxu1 }
 0x12c   :  { %v757_v51 = vmax.f32 %v521_v47, 0.0  ;;  %v793_v52 = vmax.f32 %v665_v48, 0.0 }
 0x12d   :  { %v525_v53 = vpop.f32.mrf.mxu0  ;;  %v669_v54 = vpop.f32.mrf.mxu1 }
 0x12e   :  { %830 = vst.msk [vmem:[%s1847_s3 + $0x88] sm:$0xff] %vm812_vm1, %v757_v51  ;;  %866 = vst.msk [vmem:[%s1847_s3 + $0x1a8] sm:$0xff] %vm812_vm1, %v793_v52  ;;  %v526_v55 = vadd.f32 %v1482_v34, %v525_v53  ;;  %v670_v56 = vadd.f32 %v1482_v34, %v669_v54 }
 0x12f   :  { %v527_v57 = vpop.f32.mrf.mxu0  ;;  %v671_v58 = vpop.f32.mrf.mxu1 }
 0x130   :  { %v758_v59 = vmax.f32 %v526_v55, 0.0  ;;  %v794_v60 = vmax.f32 %v670_v56, 0.0 }
 0x131   :  { %v528_v61 = vpop.f32.mrf.mxu0  ;;  %v672_v62 = vpop.f32.mrf.mxu1 }
 0x132   :  { %831 = vst.msk [vmem:[%s1847_s3 + $0x90] sm:$0xff] %vm812_vm1, %v758_v59  ;;  %867 = vst.msk [vmem:[%s1847_s3 + $0x1b0] sm:$0xff] %vm812_vm1, %v794_v60  ;;  %v529_v63 = vadd.f32 %v1482_v34, %v528_v61  ;;  %v673_v0 = vadd.f32 %v1482_v34, %v672_v62 }
 0x133   :  { %v530_v1 = vpop.f32.mrf.mxu0  ;;  %v674_v2 = vpop.f32.mrf.mxu1 }
 0x134   :  { %v759_v3 = vmax.f32 %v529_v63, 0.0  ;;  %v795_v4 = vmax.f32 %v673_v0, 0.0 }
 0x135   :  { %v533_v5 = vpop.f32.mrf.mxu0  ;;  %v677_v6 = vpop.f32.mrf.mxu1 }
 0x136   :  { %832 = vst.msk [vmem:[%s1847_s3 + $0x98] sm:$0xff] %vm812_vm1, %v759_v3  ;;  %868 = vst.msk [vmem:[%s1847_s3 + $0x1b8] sm:$0xff] %vm812_vm1, %v795_v4  ;;  %v534_v7 = vadd.f32 %v1482_v34, %v533_v5  ;;  %v678_v8 = vadd.f32 %v1482_v34, %v677_v6 }
 0x137   :  { %v535_v9 = vpop.f32.mrf.mxu0  ;;  %v679_v10 = vpop.f32.mrf.mxu1 }
 0x138   :  { %v760_v11 = vmax.f32 %v534_v7, 0.0  ;;  %v796_v12 = vmax.f32 %v678_v8, 0.0 }
 0x139   :  { %v536_v13 = vpop.f32.mrf.mxu0  ;;  %v680_v14 = vpop.f32.mrf.mxu1 }
 0x13a   :  { %833 = vst.msk [vmem:[%s1847_s3 + $0xa0] sm:$0xff] %vm812_vm1, %v760_v11  ;;  %869 = vst.msk [vmem:[%s1847_s3 + $0x1c0] sm:$0xff] %vm812_vm1, %v796_v12  ;;  %v537_v15 = vadd.f32 %v1482_v34, %v536_v13  ;;  %v681_v16 = vadd.f32 %v1482_v34, %v680_v14 }
 0x13b   :  { %v538_v17 = vpop.f32.mrf.mxu0  ;;  %v682_v18 = vpop.f32.mrf.mxu1 }
 0x13c   :  { %v761_v19 = vmax.f32 %v537_v15, 0.0  ;;  %v797_v20 = vmax.f32 %v681_v16, 0.0 }
 0x13d   :  { %v541_v21 = vpop.f32.mrf.mxu0  ;;  %v685_v22 = vpop.f32.mrf.mxu1 }
 0x13e   :  { %834 = vst.msk [vmem:[%s1847_s3 + $0xa8] sm:$0xff] %vm812_vm1, %v761_v19  ;;  %870 = vst.msk [vmem:[%s1847_s3 + $0x1c8] sm:$0xff] %vm812_vm1, %v797_v20  ;;  %v542_v23 = vadd.f32 %v1482_v34, %v541_v21  ;;  %v686_v24 = vadd.f32 %v1482_v34, %v685_v22 }
 0x13f   :  { %v543_v25 = vpop.f32.mrf.mxu0  ;;  %v687_v26 = vpop.f32.mrf.mxu1 }
 0x140   :  { %v762_v27 = vmax.f32 %v542_v23, 0.0  ;;  %v798_v28 = vmax.f32 %v686_v24, 0.0 }
 0x141   :  { %v544_v29 = vpop.f32.mrf.mxu0  ;;  %v688_v30 = vpop.f32.mrf.mxu1 }
 0x142   :  { %835 = vst.msk [vmem:[%s1847_s3 + $0xb0] sm:$0xff] %vm812_vm1, %v762_v27  ;;  %871 = vst.msk [vmem:[%s1847_s3 + $0x1d0] sm:$0xff] %vm812_vm1, %v798_v28  ;;  %v545_v31 = vadd.f32 %v1482_v34, %v544_v29  ;;  %v689_v32 = vadd.f32 %v1482_v34, %v688_v30 }
 0x143   :  { %v546_v33 = vpop.f32.mrf.mxu0  ;;  %v690_v35 = vpop.f32.mrf.mxu1 }
 0x144   :  { %v763_v36 = vmax.f32 %v545_v31, 0.0  ;;  %v799_v37 = vmax.f32 %v689_v32, 0.0 }
 0x145   :  { %v549_v38 = vpop.f32.mrf.mxu0  ;;  %v693_v39 = vpop.f32.mrf.mxu1 }
 0x146   :  { %836 = vst.msk [vmem:[%s1847_s3 + $0xb8] sm:$0xff] %vm812_vm1, %v763_v36  ;;  %872 = vst.msk [vmem:[%s1847_s3 + $0x1d8] sm:$0xff] %vm812_vm1, %v799_v37  ;;  %v550_v40 = vadd.f32 %v1482_v34, %v549_v38  ;;  %v694_v41 = vadd.f32 %v1482_v34, %v693_v39 }
 0x147   :  { %v551_v42 = vpop.f32.mrf.mxu0  ;;  %v695_v43 = vpop.f32.mrf.mxu1 }
 0x148   :  { %v764_v44 = vmax.f32 %v550_v40, 0.0  ;;  %v800_v45 = vmax.f32 %v694_v41, 0.0 }
 0x149   :  { %v552_v46 = vpop.f32.mrf.mxu0  ;;  %v696_v47 = vpop.f32.mrf.mxu1 }
 0x14a   :  { %837 = vst.msk [vmem:[%s1847_s3 + $0xc0] sm:$0xff] %vm812_vm1, %v764_v44  ;;  %873 = vst.msk [vmem:[%s1847_s3 + $0x1e0] sm:$0xff] %vm812_vm1, %v800_v45  ;;  %v553_v48 = vadd.f32 %v1482_v34, %v552_v46  ;;  %v697_v49 = vadd.f32 %v1482_v34, %v696_v47 }
 0x14b   :  { %v554_v50 = vpop.f32.mrf.mxu0  ;;  %v698_v51 = vpop.f32.mrf.mxu1 }
 0x14c   :  { %v765_v52 = vmax.f32 %v553_v48, 0.0  ;;  %v801_v53 = vmax.f32 %v697_v49, 0.0 }
 0x14d   :  { %v557_v54 = vpop.f32.mrf.mxu0  ;;  %v701_v55 = vpop.f32.mrf.mxu1 }
 0x14e   :  { %838 = vst.msk [vmem:[%s1847_s3 + $0xc8] sm:$0xff] %vm812_vm1, %v765_v52  ;;  %874 = vst.msk [vmem:[%s1847_s3 + $0x1e8] sm:$0xff] %vm812_vm1, %v801_v53  ;;  %v558_v56 = vadd.f32 %v1482_v34, %v557_v54  ;;  %v702_v57 = vadd.f32 %v1482_v34, %v701_v55 }
 0x14f   :  { %v559_v58 = vpop.f32.mrf.mxu0  ;;  %v703_v59 = vpop.f32.mrf.mxu1 }
 0x150   :  { %v766_v60 = vmax.f32 %v558_v56, 0.0  ;;  %v802_v61 = vmax.f32 %v702_v57, 0.0 }
 0x151   :  { %v560_v62 = vpop.f32.mrf.mxu0  ;;  %v704_v63 = vpop.f32.mrf.mxu1 }
 0x152   :  { %839 = vst.msk [vmem:[%s1847_s3 + $0xd0] sm:$0xff] %vm812_vm1, %v766_v60  ;;  %875 = vst.msk [vmem:[%s1847_s3 + $0x1f0] sm:$0xff] %vm812_vm1, %v802_v61  ;;  %v561_v0 = vadd.f32 %v1482_v34, %v560_v62  ;;  %v705_v1 = vadd.f32 %v1482_v34, %v704_v63 }
 0x153   :  { %v562_v2 = vpop.f32.mrf.mxu0  ;;  %v706_v3 = vpop.f32.mrf.mxu1 }
 0x154   :  { %v767_v4 = vmax.f32 %v561_v0, 0.0  ;;  %v803_v5 = vmax.f32 %v705_v1, 0.0 }
 0x155   :  { %v565_v6 = vpop.f32.mrf.mxu0  ;;  %v709_v7 = vpop.f32.mrf.mxu1 }
 0x156   :  { %840 = vst.msk [vmem:[%s1847_s3 + $0xd8] sm:$0xff] %vm812_vm1, %v767_v4  ;;  %876 = vst.msk [vmem:[%s1847_s3 + $0x1f8] sm:$0xff] %vm812_vm1, %v803_v5  ;;  %v566_v8 = vadd.f32 %v1482_v34, %v565_v6  ;;  %v710_v9 = vadd.f32 %v1482_v34, %v709_v7 }
 0x157   :  { %v567_v10 = vpop.f32.mrf.mxu0  ;;  %v711_v11 = vpop.f32.mrf.mxu1 }
 0x158   :  { %v768_v12 = vmax.f32 %v566_v8, 0.0  ;;  %v804_v13 = vmax.f32 %v710_v9, 0.0 }
 0x159   :  { %v568_v14 = vpop.f32.mrf.mxu0  ;;  %v712_v15 = vpop.f32.mrf.mxu1 }
 0x15a   :  { %841 = vst.msk [vmem:[%s1847_s3 + $0xe0] sm:$0xff] %vm812_vm1, %v768_v12  ;;  %877 = vst.msk [vmem:[%s1847_s3 + $0x200] sm:$0xff] %vm812_vm1, %v804_v13  ;;  %v569_v16 = vadd.f32 %v1482_v34, %v568_v14  ;;  %v713_v17 = vadd.f32 %v1482_v34, %v712_v15 }
 0x15b   :  { %v570_v18 = vpop.f32.mrf.mxu0  ;;  %v714_v19 = vpop.f32.mrf.mxu1 }
 0x15c   :  { %v769_v20 = vmax.f32 %v569_v16, 0.0  ;;  %v805_v21 = vmax.f32 %v713_v17, 0.0 }
 0x15d   :  { %v573_v22 = vpop.f32.mrf.mxu0  ;;  %v717_v23 = vpop.f32.mrf.mxu1 }
 0x15e   :  { %842 = vst.msk [vmem:[%s1847_s3 + $0xe8] sm:$0xff] %vm812_vm1, %v769_v20  ;;  %878 = vst.msk [vmem:[%s1847_s3 + $0x208] sm:$0xff] %vm812_vm1, %v805_v21  ;;  %v574_v24 = vadd.f32 %v1482_v34, %v573_v22  ;;  %v718_v25 = vadd.f32 %v1482_v34, %v717_v23 }
 0x15f   :  { %v575_v26 = vpop.f32.mrf.mxu0  ;;  %v719_v27 = vpop.f32.mrf.mxu1 }
 0x160   :  { %v770_v28 = vmax.f32 %v574_v24, 0.0  ;;  %v806_v29 = vmax.f32 %v718_v25, 0.0 }
 0x161   :  { %v576_v30 = vpop.f32.mrf.mxu0  ;;  %v720_v31 = vpop.f32.mrf.mxu1 }
 0x162   :  { %843 = vst.msk [vmem:[%s1847_s3 + $0xf0] sm:$0xff] %vm812_vm1, %v770_v28  ;;  %879 = vst.msk [vmem:[%s1847_s3 + $0x210] sm:$0xff] %vm812_vm1, %v806_v29  ;;  %v577_v32 = vadd.f32 %v1482_v34, %v576_v30  ;;  %v721_v33 = vadd.f32 %v1482_v34, %v720_v31 }
 0x163   :  { %v578_v35 = vpop.f32.mrf.mxu0  ;;  %v722_v36 = vpop.f32.mrf.mxu1 }
 0x164   :  { %v771_v37 = vmax.f32 %v577_v32, 0.0  ;;  %v807_v38 = vmax.f32 %v721_v33, 0.0 }
 0x165   :  { %v581_v39 = vpop.f32.mrf.mxu0  ;;  %v725_v40 = vpop.f32.mrf.mxu1 }
 0x166   :  { %844 = vst.msk [vmem:[%s1847_s3 + $0xf8] sm:$0xff] %vm812_vm1, %v771_v37  ;;  %880 = vst.msk [vmem:[%s1847_s3 + $0x218] sm:$0xff] %vm812_vm1, %v807_v38  ;;  %v582_v41 = vadd.f32 %v1482_v34, %v581_v39  ;;  %v726_v42 = vadd.f32 %v1482_v34, %v725_v40 }
 0x167   :  { %v583_v43 = vpop.f32.mrf.mxu0  ;;  %v727_v44 = vpop.f32.mrf.mxu1 }
 0x168   :  { %v772_v45 = vmax.f32 %v582_v41, 0.0  ;;  %v808_v46 = vmax.f32 %v726_v42, 0.0 }
 0x169   :  { %v584_v47 = vpop.f32.mrf.mxu0  ;;  %v728_v48 = vpop.f32.mrf.mxu1 }
 0x16a   :  { %845 = vst.msk [vmem:[%s1847_s3 + $0x100] sm:$0xff] %vm812_vm1, %v772_v45  ;;  %881 = vst.msk [vmem:[%s1847_s3 + $0x220] sm:$0xff] %vm812_vm1, %v808_v46  ;;  %v585_v49 = vadd.f32 %v1482_v34, %v584_v47  ;;  %v729_v50 = vadd.f32 %v1482_v34, %v728_v48 }
 0x16b   :  { %v586_v51 = vpop.f32.mrf.mxu0  ;;  %v730_v52 = vpop.f32.mrf.mxu1 }
 0x16c   :  { %v773_v53 = vmax.f32 %v585_v49, 0.0  ;;  %v809_v54 = vmax.f32 %v729_v50, 0.0 }
 0x16d   :  { %v589_v55 = vpop.f32.mrf.mxu0  ;;  %v733_v56 = vpop.f32.mrf.mxu1 }
 0x16e   :  { %846 = vst.msk [vmem:[%s1847_s3 + $0x108] sm:$0xff] %vm812_vm1, %v773_v53  ;;  %882 = vst.msk [vmem:[%s1847_s3 + $0x228] sm:$0xff] %vm812_vm1, %v809_v54  ;;  %v590_v57 = vadd.f32 %v1482_v34, %v589_v55  ;;  %v734_v58 = vadd.f32 %v1482_v34, %v733_v56 }
 0x16f   :  { %v591_v59 = vpop.f32.mrf.mxu0  ;;  %v735_v60 = vpop.f32.mrf.mxu1 }
 0x170   :  { %v774_v61 = vmax.f32 %v590_v57, 0.0  ;;  %v810_v62 = vmax.f32 %v734_v58, 0.0 }
 0x171   :  { %v592_v63 = vpop.f32.mrf.mxu0  ;;  %v736_v0 = vpop.f32.mrf.mxu1 }
 0x172   :  { %847 = vst.msk [vmem:[%s1847_s3 + $0x110] sm:$0xff] %vm812_vm1, %v774_v61  ;;  %883 = vst.msk [vmem:[%s1847_s3 + $0x230] sm:$0xff] %vm812_vm1, %v810_v62  ;;  %v593_v1 = vadd.f32 %v1482_v34, %v592_v63  ;;  %v737_v2 = vadd.f32 %v1482_v34, %v736_v0 }
 0x173   :  { %v594_v3 = vpop.f32.mrf.mxu0  ;;  %v738_v4 = vpop.f32.mrf.mxu1 }
 0x174   :  { %v775_v5 = vmax.f32 %v593_v1, 0.0  ;;  %v811_v6 = vmax.f32 %v737_v2, 0.0 }
 0x176   :  { %848 = vst.msk [vmem:[%s1847_s3 + $0x118] sm:$0xff] %vm812_vm1, %v775_v5  ;;  %884 = vst.msk [vmem:[%s1847_s3 + $0x238] sm:$0xff] %vm812_vm1, %v811_v6 }

// kernel: two_tower_forward.6
= control target key start
LH: loop header
LB: loop body
LE: loop exit
PB: predicated region body
PF: predicated region fallthrough
CT: control target
= control target key end

     0   :  { %v601_v1 = vmov 0.0   ;;  %vm602_vm0 = vmmov 0   ;;  %vm226_vm1 = vcmask 261120   ;;  %vm437_vm2 = vcmask 523264   ;;  %s886_s1 = inlined_call_operand.vmem [shape: bf16[288,64], index: 1, kind: input, shape index: {}]   ;;  %s887_s0 = inlined_call_operand.vmem [shape: f32[100,288], index: 0, kind: input, shape index: {}]   ;;  %s888_s2 = inlined_call_operand.vmem [shape: f32[1,64], index: 2, kind: input, shape index: {}]   ;;  %s889_s3 = inlined_call_operand.vmem [shape: f32[100,64], index: 3, kind: output, shape index: {}]  }
   0x1   :  { %v583_v0 = vld [vmem:[%s886_s1 + $0x78] sm:$0xff]   ;;  %549 = vmatprep.subr.bf16.mxu1 %v601_v1  ;;  %553 = vmatprep.mubr.msk.bf16.mxu1 %vm602_vm0, %v601_v1  ;;  %v585_v3 = vld [vmem:[%s886_s1 + $0x70] sm:$0xff]   ;;  %v587_v5 = vld [vmem:[%s886_s1 + $0x68] sm:$0xff]   ;;  %vm450_vm3 = vcmask 519168  }
   0x2   :  { %v584_v2 = vld [vmem:[%s886_s1 + $0x38] sm:$0xff]   ;;  %482 = vmatprep.subr.bf16.mxu0 %v583_v0  ;;  %v586_v4 = vld [vmem:[%s886_s1 + $0x30] sm:$0xff]   ;;  %v588_v6 = vld [vmem:[%s886_s1 + $0x28] sm:$0xff]  }
   0x3   :  { %483 = vmatpush3.bf16.msra.mxu0 %v584_v2  ;;  %v589_v7 = vld [vmem:[%s886_s1 + $0x60] sm:$0xff]   ;;  %v591_v9 = vld [vmem:[%s886_s1 + $0x58] sm:$0xff]   ;;  %v596_v10 = vld [vmem:[%s886_s1 + $0x88] sm:$0xff]  }
   0x4   :  { %484 = vmatprep.subr.bf16.mxu0 %v585_v3  ;;  %v590_v8 = vld [vmem:[%s886_s1 + $0x20] sm:$0xff]   ;;  %v592_v11 = vld [vmem:[%s886_s1 + $0x18] sm:$0xff]   ;;  %v593_v12 = vld [vmem:[%s886_s1 + $0x50] sm:$0xff]   ;;  %550 = vmatpush3.bf16.msra.mxu1 %v596_v10 }
   0x5   :  { %551 = vmatprep.subr.bf16.mxu1 %v601_v1  ;;  %v599_v13 = vld [vmem:[%s886_s1 + $0x80] sm:$0xff]   ;;  %v16_v14 = vld [vmem:[%s887_s0 + $0x8] sm:$0xff]  ;;  %v17_v16 = vld [vmem:[%s887_s0 + $0x10] sm:$0xff] }
   0x6   :  { %v19_v15 = vld [vmem:[%s887_s0 + $0x20] sm:$0xff]  ;;  %v594_v17 = vld [vmem:[%s886_s1 + $0x10] sm:$0xff]   ;;  %v20_v19 = vld [vmem:[%s887_s0 + $0x28] sm:$0xff] }
   0x7   :  { %485 = vmatpush3.bf16.msra.mxu0 %v586_v4  ;;  %v55_v18 = vpack.c.bf16 %v19_v15, %v16_v14  ;;  %v595_v20 = vld [vmem:[%s886_s1 + $0x48] sm:$0xff]   ;;  %v56_v21 = vpack.c.bf16 %v20_v19, %v17_v16  ;;  %v23_v23 = vld [vmem:[%s887_s0 + $0x40] sm:$0xff]  ;;  %v26_v24 = vld [vmem:[%s887_s0 + $0x58] sm:$0xff] }
   0x8   :  { %486 = vmatprep.subr.bf16.mxu0 %v587_v5  ;;  %552 = vmatpush3.bf16.msra.mxu1 %v599_v13  ;;  %v597_v22 = vld [vmem:[%s886_s1 + $0x8] sm:$0xff]   ;;  %v598_v25 = vld [vmem:[%s886_s1 + $0x40] sm:$0xff]   ;;  %v59_v26 = vpack.c.bf16 %v26_v24, %v23_v23  ;;  %v18_v29 = vld [vmem:[%s887_s0 + $0x18] sm:$0xff] }
   0x9   :  { %280 = vmatprep.mubr.bf16.mxu0 %v55_v18  ;;  %v600_v27 = vld [vmem:[%s886_s1] sm:$0xff]   ;;  %v22_v30 = vld [vmem:[%s887_s0 + $0x38] sm:$0xff]  ;;  %v25_v31 = vld [vmem:[%s887_s0 + $0x50] sm:$0xff] }
   0xa   :  { %v15_v28 = vld [vmem:[%s887_s0] sm:$0xff]  ;;  %v58_v33 = vpack.c.bf16 %v25_v31, %v22_v30  ;;  %v29_v34 = vld [vmem:[%s887_s0 + $0x70] sm:$0xff]  ;;  %v32_v35 = vld [vmem:[%s887_s0 + $0x88] sm:$0xff] }
   0xb   :  { %487 = vmatpush3.bf16.msra.mxu0 %v588_v6  ;;  %554 = vmatmul.mubr.msk.bf16.vlgmr.msra.gmra.mxu1 %vm226_vm1, %v56_v21  ;;  %v54_v32 = vpack.c.bf16 %v18_v29, %v15_v28  ;;  %v62_v36 = vpack.c.bf16 %v32_v35, %v29_v34  ;;  %v21_v37 = vld [vmem:[%s887_s0 + $0x30] sm:$0xff]  ;;  %v24_v38 = vld [vmem:[%s887_s0 + $0x48] sm:$0xff]  ;;  %v31_v40 = vld [vmem:[%s887_s0 + $0x80] sm:$0xff] }
   0xc   :  { %488 = vmatprep.subr.bf16.mxu0 %v589_v7  ;;  %557 = vmatprep.mubr.msk.bf16.mxu1 %vm602_vm0, %v601_v1  ;;  %v28_v39 = vld [vmem:[%s887_s0 + $0x68] sm:$0xff]  ;;  %v57_v41 = vpack.c.bf16 %v24_v38, %v21_v37  ;;  %v35_v43 = vld [vmem:[%s887_s0 + $0xa0] sm:$0xff]  ;;  %v38_v44 = vld [vmem:[%s887_s0 + $0xb8] sm:$0xff] }
   0xd   :  { %v61_v42 = vpack.c.bf16 %v31_v40, %v28_v39  ;;  %v65_v45 = vpack.c.bf16 %v38_v44, %v35_v43  ;;  %v27_v46 = vld [vmem:[%s887_s0 + $0x60] sm:$0xff]  ;;  %v30_v47 = vld [vmem:[%s887_s0 + $0x78] sm:$0xff]  ;;  %v37_v49 = vld [vmem:[%s887_s0 + $0xb0] sm:$0xff] }
   0xe   :  { %v34_v48 = vld [vmem:[%s887_s0 + $0x98] sm:$0xff]  ;;  %v60_v50 = vpack.c.bf16 %v30_v47, %v27_v46  ;;  %v41_v52 = vld [vmem:[%s887_s0 + $0xd0] sm:$0xff]  ;;  %v44_v53 = vld [vmem:[%s887_s0 + $0xe8] sm:$0xff] }
   0xf   :  { %489 = vmatpush3.bf16.msra.mxu0 %v590_v8  ;;  %v64_v51 = vpack.c.bf16 %v37_v49, %v34_v48  ;;  %v68_v54 = vpack.c.bf16 %v44_v53, %v41_v52  ;;  %v33_v55 = vld [vmem:[%s887_s0 + $0x90] sm:$0xff]  ;;  %v36_v56 = vld [vmem:[%s887_s0 + $0xa8] sm:$0xff]  ;;  %v43_v58 = vld [vmem:[%s887_s0 + $0xe0] sm:$0xff] }
  0x10   :  { %490 = vmatprep.subr.bf16.mxu0 %v591_v9  ;;  %v40_v57 = vld [vmem:[%s887_s0 + $0xc8] sm:$0xff]  ;;  %v63_v59 = vpack.c.bf16 %v36_v56, %v33_v55  ;;  %v47_v61 = vld [vmem:[%s887_s0 + $0x100] sm:$0xff]  ;;  %v50_v62 = vld [vmem:[%s887_s0 + $0x118] sm:$0xff] }
  0x11   :  { %v67_v60 = vpack.c.bf16 %v43_v58, %v40_v57  ;;  %v71_v63 = vpack.c.bf16 %v50_v62, %v47_v61  ;;  %v39_v0 = vld [vmem:[%s887_s0 + $0xc0] sm:$0xff]  ;;  %v42_v2 = vld [vmem:[%s887_s0 + $0xd8] sm:$0xff]  ;;  %v49_v4 = vld [vmem:[%s887_s0 + $0x110] sm:$0xff] }
  0x12   :  { %v46_v3 = vld [vmem:[%s887_s0 + $0xf8] sm:$0xff]  ;;  %v66_v5 = vpack.c.bf16 %v42_v2, %v39_v0  ;;  %v53_v7 = vld [vmem:[%s887_s0 + $0x130] sm:$0xf]  ;;  %v48_v10 = vld [vmem:[%s887_s0 + $0x108] sm:$0xff] }
  0x13   :  { %491 = vmatpush3.bf16.msra.mxu0 %v592_v11  ;;  %558 = vmatmul.mubr.msk.bf16.gmra.mxu1 %vm226_vm1, %v59_v26  ;;  %v70_v6 = vpack.c.bf16 %v49_v4, %v46_v3  ;;  %v74_v8 = vpack.c.bf16 %v53_v7, %v53_v7  ;;  %v45_v9 = vld [vmem:[%s887_s0 + $0xf0] sm:$0xff]  ;;  %v52_v11 = vld [vmem:[%s887_s0 + $0x128] sm:$0xf]  ;;  %v51_v13 = vld [vmem:[%s887_s0 + $0x120] sm:$0xf] }
  0x14   :  { %492 = vmatprep.subr.bf16.mxu0 %v593_v12  ;;  %561 = vmatprep.mubr.msk.bf16.mxu1 %vm602_vm0, %v601_v1  ;;  %v73_v12 = vpack.c.bf16 %v52_v11, %v52_v11  ;;  %v72_v14 = vpack.c.bf16 %v51_v13, %v51_v13  ;;  %v820_v23 = vld [vmem:[%s888_s2] ss:$0 sm:$0xff] }
  0x17   :  { %493 = vmatpush3.bf16.msra.mxu0 %v594_v17 }
  0x18   :  { %494 = vmatprep.subr.bf16.mxu0 %v595_v20 }
  0x1b   :  { %495 = vmatpush3.bf16.msra.mxu0 %v597_v22  ;;  %562 = vmatmul.mubr.msk.bf16.gmra.mxu1 %vm226_vm1, %v62_v36 }
  0x1c   :  { %496 = vmatprep.subr.bf16.mxu0 %v598_v25  ;;  %565 = vmatprep.mubr.msk.bf16.mxu1 %vm602_vm0, %v601_v1 }
  0x1f   :  { %497 = vmatpush3.bf16.msra.mxu0 %v600_v27 }
  0x22   :  { %281 = vmatmul.mubr.bf16.vlgmr.msra.gmra.mxu0 %v54_v32 }
  0x23   :  { %288 = vmatprep.mubr.bf16.mxu0 %v58_v33  ;;  %566 = vmatmul.mubr.msk.bf16.gmra.mxu1 %vm226_vm1, %v65_v45 }
  0x24   :  { %569 = vmatprep.mubr.msk.bf16.mxu1 %vm602_vm0, %v601_v1 }
  0x2a   :  { %289 = vmatmul.mubr.bf16.gmra.mxu0 %v57_v41 }
  0x2b   :  { %296 = vmatprep.mubr.bf16.mxu0 %v61_v42  ;;  %570 = vmatmul.mubr.msk.bf16.gmra.mxu1 %vm226_vm1, %v68_v54 }
  0x2c   :  { %573 = vmatprep.mubr.msk.bf16.mxu1 %vm602_vm0, %v601_v1 }
  0x32   :  { %297 = vmatmul.mubr.bf16.gmra.mxu0 %v60_v50 }
  0x33   :  { %304 = vmatprep.mubr.bf16.mxu0 %v64_v51  ;;  %574 = vmatmul.mubr.msk.bf16.gmra.mxu1 %vm226_vm1, %v71_v63 }
  0x34   :  { %577 = vmatprep.mubr.msk.bf16.mxu1 %vm602_vm0, %v601_v1  ;;  %v69_v1 = vpack.c.bf16 %v48_v10, %v45_v9 }
  0x3a   :  { %305 = vmatmul.mubr.bf16.gmra.mxu0 %v63_v59 }
  0x3b   :  { %312 = vmatprep.mubr.bf16.mxu0 %v67_v60  ;;  %578 = vmatmul.mubr.msk.bf16.gmra.mxu1 %vm226_vm1, %v74_v8 }
  0x42   :  { %313 = vmatmul.mubr.bf16.gmra.mxu0 %v66_v5 }
  0x43   :  { %320 = vmatprep.mubr.bf16.mxu0 %v70_v6 }
  0x4a   :  { %321 = vmatmul.mubr.bf16.gmra.mxu0 %v69_v1 }
  0x4b   :  { %328 = vmatprep.mubr.bf16.mxu0 %v73_v12 }
  0x52   :  { %329 = vmatmul.mubr.bf16.gmra.mxu0 %v72_v14 }
  0xcb   :  { %v370_v15 = vpop.f32.mrf.mxu1 }
  0xcd   :  { %v555_v16 = vpop.f32.mrf.mxu1 }
  0xcf   :  { %v373_v17 = vpop.f32.mrf.mxu1 }
  0xd1   :  { %v556_v18 = vpop.f32.mrf.mxu1 }
  0xd3   :  { %v378_v19 = vpop.f32.mrf.mxu1 }
  0xd5   :  { %v559_v20 = vpop.f32.mrf.mxu1 }
  0xd7   :  { %v381_v22 = vpop.f32.mrf.mxu1 }
  0xd9   :  { %v560_v25 = vpop.f32.mrf.mxu1 }
  0xdb   :  { %v386_v28 = vpop.f32.mrf.mxu1 }
  0xdd   :  { %v563_v31 = vpop.f32.mrf.mxu1 }
  0xdf   :  { %v389_v35 = vpop.f32.mrf.mxu1 }
  0xe1   :  { %v564_v39 = vpop.f32.mrf.mxu1 }
  0xe2   :  { %v498_v21 = vpop.f32.mrf.mxu0 }
  0xe3   :  { %v394_v43 = vpop.f32.mrf.mxu1 }
  0xe4   :  { %v499_v24 = vpop.f32.mrf.mxu0 }
  0xe5   :  { %v500_v26 = vadd.f32 %v499_v24, %v498_v21  ;;  %v567_v47 = vpop.f32.mrf.mxu1 }
  0xe6   :  { %v501_v27 = vpop.f32.mrf.mxu0 }
  0xe7   :  { %v283_v29 = vadd.f32 %v500_v26, %v820_v23  ;;  %v397_v51 = vpop.f32.mrf.mxu1 }
  0xe8   :  { %v502_v30 = vpop.f32.mrf.mxu0 }
  0xe9   :  { %v371_v32 = vadd.f32 %v370_v15, %v283_v29  ;;  %v503_v33 = vadd.f32 %v502_v30, %v501_v27  ;;  %v568_v55 = vpop.f32.mrf.mxu1 }
  0xea   :  { %v504_v34 = vpop.f32.mrf.mxu0 }
  0xeb   :  { %v424_v36 = vmax.f32 %v371_v32, 0.0  ;;  %v286_v37 = vadd.f32 %v503_v33, %v820_v23  ;;  %v402_v59 = vpop.f32.mrf.mxu1 }
  0xec   :  { %v505_v38 = vpop.f32.mrf.mxu0 }
  0xed   :  { %438 = vst.msk [vmem:[%s889_s3] sm:$0xff] %vm437_vm2, %v424_v36  ;;  %v374_v40 = vadd.f32 %v373_v17, %v286_v37  ;;  %v506_v41 = vadd.f32 %v505_v38, %v504_v34  ;;  %v571_v63 = vpop.f32.mrf.mxu1 }
  0xee   :  { %v507_v42 = vpop.f32.mrf.mxu0 }
  0xef   :  { %v425_v44 = vmax.f32 %v374_v40, 0.0  ;;  %v291_v45 = vadd.f32 %v506_v41, %v820_v23  ;;  %v405_v4 = vpop.f32.mrf.mxu1 }
  0xf0   :  { %v508_v46 = vpop.f32.mrf.mxu0 }
  0xf1   :  { %439 = vst.msk [vmem:[%s889_s3 + $0x8] sm:$0xff] %vm437_vm2, %v425_v44  ;;  %v379_v48 = vadd.f32 %v378_v19, %v291_v45  ;;  %v509_v49 = vadd.f32 %v508_v46, %v507_v42  ;;  %v572_v8 = vpop.f32.mrf.mxu1 }
  0xf2   :  { %v510_v50 = vpop.f32.mrf.mxu0 }
  0xf3   :  { %v426_v52 = vmax.f32 %v379_v48, 0.0  ;;  %v294_v53 = vadd.f32 %v509_v49, %v820_v23  ;;  %v410_v1 = vpop.f32.mrf.mxu1 }
  0xf4   :  { %v511_v54 = vpop.f32.mrf.mxu0 }
  0xf5   :  { %440 = vst.msk [vmem:[%s889_s3 + $0x10] sm:$0xff] %vm437_vm2, %v426_v52  ;;  %v382_v56 = vadd.f32 %v381_v22, %v294_v53  ;;  %v512_v57 = vadd.f32 %v511_v54, %v510_v50  ;;  %v575_v15 = vpop.f32.mrf.mxu1 }
  0xf6   :  { %v513_v58 = vpop.f32.mrf.mxu0 }
  0xf7   :  { %v427_v60 = vmax.f32 %v382_v56, 0.0  ;;  %v299_v61 = vadd.f32 %v512_v57, %v820_v23  ;;  %v413_v19 = vpop.f32.mrf.mxu1 }
  0xf8   :  { %v514_v62 = vpop.f32.mrf.mxu0 }
  0xf9   :  { %441 = vst.msk [vmem:[%s889_s3 + $0x18] sm:$0xff] %vm437_vm2, %v427_v60  ;;  %v387_v0 = vadd.f32 %v386_v28, %v299_v61  ;;  %v515_v2 = vadd.f32 %v514_v62, %v513_v58  ;;  %v576_v24 = vpop.f32.mrf.mxu1 }
  0xfa   :  { %v516_v3 = vpop.f32.mrf.mxu0 }
  0xfb   :  { %v428_v5 = vmax.f32 %v387_v0, 0.0  ;;  %v302_v6 = vadd.f32 %v515_v2, %v820_v23  ;;  %v418_v28 = vpop.f32.mrf.mxu1 }
  0xfc   :  { %v517_v7 = vpop.f32.mrf.mxu0 }
  0xfd   :  { %442 = vst.msk [vmem:[%s889_s3 + $0x20] sm:$0xff] %vm437_vm2, %v428_v5  ;;  %v390_v9 = vadd.f32 %v389_v35, %v302_v6  ;;  %v518_v10 = vadd.f32 %v517_v7, %v516_v3  ;;  %v579_v32 = vpop.f32.mrf.mxu1 }
  0xfe   :  { %v519_v11 = vpop.f32.mrf.mxu0 }
  0xff   :  { %v429_v12 = vmax.f32 %v390_v9, 0.0  ;;  %v307_v13 = vadd.f32 %v518_v10, %v820_v23  ;;  %v421_v36 = vpop.f32.mrf.mxu1 }
 0x100   :  { %v520_v14 = vpop.f32.mrf.mxu0 }
 0x101   :  { %443 = vst.msk [vmem:[%s889_s3 + $0x28] sm:$0xff] %vm437_vm2, %v429_v12  ;;  %v395_v16 = vadd.f32 %v394_v43, %v307_v13  ;;  %v521_v17 = vadd.f32 %v520_v14, %v519_v11  ;;  %v580_v40 = vpop.f32.mrf.mxu1 }
 0x102   :  { %v522_v18 = vpop.f32.mrf.mxu0 }
 0x103   :  { %v430_v20 = vmax.f32 %v395_v16, 0.0  ;;  %v310_v21 = vadd.f32 %v521_v17, %v820_v23 }
 0x104   :  { %v523_v22 = vpop.f32.mrf.mxu0 }
 0x105   :  { %444 = vst.msk [vmem:[%s889_s3 + $0x30] sm:$0xff] %vm437_vm2, %v430_v20  ;;  %v398_v25 = vadd.f32 %v397_v51, %v310_v21  ;;  %v524_v26 = vadd.f32 %v523_v22, %v522_v18 }
 0x106   :  { %v525_v27 = vpop.f32.mrf.mxu0 }
 0x107   :  { %v431_v29 = vmax.f32 %v398_v25, 0.0  ;;  %v315_v30 = vadd.f32 %v524_v26, %v820_v23 }
 0x108   :  { %v526_v31 = vpop.f32.mrf.mxu0 }
 0x109   :  { %445 = vst.msk [vmem:[%s889_s3 + $0x38] sm:$0xff] %vm437_vm2, %v431_v29  ;;  %v403_v33 = vadd.f32 %v402_v59, %v315_v30  ;;  %v527_v34 = vadd.f32 %v526_v31, %v525_v27 }
 0x10a   :  { %v528_v35 = vpop.f32.mrf.mxu0 }
 0x10b   :  { %v432_v37 = vmax.f32 %v403_v33, 0.0  ;;  %v318_v38 = vadd.f32 %v527_v34, %v820_v23 }
 0x10c   :  { %v529_v39 = vpop.f32.mrf.mxu0 }
 0x10d   :  { %446 = vst.msk [vmem:[%s889_s3 + $0x40] sm:$0xff] %vm437_vm2, %v432_v37  ;;  %v406_v41 = vadd.f32 %v405_v4, %v318_v38  ;;  %v530_v42 = vadd.f32 %v529_v39, %v528_v35 }
 0x10e   :  { %v531_v43 = vpop.f32.mrf.mxu0 }
 0x10f   :  { %v433_v44 = vmax.f32 %v406_v41, 0.0  ;;  %v323_v45 = vadd.f32 %v530_v42, %v820_v23 }
 0x110   :  { %v532_v46 = vpop.f32.mrf.mxu0 }
 0x111   :  { %447 = vst.msk [vmem:[%s889_s3 + $0x48] sm:$0xff] %vm437_vm2, %v433_v44  ;;  %v411_v47 = vadd.f32 %v410_v1, %v323_v45  ;;  %v533_v48 = vadd.f32 %v532_v46, %v531_v43 }
 0x112   :  { %v534_v49 = vpop.f32.mrf.mxu0 }
 0x113   :  { %v434_v50 = vmax.f32 %v411_v47, 0.0  ;;  %v326_v51 = vadd.f32 %v533_v48, %v820_v23 }
 0x114   :  { %v535_v52 = vpop.f32.mrf.mxu0 }
 0x115   :  { %448 = vst.msk [vmem:[%s889_s3 + $0x50] sm:$0xff] %vm437_vm2, %v434_v50  ;;  %v414_v53 = vadd.f32 %v413_v19, %v326_v51  ;;  %v536_v54 = vadd.f32 %v535_v52, %v534_v49 }
 0x116   :  { %v537_v55 = vpop.f32.mrf.mxu0 }
 0x117   :  { %v435_v56 = vmax.f32 %v414_v53, 0.0  ;;  %v331_v57 = vadd.f32 %v536_v54, %v820_v23 }
 0x118   :  { %v538_v58 = vpop.f32.mrf.mxu0 }
 0x119   :  { %449 = vst.msk [vmem:[%s889_s3 + $0x58] sm:$0xff] %vm437_vm2, %v435_v56  ;;  %v419_v59 = vadd.f32 %v418_v28, %v331_v57 }
 0x11b   :  { %v436_v60 = vmax.f32 %v419_v59, 0.0 }
 0x11d   :  { %451 = vst.msk [vmem:[%s889_s3 + $0x60] sm:$0xf] %vm450_vm3, %v436_v60 }

// kernel: two_tower_forward.7
= control target key start
LH: loop header
LB: loop body
LE: loop exit
PB: predicated region body
PF: predicated region fallthrough
CT: control target
= control target key end

     0   :  { %v12833_v36 = vmov 1983009808   ;;  %v52_v38 = vlaneseq  ;;  %s16768_s0 = inlined_call_operand.vmem [shape: f32[2,3200], index: 0, kind: input, shape index: {}]   ;;  %s16769_s1 = inlined_call_operand.vmem [shape: bf16[3200,576], index: 1, kind: input, shape index: {}]   ;;  %s16770_s2 = inlined_call_operand.vmem [shape: f32[1,576], index: 2, kind: input, shape index: {}]   ;;  %s16771_s3 = inlined_call_operand.vmem [shape: bf16[576,288], index: 3, kind: input, shape index: {}]   ;;  %s16772_s4 = inlined_call_operand.vmem [shape: f32[1,288], index: 4, kind: input, shape index: {}]   ;;  %s16773_s5 = inlined_call_operand.vmem [shape: bf16[288,144], index: 5, kind: input, shape index: {}]   ;;  %s16774_s6 = inlined_call_operand.vmem [shape: f32[1,144], index: 6, kind: input, shape index: {}]   ;;  %s16775_s7 = inlined_call_operand.vmem [shape: bf16[144,10], index: 7, kind: input, shape index: {}]   ;;  %s16776_s8 = inlined_call_operand.vmem [shape: f32[1,10], index: 8, kind: input, shape index: {}]   ;;  %s16777_s9 = inlined_call_operand.hbm [shape: f32[2,10], index: 9, kind: output, shape index: {}]  }
   0x1   :  { %v11196_v0 = vld [vmem:[%s16769_s1 + $0x11c] ss:$20 sps:$4 sm:$0xff]   ;;  %v11200_v2 = vld [vmem:[%s16769_s1 + $0x118] ss:$20 sps:$4 sm:$0xff]   ;;  %v11202_v4 = vld [vmem:[%s16769_s1 + $0xf4] ss:$20 sps:$4 sm:$0xff]   ;;  %v50_v37 = vunpack.c.l.s4 %v12833_v36 }
   0x2   :  { %v11198_v1 = vld [vmem:[%s16769_s1 + $0x39c] ss:$20 sps:$4 sm:$0xff]   ;;  %6634 = vmatprep.subr.bf16.mxu0 %v11196_v0  ;;  %v11201_v3 = vld [vmem:[%s16769_s1 + $0x398] ss:$20 sps:$4 sm:$0xff]   ;;  %v11204_v5 = vld [vmem:[%s16769_s1 + $0x374] ss:$20 sps:$4 sm:$0xff]  }
   0x3   :  { %6675 = vmatprep.subr.bf16.mxu1 %v11198_v1  ;;  %6635 = vmatpush1.bf16.msra.mxu0 %v11200_v2  ;;  %v11206_v6 = vld [vmem:[%s16769_s1 + $0xf0] ss:$20 sps:$4 sm:$0xff]   ;;  %v11208_v8 = vld [vmem:[%s16769_s1 + $0xcc] ss:$20 sps:$4 sm:$0xff]   ;;  %v11212_v10 = vld [vmem:[%s16769_s1 + $0xc8] ss:$20 sps:$4 sm:$0xff]   ;;  %v51_v42 = vunpack.c.0.s8 %v50_v37 }
   0x4   :  { %6676 = vmatpush1.bf16.msra.mxu1 %v11201_v3  ;;  %6636 = vmatprep.subr.bf16.mxu0 %v11202_v4  ;;  %v11207_v7 = vld [vmem:[%s16769_s1 + $0x370] ss:$20 sps:$4 sm:$0xff]   ;;  %v11210_v9 = vld [vmem:[%s16769_s1 + $0x34c] ss:$20 sps:$4 sm:$0xff]   ;;  %v11213_v11 = vld [vmem:[%s16769_s1 + $0x348] ss:$20 sps:$4 sm:$0xff]  }
   0x5   :  { %6677 = vmatprep.subr.bf16.mxu1 %v11204_v5  ;;  %v11214_v12 = vld [vmem:[%s16769_s1 + $0xa4] ss:$20 sps:$4 sm:$0xff]   ;;  %v11218_v14 = vld [vmem:[%s16769_s1 + $0xa0] ss:$20 sps:$4 sm:$0xff]   ;;  %v11220_v16 = vld [vmem:[%s16769_s1 + $0x7c] ss:$20 sps:$4 sm:$0xff]  }
   0x6   :  { %v11216_v13 = vld [vmem:[%s16769_s1 + $0x324] ss:$20 sps:$4 sm:$0xff]   ;;  %v11219_v15 = vld [vmem:[%s16769_s1 + $0x320] ss:$20 sps:$4 sm:$0xff]   ;;  %v11222_v17 = vld [vmem:[%s16769_s1 + $0x2fc] ss:$20 sps:$4 sm:$0xff]  }
   0x7   :  { %6637 = vmatpush1.bf16.msra.mxu0 %v11206_v6  ;;  %v11224_v18 = vld [vmem:[%s16769_s1 + $0x78] ss:$20 sps:$4 sm:$0xff]   ;;  %v11226_v20 = vld [vmem:[%s16769_s1 + $0x54] ss:$20 sps:$4 sm:$0xff]   ;;  %v11230_v22 = vld [vmem:[%s16769_s1 + $0x50] ss:$20 sps:$4 sm:$0xff]  }
   0x8   :  { %6678 = vmatpush1.bf16.msra.mxu1 %v11207_v7  ;;  %6638 = vmatprep.subr.bf16.mxu0 %v11208_v8  ;;  %v11225_v19 = vld [vmem:[%s16769_s1 + $0x2f8] ss:$20 sps:$4 sm:$0xff]   ;;  %v11228_v21 = vld [vmem:[%s16769_s1 + $0x2d4] ss:$20 sps:$4 sm:$0xff]   ;;  %v11231_v23 = vld [vmem:[%s16769_s1 + $0x2d0] ss:$20 sps:$4 sm:$0xff]  }
   0x9   :  { %6679 = vmatprep.subr.bf16.mxu1 %v11210_v9  ;;  %v11232_v24 = vld [vmem:[%s16769_s1 + $0x2c] ss:$20 sps:$4 sm:$0xff]   ;;  %v11236_v26 = vld [vmem:[%s16769_s1 + $0x28] ss:$20 sps:$4 sm:$0xff]   ;;  %v11238_v28 = vld [vmem:[%s16769_s1 + $0x4] ss:$20 sps:$4 sm:$0xff]  }
   0xa   :  { %v11234_v25 = vld [vmem:[%s16769_s1 + $0x2ac] ss:$20 sps:$4 sm:$0xff]   ;;  %v11237_v27 = vld [vmem:[%s16769_s1 + $0x2a8] ss:$20 sps:$4 sm:$0xff]   ;;  %v11240_v29 = vld [vmem:[%s16769_s1 + $0x284] ss:$20 sps:$4 sm:$0xff]  }
   0xb   :  { %6639 = vmatpush1.bf16.msra.mxu0 %v11212_v10  ;;  %v11242_v30 = vld [vmem:[%s16769_s1] ss:$20 sps:$4 sm:$0xff]   ;;  %v11244_v32 = vld [vmem:[%s16769_s1 + $0x25c] ss:$20 sps:$4 sm:$0xff]   ;;  %v11248_v34 = vld [vmem:[%s16769_s1 + $0x258] ss:$20 sps:$4 sm:$0xff]  }
   0xc   :  { %6680 = vmatpush1.bf16.msra.mxu1 %v11213_v11  ;;  %6640 = vmatprep.subr.bf16.mxu0 %v11214_v12  ;;  %v11243_v31 = vld [vmem:[%s16769_s1 + $0x280] ss:$20 sps:$4 sm:$0xff]   ;;  %v11246_v33 = vld [vmem:[%s16769_s1 + $0x4dc] ss:$20 sps:$4 sm:$0xff]   ;;  %v11249_v35 = vld [vmem:[%s16769_s1 + $0x4d8] ss:$20 sps:$4 sm:$0xff]  }
   0xd   :  { %6681 = vmatprep.subr.bf16.mxu1 %v11216_v13  ;;  %v11250_v39 = vld [vmem:[%s16769_s1 + $0x234] ss:$20 sps:$4 sm:$0xff]   ;;  %v11254_v41 = vld [vmem:[%s16769_s1 + $0x230] ss:$20 sps:$4 sm:$0xff]   ;;  %v13005_v43 = vshrl.u32 %v52_v38, 7 }
   0xe   :  { %v11252_v40 = vld [vmem:[%s16769_s1 + $0x4b4] ss:$20 sps:$4 sm:$0xff]   ;;  %v11255_v44 = vld [vmem:[%s16769_s1 + $0x4b0] ss:$20 sps:$4 sm:$0xff]   ;;  %v11256_v45 = vld [vmem:[%s16769_s1 + $0x20c] ss:$20 sps:$4 sm:$0xff]  }
   0xf   :  { %6641 = vmatpush1.bf16.msra.mxu0 %v11218_v14  ;;  %v11258_v46 = vld [vmem:[%s16769_s1 + $0x48c] ss:$20 sps:$4 sm:$0xff]   ;;  %v11260_v47 = vld [vmem:[%s16769_s1 + $0x208] ss:$20 sps:$4 sm:$0xff]   ;;  %v13023_v49 = vsub.s32 %v51_v42, %v13005_v43  ;;  %v11262_v50 = vld [vmem:[%s16769_s1 + $0x1e4] ss:$20 sps:$4 sm:$0xff]  }
  0x10   :  { %6682 = vmatpush1.bf16.msra.mxu1 %v11219_v15  ;;  %6642 = vmatprep.subr.bf16.mxu0 %v11220_v16  ;;  %v11261_v48 = vld [vmem:[%s16769_s1 + $0x488] ss:$20 sps:$4 sm:$0xff]   ;;  %v11264_v51 = vld [vmem:[%s16769_s1 + $0x464] ss:$20 sps:$4 sm:$0xff]   ;;  %v11266_v53 = vld [vmem:[%s16769_s1 + $0x1e0] ss:$20 sps:$4 sm:$0xff]  }
  0x11   :  { %6683 = vmatprep.subr.bf16.mxu1 %v11222_v17  ;;  %v34_v52 = vld [vmem:[%s16768_s0] sm:$0xff]  ;;  %v11268_v57 = vld [vmem:[%s16769_s1 + $0x1bc] ss:$20 sps:$4 sm:$0xff]   ;;  %v11272_v61 = vld [vmem:[%s16769_s1 + $0x1b8] ss:$20 sps:$4 sm:$0xff]  }
  0x12   :  { %v55_v54 = vrot.slane %v34_v52, %v13023_v49  ;;  %v48_v55 = vcombine.high %v34_v52, %v34_v52  ;;  %v11267_v56 = vld [vmem:[%s16769_s1 + $0x460] ss:$20 sps:$4 sm:$0xff]   ;;  %v11270_v58 = vld [vmem:[%s16769_s1 + $0x43c] ss:$20 sps:$4 sm:$0xff]   ;;  %v11273_v0 = vld [vmem:[%s16769_s1 + $0x438] ss:$20 sps:$4 sm:$0xff]  }
  0x13   :  { %6643 = vmatpush1.bf16.msra.mxu0 %v11224_v18  ;;  %v11274_v1 = vld [vmem:[%s16769_s1 + $0x194] ss:$20 sps:$4 sm:$0xff]   ;;  %v11278_v4 = vld [vmem:[%s16769_s1 + $0x190] ss:$20 sps:$4 sm:$0xff]   ;;  %v11280_v6 = vld [vmem:[%s16769_s1 + $0x16c] ss:$20 sps:$4 sm:$0xff]  }
  0x14   :  { %6684 = vmatpush1.bf16.msra.mxu1 %v11225_v19  ;;  %6644 = vmatprep.subr.bf16.mxu0 %v11226_v20  ;;  %v63_v59 = vcombine.high %v55_v54, %v55_v54  ;;  %v62_v60 = vrot.slane %v48_v55, %v13023_v49  ;;  %v11276_v2 = vld [vmem:[%s16769_s1 + $0x414] ss:$20 sps:$4 sm:$0xff]   ;;  %v11279_v5 = vld [vmem:[%s16769_s1 + $0x410] ss:$20 sps:$4 sm:$0xff]   ;;  %v11282_v7 = vld [vmem:[%s16769_s1 + $0x3ec] ss:$20 sps:$4 sm:$0xff]   ;;  %v13102_v16 = vpack.c.bf16 %v55_v54, %v55_v54 }
  0x15   :  { %6685 = vmatprep.subr.bf16.mxu1 %v11228_v21  ;;  %v11284_v8 = vld [vmem:[%s16769_s1 + $0x168] ss:$20 sps:$4 sm:$0xff]   ;;  %v11286_v10 = vld [vmem:[%s16769_s1 + $0x144] ss:$20 sps:$4 sm:$0xff]   ;;  %v11290_v12 = vld [vmem:[%s16769_s1 + $0x140] ss:$20 sps:$4 sm:$0xff]  }
  0x16   :  { %v13051_v62 = vpack.c.bf16 %v63_v59, %v63_v59  ;;  %v64_v63 = vcombine.high %v62_v60, %v62_v60  ;;  %v11285_v9 = vld [vmem:[%s16769_s1 + $0x3e8] ss:$20 sps:$4 sm:$0xff]   ;;  %v11288_v11 = vld [vmem:[%s16769_s1 + $0x3c4] ss:$20 sps:$4 sm:$0xff]   ;;  %v11291_v13 = vld [vmem:[%s16769_s1 + $0x3c0] ss:$20 sps:$4 sm:$0xff]   ;;  %v13107_v18 = vpack.c.bf16 %v62_v60, %v62_v60 }
  0x17   :  { %6645 = vmatpush1.bf16.msra.mxu0 %v11230_v22  ;;  %v11295_v14 = vld [vmem:[%s16769_s1 + $0x61c] ss:$20 sps:$4 sm:$0xff]   ;;  %v11293_v17 = vld [vmem:[%s16769_s1 + $0x618] ss:$20 sps:$4 sm:$0xff]   ;;  %v11301_v20 = vld [vmem:[%s16769_s1 + $0x5f4] ss:$20 sps:$4 sm:$0xff]  }
  0x18   :  { %6686 = vmatpush1.bf16.msra.mxu1 %v11231_v23  ;;  %6646 = vmatprep.subr.bf16.mxu0 %v11232_v24  ;;  %v13062_v3 = vpack.c.bf16 %v64_v63, %v64_v63  ;;  %v11298_v15 = vld [vmem:[%s16769_s1 + $0x89c] ss:$20 sps:$4 sm:$0xff]   ;;  %v11296_v19 = vld [vmem:[%s16769_s1 + $0x898] ss:$20 sps:$4 sm:$0xff]   ;;  %v11304_v21 = vld [vmem:[%s16769_s1 + $0x874] ss:$20 sps:$4 sm:$0xff]  }
  0x19   :  { %6687 = vmatprep.subr.bf16.mxu1 %v11234_v25  ;;  %6666 = vmatprep.mubr.bf16.mxu0 %v13051_v62  ;;  %v11299_v22 = vld [vmem:[%s16769_s1 + $0x5f0] ss:$20 sps:$4 sm:$0xff]   ;;  %v11307_v24 = vld [vmem:[%s16769_s1 + $0x5cc] ss:$20 sps:$4 sm:$0xff]   ;;  %v11325_v36 = vld [vmem:[%s16769_s1 + $0x554] ss:$20 sps:$4 sm:$0xff]  }
  0x1a   :  { %6707 = vmatprep.mubr.bf16.mxu1 %v13062_v3  ;;  %v11302_v23 = vld [vmem:[%s16769_s1 + $0x870] ss:$20 sps:$4 sm:$0xff]   ;;  %v11310_v25 = vld [vmem:[%s16769_s1 + $0x84c] ss:$20 sps:$4 sm:$0xff]   ;;  %v11328_v37 = vld [vmem:[%s16769_s1 + $0x7d4] ss:$20 sps:$4 sm:$0xff]  }
  0x1b   :  { %6647 = vmatpush1.bf16.msra.mxu0 %v11236_v26  ;;  %v11305_v26 = vld [vmem:[%s16769_s1 + $0x5c8] ss:$20 sps:$4 sm:$0xff]   ;;  %v11323_v38 = vld [vmem:[%s16769_s1 + $0x550] ss:$20 sps:$4 sm:$0xff]   ;;  %v11335_v55 = vld [vmem:[%s16769_s1 + $0x500] ss:$20 sps:$4 sm:$0xff]  }
  0x1c   :  { %6688 = vmatpush1.bf16.msra.mxu1 %v11237_v27  ;;  %6648 = vmatprep.subr.bf16.mxu0 %v11238_v28  ;;  %v11308_v27 = vld [vmem:[%s16769_s1 + $0x848] ss:$20 sps:$4 sm:$0xff]   ;;  %v11313_v28 = vld [vmem:[%s16769_s1 + $0x5a4] ss:$20 sps:$4 sm:$0xff]  }
  0x1d   :  { %6689 = vmatprep.subr.bf16.mxu1 %v11240_v29  ;;  %v11316_v29 = vld [vmem:[%s16769_s1 + $0x824] ss:$20 sps:$4 sm:$0xff]   ;;  %v35_v42 = vld [vmem:[%s16768_s0 + $0x8] sm:$0xff]  ;;  %v11346_v59 = vld [vmem:[%s16769_s1 + $0x9dc] ss:$20 sps:$4 sm:$0xff]  }
  0x1e   :  { %v11340_v52 = vld [vmem:[%s16769_s1 + $0x784] ss:$20 sps:$4 sm:$0xff]   ;;  %v11349_v63 = vld [vmem:[%s16769_s1 + $0x734] ss:$20 sps:$4 sm:$0xff]  }
  0x1f   :  { %6649 = vmatpush1.bf16.msra.mxu0 %v11242_v30  ;;  %v11311_v30 = vld [vmem:[%s16769_s1 + $0x5a0] ss:$20 sps:$4 sm:$0xff]   ;;  %v11341_v60 = vld [vmem:[%s16769_s1 + $0x758] ss:$20 sps:$4 sm:$0xff]  }
  0x20   :  { %6690 = vmatpush1.bf16.msra.mxu1 %v11243_v31  ;;  %6650 = vmatprep.subr.bf16.mxu0 %v11244_v32  ;;  %v11314_v31 = vld [vmem:[%s16769_s1 + $0x820] ss:$20 sps:$4 sm:$0xff]   ;;  %v11319_v32 = vld [vmem:[%s16769_s1 + $0x57c] ss:$20 sps:$4 sm:$0xff]  }
  0x21   :  { %6691 = vmatprep.subr.bf16.mxu1 %v11246_v33  ;;  %v11322_v33 = vld [vmem:[%s16769_s1 + $0x7fc] ss:$20 sps:$4 sm:$0xff]  }
  0x23   :  { %6651 = vmatpush2.bf16.msra.mxu0 %v11248_v34  ;;  %v11317_v34 = vld [vmem:[%s16769_s1 + $0x578] ss:$20 sps:$4 sm:$0xff]  }
  0x24   :  { %6692 = vmatpush2.bf16.msra.mxu1 %v11249_v35  ;;  %6652 = vmatprep.subr.bf16.mxu0 %v11250_v39  ;;  %v11320_v35 = vld [vmem:[%s16769_s1 + $0x7f8] ss:$20 sps:$4 sm:$0xff]   ;;  %v11326_v39 = vld [vmem:[%s16769_s1 + $0x7d0] ss:$20 sps:$4 sm:$0xff]  }
  0x25   :  { %6693 = vmatprep.subr.bf16.mxu1 %v11252_v40  ;;  %v11331_v40 = vld [vmem:[%s16769_s1 + $0x52c] ss:$20 sps:$4 sm:$0xff]  }
  0x27   :  { %6653 = vmatpush2.bf16.msra.mxu0 %v11254_v41  ;;  %v11334_v41 = vld [vmem:[%s16769_s1 + $0x7ac] ss:$20 sps:$4 sm:$0xff]  }
  0x28   :  { %6694 = vmatpush2.bf16.msra.mxu1 %v11255_v44  ;;  %6654 = vmatprep.subr.bf16.mxu0 %v11256_v45  ;;  %v13184_v44 = vrot.slane %v35_v42, %v13023_v49  ;;  %v65_v45 = vcombine.high %v35_v42, %v35_v42 }
  0x29   :  { %6695 = vmatprep.subr.bf16.mxu1 %v11258_v46  ;;  %v11329_v46 = vld [vmem:[%s16769_s1 + $0x528] ss:$20 sps:$4 sm:$0xff]  }
  0x2b   :  { %6655 = vmatpush2.bf16.msra.mxu0 %v11260_v47  ;;  %v11332_v47 = vld [vmem:[%s16769_s1 + $0x7a8] ss:$20 sps:$4 sm:$0xff]  }
  0x2c   :  { %6696 = vmatpush2.bf16.msra.mxu1 %v11261_v48  ;;  %6656 = vmatprep.subr.bf16.mxu0 %v11262_v50  ;;  %v80_v48 = vcombine.high %v13184_v44, %v13184_v44  ;;  %v13195_v50 = vrot.slane %v65_v45, %v13023_v49  ;;  %v11399_v45 = vld [vmem:[%s16769_s1 + $0xd70] ss:$20 sps:$4 sm:$0xff]  }
  0x2d   :  { %6697 = vmatprep.subr.bf16.mxu1 %v11264_v51  ;;  %v11337_v51 = vld [vmem:[%s16769_s1 + $0x504] ss:$20 sps:$4 sm:$0xff]  }
  0x2e   :  { %v81_v54 = vcombine.high %v13195_v50, %v13195_v50 }
  0x2f   :  { %6657 = vmatpush2.bf16.msra.mxu0 %v11266_v53  ;;  %v13203_v53 = vpack.c.bf16 %v80_v48, %v80_v48 }
  0x30   :  { %6698 = vmatpush2.bf16.msra.mxu1 %v11267_v56  ;;  %6658 = vmatprep.subr.bf16.mxu0 %v11268_v57  ;;  %v11338_v56 = vld [vmem:[%s16769_s1 + $0x780] ss:$20 sps:$4 sm:$0xff]   ;;  %v13213_v57 = vpack.c.bf16 %v81_v54, %v81_v54  ;;  %v11405_v54 = vld [vmem:[%s16769_s1 + $0xd48] ss:$20 sps:$4 sm:$0xff]  }
  0x31   :  { %6699 = vmatprep.subr.bf16.mxu1 %v11270_v58  ;;  %v11343_v58 = vld [vmem:[%s16769_s1 + $0x75c] ss:$20 sps:$4 sm:$0xff]  }
  0x33   :  { %6659 = vmatpush2.bf16.msra.mxu0 %v11272_v61  ;;  %v11344_v61 = vld [vmem:[%s16769_s1 + $0x9d8] ss:$20 sps:$4 sm:$0xff]  }
  0x34   :  { %6700 = vmatpush2.bf16.msra.mxu1 %v11273_v0  ;;  %6660 = vmatprep.subr.bf16.mxu0 %v11274_v1  ;;  %v11352_v0 = vld [vmem:[%s16769_s1 + $0x9b4] ss:$20 sps:$4 sm:$0xff]   ;;  %v11347_v1 = vld [vmem:[%s16769_s1 + $0x730] ss:$20 sps:$4 sm:$0xff]  }
  0x35   :  { %6701 = vmatprep.subr.bf16.mxu1 %v11276_v2  ;;  %v11350_v2 = vld [vmem:[%s16769_s1 + $0x9b0] ss:$20 sps:$4 sm:$0xff]  }
  0x37   :  { %6661 = vmatpush2.bf16.msra.mxu0 %v11278_v4  ;;  %v11355_v4 = vld [vmem:[%s16769_s1 + $0x70c] ss:$20 sps:$4 sm:$0xff]  }
  0x38   :  { %6702 = vmatpush2.bf16.msra.mxu1 %v11279_v5  ;;  %6662 = vmatprep.subr.bf16.mxu0 %v11280_v6  ;;  %v11358_v5 = vld [vmem:[%s16769_s1 + $0x98c] ss:$20 sps:$4 sm:$0xff]   ;;  %v11353_v6 = vld [vmem:[%s16769_s1 + $0x708] ss:$20 sps:$4 sm:$0xff]  }
  0x39   :  { %6703 = vmatprep.subr.bf16.mxu1 %v11282_v7  ;;  %v11356_v7 = vld [vmem:[%s16769_s1 + $0x988] ss:$20 sps:$4 sm:$0xff]  }
  0x3b   :  { %6663 = vmatpush2.bf16.msra.mxu0 %v11284_v8  ;;  %v11361_v8 = vld [vmem:[%s16769_s1 + $0x6e4] ss:$20 sps:$4 sm:$0xff]  }
  0x3c   :  { %6704 = vmatpush2.bf16.msra.mxu1 %v11285_v9  ;;  %6664 = vmatprep.subr.bf16.mxu0 %v11286_v10  ;;  %v11364_v9 = vld [vmem:[%s16769_s1 + $0x964] ss:$20 sps:$4 sm:$0xff]   ;;  %v11359_v10 = vld [vmem:[%s16769_s1 + $0x6e0] ss:$20 sps:$4 sm:$0xff]  }
  0x3d   :  { %6705 = vmatprep.subr.bf16.mxu1 %v11288_v11  ;;  %v11362_v11 = vld [vmem:[%s16769_s1 + $0x960] ss:$20 sps:$4 sm:$0xff]  }
  0x3f   :  { %6665 = vmatpush2.bf16.msra.mxu0 %v11290_v12  ;;  %v11367_v12 = vld [vmem:[%s16769_s1 + $0x6bc] ss:$20 sps:$4 sm:$0xff]  }
  0x40   :  { %6706 = vmatpush2.bf16.msra.mxu1 %v11291_v13  ;;  %6716 = vmatprep.subr.bf16.mxu0 %v11295_v14  ;;  %v11370_v13 = vld [vmem:[%s16769_s1 + $0x93c] ss:$20 sps:$4 sm:$0xff]   ;;  %v11365_v14 = vld [vmem:[%s16769_s1 + $0x6b8] ss:$20 sps:$4 sm:$0xff]  }
  0x41   :  { %6757 = vmatprep.subr.bf16.mxu1 %v11298_v15  ;;  %v11368_v15 = vld [vmem:[%s16769_s1 + $0x938] ss:$20 sps:$4 sm:$0xff]  }
  0x42   :  { %6667 = vmatmul.mubr.bf16.vlgmr.msra.gmra.mxu0 %v13102_v16 }
  0x43   :  { %6708 = vmatmul.mubr.bf16.vlgmr.msra.gmra.mxu1 %v13107_v18  ;;  %6717 = vmatpush1.bf16.msra.mxu0 %v11293_v17  ;;  %v11373_v17 = vld [vmem:[%s16769_s1 + $0x694] ss:$20 sps:$4 sm:$0xff]  }
  0x44   :  { %6758 = vmatpush1.bf16.msra.mxu1 %v11296_v19  ;;  %6718 = vmatprep.subr.bf16.mxu0 %v11301_v20  ;;  %v11376_v19 = vld [vmem:[%s16769_s1 + $0x914] ss:$20 sps:$4 sm:$0xff]   ;;  %v11371_v20 = vld [vmem:[%s16769_s1 + $0x690] ss:$20 sps:$4 sm:$0xff]  }
  0x45   :  { %6759 = vmatprep.subr.bf16.mxu1 %v11304_v21  ;;  %6748 = vmatprep.mubr.bf16.mxu0 %v13203_v53  ;;  %v11374_v21 = vld [vmem:[%s16769_s1 + $0x910] ss:$20 sps:$4 sm:$0xff]  }
  0x46   :  { %6789 = vmatprep.mubr.bf16.mxu1 %v13213_v57 }
  0x47   :  { %6719 = vmatpush1.bf16.msra.mxu0 %v11299_v22  ;;  %v11379_v22 = vld [vmem:[%s16769_s1 + $0x66c] ss:$20 sps:$4 sm:$0xff]  }
  0x48   :  { %6760 = vmatpush1.bf16.msra.mxu1 %v11302_v23  ;;  %6720 = vmatprep.subr.bf16.mxu0 %v11307_v24  ;;  %v11382_v23 = vld [vmem:[%s16769_s1 + $0x8ec] ss:$20 sps:$4 sm:$0xff]   ;;  %v11377_v24 = vld [vmem:[%s16769_s1 + $0x668] ss:$20 sps:$4 sm:$0xff]  }
  0x49   :  { %6761 = vmatprep.subr.bf16.mxu1 %v11310_v25  ;;  %v11380_v25 = vld [vmem:[%s16769_s1 + $0x8e8] ss:$20 sps:$4 sm:$0xff]  }
  0x4b   :  { %6721 = vmatpush1.bf16.msra.mxu0 %v11305_v26  ;;  %v11385_v26 = vld [vmem:[%s16769_s1 + $0x644] ss:$20 sps:$4 sm:$0xff]  }
  0x4c   :  { %6762 = vmatpush1.bf16.msra.mxu1 %v11308_v27  ;;  %6722 = vmatprep.subr.bf16.mxu0 %v11313_v28  ;;  %v11388_v27 = vld [vmem:[%s16769_s1 + $0x8c4] ss:$20 sps:$4 sm:$0xff]   ;;  %v11383_v28 = vld [vmem:[%s16769_s1 + $0x640] ss:$20 sps:$4 sm:$0xff]  }
  0x4d   :  { %6763 = vmatprep.subr.bf16.mxu1 %v11316_v29  ;;  %v11386_v29 = vld [vmem:[%s16769_s1 + $0x8c0] ss:$20 sps:$4 sm:$0xff]  }
  0x4f   :  { %6723 = vmatpush1.bf16.msra.mxu0 %v11311_v30  ;;  %v11392_v30 = vld [vmem:[%s16769_s1 + $0xb1c] ss:$20 sps:$4 sm:$0xff]  }
  0x50   :  { %6764 = vmatpush1.bf16.msra.mxu1 %v11314_v31  ;;  %6724 = vmatprep.subr.bf16.mxu0 %v11319_v32  ;;  %v11395_v31 = vld [vmem:[%s16769_s1 + $0xd9c] ss:$20 sps:$4 sm:$0xff]   ;;  %v13321_v32 = vpack.c.bf16 %v13184_v44, %v13184_v44 }
  0x51   :  { %6765 = vmatprep.subr.bf16.mxu1 %v11322_v33  ;;  %v11390_v33 = vld [vmem:[%s16769_s1 + $0xb18] ss:$20 sps:$4 sm:$0xff]  }
  0x53   :  { %6725 = vmatpush1.bf16.msra.mxu0 %v11317_v34  ;;  %v13328_v34 = vpack.c.bf16 %v13195_v50, %v13195_v50 }
  0x54   :  { %6766 = vmatpush1.bf16.msra.mxu1 %v11320_v35  ;;  %6726 = vmatprep.subr.bf16.mxu0 %v11325_v36  ;;  %v11393_v35 = vld [vmem:[%s16769_s1 + $0xd98] ss:$20 sps:$4 sm:$0xff]   ;;  %v11398_v36 = vld [vmem:[%s16769_s1 + $0xaf4] ss:$20 sps:$4 sm:$0xff]  }
  0x55   :  { %6767 = vmatprep.subr.bf16.mxu1 %v11328_v37  ;;  %v36_v37 = vld [vmem:[%s16768_s0 + $0x10] sm:$0xff] }
  0x57   :  { %6727 = vmatpush1.bf16.msra.mxu0 %v11323_v38  ;;  %v11401_v38 = vld [vmem:[%s16769_s1 + $0xd74] ss:$20 sps:$4 sm:$0xff]  }
  0x58   :  { %6768 = vmatpush1.bf16.msra.mxu1 %v11326_v39  ;;  %6728 = vmatprep.subr.bf16.mxu0 %v11331_v40  ;;  %v13343_v39 = vrot.slane %v36_v37, %v13023_v49  ;;  %v82_v40 = vcombine.high %v36_v37, %v36_v37  ;;  %v11465_v37 = vld [vmem:[%s16769_s1 + $0xe38] ss:$20 sps:$4 sm:$0xff]  }
  0x59   :  { %6769 = vmatprep.subr.bf16.mxu1 %v11334_v41  ;;  %v11396_v41 = vld [vmem:[%s16769_s1 + $0xaf0] ss:$20 sps:$4 sm:$0xff]  }
  0x5a   :  { %v97_v42 = vcombine.high %v13343_v39, %v13343_v39  ;;  %v13353_v44 = vrot.slane %v82_v40, %v13023_v49  ;;  %v11473_v40 = vld [vmem:[%s16769_s1 + $0xe14] ss:$20 sps:$4 sm:$0xff]  }
  0x5b   :  { %6729 = vmatpush1.bf16.msra.mxu0 %v11329_v46  ;;  %v11404_v46 = vld [vmem:[%s16769_s1 + $0xacc] ss:$20 sps:$4 sm:$0xff]  }
  0x5c   :  { %6770 = vmatpush1.bf16.msra.mxu1 %v11332_v47  ;;  %6730 = vmatprep.subr.bf16.mxu0 %v11337_v51  ;;  %v11407_v47 = vld [vmem:[%s16769_s1 + $0xd4c] ss:$20 sps:$4 sm:$0xff]   ;;  %v13364_v48 = vpack.c.bf16 %v97_v42, %v97_v42  ;;  %v98_v50 = vcombine.high %v13353_v44, %v13353_v44  ;;  %v11402_v51 = vld [vmem:[%s16769_s1 + $0xac8] ss:$20 sps:$4 sm:$0xff]  }
  0x5d   :  { %6771 = vmatprep.subr.bf16.mxu1 %v11340_v52  ;;  %v37_v42 = vld [vmem:[%s16768_s0 + $0x18] sm:$0xff] }
  0x5e   :  { %v13372_v52 = vpack.c.bf16 %v98_v50, %v98_v50  ;;  %v99_v50 = vcombine.high %v37_v42, %v37_v42 }
  0x5f   :  { %6731 = vmatpush1.bf16.msra.mxu0 %v11335_v55  ;;  %v11410_v55 = vld [vmem:[%s16769_s1 + $0xaa4] ss:$20 sps:$4 sm:$0xff]  }
  0x60   :  { %6772 = vmatpush1.bf16.msra.mxu1 %v11338_v56  ;;  %6732 = vmatprep.subr.bf16.mxu0 %v11343_v58  ;;  %v11413_v56 = vld [vmem:[%s16769_s1 + $0xd24] ss:$20 sps:$4 sm:$0xff]   ;;  %v11408_v58 = vld [vmem:[%s16769_s1 + $0xaa0] ss:$20 sps:$4 sm:$0xff]  }
  0x61   :  { %6773 = vmatprep.subr.bf16.mxu1 %v11346_v59  ;;  %v11411_v59 = vld [vmem:[%s16769_s1 + $0xd20] ss:$20 sps:$4 sm:$0xff]  }
  0x63   :  { %6733 = vmatpush2.bf16.msra.mxu0 %v11341_v60  ;;  %v11416_v60 = vld [vmem:[%s16769_s1 + $0xa7c] ss:$20 sps:$4 sm:$0xff]  }
  0x64   :  { %6774 = vmatpush2.bf16.msra.mxu1 %v11344_v61  ;;  %6734 = vmatprep.subr.bf16.mxu0 %v11349_v63  ;;  %v11419_v61 = vld [vmem:[%s16769_s1 + $0xcfc] ss:$20 sps:$4 sm:$0xff]   ;;  %v11414_v63 = vld [vmem:[%s16769_s1 + $0xa78] ss:$20 sps:$4 sm:$0xff]  }
  0x65   :  { %6775 = vmatprep.subr.bf16.mxu1 %v11352_v0  ;;  %v11417_v0 = vld [vmem:[%s16769_s1 + $0xcf8] ss:$20 sps:$4 sm:$0xff]  }
  0x67   :  { %6735 = vmatpush2.bf16.msra.mxu0 %v11347_v1  ;;  %v11422_v1 = vld [vmem:[%s16769_s1 + $0xa54] ss:$20 sps:$4 sm:$0xff]  }
  0x68   :  { %6776 = vmatpush2.bf16.msra.mxu1 %v11350_v2  ;;  %6736 = vmatprep.subr.bf16.mxu0 %v11355_v4  ;;  %v11425_v2 = vld [vmem:[%s16769_s1 + $0xcd4] ss:$20 sps:$4 sm:$0xff]   ;;  %v11420_v4 = vld [vmem:[%s16769_s1 + $0xa50] ss:$20 sps:$4 sm:$0xff]  }
  0x69   :  { %6777 = vmatprep.subr.bf16.mxu1 %v11358_v5  ;;  %v11423_v5 = vld [vmem:[%s16769_s1 + $0xcd0] ss:$20 sps:$4 sm:$0xff]  }
  0x6b   :  { %6737 = vmatpush2.bf16.msra.mxu0 %v11353_v6  ;;  %v11428_v6 = vld [vmem:[%s16769_s1 + $0xa2c] ss:$20 sps:$4 sm:$0xff]  }
  0x6c   :  { %6778 = vmatpush2.bf16.msra.mxu1 %v11356_v7  ;;  %6738 = vmatprep.subr.bf16.mxu0 %v11361_v8  ;;  %v11431_v7 = vld [vmem:[%s16769_s1 + $0xcac] ss:$20 sps:$4 sm:$0xff]   ;;  %v11426_v8 = vld [vmem:[%s16769_s1 + $0xa28] ss:$20 sps:$4 sm:$0xff]  }
  0x6d   :  { %6779 = vmatprep.subr.bf16.mxu1 %v11364_v9  ;;  %v11429_v9 = vld [vmem:[%s16769_s1 + $0xca8] ss:$20 sps:$4 sm:$0xff]  }
  0x6f   :  { %6739 = vmatpush2.bf16.msra.mxu0 %v11359_v10  ;;  %v11434_v10 = vld [vmem:[%s16769_s1 + $0xa04] ss:$20 sps:$4 sm:$0xff]  }
  0x70   :  { %6780 = vmatpush2.bf16.msra.mxu1 %v11362_v11  ;;  %6740 = vmatprep.subr.bf16.mxu0 %v11367_v12  ;;  %v11437_v11 = vld [vmem:[%s16769_s1 + $0xc84] ss:$20 sps:$4 sm:$0xff]   ;;  %v11432_v12 = vld [vmem:[%s16769_s1 + $0xa00] ss:$20 sps:$4 sm:$0xff]  }
  0x71   :  { %6781 = vmatprep.subr.bf16.mxu1 %v11370_v13  ;;  %v11435_v13 = vld [vmem:[%s16769_s1 + $0xc80] ss:$20 sps:$4 sm:$0xff]  }
  0x73   :  { %6741 = vmatpush2.bf16.msra.mxu0 %v11365_v14  ;;  %v11440_v14 = vld [vmem:[%s16769_s1 + $0xc5c] ss:$20 sps:$4 sm:$0xff]  }
  0x74   :  { %6782 = vmatpush2.bf16.msra.mxu1 %v11368_v15  ;;  %6742 = vmatprep.subr.bf16.mxu0 %v11373_v17  ;;  %v11443_v15 = vld [vmem:[%s16769_s1 + $0xedc] ss:$20 sps:$4 sm:$0xff]   ;;  %v11438_v17 = vld [vmem:[%s16769_s1 + $0xc58] ss:$20 sps:$4 sm:$0xff]  }
  0x75   :  { %6783 = vmatprep.subr.bf16.mxu1 %v11376_v19  ;;  %v11441_v19 = vld [vmem:[%s16769_s1 + $0xed8] ss:$20 sps:$4 sm:$0xff]  }
  0x77   :  { %6743 = vmatpush2.bf16.msra.mxu0 %v11371_v20  ;;  %v11446_v20 = vld [vmem:[%s16769_s1 + $0xc34] ss:$20 sps:$4 sm:$0xff]  }
  0x78   :  { %6784 = vmatpush2.bf16.msra.mxu1 %v11374_v21  ;;  %6744 = vmatprep.subr.bf16.mxu0 %v11379_v22  ;;  %v11449_v21 = vld [vmem:[%s16769_s1 + $0xeb4] ss:$20 sps:$4 sm:$0xff]   ;;  %v11444_v22 = vld [vmem:[%s16769_s1 + $0xc30] ss:$20 sps:$4 sm:$0xff]  }
  0x79   :  { %6785 = vmatprep.subr.bf16.mxu1 %v11382_v23  ;;  %v11447_v23 = vld [vmem:[%s16769_s1 + $0xeb0] ss:$20 sps:$4 sm:$0xff]  }
  0x7b   :  { %6745 = vmatpush2.bf16.msra.mxu0 %v11377_v24  ;;  %v11452_v24 = vld [vmem:[%s16769_s1 + $0xc0c] ss:$20 sps:$4 sm:$0xff]  }
  0x7c   :  { %6786 = vmatpush2.bf16.msra.mxu1 %v11380_v25  ;;  %6746 = vmatprep.subr.bf16.mxu0 %v11385_v26  ;;  %v11455_v25 = vld [vmem:[%s16769_s1 + $0xe8c] ss:$20 sps:$4 sm:$0xff]   ;;  %v11450_v26 = vld [vmem:[%s16769_s1 + $0xc08] ss:$20 sps:$4 sm:$0xff]  }
  0x7d   :  { %6787 = vmatprep.subr.bf16.mxu1 %v11388_v27  ;;  %v11453_v27 = vld [vmem:[%s16769_s1 + $0xe88] ss:$20 sps:$4 sm:$0xff]  }
  0x7f   :  { %6747 = vmatpush2.bf16.msra.mxu0 %v11383_v28  ;;  %v11458_v28 = vld [vmem:[%s16769_s1 + $0xbe4] ss:$20 sps:$4 sm:$0xff]  }
  0x80   :  { %6788 = vmatpush2.bf16.msra.mxu1 %v11386_v29  ;;  %6798 = vmatprep.subr.bf16.mxu0 %v11392_v30  ;;  %v11461_v29 = vld [vmem:[%s16769_s1 + $0xe64] ss:$20 sps:$4 sm:$0xff]   ;;  %v11456_v30 = vld [vmem:[%s16769_s1 + $0xbe0] ss:$20 sps:$4 sm:$0xff]  }
  0x81   :  { %6839 = vmatprep.subr.bf16.mxu1 %v11395_v31  ;;  %v11459_v31 = vld [vmem:[%s16769_s1 + $0xe60] ss:$20 sps:$4 sm:$0xff]  }
  0x82   :  { %6749 = vmatmul.mubr.bf16.vlgmr.msra.gmra.mxu0 %v13321_v32 }
  0x83   :  { %6790 = vmatmul.mubr.bf16.vlgmr.msra.gmra.mxu1 %v13328_v34  ;;  %6799 = vmatpush1.bf16.msra.mxu0 %v11390_v33  ;;  %v11464_v33 = vld [vmem:[%s16769_s1 + $0xbbc] ss:$20 sps:$4 sm:$0xff]  }
  0x84   :  { %6840 = vmatpush1.bf16.msra.mxu1 %v11393_v35  ;;  %6800 = vmatprep.subr.bf16.mxu0 %v11398_v36  ;;  %v11467_v35 = vld [vmem:[%s16769_s1 + $0xe3c] ss:$20 sps:$4 sm:$0xff]   ;;  %v11462_v36 = vld [vmem:[%s16769_s1 + $0xbb8] ss:$20 sps:$4 sm:$0xff]  }
  0x85   :  { %6841 = vmatprep.subr.bf16.mxu1 %v11401_v38  ;;  %6830 = vmatprep.mubr.bf16.mxu0 %v13364_v48  ;;  %v11470_v38 = vld [vmem:[%s16769_s1 + $0xb94] ss:$20 sps:$4 sm:$0xff]  }
  0x86   :  { %6871 = vmatprep.mubr.bf16.mxu1 %v13372_v52 }
  0x87   :  { %6801 = vmatpush1.bf16.msra.mxu0 %v11396_v41  ;;  %v11468_v41 = vld [vmem:[%s16769_s1 + $0xb90] ss:$20 sps:$4 sm:$0xff]  }
  0x88   :  { %6842 = vmatpush1.bf16.msra.mxu1 %v11399_v45  ;;  %6802 = vmatprep.subr.bf16.mxu0 %v11404_v46  ;;  %v11471_v45 = vld [vmem:[%s16769_s1 + $0xe10] ss:$20 sps:$4 sm:$0xff]   ;;  %v11476_v46 = vld [vmem:[%s16769_s1 + $0xb6c] ss:$20 sps:$4 sm:$0xff]  }
  0x89   :  { %6843 = vmatprep.subr.bf16.mxu1 %v11407_v47  ;;  %v11479_v47 = vld [vmem:[%s16769_s1 + $0xdec] ss:$20 sps:$4 sm:$0xff]  }
  0x8b   :  { %6803 = vmatpush1.bf16.msra.mxu0 %v11402_v51  ;;  %v11474_v51 = vld [vmem:[%s16769_s1 + $0xb68] ss:$20 sps:$4 sm:$0xff]  }
  0x8c   :  { %6844 = vmatpush1.bf16.msra.mxu1 %v11405_v54  ;;  %6804 = vmatprep.subr.bf16.mxu0 %v11410_v55  ;;  %v11477_v54 = vld [vmem:[%s16769_s1 + $0xde8] ss:$20 sps:$4 sm:$0xff]   ;;  %v11482_v55 = vld [vmem:[%s16769_s1 + $0xb44] ss:$20 sps:$4 sm:$0xff]  }
  0x8d   :  { %6845 = vmatprep.subr.bf16.mxu1 %v11413_v56  ;;  %v11485_v56 = vld [vmem:[%s16769_s1 + $0xdc4] ss:$20 sps:$4 sm:$0xff]  }
  0x8f   :  { %6805 = vmatpush1.bf16.msra.mxu0 %v11408_v58  ;;  %v13532_v58 = vrot.slane %v37_v42, %v13023_v49  ;;  %v11540_v42 = vld [vmem:[%s16769_s1 + $0x13dc] ss:$20 sps:$4 sm:$0xff]  }
  0x90   :  { %6846 = vmatpush1.bf16.msra.mxu1 %v11411_v59  ;;  %6806 = vmatprep.subr.bf16.mxu0 %v11416_v60  ;;  %v13535_v59 = vrot.slane %v99_v50, %v13023_v49  ;;  %v11480_v60 = vld [vmem:[%s16769_s1 + $0xb40] ss:$20 sps:$4 sm:$0xff]  }
  0x91   :  { %6847 = vmatprep.subr.bf16.mxu1 %v11419_v61  ;;  %v11483_v61 = vld [vmem:[%s16769_s1 + $0xdc0] ss:$20 sps:$4 sm:$0xff]  }
  0x92   :  { %v11546_v50 = vld [vmem:[%s16769_s1 + $0x13b4] ss:$20 sps:$4 sm:$0xff]  }
  0x93   :  { %6807 = vmatpush1.bf16.msra.mxu0 %v11414_v63  ;;  %v11489_v63 = vld [vmem:[%s16769_s1 + $0x101c] ss:$20 sps:$4 sm:$0xff]  }
  0x94   :  { %6848 = vmatpush1.bf16.msra.mxu1 %v11417_v0  ;;  %6808 = vmatprep.subr.bf16.mxu0 %v11422_v1  ;;  %v11492_v0 = vld [vmem:[%s16769_s1 + $0x129c] ss:$20 sps:$4 sm:$0xff]   ;;  %v114_v1 = vcombine.high %v13532_v58, %v13532_v58 }
  0x95   :  { %6849 = vmatprep.subr.bf16.mxu1 %v11425_v2  ;;  %v115_v2 = vcombine.high %v13535_v59, %v13535_v59 }
  0x97   :  { %6809 = vmatpush1.bf16.msra.mxu0 %v11420_v4  ;;  %v13555_v4 = vpack.c.bf16 %v13343_v39, %v13343_v39  ;;  %v11495_v39 = vld [vmem:[%s16769_s1 + $0xff4] ss:$20 sps:$4 sm:$0xff]  }
  0x98   :  { %6850 = vmatpush1.bf16.msra.mxu1 %v11423_v5  ;;  %6810 = vmatprep.subr.bf16.mxu0 %v11428_v6  ;;  %v11487_v5 = vld [vmem:[%s16769_s1 + $0x1018] ss:$20 sps:$4 sm:$0xff]   ;;  %v13562_v6 = vpack.c.bf16 %v13353_v44, %v13353_v44  ;;  %v13575_v44 = vpack.c.bf16 %v115_v2, %v115_v2  ;;  %v11556_v2 = vld [vmem:[%s16769_s1 + $0x1360] ss:$20 sps:$4 sm:$0xff]  }
  0x99   :  { %6851 = vmatprep.subr.bf16.mxu1 %v11431_v7  ;;  %v11490_v7 = vld [vmem:[%s16769_s1 + $0x1298] ss:$20 sps:$4 sm:$0xff]  }
  0x9b   :  { %6811 = vmatpush1.bf16.msra.mxu0 %v11426_v8  ;;  %v11498_v8 = vld [vmem:[%s16769_s1 + $0x1274] ss:$20 sps:$4 sm:$0xff]  }
  0x9c   :  { %6852 = vmatpush1.bf16.msra.mxu1 %v11429_v9  ;;  %6812 = vmatprep.subr.bf16.mxu0 %v11434_v10  ;;  %v13573_v9 = vpack.c.bf16 %v114_v1, %v114_v1  ;;  %v11493_v10 = vld [vmem:[%s16769_s1 + $0xff0] ss:$20 sps:$4 sm:$0xff]   ;;  %v11553_v1 = vld [vmem:[%s16769_s1 + $0x10e0] ss:$20 sps:$4 sm:$0xff]  }
  0x9d   :  { %6853 = vmatprep.subr.bf16.mxu1 %v11437_v11  ;;  %v11496_v11 = vld [vmem:[%s16769_s1 + $0x1270] ss:$20 sps:$4 sm:$0xff]  }
  0x9f   :  { %6813 = vmatpush1.bf16.msra.mxu0 %v11432_v12  ;;  %v11501_v12 = vld [vmem:[%s16769_s1 + $0xfcc] ss:$20 sps:$4 sm:$0xff]  }
  0xa0   :  { %6854 = vmatpush1.bf16.msra.mxu1 %v11435_v13  ;;  %6814 = vmatprep.subr.bf16.mxu0 %v11440_v14  ;;  %v11504_v13 = vld [vmem:[%s16769_s1 + $0x124c] ss:$20 sps:$4 sm:$0xff]   ;;  %v11499_v14 = vld [vmem:[%s16769_s1 + $0xfc8] ss:$20 sps:$4 sm:$0xff]  }
  0xa1   :  { %6855 = vmatprep.subr.bf16.mxu1 %v11443_v15  ;;  %v11502_v15 = vld [vmem:[%s16769_s1 + $0x1248] ss:$20 sps:$4 sm:$0xff]  }
  0xa3   :  { %6815 = vmatpush2.bf16.msra.mxu0 %v11438_v17  ;;  %v11507_v17 = vld [vmem:[%s16769_s1 + $0xfa4] ss:$20 sps:$4 sm:$0xff]  }
  0xa4   :  { %6856 = vmatpush2.bf16.msra.mxu1 %v11441_v19  ;;  %6816 = vmatprep.subr.bf16.mxu0 %v11446_v20  ;;  %v11510_v19 = vld [vmem:[%s16769_s1 + $0x1224] ss:$20 sps:$4 sm:$0xff]   ;;  %v11505_v20 = vld [vmem:[%s16769_s1 + $0xfa0] ss:$20 sps:$4 sm:$0xff]  }
  0xa5   :  { %6857 = vmatprep.subr.bf16.mxu1 %v11449_v21  ;;  %v11508_v21 = vld [vmem:[%s16769_s1 + $0x1220] ss:$20 sps:$4 sm:$0xff]  }
  0xa7   :  { %6817 = vmatpush2.bf16.msra.mxu0 %v11444_v22  ;;  %v11513_v22 = vld [vmem:[%s16769_s1 + $0xf7c] ss:$20 sps:$4 sm:$0xff]  }
  0xa8   :  { %6858 = vmatpush2.bf16.msra.mxu1 %v11447_v23  ;;  %6818 = vmatprep.subr.bf16.mxu0 %v11452_v24  ;;  %v11516_v23 = vld [vmem:[%s16769_s1 + $0x11fc] ss:$20 sps:$4 sm:$0xff]   ;;  %v11511_v24 = vld [vmem:[%s16769_s1 + $0xf78] ss:$20 sps:$4 sm:$0xff]  }
  0xa9   :  { %6859 = vmatprep.subr.bf16.mxu1 %v11455_v25  ;;  %v11514_v25 = vld [vmem:[%s16769_s1 + $0x11f8] ss:$20 sps:$4 sm:$0xff]  }
  0xab   :  { %6819 = vmatpush2.bf16.msra.mxu0 %v11450_v26  ;;  %v11519_v26 = vld [vmem:[%s16769_s1 + $0xf54] ss:$20 sps:$4 sm:$0xff]  }
  0xac   :  { %6860 = vmatpush2.bf16.msra.mxu1 %v11453_v27  ;;  %6820 = vmatprep.subr.bf16.mxu0 %v11458_v28  ;;  %v11522_v27 = vld [vmem:[%s16769_s1 + $0x11d4] ss:$20 sps:$4 sm:$0xff]   ;;  %v11517_v28 = vld [vmem:[%s16769_s1 + $0xf50] ss:$20 sps:$4 sm:$0xff]  }
  0xad   :  { %6861 = vmatprep.subr.bf16.mxu1 %v11461_v29  ;;  %v11520_v29 = vld [vmem:[%s16769_s1 + $0x11d0] ss:$20 sps:$4 sm:$0xff]  }
  0xaf   :  { %6821 = vmatpush2.bf16.msra.mxu0 %v11456_v30  ;;  %v11525_v30 = vld [vmem:[%s16769_s1 + $0xf2c] ss:$20 sps:$4 sm:$0xff]  }
  0xb0   :  { %6862 = vmatpush2.bf16.msra.mxu1 %v11459_v31  ;;  %6822 = vmatprep.subr.bf16.mxu0 %v11464_v33  ;;  %v11528_v31 = vld [vmem:[%s16769_s1 + $0x11ac] ss:$20 sps:$4 sm:$0xff]   ;;  %v11523_v33 = vld [vmem:[%s16769_s1 + $0xf28] ss:$20 sps:$4 sm:$0xff]  }
  0xb1   :  { %6863 = vmatprep.subr.bf16.mxu1 %v11467_v35  ;;  %v11526_v35 = vld [vmem:[%s16769_s1 + $0x11a8] ss:$20 sps:$4 sm:$0xff]  }
  0xb3   :  { %6823 = vmatpush2.bf16.msra.mxu0 %v11462_v36  ;;  %v11531_v36 = vld [vmem:[%s16769_s1 + $0xf04] ss:$20 sps:$4 sm:$0xff]  }
  0xb4   :  { %6864 = vmatpush2.bf16.msra.mxu1 %v11465_v37  ;;  %6824 = vmatprep.subr.bf16.mxu0 %v11470_v38  ;;  %v11534_v37 = vld [vmem:[%s16769_s1 + $0x1184] ss:$20 sps:$4 sm:$0xff]   ;;  %v11529_v38 = vld [vmem:[%s16769_s1 + $0xf00] ss:$20 sps:$4 sm:$0xff]  }
  0xb5   :  { %6865 = vmatprep.subr.bf16.mxu1 %v11473_v40  ;;  %v11532_v40 = vld [vmem:[%s16769_s1 + $0x1180] ss:$20 sps:$4 sm:$0xff]  }
  0xb7   :  { %6825 = vmatpush2.bf16.msra.mxu0 %v11468_v41  ;;  %v11537_v41 = vld [vmem:[%s16769_s1 + $0x115c] ss:$20 sps:$4 sm:$0xff]  }
  0xb8   :  { %6866 = vmatpush2.bf16.msra.mxu1 %v11471_v45  ;;  %6826 = vmatprep.subr.bf16.mxu0 %v11476_v46  ;;  %v11535_v45 = vld [vmem:[%s16769_s1 + $0x1158] ss:$20 sps:$4 sm:$0xff]  }
  0xb9   :  { %6867 = vmatprep.subr.bf16.mxu1 %v11479_v47  ;;  %v11538_v46 = vld [vmem:[%s16769_s1 + $0x13d8] ss:$20 sps:$4 sm:$0xff]   ;;  %v11543_v47 = vld [vmem:[%s16769_s1 + $0x1134] ss:$20 sps:$4 sm:$0xff]  }
  0xbb   :  { %6827 = vmatpush2.bf16.msra.mxu0 %v11474_v51  ;;  %v11541_v51 = vld [vmem:[%s16769_s1 + $0x1130] ss:$20 sps:$4 sm:$0xff]  }
  0xbc   :  { %6868 = vmatpush2.bf16.msra.mxu1 %v11477_v54  ;;  %6828 = vmatprep.subr.bf16.mxu0 %v11482_v55  ;;  %v11544_v54 = vld [vmem:[%s16769_s1 + $0x13b0] ss:$20 sps:$4 sm:$0xff]   ;;  %v11549_v55 = vld [vmem:[%s16769_s1 + $0x110c] ss:$20 sps:$4 sm:$0xff]  }
  0xbd   :  { %6869 = vmatprep.subr.bf16.mxu1 %v11485_v56  ;;  %v11552_v56 = vld [vmem:[%s16769_s1 + $0x138c] ss:$20 sps:$4 sm:$0xff]  }
  0xbf   :  { %6829 = vmatpush2.bf16.msra.mxu0 %v11480_v60  ;;  %v11547_v60 = vld [vmem:[%s16769_s1 + $0x1108] ss:$20 sps:$4 sm:$0xff]  }
  0xc0   :  { %6870 = vmatpush2.bf16.msra.mxu1 %v11483_v61  ;;  %6880 = vmatprep.subr.bf16.mxu0 %v11489_v63  ;;  %v11550_v61 = vld [vmem:[%s16769_s1 + $0x1388] ss:$20 sps:$4 sm:$0xff]   ;;  %v11555_v63 = vld [vmem:[%s16769_s1 + $0x10e4] ss:$20 sps:$4 sm:$0xff]  }
  0xc1   :  { %6921 = vmatprep.subr.bf16.mxu1 %v11492_v0  ;;  %v11558_v0 = vld [vmem:[%s16769_s1 + $0x1364] ss:$20 sps:$4 sm:$0xff]  }
  0xc2   :  { %6831 = vmatmul.mubr.bf16.vlgmr.msra.gmra.mxu0 %v13555_v4 }
  0xc3   :  { %6872 = vmatmul.mubr.bf16.vlgmr.msra.gmra.mxu1 %v13562_v6  ;;  %6881 = vmatpush1.bf16.msra.mxu0 %v11487_v5  ;;  %v11561_v5 = vld [vmem:[%s16769_s1 + $0x10bc] ss:$20 sps:$4 sm:$0xff]  }
  0xc4   :  { %6922 = vmatpush1.bf16.msra.mxu1 %v11490_v7  ;;  %6882 = vmatprep.subr.bf16.mxu0 %v11495_v39  ;;  %v11564_v7 = vld [vmem:[%s16769_s1 + $0x133c] ss:$20 sps:$4 sm:$0xff]   ;;  %v11559_v39 = vld [vmem:[%s16769_s1 + $0x10b8] ss:$20 sps:$4 sm:$0xff]  }
  0xc5   :  { %6923 = vmatprep.subr.bf16.mxu1 %v11498_v8  ;;  %6912 = vmatprep.mubr.bf16.mxu0 %v13573_v9  ;;  %v11562_v8 = vld [vmem:[%s16769_s1 + $0x1338] ss:$20 sps:$4 sm:$0xff]  }
  0xc6   :  { %6953 = vmatprep.mubr.bf16.mxu1 %v13575_v44 }
  0xc7   :  { %6883 = vmatpush1.bf16.msra.mxu0 %v11493_v10  ;;  %v11567_v10 = vld [vmem:[%s16769_s1 + $0x1094] ss:$20 sps:$4 sm:$0xff]  }
  0xc8   :  { %6924 = vmatpush1.bf16.msra.mxu1 %v11496_v11  ;;  %6884 = vmatprep.subr.bf16.mxu0 %v11501_v12  ;;  %v11570_v11 = vld [vmem:[%s16769_s1 + $0x1314] ss:$20 sps:$4 sm:$0xff]   ;;  %v38_v12 = vld [vmem:[%s16768_s0 + $0x20] sm:$0xff] }
  0xc9   :  { %6925 = vmatprep.subr.bf16.mxu1 %v11504_v13  ;;  %v11565_v13 = vld [vmem:[%s16769_s1 + $0x1090] ss:$20 sps:$4 sm:$0xff]  }
  0xcb   :  { %6885 = vmatpush1.bf16.msra.mxu0 %v11499_v14  ;;  %v11568_v14 = vld [vmem:[%s16769_s1 + $0x1310] ss:$20 sps:$4 sm:$0xff]  }
  0xcc   :  { %6926 = vmatpush1.bf16.msra.mxu1 %v11502_v15  ;;  %6886 = vmatprep.subr.bf16.mxu0 %v11507_v17  ;;  %v11573_v15 = vld [vmem:[%s16769_s1 + $0x106c] ss:$20 sps:$4 sm:$0xff]  }
  0xcd   :  { %6927 = vmatprep.subr.bf16.mxu1 %v11510_v19  ;;  %v11576_v17 = vld [vmem:[%s16769_s1 + $0x12ec] ss:$20 sps:$4 sm:$0xff]   ;;  %v116_v19 = vcombine.high %v38_v12, %v38_v12 }
  0xcf   :  { %6887 = vmatpush1.bf16.msra.mxu0 %v11505_v20  ;;  %v11571_v20 = vld [vmem:[%s16769_s1 + $0x1068] ss:$20 sps:$4 sm:$0xff]  }
  0xd0   :  { %6928 = vmatpush1.bf16.msra.mxu1 %v11508_v21  ;;  %6888 = vmatprep.subr.bf16.mxu0 %v11513_v22  ;;  %v11574_v21 = vld [vmem:[%s16769_s1 + $0x12e8] ss:$20 sps:$4 sm:$0xff]   ;;  %v11579_v22 = vld [vmem:[%s16769_s1 + $0x1044] ss:$20 sps:$4 sm:$0xff]  }
  0xd1   :  { %6929 = vmatprep.subr.bf16.mxu1 %v11516_v23  ;;  %v11582_v23 = vld [vmem:[%s16769_s1 + $0x12c4] ss:$20 sps:$4 sm:$0xff]  }
  0xd3   :  { %6889 = vmatpush1.bf16.msra.mxu0 %v11511_v24  ;;  %v13753_v24 = vrot.slane %v38_v12, %v13023_v49  ;;  %v11604_v12 = vld [vmem:[%s16769_s1 + $0x14a4] ss:$20 sps:$4 sm:$0xff]  }
  0xd4   :  { %6930 = vmatpush1.bf16.msra.mxu1 %v11514_v25  ;;  %6890 = vmatprep.subr.bf16.mxu0 %v11519_v26  ;;  %v13756_v25 = vrot.slane %v116_v19, %v13023_v49  ;;  %v11577_v26 = vld [vmem:[%s16769_s1 + $0x1040] ss:$20 sps:$4 sm:$0xff]   ;;  %v11610_v19 = vld [vmem:[%s16769_s1 + $0x147c] ss:$20 sps:$4 sm:$0xff]  }
  0xd5   :  { %6931 = vmatprep.subr.bf16.mxu1 %v11522_v27  ;;  %v11580_v27 = vld [vmem:[%s16769_s1 + $0x12c0] ss:$20 sps:$4 sm:$0xff]  }
  0xd7   :  { %6891 = vmatpush1.bf16.msra.mxu0 %v11517_v28  ;;  %v1407_v28 = vld [vmem:[%s16770_s2] sm:$0x1f] }
  0xd8   :  { %6932 = vmatpush1.bf16.msra.mxu1 %v11520_v29  ;;  %6892 = vmatprep.subr.bf16.mxu0 %v11525_v30  ;;  %v13768_v29 = vsub.s32 0, %v13005_v43  ;;  %v11586_v30 = vld [vmem:[%s16769_s1 + $0x151c] ss:$20 sps:$4 sm:$0xff]  }
  0xd9   :  { %6933 = vmatprep.subr.bf16.mxu1 %v11528_v31  ;;  %v11589_v31 = vld [vmem:[%s16769_s1 + $0x179c] ss:$20 sps:$4 sm:$0xff]  }
  0xdb   :  { %6893 = vmatpush1.bf16.msra.mxu0 %v11523_v33  ;;  %v13777_v33 = vsub.s32 1, %v13005_v43 }
  0xdc   :  { %6934 = vmatpush1.bf16.msra.mxu1 %v11526_v35  ;;  %6894 = vmatprep.subr.bf16.mxu0 %v11531_v36  ;;  %v131_v35 = vcombine.high %v13753_v24, %v13753_v24  ;;  %v132_v36 = vcombine.high %v13756_v25, %v13756_v25 }
  0xdd   :  { %6935 = vmatprep.subr.bf16.mxu1 %v11534_v37  ;;  %v13785_v37 = vpack.c.bf16 %v13532_v58, %v13532_v58  ;;  %v11592_v58 = vld [vmem:[%s16769_s1 + $0x14f4] ss:$20 sps:$4 sm:$0xff]  }
  0xdf   :  { %6895 = vmatpush1.bf16.msra.mxu0 %v11529_v38  ;;  %v13789_v38 = vpack.c.bf16 %v13535_v59, %v13535_v59  ;;  %v11595_v59 = vld [vmem:[%s16769_s1 + $0x1774] ss:$20 sps:$4 sm:$0xff]  }
  0xe0   :  { %6936 = vmatpush1.bf16.msra.mxu1 %v11532_v40  ;;  %6896 = vmatprep.subr.bf16.mxu0 %v11537_v41  ;;  %v1412_v40 = vrot.slane %v1407_v28, %v13768_v29  ;;  %v11584_v41 = vld [vmem:[%s16769_s1 + $0x1518] ss:$20 sps:$4 sm:$0xff]  }
  0xe1   :  { %6937 = vmatprep.subr.bf16.mxu1 %v11540_v42  ;;  %v11587_v42 = vld [vmem:[%s16769_s1 + $0x1798] ss:$20 sps:$4 sm:$0xff]  }
  0xe3   :  { %6897 = vmatpush2.bf16.msra.mxu0 %v11535_v45  ;;  %v1416_v45 = vrot.slane %v1407_v28, %v13777_v33  ;;  %v11617_v28 = vld [vmem:[%s16769_s1 + $0x16d0] ss:$20 sps:$4 sm:$0xff]  }
  0xe4   :  { %6938 = vmatpush2.bf16.msra.mxu1 %v11538_v46  ;;  %6898 = vmatprep.subr.bf16.mxu0 %v11543_v47  ;;  %v13805_v46 = vpack.c.bf16 %v131_v35, %v131_v35  ;;  %v13807_v47 = vpack.c.bf16 %v132_v36, %v132_v36  ;;  %v11620_v35 = vld [vmem:[%s16769_s1 + $0x1428] ss:$20 sps:$4 sm:$0xff]  }
  0xe5   :  { %6939 = vmatprep.subr.bf16.mxu1 %v11546_v50  ;;  %v11623_v36 = vld [vmem:[%s16769_s1 + $0x16a8] ss:$20 sps:$4 sm:$0xff]  }
  0xe7   :  { %6899 = vmatpush2.bf16.msra.mxu0 %v11541_v51 }
  0xe8   :  { %6940 = vmatpush2.bf16.msra.mxu1 %v11544_v54  ;;  %6900 = vmatprep.subr.bf16.mxu0 %v11549_v55  ;;  %v11590_v54 = vld [vmem:[%s16769_s1 + $0x14f0] ss:$20 sps:$4 sm:$0xff]  }
  0xe9   :  { %6941 = vmatprep.subr.bf16.mxu1 %v11552_v56  ;;  %v11593_v56 = vld [vmem:[%s16769_s1 + $0x1770] ss:$20 sps:$4 sm:$0xff]  }
  0xeb   :  { %6901 = vmatpush2.bf16.msra.mxu0 %v11547_v60  ;;  %v11598_v60 = vld [vmem:[%s16769_s1 + $0x14cc] ss:$20 sps:$4 sm:$0xff]  }
  0xec   :  { %6942 = vmatpush2.bf16.msra.mxu1 %v11550_v61  ;;  %6902 = vmatprep.subr.bf16.mxu0 %v11555_v63 }
  0xed   :  { %6943 = vmatprep.subr.bf16.mxu1 %v11558_v0  ;;  %v11601_v0 = vld [vmem:[%s16769_s1 + $0x174c] ss:$20 sps:$4 sm:$0xff]  }
  0xef   :  { %6903 = vmatpush2.bf16.msra.mxu0 %v11553_v1 }
  0xf0   :  { %6944 = vmatpush2.bf16.msra.mxu1 %v11556_v2  ;;  %6904 = vmatprep.subr.bf16.mxu0 %v11561_v5 }
  0xf1   :  { %6945 = vmatprep.subr.bf16.mxu1 %v11564_v7  ;;  %v11596_v7 = vld [vmem:[%s16769_s1 + $0x14c8] ss:$20 sps:$4 sm:$0xff]  }
  0xf3   :  { %6905 = vmatpush2.bf16.msra.mxu0 %v11559_v39  ;;  %v11599_v39 = vld [vmem:[%s16769_s1 + $0x1748] ss:$20 sps:$4 sm:$0xff]  }
  0xf4   :  { %6946 = vmatpush2.bf16.msra.mxu1 %v11562_v8  ;;  %6906 = vmatprep.subr.bf16.mxu0 %v11567_v10 }
  0xf5   :  { %6947 = vmatprep.subr.bf16.mxu1 %v11570_v11 }
  0xf7   :  { %6907 = vmatpush2.bf16.msra.mxu0 %v11565_v13  ;;  %v11607_v13 = vld [vmem:[%s16769_s1 + $0x1724] ss:$20 sps:$4 sm:$0xff]  }
  0xf8   :  { %6948 = vmatpush2.bf16.msra.mxu1 %v11568_v14  ;;  %6908 = vmatprep.subr.bf16.mxu0 %v11573_v15  ;;  %v11602_v15 = vld [vmem:[%s16769_s1 + $0x14a0] ss:$20 sps:$4 sm:$0xff]  }
  0xf9   :  { %6949 = vmatprep.subr.bf16.mxu1 %v11576_v17  ;;  %v11605_v17 = vld [vmem:[%s16769_s1 + $0x1720] ss:$20 sps:$4 sm:$0xff]  }
  0xfb   :  { %6909 = vmatpush2.bf16.msra.mxu0 %v11571_v20  ;;  %v11613_v20 = vld [vmem:[%s16769_s1 + $0x16fc] ss:$20 sps:$4 sm:$0xff]  }
  0xfc   :  { %6950 = vmatpush2.bf16.msra.mxu1 %v11574_v21  ;;  %6910 = vmatprep.subr.bf16.mxu0 %v11579_v22  ;;  %v11608_v21 = vld [vmem:[%s16769_s1 + $0x1478] ss:$20 sps:$4 sm:$0xff]  }
  0xfd   :  { %6951 = vmatprep.subr.bf16.mxu1 %v11582_v23  ;;  %v11611_v22 = vld [vmem:[%s16769_s1 + $0x16f8] ss:$20 sps:$4 sm:$0xff]   ;;  %v11616_v23 = vld [vmem:[%s16769_s1 + $0x1454] ss:$20 sps:$4 sm:$0xff]  }
  0xff   :  { %6911 = vmatpush2.bf16.msra.mxu0 %v11577_v26  ;;  %v11619_v26 = vld [vmem:[%s16769_s1 + $0x16d4] ss:$20 sps:$4 sm:$0xff]  }
 0x100   :  { %6952 = vmatpush2.bf16.msra.mxu1 %v11580_v27  ;;  %6962 = vmatprep.subr.bf16.mxu0 %v11586_v30  ;;  %v11614_v27 = vld [vmem:[%s16769_s1 + $0x1450] ss:$20 sps:$4 sm:$0xff]   ;;  %v11622_v30 = vld [vmem:[%s16769_s1 + $0x142c] ss:$20 sps:$4 sm:$0xff]  }
 0x101   :  { %7003 = vmatprep.subr.bf16.mxu1 %v11589_v31  ;;  %v11625_v31 = vld [vmem:[%s16769_s1 + $0x16ac] ss:$20 sps:$4 sm:$0xff]  }
 0x102   :  { %v6668_v50 = vpop.f32.mrf.mxu0  ;;  %6913 = vmatmul.mubr.bf16.vlgmr.msra.gmra.mxu0 %v13785_v37 }
 0x103   :  { %6954 = vmatmul.mubr.bf16.vlgmr.msra.gmra.mxu1 %v13789_v38  ;;  %v6709_v51 = vpop.f32.mrf.mxu1  ;;  %v6669_v55 = vadd.f32 %v6668_v50, %v1412_v40  ;;  %6963 = vmatpush1.bf16.msra.mxu0 %v11584_v41  ;;  %v11628_v40 = vld [vmem:[%s16769_s1 + $0x1404] ss:$20 sps:$4 sm:$0xff]  }
 0x104   :  { %7004 = vmatpush1.bf16.msra.mxu1 %v11587_v42  ;;  %v6670_v61 = vpop.f32.mrf.mxu0  ;;  %6964 = vmatprep.subr.bf16.mxu0 %v11592_v58  ;;  %v11631_v41 = vld [vmem:[%s16769_s1 + $0x1684] ss:$20 sps:$4 sm:$0xff]   ;;  %v11626_v42 = vld [vmem:[%s16769_s1 + $0x1400] ss:$20 sps:$4 sm:$0xff]  }
 0x105   :  { %v6711_v63 = vpop.f32.mrf.mxu1  ;;  %7005 = vmatprep.subr.bf16.mxu1 %v11595_v59  ;;  %v6671_v1 = vadd.f32 %v6670_v61, %v1416_v45  ;;  %v13823_v2 = vadd.f32 %v6709_v51, %v6669_v55  ;;  %6994 = vmatprep.mubr.bf16.mxu0 %v13805_v46  ;;  %v11629_v58 = vld [vmem:[%s16769_s1 + $0x1680] ss:$20 sps:$4 sm:$0xff]   ;;  %v11634_v59 = vld [vmem:[%s16769_s1 + $0x165c] ss:$20 sps:$4 sm:$0xff]   ;;  %v11632_v50 = vld [vmem:[%s16769_s1 + $0x1658] ss:$20 sps:$4 sm:$0xff]  }
 0x106   :  { %7035 = vmatprep.mubr.bf16.mxu1 %v13807_v47  ;;  %v6672_v5 = vpop.f32.mrf.mxu0  ;;  %v11637_v45 = vld [vmem:[%s16769_s1 + $0x18dc] ss:$20 sps:$4 sm:$0xff]   ;;  %v11635_v51 = vld [vmem:[%s16769_s1 + $0x18d8] ss:$20 sps:$4 sm:$0xff]   ;;  %v11643_v55 = vld [vmem:[%s16769_s1 + $0x18b4] ss:$20 sps:$4 sm:$0xff]  }
 0x107   :  { %v6713_v8 = vpop.f32.mrf.mxu1  ;;  %v13833_v10 = vadd.f32 %v6711_v63, %v6671_v1  ;;  %6965 = vmatpush1.bf16.msra.mxu0 %v11590_v54  ;;  %v11640_v54 = vld [vmem:[%s16769_s1 + $0x1634] ss:$20 sps:$4 sm:$0xff]   ;;  %v11646_v61 = vld [vmem:[%s16769_s1 + $0x160c] ss:$20 sps:$4 sm:$0xff]   ;;  %v11652_v5 = vld [vmem:[%s16769_s1 + $0x15e4] ss:$20 sps:$4 sm:$0xff]  }
 0x108   :  { %7006 = vmatpush1.bf16.msra.mxu1 %v11593_v56  ;;  %v6673_v11 = vpop.f32.mrf.mxu0  ;;  %6966 = vmatprep.subr.bf16.mxu0 %v11598_v60  ;;  %v11638_v56 = vld [vmem:[%s16769_s1 + $0x1630] ss:$20 sps:$4 sm:$0xff]   ;;  %v11649_v63 = vld [vmem:[%s16769_s1 + $0x188c] ss:$20 sps:$4 sm:$0xff]   ;;  %v11647_v1 = vld [vmem:[%s16769_s1 + $0x1888] ss:$20 sps:$4 sm:$0xff]  }
 0x109   :  { %7007 = vmatprep.subr.bf16.mxu1 %v11601_v0  ;;  %v6714_v14 = vpop.f32.mrf.mxu1  ;;  %v11641_v60 = vld [vmem:[%s16769_s1 + $0x18b0] ss:$20 sps:$4 sm:$0xff]   ;;  %v11644_v0 = vld [vmem:[%s16769_s1 + $0x1608] ss:$20 sps:$4 sm:$0xff]   ;;  %v11653_v8 = vld [vmem:[%s16769_s1 + $0x1860] ss:$20 sps:$4 sm:$0xff]  }
 0x10a   :  { %v11658_v11 = vld [vmem:[%s16769_s1 + $0x15bc] ss:$20 sps:$4 sm:$0xff]   ;;  %v11659_v14 = vld [vmem:[%s16769_s1 + $0x1838] ss:$20 sps:$4 sm:$0xff]  }
 0x10b   :  { %6967 = vmatpush1.bf16.msra.mxu0 %v11596_v7  ;;  %v11655_v7 = vld [vmem:[%s16769_s1 + $0x1864] ss:$20 sps:$4 sm:$0xff]  }
 0x10c   :  { %7008 = vmatpush1.bf16.msra.mxu1 %v11599_v39  ;;  %6968 = vmatprep.subr.bf16.mxu0 %v11604_v12  ;;  %v11650_v39 = vld [vmem:[%s16769_s1 + $0x15e0] ss:$20 sps:$4 sm:$0xff]   ;;  %v11661_v12 = vld [vmem:[%s16769_s1 + $0x183c] ss:$20 sps:$4 sm:$0xff]  }
 0x10d   :  { %7009 = vmatprep.subr.bf16.mxu1 %v11607_v13  ;;  %v11656_v13 = vld [vmem:[%s16769_s1 + $0x15b8] ss:$20 sps:$4 sm:$0xff]  }
 0x10f   :  { %6969 = vmatpush1.bf16.msra.mxu0 %v11602_v15  ;;  %v11664_v15 = vld [vmem:[%s16769_s1 + $0x1594] ss:$20 sps:$4 sm:$0xff]  }
 0x110   :  { %7010 = vmatpush1.bf16.msra.mxu1 %v11605_v17  ;;  %6970 = vmatprep.subr.bf16.mxu0 %v11610_v19  ;;  %v11667_v17 = vld [vmem:[%s16769_s1 + $0x1814] ss:$20 sps:$4 sm:$0xff]  }
 0x111   :  { %7011 = vmatprep.subr.bf16.mxu1 %v11613_v20  ;;  %v39_v19 = vld [vmem:[%s16768_s0 + $0x28] sm:$0xff]  ;;  %v11662_v20 = vld [vmem:[%s16769_s1 + $0x1590] ss:$20 sps:$4 sm:$0xff]  }
 0x113   :  { %6971 = vmatpush1.bf16.msra.mxu0 %v11608_v21  ;;  %v11665_v21 = vld [vmem:[%s16769_s1 + $0x1810] ss:$20 sps:$4 sm:$0xff]  }
 0x114   :  { %7012 = vmatpush1.bf16.msra.mxu1 %v11611_v22  ;;  %6972 = vmatprep.subr.bf16.mxu0 %v11616_v23  ;;  %v11670_v22 = vld [vmem:[%s16769_s1 + $0x156c] ss:$20 sps:$4 sm:$0xff]  }
 0x115   :  { %7013 = vmatprep.subr.bf16.mxu1 %v11619_v26  ;;  %v11673_v23 = vld [vmem:[%s16769_s1 + $0x17ec] ss:$20 sps:$4 sm:$0xff]   ;;  %v133_v26 = vcombine.high %v39_v19, %v39_v19 }
 0x117   :  { %6973 = vmatpush1.bf16.msra.mxu0 %v11614_v27  ;;  %v11668_v27 = vld [vmem:[%s16769_s1 + $0x1568] ss:$20 sps:$4 sm:$0xff]  }
 0x118   :  { %7014 = vmatpush1.bf16.msra.mxu1 %v11617_v28  ;;  %6974 = vmatprep.subr.bf16.mxu0 %v11622_v30  ;;  %v11671_v28 = vld [vmem:[%s16769_s1 + $0x17e8] ss:$20 sps:$4 sm:$0xff]   ;;  %v11676_v30 = vld [vmem:[%s16769_s1 + $0x1544] ss:$20 sps:$4 sm:$0xff]  }
 0x119   :  { %7015 = vmatprep.subr.bf16.mxu1 %v11625_v31  ;;  %v11679_v31 = vld [vmem:[%s16769_s1 + $0x17c4] ss:$20 sps:$4 sm:$0xff]  }
 0x11b   :  { %6975 = vmatpush1.bf16.msra.mxu0 %v11620_v35  ;;  %v13989_v35 = vrot.slane %v39_v19, %v13023_v49  ;;  %v11701_v19 = vld [vmem:[%s16769_s1 + $0x19a4] ss:$20 sps:$4 sm:$0xff]  }
 0x11c   :  { %7016 = vmatpush1.bf16.msra.mxu1 %v11623_v36  ;;  %6976 = vmatprep.subr.bf16.mxu0 %v11628_v40  ;;  %v13992_v36 = vrot.slane %v133_v26, %v13023_v49  ;;  %v11674_v40 = vld [vmem:[%s16769_s1 + $0x1540] ss:$20 sps:$4 sm:$0xff]   ;;  %v11686_v49 = vld [vmem:[%s16769_s1 + $0x1c9c] ss:$20 sps:$4 sm:$0xff]  }
 0x11d   :  { %7017 = vmatprep.subr.bf16.mxu1 %v11631_v41  ;;  %v11677_v41 = vld [vmem:[%s16769_s1 + $0x17c0] ss:$20 sps:$4 sm:$0xff]   ;;  %v11707_v26 = vld [vmem:[%s16769_s1 + $0x197c] ss:$20 sps:$4 sm:$0xff]  }
 0x11f   :  { %6977 = vmatpush1.bf16.msra.mxu0 %v11626_v42  ;;  %v11683_v42 = vld [vmem:[%s16769_s1 + $0x1a1c] ss:$20 sps:$4 sm:$0xff]  }
 0x120   :  { %7018 = vmatpush1.bf16.msra.mxu1 %v11629_v58  ;;  %6978 = vmatprep.subr.bf16.mxu0 %v11634_v59  ;;  %v11681_v58 = vld [vmem:[%s16769_s1 + $0x1a18] ss:$20 sps:$4 sm:$0xff]  }
 0x121   :  { %7019 = vmatprep.subr.bf16.mxu1 %v11637_v45  ;;  %v11684_v59 = vld [vmem:[%s16769_s1 + $0x1c98] ss:$20 sps:$4 sm:$0xff]   ;;  %v148_v45 = vcombine.high %v13989_v35, %v13989_v35 }
 0x123   :  { %6979 = vmatpush2.bf16.msra.mxu0 %v11632_v50  ;;  %v149_v50 = vcombine.high %v13992_v36, %v13992_v36 }
 0x124   :  { %7020 = vmatpush2.bf16.msra.mxu1 %v11635_v51  ;;  %6980 = vmatprep.subr.bf16.mxu0 %v11640_v54  ;;  %v14018_v51 = vpack.c.bf16 %v13753_v24, %v13753_v24  ;;  %v14022_v54 = vpack.c.bf16 %v13756_v25, %v13756_v25  ;;  %v11687_v24 = vld [vmem:[%s16769_s1 + $0x19f0] ss:$20 sps:$4 sm:$0xff]  }
 0x125   :  { %7021 = vmatprep.subr.bf16.mxu1 %v11643_v55  ;;  %v11689_v55 = vld [vmem:[%s16769_s1 + $0x19f4] ss:$20 sps:$4 sm:$0xff]   ;;  %v11690_v25 = vld [vmem:[%s16769_s1 + $0x1c70] ss:$20 sps:$4 sm:$0xff]  }
 0x127   :  { %6981 = vmatpush2.bf16.msra.mxu0 %v11638_v56  ;;  %v11692_v56 = vld [vmem:[%s16769_s1 + $0x1c74] ss:$20 sps:$4 sm:$0xff]  }
 0x128   :  { %7022 = vmatpush2.bf16.msra.mxu1 %v11641_v60  ;;  %6982 = vmatprep.subr.bf16.mxu0 %v11646_v61  ;;  %v14036_v60 = vpack.c.bf16 %v148_v45, %v148_v45  ;;  %v14038_v61 = vpack.c.bf16 %v149_v50, %v149_v50  ;;  %v11720_v45 = vld [vmem:[%s16769_s1 + $0x1ba8] ss:$20 sps:$4 sm:$0xff]   ;;  %v11725_v50 = vld [vmem:[%s16769_s1 + $0x1904] ss:$20 sps:$4 sm:$0xff]  }
 0x129   :  { %7023 = vmatprep.subr.bf16.mxu1 %v11649_v63 }
 0x12b   :  { %6983 = vmatpush2.bf16.msra.mxu0 %v11644_v0 }
 0x12c   :  { %7024 = vmatpush2.bf16.msra.mxu1 %v11647_v1  ;;  %6984 = vmatprep.subr.bf16.mxu0 %v11652_v5 }
 0x12d   :  { %7025 = vmatprep.subr.bf16.mxu1 %v11655_v7 }
 0x12f   :  { %6985 = vmatpush2.bf16.msra.mxu0 %v11650_v39  ;;  %v11695_v39 = vld [vmem:[%s16769_s1 + $0x19cc] ss:$20 sps:$4 sm:$0xff]  }
 0x130   :  { %7026 = vmatpush2.bf16.msra.mxu1 %v11653_v8  ;;  %6986 = vmatprep.subr.bf16.mxu0 %v11658_v11  ;;  %v11698_v8 = vld [vmem:[%s16769_s1 + $0x1c4c] ss:$20 sps:$4 sm:$0xff]  }
 0x131   :  { %7027 = vmatprep.subr.bf16.mxu1 %v11661_v12 }
 0x133   :  { %6987 = vmatpush2.bf16.msra.mxu0 %v11656_v13  ;;  %v11696_v13 = vld [vmem:[%s16769_s1 + $0x1c48] ss:$20 sps:$4 sm:$0xff]  }
 0x134   :  { %7028 = vmatpush2.bf16.msra.mxu1 %v11659_v14  ;;  %6988 = vmatprep.subr.bf16.mxu0 %v11664_v15 }
 0x135   :  { %7029 = vmatprep.subr.bf16.mxu1 %v11667_v17 }
 0x137   :  { %6989 = vmatpush2.bf16.msra.mxu0 %v11662_v20  ;;  %v11704_v20 = vld [vmem:[%s16769_s1 + $0x1c24] ss:$20 sps:$4 sm:$0xff]  }
 0x138   :  { %7030 = vmatpush2.bf16.msra.mxu1 %v11665_v21  ;;  %6990 = vmatprep.subr.bf16.mxu0 %v11670_v22  ;;  %v11699_v22 = vld [vmem:[%s16769_s1 + $0x19a0] ss:$20 sps:$4 sm:$0xff]  }
 0x139   :  { %7031 = vmatprep.subr.bf16.mxu1 %v11673_v23  ;;  %v11702_v23 = vld [vmem:[%s16769_s1 + $0x1c20] ss:$20 sps:$4 sm:$0xff]  }
 0x13b   :  { %6991 = vmatpush2.bf16.msra.mxu0 %v11668_v27  ;;  %v11710_v27 = vld [vmem:[%s16769_s1 + $0x1bfc] ss:$20 sps:$4 sm:$0xff]  }
 0x13c   :  { %7032 = vmatpush2.bf16.msra.mxu1 %v11671_v28  ;;  %6992 = vmatprep.subr.bf16.mxu0 %v11676_v30  ;;  %v11705_v28 = vld [vmem:[%s16769_s1 + $0x1978] ss:$20 sps:$4 sm:$0xff]  }
 0x13d   :  { %7033 = vmatprep.subr.bf16.mxu1 %v11679_v31  ;;  %v11708_v30 = vld [vmem:[%s16769_s1 + $0x1bf8] ss:$20 sps:$4 sm:$0xff]   ;;  %v11713_v31 = vld [vmem:[%s16769_s1 + $0x1954] ss:$20 sps:$4 sm:$0xff]  }
 0x13f   :  { %6993 = vmatpush2.bf16.msra.mxu0 %v11674_v40  ;;  %v11716_v40 = vld [vmem:[%s16769_s1 + $0x1bd4] ss:$20 sps:$4 sm:$0xff]  }
 0x140   :  { %7034 = vmatpush2.bf16.msra.mxu1 %v11677_v41  ;;  %7044 = vmatprep.subr.bf16.mxu0 %v11683_v42  ;;  %v11711_v41 = vld [vmem:[%s16769_s1 + $0x1950] ss:$20 sps:$4 sm:$0xff]  }
 0x141   :  { %7085 = vmatprep.subr.bf16.mxu1 %v11686_v49  ;;  %v11714_v42 = vld [vmem:[%s16769_s1 + $0x1bd0] ss:$20 sps:$4 sm:$0xff]   ;;  %v11719_v49 = vld [vmem:[%s16769_s1 + $0x192c] ss:$20 sps:$4 sm:$0xff]  }
 0x142   :  { %v6750_v63 = vpop.f32.mrf.mxu0  ;;  %6995 = vmatmul.mubr.bf16.vlgmr.msra.gmra.mxu0 %v14018_v51 }
 0x143   :  { %7036 = vmatmul.mubr.bf16.vlgmr.msra.gmra.mxu1 %v14022_v54  ;;  %v6791_v0 = vpop.f32.mrf.mxu1  ;;  %v6751_v1 = vadd.f32 %v6750_v63, %v13823_v2  ;;  %7045 = vmatpush1.bf16.msra.mxu0 %v11681_v58  ;;  %v11693_v2 = vld [vmem:[%s16769_s1 + $0x19c8] ss:$20 sps:$4 sm:$0xff]   ;;  %v11722_v58 = vld [vmem:[%s16769_s1 + $0x1bac] ss:$20 sps:$4 sm:$0xff]  }
 0x144   :  { %7086 = vmatpush1.bf16.msra.mxu1 %v11684_v59  ;;  %v6752_v5 = vpop.f32.mrf.mxu0  ;;  %7046 = vmatprep.subr.bf16.mxu0 %v11689_v55  ;;  %v11717_v59 = vld [vmem:[%s16769_s1 + $0x1928] ss:$20 sps:$4 sm:$0xff]   ;;  %v11728_v55 = vld [vmem:[%s16769_s1 + $0x1b84] ss:$20 sps:$4 sm:$0xff]  }
 0x145   :  { %v6793_v7 = vpop.f32.mrf.mxu1  ;;  %7087 = vmatprep.subr.bf16.mxu1 %v11692_v56  ;;  %v6753_v11 = vadd.f32 %v6752_v5, %v13833_v10  ;;  %v14050_v12 = vadd.f32 %v6791_v0, %v6751_v1  ;;  %7076 = vmatprep.mubr.bf16.mxu0 %v14036_v60  ;;  %v11723_v56 = vld [vmem:[%s16769_s1 + $0x1900] ss:$20 sps:$4 sm:$0xff]   ;;  %v11734_v63 = vld [vmem:[%s16769_s1 + $0x1ddc] ss:$20 sps:$4 sm:$0xff]   ;;  %v11729_v0 = vld [vmem:[%s16769_s1 + $0x1b58] ss:$20 sps:$4 sm:$0xff]  }
 0x146   :  { %7117 = vmatprep.mubr.bf16.mxu1 %v14038_v61  ;;  %v6754_v14 = vpop.f32.mrf.mxu0  ;;  %v11732_v1 = vld [vmem:[%s16769_s1 + $0x1dd8] ss:$20 sps:$4 sm:$0xff]   ;;  %v11737_v5 = vld [vmem:[%s16769_s1 + $0x1b34] ss:$20 sps:$4 sm:$0xff]  }
 0x147   :  { %v6795_v15 = vpop.f32.mrf.mxu1  ;;  %v14060_v17 = vadd.f32 %v6793_v7, %v6753_v11  ;;  %7047 = vmatpush1.bf16.msra.mxu0 %v11687_v24  ;;  %v11726_v24 = vld [vmem:[%s16769_s1 + $0x1b80] ss:$20 sps:$4 sm:$0xff]   ;;  %v11744_v14 = vld [vmem:[%s16769_s1 + $0x1d88] ss:$20 sps:$4 sm:$0xff]  }
 0x148   :  { %7088 = vmatpush1.bf16.msra.mxu1 %v11690_v25  ;;  %v6755_v10 = vpop.f32.mrf.mxu0  ;;  %7048 = vmatprep.subr.bf16.mxu0 %v11695_v39  ;;  %v11731_v25 = vld [vmem:[%s16769_s1 + $0x1b5c] ss:$20 sps:$4 sm:$0xff]   ;;  %v11740_v7 = vld [vmem:[%s16769_s1 + $0x1db4] ss:$20 sps:$4 sm:$0xff]   ;;  %v11743_v11 = vld [vmem:[%s16769_s1 + $0x1b0c] ss:$20 sps:$4 sm:$0xff]  }
 0x149   :  { %7089 = vmatprep.subr.bf16.mxu1 %v11698_v8  ;;  %v6796_v21 = vpop.f32.mrf.mxu1  ;;  %v11735_v39 = vld [vmem:[%s16769_s1 + $0x1b30] ss:$20 sps:$4 sm:$0xff]  }
 0x14a   :  { %v11738_v8 = vld [vmem:[%s16769_s1 + $0x1db0] ss:$20 sps:$4 sm:$0xff]  }
 0x14b   :  { %7049 = vmatpush1.bf16.msra.mxu0 %v11693_v2  ;;  %v11746_v2 = vld [vmem:[%s16769_s1 + $0x1d8c] ss:$20 sps:$4 sm:$0xff]   ;;  %v11749_v15 = vld [vmem:[%s16769_s1 + $0x1ae4] ss:$20 sps:$4 sm:$0xff]   ;;  %v11755_v21 = vld [vmem:[%s16769_s1 + $0x1abc] ss:$20 sps:$4 sm:$0xff]  }
 0x14c   :  { %7090 = vmatpush1.bf16.msra.mxu1 %v11696_v13  ;;  %7050 = vmatprep.subr.bf16.mxu0 %v11701_v19  ;;  %v11741_v13 = vld [vmem:[%s16769_s1 + $0x1b08] ss:$20 sps:$4 sm:$0xff]   ;;  %v11752_v10 = vld [vmem:[%s16769_s1 + $0x1d64] ss:$20 sps:$4 sm:$0xff]   ;;  %v11747_v19 = vld [vmem:[%s16769_s1 + $0x1ae0] ss:$20 sps:$4 sm:$0xff]  }
 0x14d   :  { %7091 = vmatprep.subr.bf16.mxu1 %v11704_v20  ;;  %v11750_v20 = vld [vmem:[%s16769_s1 + $0x1d60] ss:$20 sps:$4 sm:$0xff]  }
 0x14f   :  { %7051 = vmatpush1.bf16.msra.mxu0 %v11699_v22  ;;  %v11758_v22 = vld [vmem:[%s16769_s1 + $0x1d3c] ss:$20 sps:$4 sm:$0xff]  }
 0x150   :  { %7092 = vmatpush1.bf16.msra.mxu1 %v11702_v23  ;;  %7052 = vmatprep.subr.bf16.mxu0 %v11707_v26  ;;  %v11753_v23 = vld [vmem:[%s16769_s1 + $0x1ab8] ss:$20 sps:$4 sm:$0xff]  }
 0x151   :  { %7093 = vmatprep.subr.bf16.mxu1 %v11710_v27  ;;  %v11756_v26 = vld [vmem:[%s16769_s1 + $0x1d38] ss:$20 sps:$4 sm:$0xff]   ;;  %v11761_v27 = vld [vmem:[%s16769_s1 + $0x1a94] ss:$20 sps:$4 sm:$0xff]  }
 0x153   :  { %7053 = vmatpush1.bf16.msra.mxu0 %v11705_v28  ;;  %v11764_v28 = vld [vmem:[%s16769_s1 + $0x1d14] ss:$20 sps:$4 sm:$0xff]  }
 0x154   :  { %7094 = vmatpush1.bf16.msra.mxu1 %v11708_v30  ;;  %7054 = vmatprep.subr.bf16.mxu0 %v11713_v31  ;;  %v11759_v30 = vld [vmem:[%s16769_s1 + $0x1a90] ss:$20 sps:$4 sm:$0xff]  }
 0x155   :  { %7095 = vmatprep.subr.bf16.mxu1 %v11716_v40  ;;  %v11762_v31 = vld [vmem:[%s16769_s1 + $0x1d10] ss:$20 sps:$4 sm:$0xff]   ;;  %v11767_v40 = vld [vmem:[%s16769_s1 + $0x1a6c] ss:$20 sps:$4 sm:$0xff]  }
 0x157   :  { %7055 = vmatpush1.bf16.msra.mxu0 %v11711_v41  ;;  %v11770_v41 = vld [vmem:[%s16769_s1 + $0x1cec] ss:$20 sps:$4 sm:$0xff]  }
 0x158   :  { %7096 = vmatpush1.bf16.msra.mxu1 %v11714_v42  ;;  %7056 = vmatprep.subr.bf16.mxu0 %v11719_v49  ;;  %v11765_v42 = vld [vmem:[%s16769_s1 + $0x1a68] ss:$20 sps:$4 sm:$0xff]  }
 0x159   :  { %7097 = vmatprep.subr.bf16.mxu1 %v11722_v58  ;;  %v11768_v49 = vld [vmem:[%s16769_s1 + $0x1ce8] ss:$20 sps:$4 sm:$0xff]   ;;  %v11773_v58 = vld [vmem:[%s16769_s1 + $0x1a44] ss:$20 sps:$4 sm:$0xff]  }
 0x15b   :  { %7057 = vmatpush1.bf16.msra.mxu0 %v11717_v59  ;;  %v11776_v59 = vld [vmem:[%s16769_s1 + $0x1cc4] ss:$20 sps:$4 sm:$0xff]  }
 0x15c   :  { %7098 = vmatpush1.bf16.msra.mxu1 %v11720_v45  ;;  %7058 = vmatprep.subr.bf16.mxu0 %v11725_v50  ;;  %v11771_v45 = vld [vmem:[%s16769_s1 + $0x1a40] ss:$20 sps:$4 sm:$0xff]  }
 0x15d   :  { %7099 = vmatprep.subr.bf16.mxu1 %v11728_v55  ;;  %v11774_v50 = vld [vmem:[%s16769_s1 + $0x1cc0] ss:$20 sps:$4 sm:$0xff]   ;;  %v11780_v55 = vld [vmem:[%s16769_s1 + $0x1f1c] ss:$20 sps:$4 sm:$0xff]  }
 0x15f   :  { %7059 = vmatpush1.bf16.msra.mxu0 %v11723_v56  ;;  %v11783_v56 = vld [vmem:[%s16769_s1 + $0x124] ss:$20 sps:$4 sm:$0xff]  }
 0x160   :  { %7100 = vmatpush1.bf16.msra.mxu1 %v11726_v24  ;;  %7060 = vmatprep.subr.bf16.mxu0 %v11731_v25  ;;  %v11778_v24 = vld [vmem:[%s16769_s1 + $0x1f18] ss:$20 sps:$4 sm:$0xff]   ;;  %v11781_v25 = vld [vmem:[%s16769_s1 + $0x120] ss:$20 sps:$4 sm:$0xff]  }
 0x161   :  { %7101 = vmatprep.subr.bf16.mxu1 %v11734_v63  ;;  %v14232_v63 = vpack.c.bf16 %v13989_v35, %v13989_v35  ;;  %v11784_v35 = vld [vmem:[%s16769_s1 + $0x1ef0] ss:$20 sps:$4 sm:$0xff]  }
 0x163   :  { %7061 = vmatpush2.bf16.msra.mxu0 %v11729_v0  ;;  %v14236_v0 = vpack.c.bf16 %v13992_v36, %v13992_v36  ;;  %v11787_v36 = vld [vmem:[%s16769_s1 + $0xf8] ss:$20 sps:$4 sm:$0xff]  }
 0x164   :  { %7102 = vmatpush2.bf16.msra.mxu1 %v11732_v1  ;;  %7062 = vmatprep.subr.bf16.mxu0 %v11737_v5  ;;  %v11786_v1 = vld [vmem:[%s16769_s1 + $0x1ef4] ss:$20 sps:$4 sm:$0xff]   ;;  %v11789_v5 = vld [vmem:[%s16769_s1 + $0xfc] ss:$20 sps:$4 sm:$0xff]  }
 0x165   :  { %7103 = vmatprep.subr.bf16.mxu1 %v11740_v7 }
 0x167   :  { %7063 = vmatpush2.bf16.msra.mxu0 %v11735_v39 }
 0x168   :  { %7104 = vmatpush2.bf16.msra.mxu1 %v11738_v8  ;;  %7064 = vmatprep.subr.bf16.mxu0 %v11743_v11 }
 0x169   :  { %7105 = vmatprep.subr.bf16.mxu1 %v11746_v2 }
 0x16b   :  { %7065 = vmatpush2.bf16.msra.mxu0 %v11741_v13  ;;  %v11792_v13 = vld [vmem:[%s16769_s1 + $0x1ecc] ss:$20 sps:$4 sm:$0xff]  }
 0x16c   :  { %7106 = vmatpush2.bf16.msra.mxu1 %v11744_v14  ;;  %7066 = vmatprep.subr.bf16.mxu0 %v11749_v15  ;;  %v11795_v14 = vld [vmem:[%s16769_s1 + $0xd4] ss:$20 sps:$4 sm:$0xff]  }
 0x16d   :  { %7107 = vmatprep.subr.bf16.mxu1 %v11752_v10 }
 0x16f   :  { %7067 = vmatpush2.bf16.msra.mxu0 %v11747_v19  ;;  %v11793_v19 = vld [vmem:[%s16769_s1 + $0xd0] ss:$20 sps:$4 sm:$0xff]  }
 0x170   :  { %7108 = vmatpush2.bf16.msra.mxu1 %v11750_v20  ;;  %7068 = vmatprep.subr.bf16.mxu0 %v11755_v21  ;;  %v12834_v20 = vmov 0  }
 0x171   :  { %7109 = vmatprep.subr.bf16.mxu1 %v11758_v22 }
 0x173   :  { %7069 = vmatpush2.bf16.msra.mxu0 %v11753_v23 }
 0x174   :  { %7110 = vmatpush2.bf16.msra.mxu1 %v11756_v26  ;;  %7070 = vmatprep.subr.bf16.mxu0 %v11761_v27  ;;  %v11798_v26 = vld [vmem:[%s16769_s1 + $0x1ea4] ss:$20 sps:$4 sm:$0xff]   ;;  %v11801_v27 = vld [vmem:[%s16769_s1 + $0xac] ss:$20 sps:$4 sm:$0xff]  }
 0x175   :  { %7111 = vmatprep.subr.bf16.mxu1 %v11764_v28 }
 0x177   :  { %7071 = vmatpush2.bf16.msra.mxu0 %v11759_v30  ;;  %v11796_v30 = vld [vmem:[%s16769_s1 + $0x1ea0] ss:$20 sps:$4 sm:$0xff]  }
 0x178   :  { %7112 = vmatpush2.bf16.msra.mxu1 %v11762_v31  ;;  %7072 = vmatprep.subr.bf16.mxu0 %v11767_v40  ;;  %v11799_v31 = vld [vmem:[%s16769_s1 + $0xa8] ss:$20 sps:$4 sm:$0xff]  }
 0x179   :  { %7113 = vmatprep.subr.bf16.mxu1 %v11770_v41  ;;  %v11804_v40 = vld [vmem:[%s16769_s1 + $0x1e7c] ss:$20 sps:$4 sm:$0xff]   ;;  %v11807_v41 = vld [vmem:[%s16769_s1 + $0x84] ss:$20 sps:$4 sm:$0xff]  }
 0x17b   :  { %7073 = vmatpush2.bf16.msra.mxu0 %v11765_v42  ;;  %v11802_v42 = vld [vmem:[%s16769_s1 + $0x1e78] ss:$20 sps:$4 sm:$0xff]  }
 0x17c   :  { %7114 = vmatpush2.bf16.msra.mxu1 %v11768_v49  ;;  %7074 = vmatprep.subr.bf16.mxu0 %v11773_v58  ;;  %v11805_v49 = vld [vmem:[%s16769_s1 + $0x80] ss:$20 sps:$4 sm:$0xff]  }
 0x17d   :  { %7115 = vmatprep.subr.bf16.mxu1 %v11776_v59  ;;  %v11810_v58 = vld [vmem:[%s16769_s1 + $0x1e54] ss:$20 sps:$4 sm:$0xff]   ;;  %v11813_v59 = vld [vmem:[%s16769_s1 + $0x5c] ss:$20 sps:$4 sm:$0xff]  }
 0x17f   :  { %7075 = vmatpush2.bf16.msra.mxu0 %v11771_v45  ;;  %v11808_v45 = vld [vmem:[%s16769_s1 + $0x1e50] ss:$20 sps:$4 sm:$0xff]  }
 0x180   :  { %7116 = vmatpush2.bf16.msra.mxu1 %v11774_v50  ;;  %7126 = vmatprep.subr.bf16.mxu0 %v11780_v55  ;;  %v11811_v50 = vld [vmem:[%s16769_s1 + $0x58] ss:$20 sps:$4 sm:$0xff]  }
 0x181   :  { %7167 = vmatprep.subr.bf16.mxu1 %v11783_v56  ;;  %v11816_v55 = vld [vmem:[%s16769_s1 + $0x1e2c] ss:$20 sps:$4 sm:$0xff]   ;;  %v11819_v56 = vld [vmem:[%s16769_s1 + $0x34] ss:$20 sps:$4 sm:$0xff]  }
 0x182   :  { %v6832_v7 = vpop.f32.mrf.mxu0  ;;  %7077 = vmatmul.mubr.bf16.vlgmr.msra.gmra.mxu0 %v14232_v63 }
 0x183   :  { %7118 = vmatmul.mubr.bf16.vlgmr.msra.gmra.mxu1 %v14236_v0  ;;  %v6873_v39 = vpop.f32.mrf.mxu1  ;;  %v6833_v8 = vadd.f32 %v6832_v7, %v14050_v12  ;;  %7127 = vmatpush1.bf16.msra.mxu0 %v11778_v24  ;;  %v11790_v12 = vld [vmem:[%s16769_s1 + $0x1ec8] ss:$20 sps:$4 sm:$0xff]   ;;  %v9678_v7 = vld.sshfl [vmem:[%s16768_s0 + $0x30] sm:$0x3 pattern:$0x76325410] }
 0x184   :  { %7168 = vmatpush1.bf16.msra.mxu1 %v11781_v25  ;;  %v6834_v11 = vpop.f32.mrf.mxu0  ;;  %7128 = vmatprep.subr.bf16.mxu0 %v11786_v1  ;;  %v11814_v24 = vld [vmem:[%s16769_s1 + $0x1e28] ss:$20 sps:$4 sm:$0xff]   ;;  %v11817_v25 = vld [vmem:[%s16769_s1 + $0x30] ss:$20 sps:$4 sm:$0xff]  }
 0x185   :  { %v6875_v2 = vpop.f32.mrf.mxu1  ;;  %7169 = vmatprep.subr.bf16.mxu1 %v11789_v5  ;;  %v6835_v15 = vadd.f32 %v6834_v11, %v14060_v17  ;;  %v14260_v10 = vadd.f32 %v6873_v39, %v6833_v8  ;;  %7158 = vmatprep.mubr.bf16.mxu0 %v12834_v20  ;;  %v11822_v1 = vld [vmem:[%s16769_s1 + $0x1e04] ss:$20 sps:$4 sm:$0xff]   ;;  %v11825_v5 = vld [vmem:[%s16769_s1 + $0xc] ss:$20 sps:$4 sm:$0xff]  }
 0x186   :  { %7199 = vmatprep.mubr.bf16.mxu1 %v13051_v62  ;;  %v6836_v21 = vpop.f32.mrf.mxu0  ;;  %v11828_v39 = vld [vmem:[%s16769_s1 + $0x264] ss:$20 sps:$4 sm:$0xff]   ;;  %v11826_v11 = vld [vmem:[%s16769_s1 + $0x260] ss:$20 sps:$4 sm:$0xff]  }
 0x187   :  { %v6877_v22 = vpop.f32.mrf.mxu1  ;;  %v14270_v23 = vadd.f32 %v6875_v2, %v6835_v15  ;;  %7129 = vmatpush1.bf16.msra.mxu0 %v11784_v35  ;;  %v11820_v35 = vld [vmem:[%s16769_s1 + $0x1e00] ss:$20 sps:$4 sm:$0xff]   ;;  %v11831_v8 = vld [vmem:[%s16769_s1 + $0x3a4] ss:$20 sps:$4 sm:$0xff]   ;;  %v11837_v15 = vld [vmem:[%s16769_s1 + $0x37c] ss:$20 sps:$4 sm:$0xff]  }
 0x188   :  { %7170 = vmatpush1.bf16.msra.mxu1 %v11787_v36  ;;  %v6837_v17 = vpop.f32.mrf.mxu0  ;;  %7130 = vmatprep.subr.bf16.mxu0 %v11792_v13  ;;  %v11823_v36 = vld [vmem:[%s16769_s1 + $0x8] ss:$20 sps:$4 sm:$0xff]   ;;  %v11829_v2 = vld [vmem:[%s16769_s1 + $0x3a0] ss:$20 sps:$4 sm:$0xff]   ;;  %v14347_v13 = vpack.c.bf16 %v9678_v7, %v9678_v7  ;;  %v11876_v7 = vld [vmem:[%s16769_s1 + $0x4e4] ss:$20 sps:$4 sm:$0xff]  }
 0x189   :  { %7171 = vmatprep.subr.bf16.mxu1 %v11795_v14  ;;  %v6878_v28 = vpop.f32.mrf.mxu1  ;;  %v11834_v14 = vld [vmem:[%s16769_s1 + $0x23c] ss:$20 sps:$4 sm:$0xff]   ;;  %v11840_v21 = vld [vmem:[%s16769_s1 + $0x214] ss:$20 sps:$4 sm:$0xff]  }
 0x18a   :  { %v11843_v22 = vld [vmem:[%s16769_s1 + $0x354] ss:$20 sps:$4 sm:$0xff]   ;;  %v11838_v17 = vld [vmem:[%s16769_s1 + $0x210] ss:$20 sps:$4 sm:$0xff]   ;;  %v11849_v28 = vld [vmem:[%s16769_s1 + $0x32c] ss:$20 sps:$4 sm:$0xff]  }
 0x18b   :  { %7131 = vmatpush1.bf16.msra.mxu0 %v11790_v12  ;;  %v11832_v12 = vld [vmem:[%s16769_s1 + $0x238] ss:$20 sps:$4 sm:$0xff]  }
 0x18c   :  { %7172 = vmatpush1.bf16.msra.mxu1 %v11793_v19  ;;  %7132 = vmatprep.subr.bf16.mxu0 %v11798_v26  ;;  %v11835_v19 = vld [vmem:[%s16769_s1 + $0x378] ss:$20 sps:$4 sm:$0xff]   ;;  %v11841_v26 = vld [vmem:[%s16769_s1 + $0x350] ss:$20 sps:$4 sm:$0xff]  }
 0x18d   :  { %7173 = vmatprep.subr.bf16.mxu1 %v11801_v27  ;;  %v11846_v27 = vld [vmem:[%s16769_s1 + $0x1ec] ss:$20 sps:$4 sm:$0xff]  }
 0x18f   :  { %7133 = vmatpush1.bf16.msra.mxu0 %v11796_v30  ;;  %v11844_v30 = vld [vmem:[%s16769_s1 + $0x1e8] ss:$20 sps:$4 sm:$0xff]  }
 0x190   :  { %7174 = vmatpush1.bf16.msra.mxu1 %v11799_v31  ;;  %7134 = vmatprep.subr.bf16.mxu0 %v11804_v40  ;;  %v11847_v31 = vld [vmem:[%s16769_s1 + $0x328] ss:$20 sps:$4 sm:$0xff]   ;;  %v11852_v40 = vld [vmem:[%s16769_s1 + $0x1c4] ss:$20 sps:$4 sm:$0xff]  }
 0x191   :  { %7175 = vmatprep.subr.bf16.mxu1 %v11807_v41  ;;  %v11855_v41 = vld [vmem:[%s16769_s1 + $0x304] ss:$20 sps:$4 sm:$0xff]  }
 0x193   :  { %7135 = vmatpush1.bf16.msra.mxu0 %v11802_v42  ;;  %v11850_v42 = vld [vmem:[%s16769_s1 + $0x1c0] ss:$20 sps:$4 sm:$0xff]  }
 0x194   :  { %7176 = vmatpush1.bf16.msra.mxu1 %v11805_v49  ;;  %7136 = vmatprep.subr.bf16.mxu0 %v11810_v58  ;;  %v11853_v49 = vld [vmem:[%s16769_s1 + $0x300] ss:$20 sps:$4 sm:$0xff]   ;;  %v11858_v58 = vld [vmem:[%s16769_s1 + $0x19c] ss:$20 sps:$4 sm:$0xff]  }
 0x195   :  { %7177 = vmatprep.subr.bf16.mxu1 %v11813_v59  ;;  %v11861_v59 = vld [vmem:[%s16769_s1 + $0x2dc] ss:$20 sps:$4 sm:$0xff]  }
 0x197   :  { %7137 = vmatpush1.bf16.msra.mxu0 %v11808_v45  ;;  %v11856_v45 = vld [vmem:[%s16769_s1 + $0x198] ss:$20 sps:$4 sm:$0xff]  }
 0x198   :  { %7178 = vmatpush1.bf16.msra.mxu1 %v11811_v50  ;;  %7138 = vmatprep.subr.bf16.mxu0 %v11816_v55  ;;  %v11859_v50 = vld [vmem:[%s16769_s1 + $0x2d8] ss:$20 sps:$4 sm:$0xff]   ;;  %v11864_v55 = vld [vmem:[%s16769_s1 + $0x174] ss:$20 sps:$4 sm:$0xff]  }
 0x199   :  { %7179 = vmatprep.subr.bf16.mxu1 %v11819_v56  ;;  %v11867_v56 = vld [vmem:[%s16769_s1 + $0x2b4] ss:$20 sps:$4 sm:$0xff]  }
 0x19b   :  { %7139 = vmatpush1.bf16.msra.mxu0 %v11814_v24  ;;  %v11862_v24 = vld [vmem:[%s16769_s1 + $0x170] ss:$20 sps:$4 sm:$0xff]  }
 0x19c   :  { %7180 = vmatpush1.bf16.msra.mxu1 %v11817_v25  ;;  %7140 = vmatprep.subr.bf16.mxu0 %v11822_v1  ;;  %v11865_v25 = vld [vmem:[%s16769_s1 + $0x2b0] ss:$20 sps:$4 sm:$0xff]   ;;  %v11870_v1 = vld [vmem:[%s16769_s1 + $0x14c] ss:$20 sps:$4 sm:$0xff]  }
 0x19d   :  { %7181 = vmatprep.subr.bf16.mxu1 %v11825_v5  ;;  %v11873_v5 = vld [vmem:[%s16769_s1 + $0x28c] ss:$20 sps:$4 sm:$0xff]  }
 0x19f   :  { %7141 = vmatpush1.bf16.msra.mxu0 %v11820_v35  ;;  %v11868_v35 = vld [vmem:[%s16769_s1 + $0x148] ss:$20 sps:$4 sm:$0xff]  }
 0x1a0   :  { %7182 = vmatpush1.bf16.msra.mxu1 %v11823_v36  ;;  %7208 = vmatprep.subr.bf16.mxu0 %v11831_v8  ;;  %v11871_v36 = vld [vmem:[%s16769_s1 + $0x288] ss:$20 sps:$4 sm:$0xff]   ;;  %v11874_v8 = vld [vmem:[%s16769_s1 + $0x4e0] ss:$20 sps:$4 sm:$0xff]  }
 0x1a1   :  { %7183 = vmatprep.subr.bf16.mxu1 %v11828_v39  ;;  %v11879_v39 = vld [vmem:[%s16769_s1 + $0x624] ss:$20 sps:$4 sm:$0xff]  }
 0x1a2   :  { %7159 = vmatmul.mubr.bf16.vlgmr.msra.gmra.mxu0 %v14347_v13 }
 0x1a3   :  { %7209 = vmatpush1.bf16.msra.mxu0 %v11829_v2  ;;  %7240 = vmatprep.mubr.bf16.mxu0 %v13062_v3  ;;  %v11882_v2 = vld [vmem:[%s16769_s1 + $0x4bc] ss:$20 sps:$4 sm:$0xff]  }
 0x1a4   :  { %7184 = vmatpush2.bf16.msra.mxu1 %v11826_v11  ;;  %7210 = vmatprep.subr.bf16.mxu0 %v11837_v15  ;;  %v11877_v11 = vld [vmem:[%s16769_s1 + $0x620] ss:$20 sps:$4 sm:$0xff]   ;;  %v11880_v15 = vld [vmem:[%s16769_s1 + $0x4b8] ss:$20 sps:$4 sm:$0xff]  }
 0x1a5   :  { %7185 = vmatprep.subr.bf16.mxu1 %v11834_v14  ;;  %v11885_v14 = vld [vmem:[%s16769_s1 + $0x5fc] ss:$20 sps:$4 sm:$0xff]  }
 0x1a7   :  { %7211 = vmatpush1.bf16.msra.mxu0 %v11835_v19 }
 0x1a8   :  { %7186 = vmatpush2.bf16.msra.mxu1 %v11832_v12  ;;  %7212 = vmatprep.subr.bf16.mxu0 %v11843_v22  ;;  %v11883_v12 = vld [vmem:[%s16769_s1 + $0x5f8] ss:$20 sps:$4 sm:$0xff]  }
 0x1a9   :  { %7187 = vmatprep.subr.bf16.mxu1 %v11840_v21 }
 0x1ab   :  { %7213 = vmatpush1.bf16.msra.mxu0 %v11841_v26 }
 0x1ac   :  { %7188 = vmatpush2.bf16.msra.mxu1 %v11838_v17  ;;  %7214 = vmatprep.subr.bf16.mxu0 %v11849_v28  ;;  %v11891_v28 = vld [vmem:[%s16769_s1 + $0x5d4] ss:$20 sps:$4 sm:$0xff]  }
 0x1ad   :  { %7189 = vmatprep.subr.bf16.mxu1 %v11846_v27  ;;  %v11888_v27 = vld [vmem:[%s16769_s1 + $0x494] ss:$20 sps:$4 sm:$0xff]  }
 0x1af   :  { %7215 = vmatpush1.bf16.msra.mxu0 %v11847_v31 }
 0x1b0   :  { %7190 = vmatpush2.bf16.msra.mxu1 %v11844_v30  ;;  %7216 = vmatprep.subr.bf16.mxu0 %v11855_v41 }
 0x1b1   :  { %7191 = vmatprep.subr.bf16.mxu1 %v11852_v40  ;;  %v11889_v40 = vld [vmem:[%s16769_s1 + $0x5d0] ss:$20 sps:$4 sm:$0xff]  }
 0x1b3   :  { %7217 = vmatpush1.bf16.msra.mxu0 %v11853_v49 }
 0x1b4   :  { %7192 = vmatpush2.bf16.msra.mxu1 %v11850_v42  ;;  %7218 = vmatprep.subr.bf16.mxu0 %v11861_v59  ;;  %v11897_v59 = vld [vmem:[%s16769_s1 + $0x5ac] ss:$20 sps:$4 sm:$0xff]  }
 0x1b5   :  { %7193 = vmatprep.subr.bf16.mxu1 %v11858_v58 }
 0x1b7   :  { %7219 = vmatpush1.bf16.msra.mxu0 %v11859_v50  ;;  %v11892_v50 = vld [vmem:[%s16769_s1 + $0x468] ss:$20 sps:$4 sm:$0xff]  }
 0x1b8   :  { %7194 = vmatpush2.bf16.msra.mxu1 %v11856_v45  ;;  %7220 = vmatprep.subr.bf16.mxu0 %v11867_v56  ;;  %v11900_v56 = vld [vmem:[%s16769_s1 + $0x444] ss:$20 sps:$4 sm:$0xff]  }
 0x1b9   :  { %7195 = vmatprep.subr.bf16.mxu1 %v11864_v55  ;;  %v11895_v55 = vld [vmem:[%s16769_s1 + $0x5a8] ss:$20 sps:$4 sm:$0xff]  }
 0x1bb   :  { %7221 = vmatpush1.bf16.msra.mxu0 %v11865_v25  ;;  %v11898_v25 = vld [vmem:[%s16769_s1 + $0x440] ss:$20 sps:$4 sm:$0xff]  }
 0x1bc   :  { %7196 = vmatpush2.bf16.msra.mxu1 %v11862_v24  ;;  %7222 = vmatprep.subr.bf16.mxu0 %v11873_v5  ;;  %v11903_v24 = vld [vmem:[%s16769_s1 + $0x584] ss:$20 sps:$4 sm:$0xff]   ;;  %v11906_v5 = vld [vmem:[%s16769_s1 + $0x41c] ss:$20 sps:$4 sm:$0xff]  }
 0x1bd   :  { %7197 = vmatprep.subr.bf16.mxu1 %v11870_v1  ;;  %v11901_v1 = vld [vmem:[%s16769_s1 + $0x580] ss:$20 sps:$4 sm:$0xff]  }
 0x1bf   :  { %7223 = vmatpush1.bf16.msra.mxu0 %v11871_v36  ;;  %v11904_v36 = vld [vmem:[%s16769_s1 + $0x418] ss:$20 sps:$4 sm:$0xff]  }
 0x1c0   :  { %7198 = vmatpush2.bf16.msra.mxu1 %v11868_v35  ;;  %7224 = vmatprep.subr.bf16.mxu0 %v11876_v7  ;;  %v11909_v35 = vld [vmem:[%s16769_s1 + $0x55c] ss:$20 sps:$4 sm:$0xff]   ;;  %v11907_v7 = vld [vmem:[%s16769_s1 + $0x558] ss:$20 sps:$4 sm:$0xff]  }
 0x1c1   :  { %7249 = vmatprep.subr.bf16.mxu1 %v11879_v39  ;;  %v11912_v39 = vld [vmem:[%s16769_s1 + $0x3f4] ss:$20 sps:$4 sm:$0xff]  }
 0x1c2   :  { %v6914_v19 = vpop.f32.mrf.mxu0 }
 0x1c3   :  { %7200 = vmatmul.mubr.bf16.vlgmr.msra.gmra.mxu1 %v13102_v16  ;;  %v6955_v21 = vpop.f32.mrf.mxu1  ;;  %v6915_v22 = vadd.f32 %v6914_v19, %v14260_v10  ;;  %7225 = vmatpush2.bf16.msra.mxu0 %v11874_v8  ;;  %v11886_v10 = vld [vmem:[%s16769_s1 + $0x490] ss:$20 sps:$4 sm:$0xff]   ;;  %v11915_v8 = vld [vmem:[%s16769_s1 + $0x534] ss:$20 sps:$4 sm:$0xff]  }
 0x1c4   :  { %7250 = vmatpush1.bf16.msra.mxu1 %v11877_v11  ;;  %v6916_v17 = vpop.f32.mrf.mxu0  ;;  %7226 = vmatprep.subr.bf16.mxu0 %v11882_v2  ;;  %v11910_v11 = vld [vmem:[%s16769_s1 + $0x3f0] ss:$20 sps:$4 sm:$0xff]   ;;  %v11919_v19 = vld [vmem:[%s16769_s1 + $0x508] ss:$20 sps:$4 sm:$0xff]  }
 0x1c5   :  { %v6957_v26 = vpop.f32.mrf.mxu1  ;;  %7251 = vmatprep.subr.bf16.mxu1 %v11885_v14  ;;  %v6917_v30 = vadd.f32 %v6916_v17, %v14270_v23  ;;  %v14468_v31 = vadd.f32 %v6955_v21, %v6915_v22  ;;  %7281 = vmatprep.mubr.bf16.mxu1 %v13203_v53  ;;  %v11894_v23 = vld [vmem:[%s16769_s1 + $0x46c] ss:$20 sps:$4 sm:$0xff]   ;;  %v11913_v2 = vld [vmem:[%s16769_s1 + $0x530] ss:$20 sps:$4 sm:$0xff]  }
 0x1c6   :  { %v6918_v41 = vpop.f32.mrf.mxu0  ;;  %v11918_v14 = vld [vmem:[%s16769_s1 + $0x3cc] ss:$20 sps:$4 sm:$0xff]   ;;  %v11924_v21 = vld [vmem:[%s16769_s1 + $0x764] ss:$20 sps:$4 sm:$0xff]  }
 0x1c7   :  { %v6959_v42 = vpop.f32.mrf.mxu1  ;;  %v14477_v49 = vadd.f32 %v6957_v26, %v6917_v30  ;;  %7227 = vmatpush2.bf16.msra.mxu0 %v11880_v15  ;;  %v11921_v15 = vld [vmem:[%s16769_s1 + $0x50c] ss:$20 sps:$4 sm:$0xff]   ;;  %v11927_v22 = vld [vmem:[%s16769_s1 + $0x8a4] ss:$20 sps:$4 sm:$0xff]   ;;  %v11939_v41 = vld [vmem:[%s16769_s1 + $0x854] ss:$20 sps:$4 sm:$0xff]  }
 0x1c8   :  { %7252 = vmatpush1.bf16.msra.mxu1 %v11883_v12  ;;  %v6919_v58 = vpop.f32.mrf.mxu0  ;;  %7228 = vmatprep.subr.bf16.mxu0 %v11888_v27  ;;  %v11916_v12 = vld [vmem:[%s16769_s1 + $0x3c8] ss:$20 sps:$4 sm:$0xff]   ;;  %v11922_v17 = vld [vmem:[%s16769_s1 + $0x760] ss:$20 sps:$4 sm:$0xff]   ;;  %v11928_v30 = vld [vmem:[%s16769_s1 + $0x738] ss:$20 sps:$4 sm:$0xff]  }
 0x1c9   :  { %7253 = vmatprep.subr.bf16.mxu1 %v11891_v28  ;;  %v6960_v45 = vpop.f32.mrf.mxu1  ;;  %v11925_v26 = vld [vmem:[%s16769_s1 + $0x8a0] ss:$20 sps:$4 sm:$0xff]   ;;  %v11930_v27 = vld [vmem:[%s16769_s1 + $0x73c] ss:$20 sps:$4 sm:$0xff]  }
 0x1ca   :  { %v11933_v28 = vld [vmem:[%s16769_s1 + $0x87c] ss:$20 sps:$4 sm:$0xff]  }
 0x1cb   :  { %7229 = vmatpush2.bf16.msra.mxu0 %v11886_v10  ;;  %v11931_v10 = vld [vmem:[%s16769_s1 + $0x878] ss:$20 sps:$4 sm:$0xff]   ;;  %v11934_v42 = vld [vmem:[%s16769_s1 + $0x710] ss:$20 sps:$4 sm:$0xff]   ;;  %v11940_v45 = vld [vmem:[%s16769_s1 + $0x6e8] ss:$20 sps:$4 sm:$0xff]  }
 0x1cc   :  { %7254 = vmatpush1.bf16.msra.mxu1 %v11889_v40  ;;  %7230 = vmatprep.subr.bf16.mxu0 %v11894_v23  ;;  %v11936_v40 = vld [vmem:[%s16769_s1 + $0x714] ss:$20 sps:$4 sm:$0xff]   ;;  %v11937_v58 = vld [vmem:[%s16769_s1 + $0x850] ss:$20 sps:$4 sm:$0xff]   ;;  %v11942_v23 = vld [vmem:[%s16769_s1 + $0x6ec] ss:$20 sps:$4 sm:$0xff]  }
 0x1cd   :  { %7255 = vmatprep.subr.bf16.mxu1 %v11897_v59  ;;  %v11945_v59 = vld [vmem:[%s16769_s1 + $0x82c] ss:$20 sps:$4 sm:$0xff]  }
 0x1cf   :  { %7231 = vmatpush2.bf16.msra.mxu0 %v11892_v50  ;;  %v11943_v50 = vld [vmem:[%s16769_s1 + $0x828] ss:$20 sps:$4 sm:$0xff]  }
 0x1d0   :  { %7256 = vmatpush1.bf16.msra.mxu1 %v11895_v55  ;;  %7232 = vmatprep.subr.bf16.mxu0 %v11900_v56  ;;  %v11948_v55 = vld [vmem:[%s16769_s1 + $0x6c4] ss:$20 sps:$4 sm:$0xff]  }
 0x1d1   :  { %7257 = vmatprep.subr.bf16.mxu1 %v11903_v24  ;;  %v11951_v56 = vld [vmem:[%s16769_s1 + $0x804] ss:$20 sps:$4 sm:$0xff]   ;;  %v11946_v24 = vld [vmem:[%s16769_s1 + $0x6c0] ss:$20 sps:$4 sm:$0xff]  }
 0x1d3   :  { %7233 = vmatpush2.bf16.msra.mxu0 %v11898_v25  ;;  %v11949_v25 = vld [vmem:[%s16769_s1 + $0x800] ss:$20 sps:$4 sm:$0xff]  }
 0x1d4   :  { %7258 = vmatpush1.bf16.msra.mxu1 %v11901_v1  ;;  %7234 = vmatprep.subr.bf16.mxu0 %v11906_v5  ;;  %v11954_v1 = vld [vmem:[%s16769_s1 + $0x69c] ss:$20 sps:$4 sm:$0xff]  }
 0x1d5   :  { %7259 = vmatprep.subr.bf16.mxu1 %v11909_v35  ;;  %v11957_v5 = vld [vmem:[%s16769_s1 + $0x7dc] ss:$20 sps:$4 sm:$0xff]   ;;  %v11952_v35 = vld [vmem:[%s16769_s1 + $0x698] ss:$20 sps:$4 sm:$0xff]  }
 0x1d7   :  { %7235 = vmatpush2.bf16.msra.mxu0 %v11904_v36  ;;  %v11955_v36 = vld [vmem:[%s16769_s1 + $0x7d8] ss:$20 sps:$4 sm:$0xff]  }
 0x1d8   :  { %7260 = vmatpush1.bf16.msra.mxu1 %v11907_v7  ;;  %7236 = vmatprep.subr.bf16.mxu0 %v11912_v39  ;;  %v11960_v7 = vld [vmem:[%s16769_s1 + $0x674] ss:$20 sps:$4 sm:$0xff]  }
 0x1d9   :  { %7261 = vmatprep.subr.bf16.mxu1 %v11915_v8  ;;  %v11963_v39 = vld [vmem:[%s16769_s1 + $0x7b4] ss:$20 sps:$4 sm:$0xff]   ;;  %v11958_v8 = vld [vmem:[%s16769_s1 + $0x670] ss:$20 sps:$4 sm:$0xff]  }
 0x1db   :  { %7237 = vmatpush2.bf16.msra.mxu0 %v11910_v11  ;;  %v11961_v11 = vld [vmem:[%s16769_s1 + $0x7b0] ss:$20 sps:$4 sm:$0xff]  }
 0x1dc   :  { %7262 = vmatpush1.bf16.msra.mxu1 %v11913_v2  ;;  %7238 = vmatprep.subr.bf16.mxu0 %v11918_v14  ;;  %v11966_v2 = vld [vmem:[%s16769_s1 + $0x64c] ss:$20 sps:$4 sm:$0xff]  }
 0x1dd   :  { %7263 = vmatprep.subr.bf16.mxu1 %v11921_v15  ;;  %v11969_v14 = vld [vmem:[%s16769_s1 + $0x78c] ss:$20 sps:$4 sm:$0xff]   ;;  %v11964_v15 = vld [vmem:[%s16769_s1 + $0x648] ss:$20 sps:$4 sm:$0xff]  }
 0x1df   :  { %7239 = vmatpush2.bf16.msra.mxu0 %v11916_v12  ;;  %v11967_v12 = vld [vmem:[%s16769_s1 + $0x788] ss:$20 sps:$4 sm:$0xff]  }
 0x1e0   :  { %7264 = vmatpush1.bf16.msra.mxu1 %v11919_v19  ;;  %7290 = vmatprep.subr.bf16.mxu0 %v11927_v22  ;;  %v11972_v19 = vld [vmem:[%s16769_s1 + $0x9e4] ss:$20 sps:$4 sm:$0xff]   ;;  %v11970_v22 = vld [vmem:[%s16769_s1 + $0x9e0] ss:$20 sps:$4 sm:$0xff]  }
 0x1e1   :  { %7265 = vmatprep.subr.bf16.mxu1 %v11924_v21  ;;  %v11975_v21 = vld [vmem:[%s16769_s1 + $0xb24] ss:$20 sps:$4 sm:$0xff]  }
 0x1e2   :  { %7241 = vmatmul.mubr.bf16.vlgmr.msra.gmra.mxu0 %v13107_v18 }
 0x1e3   :  { %7291 = vmatpush1.bf16.msra.mxu0 %v11925_v26  ;;  %7322 = vmatprep.mubr.bf16.mxu0 %v13213_v57  ;;  %v11978_v26 = vld [vmem:[%s16769_s1 + $0x9bc] ss:$20 sps:$4 sm:$0xff]  }
 0x1e4   :  { %7266 = vmatpush2.bf16.msra.mxu1 %v11922_v17  ;;  %7292 = vmatprep.subr.bf16.mxu0 %v11933_v28  ;;  %v11973_v17 = vld [vmem:[%s16769_s1 + $0xb20] ss:$20 sps:$4 sm:$0xff]  }
 0x1e5   :  { %7267 = vmatprep.subr.bf16.mxu1 %v11930_v27  ;;  %v11981_v27 = vld [vmem:[%s16769_s1 + $0xafc] ss:$20 sps:$4 sm:$0xff]  }
 0x1e7   :  { %7293 = vmatpush1.bf16.msra.mxu0 %v11931_v10 }
 0x1e8   :  { %7268 = vmatpush2.bf16.msra.mxu1 %v11928_v30  ;;  %7294 = vmatprep.subr.bf16.mxu0 %v11939_v41  ;;  %v11979_v41 = vld [vmem:[%s16769_s1 + $0xaf8] ss:$20 sps:$4 sm:$0xff]  }
 0x1e9   :  { %7269 = vmatprep.subr.bf16.mxu1 %v11936_v40  ;;  %v11976_v40 = vld [vmem:[%s16769_s1 + $0x9b8] ss:$20 sps:$4 sm:$0xff]  }
 0x1eb   :  { %7295 = vmatpush1.bf16.msra.mxu0 %v11937_v58 }
 0x1ec   :  { %7270 = vmatpush2.bf16.msra.mxu1 %v11934_v42  ;;  %7296 = vmatprep.subr.bf16.mxu0 %v11945_v59 }
 0x1ed   :  { %7271 = vmatprep.subr.bf16.mxu1 %v11942_v23  ;;  %v11984_v23 = vld [vmem:[%s16769_s1 + $0x994] ss:$20 sps:$4 sm:$0xff]  }
 0x1ef   :  { %7297 = vmatpush1.bf16.msra.mxu0 %v11943_v50 }
 0x1f0   :  { %7272 = vmatpush2.bf16.msra.mxu1 %v11940_v45  ;;  %7298 = vmatprep.subr.bf16.mxu0 %v11951_v56 }
 0x1f1   :  { %7273 = vmatprep.subr.bf16.mxu1 %v11948_v55 }
 0x1f3   :  { %7299 = vmatpush1.bf16.msra.mxu0 %v11949_v25  ;;  %v11985_v25 = vld [vmem:[%s16769_s1 + $0xad0] ss:$20 sps:$4 sm:$0xff]  }
 0x1f4   :  { %7274 = vmatpush2.bf16.msra.mxu1 %v11946_v24  ;;  %7300 = vmatprep.subr.bf16.mxu0 %v11957_v5  ;;  %v11982_v24 = vld [vmem:[%s16769_s1 + $0x990] ss:$20 sps:$4 sm:$0xff]   ;;  %v11993_v5 = vld [vmem:[%s16769_s1 + $0xaac] ss:$20 sps:$4 sm:$0xff]  }
 0x1f5   :  { %7275 = vmatprep.subr.bf16.mxu1 %v11954_v1 }
 0x1f7   :  { %7301 = vmatpush1.bf16.msra.mxu0 %v11955_v36  ;;  %v11988_v36 = vld [vmem:[%s16769_s1 + $0x968] ss:$20 sps:$4 sm:$0xff]  }
 0x1f8   :  { %7276 = vmatpush2.bf16.msra.mxu1 %v11952_v35  ;;  %7302 = vmatprep.subr.bf16.mxu0 %v11963_v39  ;;  %v11996_v39 = vld [vmem:[%s16769_s1 + $0x944] ss:$20 sps:$4 sm:$0xff]  }
 0x1f9   :  { %7277 = vmatprep.subr.bf16.mxu1 %v11960_v7  ;;  %v11991_v7 = vld [vmem:[%s16769_s1 + $0xaa8] ss:$20 sps:$4 sm:$0xff]  }
 0x1fb   :  { %7303 = vmatpush1.bf16.msra.mxu0 %v11961_v11  ;;  %v11994_v11 = vld [vmem:[%s16769_s1 + $0x940] ss:$20 sps:$4 sm:$0xff]  }
 0x1fc   :  { %7278 = vmatpush2.bf16.msra.mxu1 %v11958_v8  ;;  %7304 = vmatprep.subr.bf16.mxu0 %v11969_v14  ;;  %v11999_v8 = vld [vmem:[%s16769_s1 + $0xa84] ss:$20 sps:$4 sm:$0xff]   ;;  %v12002_v14 = vld [vmem:[%s16769_s1 + $0x91c] ss:$20 sps:$4 sm:$0xff]  }
 0x1fd   :  { %7279 = vmatprep.subr.bf16.mxu1 %v11966_v2  ;;  %v11997_v2 = vld [vmem:[%s16769_s1 + $0xa80] ss:$20 sps:$4 sm:$0xff]  }
 0x1ff   :  { %7305 = vmatpush1.bf16.msra.mxu0 %v11967_v12  ;;  %v12000_v12 = vld [vmem:[%s16769_s1 + $0x918] ss:$20 sps:$4 sm:$0xff]  }
 0x200   :  { %7280 = vmatpush2.bf16.msra.mxu1 %v11964_v15  ;;  %7306 = vmatprep.subr.bf16.mxu0 %v11972_v19  ;;  %v12005_v15 = vld [vmem:[%s16769_s1 + $0xa5c] ss:$20 sps:$4 sm:$0xff]   ;;  %v12003_v19 = vld [vmem:[%s16769_s1 + $0xa58] ss:$20 sps:$4 sm:$0xff]  }
 0x201   :  { %7331 = vmatprep.subr.bf16.mxu1 %v11975_v21  ;;  %v12008_v21 = vld [vmem:[%s16769_s1 + $0x8f4] ss:$20 sps:$4 sm:$0xff]  }
 0x202   :  { %v6996_v28 = vpop.f32.mrf.mxu0 }
 0x203   :  { %7282 = vmatmul.mubr.bf16.vlgmr.msra.gmra.mxu1 %v13321_v32  ;;  %v7037_v30 = vpop.f32.mrf.mxu1  ;;  %v6997_v10 = vadd.f32 %v6996_v28, %v14468_v31  ;;  %7307 = vmatpush2.bf16.msra.mxu0 %v11970_v22  ;;  %v11987_v31 = vld [vmem:[%s16769_s1 + $0xad4] ss:$20 sps:$4 sm:$0xff]   ;;  %v12017_v28 = vld [vmem:[%s16769_s1 + $0xa0c] ss:$20 sps:$4 sm:$0xff]  }
 0x204   :  { %7332 = vmatpush1.bf16.msra.mxu1 %v11973_v17  ;;  %v6998_v42 = vpop.f32.mrf.mxu0  ;;  %7308 = vmatprep.subr.bf16.mxu0 %v11978_v26  ;;  %v12011_v22 = vld [vmem:[%s16769_s1 + $0xa34] ss:$20 sps:$4 sm:$0xff]   ;;  %v12006_v17 = vld [vmem:[%s16769_s1 + $0x8f0] ss:$20 sps:$4 sm:$0xff]  }
 0x205   :  { %v7039_v58 = vpop.f32.mrf.mxu1  ;;  %7333 = vmatprep.subr.bf16.mxu1 %v11981_v27  ;;  %v6999_v59 = vadd.f32 %v6998_v42, %v14477_v49  ;;  %v14670_v45 = vadd.f32 %v7037_v30, %v6997_v10  ;;  %7363 = vmatprep.mubr.bf16.mxu1 %v13364_v48  ;;  %v11990_v49 = vld [vmem:[%s16769_s1 + $0x96c] ss:$20 sps:$4 sm:$0xff]   ;;  %v12009_v26 = vld [vmem:[%s16769_s1 + $0xa30] ss:$20 sps:$4 sm:$0xff]   ;;  %v12012_v30 = vld [vmem:[%s16769_s1 + $0x8c8] ss:$20 sps:$4 sm:$0xff]  }
 0x206   :  { %v7000_v50 = vpop.f32.mrf.mxu0  ;;  %v12014_v27 = vld [vmem:[%s16769_s1 + $0x8cc] ss:$20 sps:$4 sm:$0xff]   ;;  %v12015_v10 = vld [vmem:[%s16769_s1 + $0xa08] ss:$20 sps:$4 sm:$0xff]  }
 0x207   :  { %v7041_v55 = vpop.f32.mrf.mxu1  ;;  %v14673_v56 = vadd.f32 %v7039_v58, %v6999_v59  ;;  %7309 = vmatpush2.bf16.msra.mxu0 %v11976_v40  ;;  %v12020_v40 = vld [vmem:[%s16769_s1 + $0xc64] ss:$20 sps:$4 sm:$0xff]   ;;  %v12018_v42 = vld [vmem:[%s16769_s1 + $0xc60] ss:$20 sps:$4 sm:$0xff]  }
 0x208   :  { %7334 = vmatpush1.bf16.msra.mxu1 %v11979_v41  ;;  %v7001_v1 = vpop.f32.mrf.mxu0  ;;  %7310 = vmatprep.subr.bf16.mxu0 %v11984_v23  ;;  %v12023_v41 = vld [vmem:[%s16769_s1 + $0xda4] ss:$20 sps:$4 sm:$0xff]   ;;  %v12021_v58 = vld [vmem:[%s16769_s1 + $0xda0] ss:$20 sps:$4 sm:$0xff]   ;;  %v12026_v23 = vld [vmem:[%s16769_s1 + $0xc3c] ss:$20 sps:$4 sm:$0xff]  }
 0x209   :  { %7335 = vmatprep.subr.bf16.mxu1 %v11987_v31  ;;  %v7042_v35 = vpop.f32.mrf.mxu1  ;;  %v12029_v31 = vld [vmem:[%s16769_s1 + $0xd7c] ss:$20 sps:$4 sm:$0xff]   ;;  %v12024_v59 = vld [vmem:[%s16769_s1 + $0xc38] ss:$20 sps:$4 sm:$0xff]   ;;  %v12032_v55 = vld [vmem:[%s16769_s1 + $0xc14] ss:$20 sps:$4 sm:$0xff]  }
 0x20a   :  { %v12027_v50 = vld [vmem:[%s16769_s1 + $0xd78] ss:$20 sps:$4 sm:$0xff]   ;;  %v12033_v1 = vld [vmem:[%s16769_s1 + $0xd50] ss:$20 sps:$4 sm:$0xff]   ;;  %v12036_v35 = vld [vmem:[%s16769_s1 + $0xbe8] ss:$20 sps:$4 sm:$0xff]  }
 0x20b   :  { %7311 = vmatpush2.bf16.msra.mxu0 %v11982_v24  ;;  %v12035_v24 = vld [vmem:[%s16769_s1 + $0xd54] ss:$20 sps:$4 sm:$0xff]  }
 0x20c   :  { %7336 = vmatpush1.bf16.msra.mxu1 %v11985_v25  ;;  %7312 = vmatprep.subr.bf16.mxu0 %v11990_v49  ;;  %v12030_v25 = vld [vmem:[%s16769_s1 + $0xc10] ss:$20 sps:$4 sm:$0xff]   ;;  %v12038_v49 = vld [vmem:[%s16769_s1 + $0xbec] ss:$20 sps:$4 sm:$0xff]  }
 0x20d   :  { %7337 = vmatprep.subr.bf16.mxu1 %v11993_v5  ;;  %v12041_v5 = vld [vmem:[%s16769_s1 + $0xd2c] ss:$20 sps:$4 sm:$0xff]  }
 0x20f   :  { %7313 = vmatpush2.bf16.msra.mxu0 %v11988_v36  ;;  %v12039_v36 = vld [vmem:[%s16769_s1 + $0xd28] ss:$20 sps:$4 sm:$0xff]  }
 0x210   :  { %7338 = vmatpush1.bf16.msra.mxu1 %v11991_v7  ;;  %7314 = vmatprep.subr.bf16.mxu0 %v11996_v39  ;;  %v12044_v7 = vld [vmem:[%s16769_s1 + $0xbc4] ss:$20 sps:$4 sm:$0xff]  }
 0x211   :  { %7339 = vmatprep.subr.bf16.mxu1 %v11999_v8  ;;  %v12047_v39 = vld [vmem:[%s16769_s1 + $0xd04] ss:$20 sps:$4 sm:$0xff]   ;;  %v12042_v8 = vld [vmem:[%s16769_s1 + $0xbc0] ss:$20 sps:$4 sm:$0xff]  }
 0x213   :  { %7315 = vmatpush2.bf16.msra.mxu0 %v11994_v11  ;;  %v12045_v11 = vld [vmem:[%s16769_s1 + $0xd00] ss:$20 sps:$4 sm:$0xff]  }
 0x214   :  { %7340 = vmatpush1.bf16.msra.mxu1 %v11997_v2  ;;  %7316 = vmatprep.subr.bf16.mxu0 %v12002_v14  ;;  %v12050_v2 = vld [vmem:[%s16769_s1 + $0xb9c] ss:$20 sps:$4 sm:$0xff]  }
 0x215   :  { %7341 = vmatprep.subr.bf16.mxu1 %v12005_v15  ;;  %v12053_v14 = vld [vmem:[%s16769_s1 + $0xcdc] ss:$20 sps:$4 sm:$0xff]   ;;  %v12048_v15 = vld [vmem:[%s16769_s1 + $0xb98] ss:$20 sps:$4 sm:$0xff]  }
 0x217   :  { %7317 = vmatpush2.bf16.msra.mxu0 %v12000_v12  ;;  %v12051_v12 = vld [vmem:[%s16769_s1 + $0xcd8] ss:$20 sps:$4 sm:$0xff]  }
 0x218   :  { %7342 = vmatpush1.bf16.msra.mxu1 %v12003_v19  ;;  %7318 = vmatprep.subr.bf16.mxu0 %v12008_v21  ;;  %v12056_v19 = vld [vmem:[%s16769_s1 + $0xb74] ss:$20 sps:$4 sm:$0xff]  }
 0x219   :  { %7343 = vmatprep.subr.bf16.mxu1 %v12011_v22  ;;  %v12059_v21 = vld [vmem:[%s16769_s1 + $0xcb4] ss:$20 sps:$4 sm:$0xff]   ;;  %v12054_v22 = vld [vmem:[%s16769_s1 + $0xb70] ss:$20 sps:$4 sm:$0xff]  }
 0x21b   :  { %7319 = vmatpush2.bf16.msra.mxu0 %v12006_v17  ;;  %v12057_v17 = vld [vmem:[%s16769_s1 + $0xcb0] ss:$20 sps:$4 sm:$0xff]  }
 0x21c   :  { %7344 = vmatpush1.bf16.msra.mxu1 %v12009_v26  ;;  %7320 = vmatprep.subr.bf16.mxu0 %v12014_v27  ;;  %v12062_v26 = vld [vmem:[%s16769_s1 + $0xb4c] ss:$20 sps:$4 sm:$0xff]  }
 0x21d   :  { %7345 = vmatprep.subr.bf16.mxu1 %v12017_v28  ;;  %v12065_v27 = vld [vmem:[%s16769_s1 + $0xc8c] ss:$20 sps:$4 sm:$0xff]   ;;  %v12060_v28 = vld [vmem:[%s16769_s1 + $0xb48] ss:$20 sps:$4 sm:$0xff]  }
 0x21f   :  { %7321 = vmatpush2.bf16.msra.mxu0 %v12012_v30  ;;  %v12063_v30 = vld [vmem:[%s16769_s1 + $0xc88] ss:$20 sps:$4 sm:$0xff]  }
 0x220   :  { %7346 = vmatpush1.bf16.msra.mxu1 %v12015_v10  ;;  %7372 = vmatprep.subr.bf16.mxu0 %v12023_v41  ;;  %v12068_v10 = vld [vmem:[%s16769_s1 + $0xee4] ss:$20 sps:$4 sm:$0xff]   ;;  %v12066_v41 = vld [vmem:[%s16769_s1 + $0xee0] ss:$20 sps:$4 sm:$0xff]  }
 0x221   :  { %7347 = vmatprep.subr.bf16.mxu1 %v12020_v40  ;;  %v12071_v40 = vld [vmem:[%s16769_s1 + $0x1024] ss:$20 sps:$4 sm:$0xff]  }
 0x222   :  { %7323 = vmatmul.mubr.bf16.vlgmr.msra.gmra.mxu0 %v13328_v34 }
 0x223   :  { %7373 = vmatpush1.bf16.msra.mxu0 %v12021_v58  ;;  %7404 = vmatprep.mubr.bf16.mxu0 %v13372_v52  ;;  %v12074_v58 = vld [vmem:[%s16769_s1 + $0xebc] ss:$20 sps:$4 sm:$0xff]  }
 0x224   :  { %7348 = vmatpush2.bf16.msra.mxu1 %v12018_v42  ;;  %7374 = vmatprep.subr.bf16.mxu0 %v12029_v31  ;;  %v12069_v42 = vld [vmem:[%s16769_s1 + $0x1020] ss:$20 sps:$4 sm:$0xff]   ;;  %v12072_v31 = vld [vmem:[%s16769_s1 + $0xeb8] ss:$20 sps:$4 sm:$0xff]  }
 0x225   :  { %7349 = vmatprep.subr.bf16.mxu1 %v12026_v23  ;;  %v12077_v23 = vld [vmem:[%s16769_s1 + $0xffc] ss:$20 sps:$4 sm:$0xff]  }
 0x227   :  { %7375 = vmatpush1.bf16.msra.mxu0 %v12027_v50 }
 0x228   :  { %7350 = vmatpush2.bf16.msra.mxu1 %v12024_v59  ;;  %7376 = vmatprep.subr.bf16.mxu0 %v12035_v24  ;;  %v12075_v59 = vld [vmem:[%s16769_s1 + $0xff8] ss:$20 sps:$4 sm:$0xff]  }
 0x229   :  { %7351 = vmatprep.subr.bf16.mxu1 %v12032_v55 }
 0x22b   :  { %7377 = vmatpush1.bf16.msra.mxu0 %v12033_v1 }
 0x22c   :  { %7352 = vmatpush2.bf16.msra.mxu1 %v12030_v25  ;;  %7378 = vmatprep.subr.bf16.mxu0 %v12041_v5  ;;  %v12083_v5 = vld [vmem:[%s16769_s1 + $0xfd4] ss:$20 sps:$4 sm:$0xff]  }
 0x22d   :  { %7353 = vmatprep.subr.bf16.mxu1 %v12038_v49  ;;  %v12080_v49 = vld [vmem:[%s16769_s1 + $0xe94] ss:$20 sps:$4 sm:$0xff]  }
 0x22f   :  { %7379 = vmatpush1.bf16.msra.mxu0 %v12039_v36 }
 0x230   :  { %7354 = vmatpush2.bf16.msra.mxu1 %v12036_v35  ;;  %7380 = vmatprep.subr.bf16.mxu0 %v12047_v39 }
 0x231   :  { %7355 = vmatprep.subr.bf16.mxu1 %v12044_v7 }
 0x233   :  { %7381 = vmatpush1.bf16.msra.mxu0 %v12045_v11  ;;  %v12081_v11 = vld [vmem:[%s16769_s1 + $0xfd0] ss:$20 sps:$4 sm:$0xff]  }
 0x234   :  { %7356 = vmatpush2.bf16.msra.mxu1 %v12042_v8  ;;  %7382 = vmatprep.subr.bf16.mxu0 %v12053_v14  ;;  %v12078_v8 = vld [vmem:[%s16769_s1 + $0xe90] ss:$20 sps:$4 sm:$0xff]   ;;  %v12089_v14 = vld [vmem:[%s16769_s1 + $0xfac] ss:$20 sps:$4 sm:$0xff]  }
 0x235   :  { %7357 = vmatprep.subr.bf16.mxu1 %v12050_v2 }
 0x237   :  { %7383 = vmatpush1.bf16.msra.mxu0 %v12051_v12  ;;  %v12084_v12 = vld [vmem:[%s16769_s1 + $0xe68] ss:$20 sps:$4 sm:$0xff]  }
 0x238   :  { %7358 = vmatpush2.bf16.msra.mxu1 %v12048_v15  ;;  %7384 = vmatprep.subr.bf16.mxu0 %v12059_v21  ;;  %v12092_v21 = vld [vmem:[%s16769_s1 + $0xe44] ss:$20 sps:$4 sm:$0xff]  }
 0x239   :  { %7359 = vmatprep.subr.bf16.mxu1 %v12056_v19  ;;  %v12087_v19 = vld [vmem:[%s16769_s1 + $0xfa8] ss:$20 sps:$4 sm:$0xff]  }
 0x23b   :  { %7385 = vmatpush1.bf16.msra.mxu0 %v12057_v17  ;;  %v12090_v17 = vld [vmem:[%s16769_s1 + $0xe40] ss:$20 sps:$4 sm:$0xff]  }
 0x23c   :  { %7360 = vmatpush2.bf16.msra.mxu1 %v12054_v22  ;;  %7386 = vmatprep.subr.bf16.mxu0 %v12065_v27  ;;  %v12095_v22 = vld [vmem:[%s16769_s1 + $0xf84] ss:$20 sps:$4 sm:$0xff]   ;;  %v12098_v27 = vld [vmem:[%s16769_s1 + $0xe1c] ss:$20 sps:$4 sm:$0xff]  }
 0x23d   :  { %7361 = vmatprep.subr.bf16.mxu1 %v12062_v26  ;;  %v12093_v26 = vld [vmem:[%s16769_s1 + $0xf80] ss:$20 sps:$4 sm:$0xff]  }
 0x23f   :  { %7387 = vmatpush1.bf16.msra.mxu0 %v12063_v30  ;;  %v12096_v30 = vld [vmem:[%s16769_s1 + $0xe18] ss:$20 sps:$4 sm:$0xff]  }
 0x240   :  { %7362 = vmatpush2.bf16.msra.mxu1 %v12060_v28  ;;  %7388 = vmatprep.subr.bf16.mxu0 %v12068_v10  ;;  %v12101_v28 = vld [vmem:[%s16769_s1 + $0xf5c] ss:$20 sps:$4 sm:$0xff]   ;;  %v12099_v10 = vld [vmem:[%s16769_s1 + $0xf58] ss:$20 sps:$4 sm:$0xff]  }
 0x241   :  { %7413 = vmatprep.subr.bf16.mxu1 %v12071_v40  ;;  %v12104_v40 = vld [vmem:[%s16769_s1 + $0xdf4] ss:$20 sps:$4 sm:$0xff]  }
 0x242   :  { %v7078_v50 = vpop.f32.mrf.mxu0 }
 0x243   :  { %7364 = vmatmul.mubr.bf16.vlgmr.msra.gmra.mxu1 %v13555_v4  ;;  %v7119_v55 = vpop.f32.mrf.mxu1  ;;  %v7079_v24 = vadd.f32 %v7078_v50, %v14670_v45  ;;  %7389 = vmatpush2.bf16.msra.mxu0 %v12066_v41  ;;  %v12107_v41 = vld [vmem:[%s16769_s1 + $0xf34] ss:$20 sps:$4 sm:$0xff]  }
 0x244   :  { %7414 = vmatpush1.bf16.msra.mxu1 %v12069_v42  ;;  %v7080_v25 = vpop.f32.mrf.mxu0  ;;  %7390 = vmatprep.subr.bf16.mxu0 %v12074_v58  ;;  %v12102_v42 = vld [vmem:[%s16769_s1 + $0xdf0] ss:$20 sps:$4 sm:$0xff]   ;;  %v12111_v50 = vld [vmem:[%s16769_s1 + $0xf08] ss:$20 sps:$4 sm:$0xff]  }
 0x245   :  { %v7121_v1 = vpop.f32.mrf.mxu1  ;;  %7415 = vmatprep.subr.bf16.mxu1 %v12077_v23  ;;  %v7081_v35 = vadd.f32 %v7080_v25, %v14673_v56  ;;  %v14872_v36 = vadd.f32 %v7119_v55, %v7079_v24  ;;  %7445 = vmatprep.mubr.bf16.mxu1 %v13573_v9  ;;  %v12086_v56 = vld [vmem:[%s16769_s1 + $0xe6c] ss:$20 sps:$4 sm:$0xff]   ;;  %v12105_v58 = vld [vmem:[%s16769_s1 + $0xf30] ss:$20 sps:$4 sm:$0xff]  }
 0x246   :  { %v7082_v45 = vpop.f32.mrf.mxu0  ;;  %v12110_v23 = vld [vmem:[%s16769_s1 + $0xdcc] ss:$20 sps:$4 sm:$0xff]   ;;  %v12116_v55 = vld [vmem:[%s16769_s1 + $0x1164] ss:$20 sps:$4 sm:$0xff]  }
 0x247   :  { %v7123_v7 = vpop.f32.mrf.mxu1  ;;  %v14875_v39 = vadd.f32 %v7121_v1, %v7081_v35  ;;  %7391 = vmatpush2.bf16.msra.mxu0 %v12072_v31  ;;  %v12113_v31 = vld [vmem:[%s16769_s1 + $0xf0c] ss:$20 sps:$4 sm:$0xff]   ;;  %v12119_v24 = vld [vmem:[%s16769_s1 + $0x12a4] ss:$20 sps:$4 sm:$0xff]  }
 0x248   :  { %7416 = vmatpush1.bf16.msra.mxu1 %v12075_v59  ;;  %v7083_v2 = vpop.f32.mrf.mxu0  ;;  %7392 = vmatprep.subr.bf16.mxu0 %v12080_v49  ;;  %v12108_v59 = vld [vmem:[%s16769_s1 + $0xdc8] ss:$20 sps:$4 sm:$0xff]   ;;  %v12114_v25 = vld [vmem:[%s16769_s1 + $0x1160] ss:$20 sps:$4 sm:$0xff]   ;;  %v12120_v35 = vld [vmem:[%s16769_s1 + $0x1138] ss:$20 sps:$4 sm:$0xff]  }
 0x249   :  { %7417 = vmatprep.subr.bf16.mxu1 %v12083_v5  ;;  %v7124_v15 = vpop.f32.mrf.mxu1  ;;  %v12117_v1 = vld [vmem:[%s16769_s1 + $0x12a0] ss:$20 sps:$4 sm:$0xff]   ;;  %v12122_v49 = vld [vmem:[%s16769_s1 + $0x113c] ss:$20 sps:$4 sm:$0xff]   ;;  %v12123_v45 = vld [vmem:[%s16769_s1 + $0x1278] ss:$20 sps:$4 sm:$0xff]  }
 0x24a   :  { %v12125_v5 = vld [vmem:[%s16769_s1 + $0x127c] ss:$20 sps:$4 sm:$0xff]   ;;  %v12128_v2 = vld [vmem:[%s16769_s1 + $0x1114] ss:$20 sps:$4 sm:$0xff]  }
 0x24b   :  { %7393 = vmatpush2.bf16.msra.mxu0 %v12078_v8  ;;  %v12129_v15 = vld [vmem:[%s16769_s1 + $0x1250] ss:$20 sps:$4 sm:$0xff]  }
 0x24c   :  { %7418 = vmatpush1.bf16.msra.mxu1 %v12081_v11  ;;  %7394 = vmatprep.subr.bf16.mxu0 %v12086_v56  ;;  %v12131_v56 = vld [vmem:[%s16769_s1 + $0x1254] ss:$20 sps:$4 sm:$0xff]  }
 0x24d   :  { %7419 = vmatprep.subr.bf16.mxu1 %v12089_v14 }
 0x24f   :  { %7395 = vmatpush2.bf16.msra.mxu0 %v12084_v12 }
 0x250   :  { %7420 = vmatpush1.bf16.msra.mxu1 %v12087_v19  ;;  %7396 = vmatprep.subr.bf16.mxu0 %v12092_v21  ;;  %v12137_v21 = vld [vmem:[%s16769_s1 + $0x122c] ss:$20 sps:$4 sm:$0xff]  }
 0x251   :  { %7421 = vmatprep.subr.bf16.mxu1 %v12095_v22  ;;  %v12132_v22 = vld [vmem:[%s16769_s1 + $0x10e8] ss:$20 sps:$4 sm:$0xff]  }
 0x253   :  { %7397 = vmatpush2.bf16.msra.mxu0 %v12090_v17  ;;  %v12135_v17 = vld [vmem:[%s16769_s1 + $0x1228] ss:$20 sps:$4 sm:$0xff]  }
 0x254   :  { %7422 = vmatpush1.bf16.msra.mxu1 %v12093_v26  ;;  %7398 = vmatprep.subr.bf16.mxu0 %v12098_v27  ;;  %v12140_v26 = vld [vmem:[%s16769_s1 + $0x10c4] ss:$20 sps:$4 sm:$0xff]  }
 0x255   :  { %7423 = vmatprep.subr.bf16.mxu1 %v12101_v28  ;;  %v12143_v27 = vld [vmem:[%s16769_s1 + $0x1204] ss:$20 sps:$4 sm:$0xff]   ;;  %v12138_v28 = vld [vmem:[%s16769_s1 + $0x10c0] ss:$20 sps:$4 sm:$0xff]  }
 0x257   :  { %7399 = vmatpush2.bf16.msra.mxu0 %v12096_v30  ;;  %v12141_v30 = vld [vmem:[%s16769_s1 + $0x1200] ss:$20 sps:$4 sm:$0xff]  }
 0x258   :  { %7424 = vmatpush1.bf16.msra.mxu1 %v12099_v10  ;;  %7400 = vmatprep.subr.bf16.mxu0 %v12104_v40  ;;  %v12146_v10 = vld [vmem:[%s16769_s1 + $0x109c] ss:$20 sps:$4 sm:$0xff]  }
 0x259   :  { %7425 = vmatprep.subr.bf16.mxu1 %v12107_v41  ;;  %v12149_v40 = vld [vmem:[%s16769_s1 + $0x11dc] ss:$20 sps:$4 sm:$0xff]   ;;  %v12144_v41 = vld [vmem:[%s16769_s1 + $0x1098] ss:$20 sps:$4 sm:$0xff]  }
 0x25b   :  { %7401 = vmatpush2.bf16.msra.mxu0 %v12102_v42  ;;  %v12147_v42 = vld [vmem:[%s16769_s1 + $0x11d8] ss:$20 sps:$4 sm:$0xff]  }
 0x25c   :  { %7426 = vmatpush1.bf16.msra.mxu1 %v12105_v58  ;;  %7402 = vmatprep.subr.bf16.mxu0 %v12110_v23  ;;  %v12152_v58 = vld [vmem:[%s16769_s1 + $0x1074] ss:$20 sps:$4 sm:$0xff]  }
 0x25d   :  { %7427 = vmatprep.subr.bf16.mxu1 %v12113_v31  ;;  %v12155_v23 = vld [vmem:[%s16769_s1 + $0x11b4] ss:$20 sps:$4 sm:$0xff]   ;;  %v12150_v31 = vld [vmem:[%s16769_s1 + $0x1070] ss:$20 sps:$4 sm:$0xff]  }
 0x25f   :  { %7403 = vmatpush2.bf16.msra.mxu0 %v12108_v59  ;;  %v12153_v59 = vld [vmem:[%s16769_s1 + $0x11b0] ss:$20 sps:$4 sm:$0xff]  }
 0x260   :  { %7428 = vmatpush1.bf16.msra.mxu1 %v12111_v50  ;;  %7454 = vmatprep.subr.bf16.mxu0 %v12119_v24  ;;  %v12158_v50 = vld [vmem:[%s16769_s1 + $0x104c] ss:$20 sps:$4 sm:$0xff]   ;;  %v12156_v24 = vld [vmem:[%s16769_s1 + $0x1048] ss:$20 sps:$4 sm:$0xff]  }
 0x261   :  { %7429 = vmatprep.subr.bf16.mxu1 %v12116_v55  ;;  %v12161_v55 = vld [vmem:[%s16769_s1 + $0x118c] ss:$20 sps:$4 sm:$0xff]  }
 0x262   :  { %v7160_v7 = vpop.f32.mrf.mxu0  ;;  %7405 = vmatmul.mubr.bf16.vlgmr.msra.gmra.mxu0 %v13562_v6 }
 0x263   :  { %v14969_v8 = vadd.f32 %v7160_v7, %v14872_v36  ;;  %7455 = vmatpush1.bf16.msra.mxu0 %v12117_v1  ;;  %v12126_v36 = vld [vmem:[%s16769_s1 + $0x1110] ss:$20 sps:$4 sm:$0xff]   ;;  %7486 = vmatprep.mubr.bf16.mxu0 %v13575_v44 }
 0x264   :  { %7430 = vmatpush2.bf16.msra.mxu1 %v12114_v25  ;;  %v7162_v11 = vpop.f32.mrf.mxu0  ;;  %7456 = vmatprep.subr.bf16.mxu0 %v12125_v5  ;;  %v12159_v25 = vld [vmem:[%s16769_s1 + $0x1188] ss:$20 sps:$4 sm:$0xff]   ;;  %v12164_v1 = vld [vmem:[%s16769_s1 + $0x13e4] ss:$20 sps:$4 sm:$0xff]   ;;  %v12162_v5 = vld [vmem:[%s16769_s1 + $0x13e0] ss:$20 sps:$4 sm:$0xff]  }
 0x265   :  { %7431 = vmatprep.subr.bf16.mxu1 %v12122_v49  ;;  %v14978_v14 = vadd.f32 %v7162_v11, %v14875_v39  ;;  %v12134_v39 = vld [vmem:[%s16769_s1 + $0x10ec] ss:$20 sps:$4 sm:$0xff]   ;;  %v12167_v49 = vld [vmem:[%s16769_s1 + $0x1524] ss:$20 sps:$4 sm:$0xff]   ;;  %v12173_v7 = vld [vmem:[%s16769_s1 + $0x14fc] ss:$20 sps:$4 sm:$0xff]  }
 0x266   :  { %v7164_v12 = vpop.f32.mrf.mxu0  ;;  %v12168_v11 = vld [vmem:[%s16769_s1 + $0x13b8] ss:$20 sps:$4 sm:$0xff]  }
 0x267   :  { %7457 = vmatpush1.bf16.msra.mxu0 %v12123_v45  ;;  %v12170_v45 = vld [vmem:[%s16769_s1 + $0x13bc] ss:$20 sps:$4 sm:$0xff]  }
 0x268   :  { %7432 = vmatpush2.bf16.msra.mxu1 %v12120_v35  ;;  %v7165_v19 = vpop.f32.mrf.mxu0  ;;  %7458 = vmatprep.subr.bf16.mxu0 %v12131_v56  ;;  %v12165_v35 = vld [vmem:[%s16769_s1 + $0x1520] ss:$20 sps:$4 sm:$0xff]  }
 0x269   :  { %7433 = vmatprep.subr.bf16.mxu1 %v12128_v2  ;;  %v12171_v2 = vld [vmem:[%s16769_s1 + $0x14f8] ss:$20 sps:$4 sm:$0xff]  }
 0x26b   :  { %7459 = vmatpush1.bf16.msra.mxu0 %v12129_v15  ;;  %v12179_v15 = vld [vmem:[%s16769_s1 + $0x14d4] ss:$20 sps:$4 sm:$0xff]  }
 0x26c   :  { %7434 = vmatpush2.bf16.msra.mxu1 %v12126_v36  ;;  %7460 = vmatprep.subr.bf16.mxu0 %v12137_v21  ;;  %v12176_v36 = vld [vmem:[%s16769_s1 + $0x1394] ss:$20 sps:$4 sm:$0xff]   ;;  %v12177_v21 = vld [vmem:[%s16769_s1 + $0x14d0] ss:$20 sps:$4 sm:$0xff]  }
 0x26d   :  { %7435 = vmatprep.subr.bf16.mxu1 %v12134_v39  ;;  %v12174_v39 = vld [vmem:[%s16769_s1 + $0x1390] ss:$20 sps:$4 sm:$0xff]  }
 0x26f   :  { %7461 = vmatpush1.bf16.msra.mxu0 %v12135_v17  ;;  %v12185_v17 = vld [vmem:[%s16769_s1 + $0x14ac] ss:$20 sps:$4 sm:$0xff]  }
 0x270   :  { %7436 = vmatpush2.bf16.msra.mxu1 %v12132_v22  ;;  %7462 = vmatprep.subr.bf16.mxu0 %v12143_v27  ;;  %v12182_v22 = vld [vmem:[%s16769_s1 + $0x136c] ss:$20 sps:$4 sm:$0xff]   ;;  %v12180_v27 = vld [vmem:[%s16769_s1 + $0x1368] ss:$20 sps:$4 sm:$0xff]  }
 0x271   :  { %7437 = vmatprep.subr.bf16.mxu1 %v12140_v26 }
 0x273   :  { %7463 = vmatpush1.bf16.msra.mxu0 %v12141_v30  ;;  %v12188_v30 = vld [vmem:[%s16769_s1 + $0x1344] ss:$20 sps:$4 sm:$0xff]  }
 0x274   :  { %7438 = vmatpush2.bf16.msra.mxu1 %v12138_v28  ;;  %7464 = vmatprep.subr.bf16.mxu0 %v12149_v40  ;;  %v12183_v28 = vld [vmem:[%s16769_s1 + $0x14a8] ss:$20 sps:$4 sm:$0xff]   ;;  %v12186_v40 = vld [vmem:[%s16769_s1 + $0x1340] ss:$20 sps:$4 sm:$0xff]  }
 0x275   :  { %7439 = vmatprep.subr.bf16.mxu1 %v12146_v10  ;;  %v12191_v10 = vld [vmem:[%s16769_s1 + $0x1484] ss:$20 sps:$4 sm:$0xff]  }
 0x277   :  { %7465 = vmatpush1.bf16.msra.mxu0 %v12147_v42  ;;  %v12194_v42 = vld [vmem:[%s16769_s1 + $0x131c] ss:$20 sps:$4 sm:$0xff]  }
 0x278   :  { %7440 = vmatpush2.bf16.msra.mxu1 %v12144_v41  ;;  %7466 = vmatprep.subr.bf16.mxu0 %v12155_v23  ;;  %v12189_v41 = vld [vmem:[%s16769_s1 + $0x1480] ss:$20 sps:$4 sm:$0xff]   ;;  %v12192_v23 = vld [vmem:[%s16769_s1 + $0x1318] ss:$20 sps:$4 sm:$0xff]  }
 0x279   :  { %7441 = vmatprep.subr.bf16.mxu1 %v12152_v58  ;;  %v12197_v58 = vld [vmem:[%s16769_s1 + $0x145c] ss:$20 sps:$4 sm:$0xff]  }
 0x27b   :  { %7467 = vmatpush1.bf16.msra.mxu0 %v12153_v59  ;;  %v12200_v59 = vld [vmem:[%s16769_s1 + $0x12f4] ss:$20 sps:$4 sm:$0xff]  }
 0x27c   :  { %7442 = vmatpush2.bf16.msra.mxu1 %v12150_v31  ;;  %7468 = vmatprep.subr.bf16.mxu0 %v12161_v55  ;;  %v12195_v31 = vld [vmem:[%s16769_s1 + $0x1458] ss:$20 sps:$4 sm:$0xff]   ;;  %v12198_v55 = vld [vmem:[%s16769_s1 + $0x12f0] ss:$20 sps:$4 sm:$0xff]  }
 0x27d   :  { %7443 = vmatprep.subr.bf16.mxu1 %v12158_v50  ;;  %v12203_v50 = vld [vmem:[%s16769_s1 + $0x1434] ss:$20 sps:$4 sm:$0xff]  }
 0x27f   :  { %7469 = vmatpush1.bf16.msra.mxu0 %v12159_v25  ;;  %v12206_v25 = vld [vmem:[%s16769_s1 + $0x12cc] ss:$20 sps:$4 sm:$0xff]  }
 0x280   :  { %7444 = vmatpush2.bf16.msra.mxu1 %v12156_v24  ;;  %7470 = vmatprep.subr.bf16.mxu0 %v12164_v1  ;;  %v12201_v24 = vld [vmem:[%s16769_s1 + $0x1430] ss:$20 sps:$4 sm:$0xff]   ;;  %v12209_v1 = vld [vmem:[%s16769_s1 + $0x140c] ss:$20 sps:$4 sm:$0xff]  }
 0x281   :  { %7495 = vmatprep.subr.bf16.mxu1 %v12167_v49  ;;  %v1419_v49 = vsub.s32 2, %v13005_v43 }
 0x283   :  { %7446 = vmatmul.mubr.bf16.vlgmr.msra.gmra.mxu1 %v13785_v37  ;;  %v15072_v56 = vpop.f32.mrf.mxu1  ;;  %7471 = vmatpush2.bf16.msra.mxu0 %v12162_v5  ;;  %v1423_v5 = vsub.s32 3, %v13005_v43 }
 0x284   :  { %7496 = vmatpush1.bf16.msra.mxu1 %v12165_v35  ;;  %7472 = vmatprep.subr.bf16.mxu0 %v12170_v45  ;;  %v12204_v35 = vld [vmem:[%s16769_s1 + $0x12c8] ss:$20 sps:$4 sm:$0xff]  }
 0x285   :  { %7497 = vmatprep.subr.bf16.mxu1 %v12173_v7  ;;  %v15080_v12 = vpop.f32.mrf.mxu1  ;;  %7527 = vmatprep.mubr.bf16.mxu1 %v13805_v46  ;;  %v12207_v45 = vld [vmem:[%s16769_s1 + $0x1408] ss:$20 sps:$4 sm:$0xff]   ;;  %v12212_v7 = vld [vmem:[%s16769_s1 + $0x1664] ss:$20 sps:$4 sm:$0xff]  }
 0x287   :  { %v7205_v19 = vpop.f32.mrf.mxu1  ;;  %7473 = vmatpush2.bf16.msra.mxu0 %v12168_v11  ;;  %v12215_v11 = vld [vmem:[%s16769_s1 + $0x17a4] ss:$20 sps:$4 sm:$0xff]  }
 0x288   :  { %7498 = vmatpush1.bf16.msra.mxu1 %v12171_v2  ;;  %7474 = vmatprep.subr.bf16.mxu0 %v12176_v36  ;;  %v12809_v2 = vld [vmem:[%s16770_s2] sm:$0x1f] }
 0x289   :  { %7499 = vmatprep.subr.bf16.mxu1 %v12179_v15  ;;  %v7206_v26 = vpop.f32.mrf.mxu1  ;;  %v1420_v36 = vrot.slane %v12809_v2, %v1419_v49  ;;  %v12210_v15 = vld [vmem:[%s16769_s1 + $0x1660] ss:$20 sps:$4 sm:$0xff]  }
 0x28a   :  { %v12213_v19 = vld [vmem:[%s16769_s1 + $0x17a0] ss:$20 sps:$4 sm:$0xff]   ;;  %v12216_v26 = vld [vmem:[%s16769_s1 + $0x1638] ss:$20 sps:$4 sm:$0xff]  }
 0x28b   :  { %7475 = vmatpush2.bf16.msra.mxu0 %v12174_v39  ;;  %v1424_v39 = vrot.slane %v12809_v2, %v1423_v5  ;;  %v12234_v5 = vld [vmem:[%s16769_s1 + $0x15c0] ss:$20 sps:$4 sm:$0xff]   ;;  %v12243_v2 = vld [vmem:[%s16769_s1 + $0x16d8] ss:$20 sps:$4 sm:$0xff]  }
 0x28c   :  { %7500 = vmatpush1.bf16.msra.mxu1 %v12177_v21  ;;  %7476 = vmatprep.subr.bf16.mxu0 %v12182_v22  ;;  %v12218_v21 = vld [vmem:[%s16769_s1 + $0x163c] ss:$20 sps:$4 sm:$0xff]  }
 0x28d   :  { %7501 = vmatprep.subr.bf16.mxu1 %v12185_v17  ;;  %v12221_v22 = vld [vmem:[%s16769_s1 + $0x177c] ss:$20 sps:$4 sm:$0xff]   ;;  %v7202_v17 = vadd.f32 %v15072_v56, %v1420_v36  ;;  %v12224_v56 = vld [vmem:[%s16769_s1 + $0x1614] ss:$20 sps:$4 sm:$0xff]  }
 0x28e   :  { %v12248_v36 = vld [vmem:[%s16769_s1 + $0x1574] ss:$20 sps:$4 sm:$0xff]  }
 0x28f   :  { %7477 = vmatpush2.bf16.msra.mxu0 %v12180_v27  ;;  %v12219_v27 = vld [vmem:[%s16769_s1 + $0x1778] ss:$20 sps:$4 sm:$0xff]  }
 0x290   :  { %7502 = vmatpush1.bf16.msra.mxu1 %v12183_v28  ;;  %7478 = vmatprep.subr.bf16.mxu0 %v12188_v30  ;;  %v7204_v30 = vadd.f32 %v15080_v12, %v1424_v39  ;;  %v12222_v12 = vld [vmem:[%s16769_s1 + $0x1610] ss:$20 sps:$4 sm:$0xff]  }
 0x291   :  { %7503 = vmatprep.subr.bf16.mxu1 %v12191_v10  ;;  %v12249_v39 = vld [vmem:[%s16769_s1 + $0x16b0] ss:$20 sps:$4 sm:$0xff]  }
 0x293   :  { %7479 = vmatpush2.bf16.msra.mxu0 %v12186_v40 }
 0x294   :  { %7504 = vmatpush1.bf16.msra.mxu1 %v12189_v41  ;;  %7480 = vmatprep.subr.bf16.mxu0 %v12194_v42  ;;  %v12227_v41 = vld [vmem:[%s16769_s1 + $0x1754] ss:$20 sps:$4 sm:$0xff]  }
 0x295   :  { %7505 = vmatprep.subr.bf16.mxu1 %v12197_v58  ;;  %v12225_v58 = vld [vmem:[%s16769_s1 + $0x1750] ss:$20 sps:$4 sm:$0xff]  }
 0x297   :  { %7481 = vmatpush2.bf16.msra.mxu0 %v12192_v23 }
 0x298   :  { %7506 = vmatpush1.bf16.msra.mxu1 %v12195_v31  ;;  %7482 = vmatprep.subr.bf16.mxu0 %v12200_v59  ;;  %v12230_v59 = vld [vmem:[%s16769_s1 + $0x15ec] ss:$20 sps:$4 sm:$0xff]  }
 0x299   :  { %7507 = vmatprep.subr.bf16.mxu1 %v12203_v50  ;;  %v12233_v50 = vld [vmem:[%s16769_s1 + $0x172c] ss:$20 sps:$4 sm:$0xff]  }
 0x29b   :  { %7483 = vmatpush2.bf16.msra.mxu0 %v12198_v55  ;;  %v12228_v55 = vld [vmem:[%s16769_s1 + $0x15e8] ss:$20 sps:$4 sm:$0xff]  }
 0x29c   :  { %7508 = vmatpush1.bf16.msra.mxu1 %v12201_v24  ;;  %7484 = vmatprep.subr.bf16.mxu0 %v12206_v25  ;;  %v12231_v24 = vld [vmem:[%s16769_s1 + $0x1728] ss:$20 sps:$4 sm:$0xff]   ;;  %v12236_v25 = vld [vmem:[%s16769_s1 + $0x15c4] ss:$20 sps:$4 sm:$0xff]  }
 0x29d   :  { %7509 = vmatprep.subr.bf16.mxu1 %v12209_v1  ;;  %v12239_v1 = vld [vmem:[%s16769_s1 + $0x1704] ss:$20 sps:$4 sm:$0xff]  }
 0x29f   :  { %7485 = vmatpush2.bf16.msra.mxu0 %v12204_v35  ;;  %v12237_v35 = vld [vmem:[%s16769_s1 + $0x1700] ss:$20 sps:$4 sm:$0xff]  }
 0x2a0   :  { %7510 = vmatpush1.bf16.msra.mxu1 %v12207_v45  ;;  %7536 = vmatprep.subr.bf16.mxu0 %v12215_v11  ;;  %v12242_v45 = vld [vmem:[%s16769_s1 + $0x159c] ss:$20 sps:$4 sm:$0xff]   ;;  %v12240_v11 = vld [vmem:[%s16769_s1 + $0x1598] ss:$20 sps:$4 sm:$0xff]  }
 0x2a1   :  { %7511 = vmatprep.subr.bf16.mxu1 %v12212_v7  ;;  %v12245_v7 = vld [vmem:[%s16769_s1 + $0x16dc] ss:$20 sps:$4 sm:$0xff]  }
 0x2a2   :  { %v7242_v28 = vpop.f32.mrf.mxu0  ;;  %7487 = vmatmul.mubr.bf16.vlgmr.msra.gmra.mxu0 %v13789_v38 }
 0x2a3   :  { %v15183_v10 = vadd.f32 %v7242_v28, %v7202_v17  ;;  %7537 = vmatpush1.bf16.msra.mxu0 %v12213_v19  ;;  %7568 = vmatprep.mubr.bf16.mxu0 %v13807_v47  ;;  %v12246_v19 = vld [vmem:[%s16769_s1 + $0x1570] ss:$20 sps:$4 sm:$0xff]   ;;  %v12252_v17 = vld [vmem:[%s16769_s1 + $0x1548] ss:$20 sps:$4 sm:$0xff]  }
 0x2a4   :  { %7512 = vmatpush2.bf16.msra.mxu1 %v12210_v15  ;;  %v7244_v40 = vpop.f32.mrf.mxu0  ;;  %7538 = vmatprep.subr.bf16.mxu0 %v12221_v22  ;;  %v12251_v15 = vld [vmem:[%s16769_s1 + $0x16b4] ss:$20 sps:$4 sm:$0xff]   ;;  %v12257_v22 = vld [vmem:[%s16769_s1 + $0x168c] ss:$20 sps:$4 sm:$0xff]   ;;  %v12263_v28 = vld [vmem:[%s16769_s1 + $0x1a24] ss:$20 sps:$4 sm:$0xff]  }
 0x2a5   :  { %7513 = vmatprep.subr.bf16.mxu1 %v12218_v21  ;;  %v15191_v42 = vadd.f32 %v7244_v40, %v7204_v30  ;;  %v12254_v21 = vld [vmem:[%s16769_s1 + $0x154c] ss:$20 sps:$4 sm:$0xff]  }
 0x2a6   :  { %v7246_v23 = vpop.f32.mrf.mxu0  ;;  %v12258_v30 = vld [vmem:[%s16769_s1 + $0x18e0] ss:$20 sps:$4 sm:$0xff]  }
 0x2a7   :  { %7539 = vmatpush1.bf16.msra.mxu0 %v12219_v27  ;;  %v12260_v27 = vld [vmem:[%s16769_s1 + $0x18e4] ss:$20 sps:$4 sm:$0xff]   ;;  %v12261_v40 = vld [vmem:[%s16769_s1 + $0x1a20] ss:$20 sps:$4 sm:$0xff]  }
 0x2a8   :  { %7514 = vmatpush2.bf16.msra.mxu1 %v12216_v26  ;;  %v7247_v31 = vpop.f32.mrf.mxu0  ;;  %7540 = vmatprep.subr.bf16.mxu0 %v12227_v41  ;;  %v12255_v26 = vld [vmem:[%s16769_s1 + $0x1688] ss:$20 sps:$4 sm:$0xff]  }
 0x2a9   :  { %7515 = vmatprep.subr.bf16.mxu1 %v12224_v56  ;;  %v12266_v56 = vld [vmem:[%s16769_s1 + $0x18bc] ss:$20 sps:$4 sm:$0xff]  }
 0x2aa   :  { %v12269_v41 = vld [vmem:[%s16769_s1 + $0x19fc] ss:$20 sps:$4 sm:$0xff]  }
 0x2ab   :  { %7541 = vmatpush1.bf16.msra.mxu0 %v12225_v58  ;;  %v12267_v58 = vld [vmem:[%s16769_s1 + $0x19f8] ss:$20 sps:$4 sm:$0xff]  }
 0x2ac   :  { %7516 = vmatpush2.bf16.msra.mxu1 %v12222_v12  ;;  %7542 = vmatprep.subr.bf16.mxu0 %v12233_v50  ;;  %v12264_v12 = vld [vmem:[%s16769_s1 + $0x18b8] ss:$20 sps:$4 sm:$0xff]   ;;  %v12272_v50 = vld [vmem:[%s16769_s1 + $0x1894] ss:$20 sps:$4 sm:$0xff]  }
 0x2ad   :  { %7517 = vmatprep.subr.bf16.mxu1 %v12230_v59 }
 0x2af   :  { %7543 = vmatpush1.bf16.msra.mxu0 %v12231_v24 }
 0x2b0   :  { %7518 = vmatpush2.bf16.msra.mxu1 %v12228_v55  ;;  %7544 = vmatprep.subr.bf16.mxu0 %v12239_v1  ;;  %v12275_v55 = vld [vmem:[%s16769_s1 + $0x19d4] ss:$20 sps:$4 sm:$0xff]   ;;  %v12273_v1 = vld [vmem:[%s16769_s1 + $0x19d0] ss:$20 sps:$4 sm:$0xff]  }
 0x2b1   :  { %7519 = vmatprep.subr.bf16.mxu1 %v12236_v25 }
 0x2b3   :  { %7545 = vmatpush1.bf16.msra.mxu0 %v12237_v35 }
 0x2b4   :  { %7520 = vmatpush2.bf16.msra.mxu1 %v12234_v5  ;;  %7546 = vmatprep.subr.bf16.mxu0 %v12245_v7  ;;  %v12281_v5 = vld [vmem:[%s16769_s1 + $0x19ac] ss:$20 sps:$4 sm:$0xff]   ;;  %v12279_v7 = vld [vmem:[%s16769_s1 + $0x19a8] ss:$20 sps:$4 sm:$0xff]  }
 0x2b5   :  { %7521 = vmatprep.subr.bf16.mxu1 %v12242_v45  ;;  %v12276_v45 = vld [vmem:[%s16769_s1 + $0x1868] ss:$20 sps:$4 sm:$0xff]  }
 0x2b7   :  { %7547 = vmatpush1.bf16.msra.mxu0 %v12243_v2  ;;  %v12287_v2 = vld [vmem:[%s16769_s1 + $0x1984] ss:$20 sps:$4 sm:$0xff]  }
 0x2b8   :  { %7522 = vmatpush2.bf16.msra.mxu1 %v12240_v11  ;;  %7548 = vmatprep.subr.bf16.mxu0 %v12251_v15  ;;  %v12284_v11 = vld [vmem:[%s16769_s1 + $0x1844] ss:$20 sps:$4 sm:$0xff]   ;;  %v12285_v15 = vld [vmem:[%s16769_s1 + $0x1980] ss:$20 sps:$4 sm:$0xff]  }
 0x2b9   :  { %7523 = vmatprep.subr.bf16.mxu1 %v12248_v36  ;;  %v12282_v36 = vld [vmem:[%s16769_s1 + $0x1840] ss:$20 sps:$4 sm:$0xff]  }
 0x2bb   :  { %7549 = vmatpush1.bf16.msra.mxu0 %v12249_v39  ;;  %v12293_v39 = vld [vmem:[%s16769_s1 + $0x195c] ss:$20 sps:$4 sm:$0xff]  }
 0x2bc   :  { %7524 = vmatpush2.bf16.msra.mxu1 %v12246_v19  ;;  %7550 = vmatprep.subr.bf16.mxu0 %v12257_v22  ;;  %v12290_v19 = vld [vmem:[%s16769_s1 + $0x181c] ss:$20 sps:$4 sm:$0xff]   ;;  %v12291_v22 = vld [vmem:[%s16769_s1 + $0x1958] ss:$20 sps:$4 sm:$0xff]  }
 0x2bd   :  { %7525 = vmatprep.subr.bf16.mxu1 %v12254_v21  ;;  %v12288_v21 = vld [vmem:[%s16769_s1 + $0x1818] ss:$20 sps:$4 sm:$0xff]  }
 0x2bf   :  { %7551 = vmatpush1.bf16.msra.mxu0 %v12255_v26  ;;  %v12299_v26 = vld [vmem:[%s16769_s1 + $0x1934] ss:$20 sps:$4 sm:$0xff]  }
 0x2c0   :  { %7526 = vmatpush2.bf16.msra.mxu1 %v12252_v17  ;;  %7552 = vmatprep.subr.bf16.mxu0 %v12260_v27  ;;  %v12296_v17 = vld [vmem:[%s16769_s1 + $0x17f4] ss:$20 sps:$4 sm:$0xff]   ;;  %v12294_v27 = vld [vmem:[%s16769_s1 + $0x17f0] ss:$20 sps:$4 sm:$0xff]  }
 0x2c1   :  { %7577 = vmatprep.subr.bf16.mxu1 %v12263_v28  ;;  %v12297_v28 = vld [vmem:[%s16769_s1 + $0x1930] ss:$20 sps:$4 sm:$0xff]  }
 0x2c3   :  { %v7283_v23 = vpop.f32.mrf.mxu1  ;;  %7528 = vmatmul.mubr.bf16.vlgmr.msra.gmra.mxu1 %v14018_v51  ;;  %7553 = vmatpush2.bf16.msra.mxu0 %v12258_v30  ;;  %v12302_v30 = vld [vmem:[%s16769_s1 + $0x17cc] ss:$20 sps:$4 sm:$0xff]  }
 0x2c4   :  { %v15286_v31 = vadd.f32 %v7283_v23, %v15183_v10  ;;  %7578 = vmatpush1.bf16.msra.mxu1 %v12261_v40  ;;  %7554 = vmatprep.subr.bf16.mxu0 %v12266_v56  ;;  %v12270_v10 = vld [vmem:[%s16769_s1 + $0x1890] ss:$20 sps:$4 sm:$0xff]   ;;  %v12305_v40 = vld [vmem:[%s16769_s1 + $0x190c] ss:$20 sps:$4 sm:$0xff]   ;;  %v12300_v56 = vld [vmem:[%s16769_s1 + $0x17c8] ss:$20 sps:$4 sm:$0xff]  }
 0x2c5   :  { %v7285_v59 = vpop.f32.mrf.mxu1  ;;  %7579 = vmatprep.subr.bf16.mxu1 %v12269_v41  ;;  %7609 = vmatprep.mubr.bf16.mxu1 %v14036_v60  ;;  %v12303_v41 = vld [vmem:[%s16769_s1 + $0x1908] ss:$20 sps:$4 sm:$0xff]   ;;  %v12306_v23 = vld [vmem:[%s16769_s1 + $0x1b60] ss:$20 sps:$4 sm:$0xff]  }
 0x2c6   :  { %v15295_v24 = vadd.f32 %v7285_v59, %v15191_v42  ;;  %v12278_v42 = vld [vmem:[%s16769_s1 + $0x186c] ss:$20 sps:$4 sm:$0xff]  }
 0x2c7   :  { %v7287_v25 = vpop.f32.mrf.mxu1  ;;  %7555 = vmatpush2.bf16.msra.mxu0 %v12264_v12  ;;  %v12308_v12 = vld [vmem:[%s16769_s1 + $0x1b64] ss:$20 sps:$4 sm:$0xff]   ;;  %v12309_v59 = vld [vmem:[%s16769_s1 + $0x1ca0] ss:$20 sps:$4 sm:$0xff]  }
 0x2c8   :  { %7580 = vmatpush1.bf16.msra.mxu1 %v12267_v58  ;;  %7556 = vmatprep.subr.bf16.mxu0 %v12272_v50  ;;  %v12311_v58 = vld [vmem:[%s16769_s1 + $0x1ca4] ss:$20 sps:$4 sm:$0xff]   ;;  %v12314_v50 = vld [vmem:[%s16769_s1 + $0x1b3c] ss:$20 sps:$4 sm:$0xff]  }
 0x2c9   :  { %7581 = vmatprep.subr.bf16.mxu1 %v12275_v55  ;;  %v7288_v35 = vpop.f32.mrf.mxu1  ;;  %v12317_v55 = vld [vmem:[%s16769_s1 + $0x1c7c] ss:$20 sps:$4 sm:$0xff]   ;;  %v12315_v25 = vld [vmem:[%s16769_s1 + $0x1c78] ss:$20 sps:$4 sm:$0xff]  }
 0x2ca   :  { %v12320_v35 = vld [vmem:[%s16769_s1 + $0x1b14] ss:$20 sps:$4 sm:$0xff]  }
 0x2cb   :  { %7557 = vmatpush2.bf16.msra.mxu0 %v12270_v10  ;;  %v12312_v10 = vld [vmem:[%s16769_s1 + $0x1b38] ss:$20 sps:$4 sm:$0xff]  }
 0x2cc   :  { %7582 = vmatpush1.bf16.msra.mxu1 %v12273_v1  ;;  %7558 = vmatprep.subr.bf16.mxu0 %v12278_v42 }
 0x2cd   :  { %7583 = vmatprep.subr.bf16.mxu1 %v12281_v5 }
 0x2cf   :  { %7559 = vmatpush2.bf16.msra.mxu0 %v12276_v45  ;;  %v12323_v45 = vld [vmem:[%s16769_s1 + $0x1c54] ss:$20 sps:$4 sm:$0xff]  }
 0x2d0   :  { %7584 = vmatpush1.bf16.msra.mxu1 %v12279_v7  ;;  %7560 = vmatprep.subr.bf16.mxu0 %v12284_v11  ;;  %v12321_v11 = vld [vmem:[%s16769_s1 + $0x1c50] ss:$20 sps:$4 sm:$0xff]  }
 0x2d1   :  { %7585 = vmatprep.subr.bf16.mxu1 %v12287_v2 }
 0x2d3   :  { %7561 = vmatpush2.bf16.msra.mxu0 %v12282_v36 }
 0x2d4   :  { %7586 = vmatpush1.bf16.msra.mxu1 %v12285_v15  ;;  %7562 = vmatprep.subr.bf16.mxu0 %v12290_v19  ;;  %v12329_v15 = vld [vmem:[%s16769_s1 + $0x1c2c] ss:$20 sps:$4 sm:$0xff]   ;;  %v12324_v19 = vld [vmem:[%s16769_s1 + $0x1ae8] ss:$20 sps:$4 sm:$0xff]  }
 0x2d5   :  { %7587 = vmatprep.subr.bf16.mxu1 %v12293_v39  ;;  %v12327_v39 = vld [vmem:[%s16769_s1 + $0x1c28] ss:$20 sps:$4 sm:$0xff]  }
 0x2d7   :  { %7563 = vmatpush2.bf16.msra.mxu0 %v12288_v21  ;;  %v12332_v21 = vld [vmem:[%s16769_s1 + $0x1ac4] ss:$20 sps:$4 sm:$0xff]  }
 0x2d8   :  { %7588 = vmatpush1.bf16.msra.mxu1 %v12291_v22  ;;  %7564 = vmatprep.subr.bf16.mxu0 %v12296_v17  ;;  %v12335_v22 = vld [vmem:[%s16769_s1 + $0x1c04] ss:$20 sps:$4 sm:$0xff]   ;;  %v12330_v17 = vld [vmem:[%s16769_s1 + $0x1ac0] ss:$20 sps:$4 sm:$0xff]  }
 0x2d9   :  { %7589 = vmatprep.subr.bf16.mxu1 %v12299_v26  ;;  %v12333_v26 = vld [vmem:[%s16769_s1 + $0x1c00] ss:$20 sps:$4 sm:$0xff]  }
 0x2db   :  { %7565 = vmatpush2.bf16.msra.mxu0 %v12294_v27  ;;  %v12338_v27 = vld [vmem:[%s16769_s1 + $0x1a9c] ss:$20 sps:$4 sm:$0xff]  }
 0x2dc   :  { %7590 = vmatpush1.bf16.msra.mxu1 %v12297_v28  ;;  %7566 = vmatprep.subr.bf16.mxu0 %v12302_v30  ;;  %v12341_v28 = vld [vmem:[%s16769_s1 + $0x1bdc] ss:$20 sps:$4 sm:$0xff]   ;;  %v12336_v30 = vld [vmem:[%s16769_s1 + $0x1a98] ss:$20 sps:$4 sm:$0xff]  }
 0x2dd   :  { %7591 = vmatprep.subr.bf16.mxu1 %v12305_v40  ;;  %v12339_v40 = vld [vmem:[%s16769_s1 + $0x1bd8] ss:$20 sps:$4 sm:$0xff]  }
 0x2df   :  { %7567 = vmatpush2.bf16.msra.mxu0 %v12300_v56  ;;  %v12344_v56 = vld [vmem:[%s16769_s1 + $0x1a74] ss:$20 sps:$4 sm:$0xff]  }
 0x2e0   :  { %7592 = vmatpush1.bf16.msra.mxu1 %v12303_v41  ;;  %7618 = vmatprep.subr.bf16.mxu0 %v12311_v58  ;;  %v12347_v41 = vld [vmem:[%s16769_s1 + $0x1bb4] ss:$20 sps:$4 sm:$0xff]   ;;  %v12345_v58 = vld [vmem:[%s16769_s1 + $0x1bb0] ss:$20 sps:$4 sm:$0xff]  }
 0x2e1   :  { %7593 = vmatprep.subr.bf16.mxu1 %v12308_v12  ;;  %v12342_v12 = vld [vmem:[%s16769_s1 + $0x1a70] ss:$20 sps:$4 sm:$0xff]  }
 0x2e2   :  { %v7324_v1 = vpop.f32.mrf.mxu0  ;;  %7569 = vmatmul.mubr.bf16.vlgmr.msra.gmra.mxu0 %v14022_v54 }
 0x2e3   :  { %v15390_v42 = vadd.f32 %v7324_v1, %v15286_v31  ;;  %7619 = vmatpush1.bf16.msra.mxu0 %v12309_v59  ;;  %v12318_v31 = vld [vmem:[%s16769_s1 + $0x1b10] ss:$20 sps:$4 sm:$0xff]   ;;  %7650 = vmatprep.mubr.bf16.mxu0 %v14038_v61  ;;  %v12353_v59 = vld [vmem:[%s16769_s1 + $0x1b8c] ss:$20 sps:$4 sm:$0xff]  }
 0x2e4   :  { %7594 = vmatpush2.bf16.msra.mxu1 %v12306_v23  ;;  %v7326_v5 = vpop.f32.mrf.mxu0  ;;  %7620 = vmatprep.subr.bf16.mxu0 %v12317_v55  ;;  %v12350_v23 = vld [vmem:[%s16769_s1 + $0x1a4c] ss:$20 sps:$4 sm:$0xff]   ;;  %v12351_v55 = vld [vmem:[%s16769_s1 + $0x1b88] ss:$20 sps:$4 sm:$0xff]  }
 0x2e5   :  { %7595 = vmatprep.subr.bf16.mxu1 %v12314_v50  ;;  %v15399_v7 = vadd.f32 %v7326_v5, %v15295_v24  ;;  %v12326_v24 = vld [vmem:[%s16769_s1 + $0x1aec] ss:$20 sps:$4 sm:$0xff]   ;;  %v12348_v50 = vld [vmem:[%s16769_s1 + $0x1a48] ss:$20 sps:$4 sm:$0xff]  }
 0x2e6   :  { %v7328_v2 = vpop.f32.mrf.mxu0 }
 0x2e7   :  { %7621 = vmatpush1.bf16.msra.mxu0 %v12315_v25  ;;  %v12359_v25 = vld [vmem:[%s16769_s1 + $0x1f24] ss:$20 sps:$4 sm:$0xff]  }
 0x2e8   :  { %7596 = vmatpush2.bf16.msra.mxu1 %v12312_v10  ;;  %v7329_v36 = vpop.f32.mrf.mxu0  ;;  %7622 = vmatprep.subr.bf16.mxu0 %v12323_v45  ;;  %v12356_v10 = vld [vmem:[%s16769_s1 + $0x1de4] ss:$20 sps:$4 sm:$0xff]  }
 0x2e9   :  { %7597 = vmatprep.subr.bf16.mxu1 %v12320_v35 }
 0x2eb   :  { %7623 = vmatpush1.bf16.msra.mxu0 %v12321_v11 }
 0x2ec   :  { %7598 = vmatpush2.bf16.msra.mxu1 %v12318_v31  ;;  %7624 = vmatprep.subr.bf16.mxu0 %v12329_v15 }
 0x2ed   :  { %7599 = vmatprep.subr.bf16.mxu1 %v12326_v24 }
 0x2ef   :  { %7625 = vmatpush1.bf16.msra.mxu0 %v12327_v39 }
 0x2f0   :  { %7600 = vmatpush2.bf16.msra.mxu1 %v12324_v19  ;;  %7626 = vmatprep.subr.bf16.mxu0 %v12335_v22 }
 0x2f1   :  { %7601 = vmatprep.subr.bf16.mxu1 %v12332_v21 }
 0x2f3   :  { %7627 = vmatpush1.bf16.msra.mxu0 %v12333_v26 }
 0x2f4   :  { %7602 = vmatpush2.bf16.msra.mxu1 %v12330_v17  ;;  %7628 = vmatprep.subr.bf16.mxu0 %v12341_v28 }
 0x2f5   :  { %7603 = vmatprep.subr.bf16.mxu1 %v12338_v27 }
 0x2f7   :  { %7629 = vmatpush1.bf16.msra.mxu0 %v12339_v40 }
 0x2f8   :  { %7604 = vmatpush2.bf16.msra.mxu1 %v12336_v30  ;;  %7630 = vmatprep.subr.bf16.mxu0 %v12347_v41 }
 0x2f9   :  { %7605 = vmatprep.subr.bf16.mxu1 %v12344_v56 }
 0x2fb   :  { %7631 = vmatpush1.bf16.msra.mxu0 %v12345_v58 }
 0x2fc   :  { %7606 = vmatpush2.bf16.msra.mxu1 %v12342_v12  ;;  %7632 = vmatprep.subr.bf16.mxu0 %v12353_v59 }
 0x2fd   :  { %7607 = vmatprep.subr.bf16.mxu1 %v12350_v23 }
 0x2fe   :  { %14 = vsyncpa [#allocation3], 0  ;;  %v12354_v1 = vld [vmem:[%s16769_s1 + $0x1de0] ss:$20 sps:$4 sm:$0xff]   ;;  %v12362_v35 = vld [vmem:[%s16769_s1 + $0x1dbc] ss:$20 sps:$4 sm:$0xff]  }
 0x2ff   :  { %7633 = vmatpush1.bf16.msra.mxu0 %v12351_v55  ;;  %v12357_v5 = vld [vmem:[%s16769_s1 + $0x1f20] ss:$20 sps:$4 sm:$0xff]   ;;  %v12365_v45 = vld [vmem:[%s16769_s1 + $0x1efc] ss:$20 sps:$4 sm:$0xff]   ;;  %v12360_v2 = vld [vmem:[%s16769_s1 + $0x1db8] ss:$20 sps:$4 sm:$0xff]  }
 0x300   :  { %7608 = vmatpush2.bf16.msra.mxu1 %v12348_v50  ;;  %7634 = vmatprep.subr.bf16.mxu0 %v12356_v10  ;;  %v12363_v36 = vld [vmem:[%s16769_s1 + $0x1ef8] ss:$20 sps:$4 sm:$0xff]   ;;  %v12368_v15 = vld [vmem:[%s16769_s1 + $0x1d94] ss:$20 sps:$4 sm:$0xff]   ;;  %v12366_v21 = vld [vmem:[%s16769_s1 + $0x1d90] ss:$20 sps:$4 sm:$0xff]  }
 0x301   :  { %7659 = vmatprep.subr.bf16.mxu1 %v12359_v25  ;;  %v12369_v22 = vld [vmem:[%s16769_s1 + $0x1ed0] ss:$20 sps:$4 sm:$0xff]   ;;  %v12377_v17 = vld [vmem:[%s16769_s1 + $0x1eac] ss:$20 sps:$4 sm:$0xff]   ;;  %v12372_v27 = vld [vmem:[%s16769_s1 + $0x1d68] ss:$20 sps:$4 sm:$0xff]  }
 0x302   :  { %v12375_v28 = vld [vmem:[%s16769_s1 + $0x1ea8] ss:$20 sps:$4 sm:$0xff]   ;;  %v12380_v30 = vld [vmem:[%s16769_s1 + $0x1d44] ss:$20 sps:$4 sm:$0xff]   ;;  %v12378_v56 = vld [vmem:[%s16769_s1 + $0x1d40] ss:$20 sps:$4 sm:$0xff]  }
 0x303   :  { %v7365_v31 = vpop.f32.mrf.mxu1  ;;  %7610 = vmatmul.mubr.bf16.vlgmr.msra.gmra.mxu1 %v14232_v63  ;;  %7635 = vmatpush2.bf16.msra.mxu0 %v12354_v1  ;;  %v12383_v40 = vld [vmem:[%s16769_s1 + $0x1e84] ss:$20 sps:$4 sm:$0xff]   ;;  %v12381_v41 = vld [vmem:[%s16769_s1 + $0x1e80] ss:$20 sps:$4 sm:$0xff]   ;;  %v12386_v12 = vld [vmem:[%s16769_s1 + $0x1d1c] ss:$20 sps:$4 sm:$0xff]  }
 0x304   :  { %v15488_v11 = vadd.f32 %v7365_v31, %v15390_v42  ;;  %7660 = vmatpush1.bf16.msra.mxu1 %v12357_v5  ;;  %7636 = vmatprep.subr.bf16.mxu0 %v12362_v35  ;;  %v12371_v42 = vld [vmem:[%s16769_s1 + $0x1ed4] ss:$20 sps:$4 sm:$0xff]   ;;  %v12389_v58 = vld [vmem:[%s16769_s1 + $0x1e5c] ss:$20 sps:$4 sm:$0xff]   ;;  %v12384_v23 = vld [vmem:[%s16769_s1 + $0x1d18] ss:$20 sps:$4 sm:$0xff]  }
 0x305   :  { %v7367_v24 = vpop.f32.mrf.mxu1  ;;  %7661 = vmatprep.subr.bf16.mxu1 %v12365_v45  ;;  %7691 = vmatprep.mubr.bf16.mxu1 %v12834_v20  ;;  %v12387_v59 = vld [vmem:[%s16769_s1 + $0x1e58] ss:$20 sps:$4 sm:$0xff]   ;;  %v12392_v50 = vld [vmem:[%s16769_s1 + $0x1cf4] ss:$20 sps:$4 sm:$0xff]   ;;  %v12390_v10 = vld [vmem:[%s16769_s1 + $0x1cf0] ss:$20 sps:$4 sm:$0xff]  }
 0x306   :  { %v15503_v19 = vadd.f32 %v7367_v24, %v15399_v7  ;;  %v12374_v7 = vld [vmem:[%s16769_s1 + $0x1d6c] ss:$20 sps:$4 sm:$0xff]   ;;  %v12395_v55 = vld [vmem:[%s16769_s1 + $0x1e34] ss:$20 sps:$4 sm:$0xff]   ;;  %v12393_v25 = vld [vmem:[%s16769_s1 + $0x1e30] ss:$20 sps:$4 sm:$0xff]  }
 0x307   :  { %v7369_v39 = vpop.f32.mrf.mxu1  ;;  %7637 = vmatpush2.bf16.msra.mxu0 %v12360_v2  ;;  %v12398_v1 = vld [vmem:[%s16769_s1 + $0x1ccc] ss:$20 sps:$4 sm:$0xff]   ;;  %v12396_v35 = vld [vmem:[%s16769_s1 + $0x1cc8] ss:$20 sps:$4 sm:$0xff]   ;;  %vm12836_vm0 = vmmov 0   ;;  %vm8967_vm1 = vcmask 523264  }
 0x308   :  { %7662 = vmatpush1.bf16.msra.mxu1 %v12363_v36  ;;  %7638 = vmatprep.subr.bf16.mxu0 %v12368_v15  ;;  %v12401_v5 = vld [vmem:[%s16769_s1 + $0x1e0c] ss:$20 sps:$4 sm:$0xff]   ;;  %v12399_v45 = vld [vmem:[%s16769_s1 + $0x1e08] ss:$20 sps:$4 sm:$0xff]   ;;  %vm9448_vm2 = vcmask 261120   ;;  %vm9617_vm3 = vcmask 130048  }
 0x309   :  { %7663 = vmatprep.subr.bf16.mxu1 %v12371_v42  ;;  %v7370_v26 = vpop.f32.mrf.mxu1  ;;  %v12402_v31 = vld [vmem:[%s16769_s1 + $0x268] ss:$20 sps:$4 sm:$0xff]   ;;  %v12406_v15 = vld [vmem:[%s16769_s1 + $0x240] ss:$20 sps:$4 sm:$0xff]   ;;  %s12837_s19 = smov [#allocation2]   ;;  %vm9662_vm4 = vcmask 74752  }
 0x30a   :  { %v12403_v2 = vld [vmem:[%s16769_s1 + $0x4e8] ss:$20 sps:$4 sm:$0xff]   ;;  %v12407_v42 = vld [vmem:[%s16769_s1 + $0x4c0] ss:$20 sps:$4 sm:$0xff]   ;;  %v12410_v26 = vld [vmem:[%s16769_s1 + $0x218] ss:$20 sps:$4 sm:$0xff]  }
 0x30b   :  { %7639 = vmatpush2.bf16.msra.mxu0 %v12366_v21  ;;  %v12404_v36 = vld [vmem:[%s16769_s1 + $0x128] ss:$20 sps:$4 sm:$0xff]   ;;  %s9670_s20 = sshll.u32 %s12837_s19, 4  ;;  %s9671_s20 = int_to_ptr.vmem [resolvable:$true] %s9670_s20 }
 0x30c   :  { %7664 = vmatpush1.bf16.msra.mxu1 %v12369_v22  ;;  %7640 = vmatprep.subr.bf16.mxu0 %v12374_v7  ;;  %v12405_v24 = vld [vmem:[%s16769_s1 + $0x3a8] ss:$20 sps:$4 sm:$0xff]   ;;  %v12408_v22 = vld [vmem:[%s16769_s1 + $0x100] ss:$20 sps:$4 sm:$0xff]   ;;  %s12811_s21 = scalar_lea.vmem %s9671_s20, 32  ;;  %p12816_p1 = scmp.lt.s32.totalorder %s9671_s20, %s9671_s20 }
 0x30d   :  { %7665 = vmatprep.subr.bf16.mxu1 %v12377_v17  ;;  %v12409_v7 = vld [vmem:[%s16769_s1 + $0x380] ss:$20 sps:$4 sm:$0xff]   ;;  %p12812_p0 = scmp.ne.s32.totalorder %s9671_s20, %s12811_s21  ;;  %p12817_p2 = scmp.lt.s32.totalorder %s12811_s21, %s12811_s21 }
 0x30f   :  { %7641 = vmatpush2.bf16.msra.mxu0 %v12372_v27  ;;  %p12818_p3 = por %p12817_p2, %p12816_p1 }
 0x310   :  { %7666 = vmatpush1.bf16.msra.mxu1 %v12375_v28  ;;  %7642 = vmatprep.subr.bf16.mxu0 %v12380_v30  ;;  %v12412_v30 = vld [vmem:[%s16769_s1 + $0xd8] ss:$20 sps:$4 sm:$0xff]  }
 0x311   :  { %7667 = vmatprep.subr.bf16.mxu1 %v12383_v40  ;;  %v12413_v40 = vld [vmem:[%s16769_s1 + $0x358] ss:$20 sps:$4 sm:$0xff]   ;;  %p12819_p4 = pnand %p12818_p3, %p12812_p0 }
 0x313   :  { %7643 = vmatpush2.bf16.msra.mxu0 %v12378_v56 }
 0x314   :  { %7668 = vmatpush1.bf16.msra.mxu1 %v12381_v41  ;;  %7644 = vmatprep.subr.bf16.mxu0 %v12386_v12  ;;  %v12417_v41 = vld [vmem:[%s16769_s1 + $0x330] ss:$20 sps:$4 sm:$0xff]   ;;  %v12418_v12 = vld [vmem:[%s16769_s1 + $0x1c8] ss:$20 sps:$4 sm:$0xff]  }
 0x315   :  { %7669 = vmatprep.subr.bf16.mxu1 %v12389_v58  ;;  %v12419_v58 = vld [vmem:[%s16769_s1 + $0x448] ss:$20 sps:$4 sm:$0xff]  }
 0x317   :  { %7645 = vmatpush2.bf16.msra.mxu0 %v12384_v23  ;;  %v12420_v23 = vld [vmem:[%s16769_s1 + $0x88] ss:$20 sps:$4 sm:$0xff]  }
 0x318   :  { %7670 = vmatpush1.bf16.msra.mxu1 %v12387_v59  ;;  %7646 = vmatprep.subr.bf16.mxu0 %v12392_v50  ;;  %v12421_v59 = vld [vmem:[%s16769_s1 + $0x308] ss:$20 sps:$4 sm:$0xff]   ;;  %v12422_v50 = vld [vmem:[%s16769_s1 + $0x1a0] ss:$20 sps:$4 sm:$0xff]  }
 0x319   :  { %7671 = vmatprep.subr.bf16.mxu1 %v12395_v55  ;;  %v12423_v55 = vld [vmem:[%s16769_s1 + $0x420] ss:$20 sps:$4 sm:$0xff]  }
 0x31b   :  { %7647 = vmatpush2.bf16.msra.mxu0 %v12390_v10  ;;  %v12424_v10 = vld [vmem:[%s16769_s1 + $0x60] ss:$20 sps:$4 sm:$0xff]  }
 0x31c   :  { %7672 = vmatpush1.bf16.msra.mxu1 %v12393_v25  ;;  %7648 = vmatprep.subr.bf16.mxu0 %v12398_v1  ;;  %v12425_v25 = vld [vmem:[%s16769_s1 + $0x2e0] ss:$20 sps:$4 sm:$0xff]   ;;  %v12426_v1 = vld [vmem:[%s16769_s1 + $0x178] ss:$20 sps:$4 sm:$0xff]  }
 0x31d   :  { %7673 = vmatprep.subr.bf16.mxu1 %v12401_v5  ;;  %v12427_v5 = vld [vmem:[%s16769_s1 + $0x3f8] ss:$20 sps:$4 sm:$0xff]  }
 0x31f   :  { %7649 = vmatpush2.bf16.msra.mxu0 %v12396_v35  ;;  %v12428_v35 = vld [vmem:[%s16769_s1 + $0x38] ss:$20 sps:$4 sm:$0xff]  }
 0x320   :  { %7674 = vmatpush1.bf16.msra.mxu1 %v12399_v45  ;;  %10837 = vmatprep.subr.bf16.mxu0 %v12402_v31  ;;  %v12429_v45 = vld [vmem:[%s16769_s1 + $0x2b8] ss:$20 sps:$4 sm:$0xff]   ;;  %v12430_v31 = vld [vmem:[%s16769_s1 + $0x150] ss:$20 sps:$4 sm:$0xff]  }
 0x321   :  { %10859 = vmatprep.subr.bf16.mxu1 %v12403_v2  ;;  %v12431_v2 = vld [vmem:[%s16769_s1 + $0x3d0] ss:$20 sps:$4 sm:$0xff]  }
 0x322   :  { %v7406_v39 = vpop.f32.mrf.mxu0  ;;  %7651 = vmatmul.mubr.bf16.vlgmr.msra.gmra.mxu0 %v14236_v0 }
 0x323   :  { %7692 = vmatmul.mubr.bf16.vlgmr.msra.gmra.mxu1 %v14347_v13  ;;  %v15593_v21 = vadd.f32 %v7406_v39, %v15488_v11  ;;  %10838 = vmatpush3.bf16.msra.mxu0 %v12404_v36  ;;  %v12411_v11 = vld [vmem:[%s16769_s1 + $0x498] ss:$20 sps:$4 sm:$0xff]   ;;  %v12432_v36 = vld [vmem:[%s16769_s1 + $0x10] ss:$20 sps:$4 sm:$0xff]   ;;  %v12436_v39 = vld [vmem:[%s16769_s1 + $0x628] ss:$20 sps:$4 sm:$0xff]  }
 0x324   :  { %10860 = vmatpush3.bf16.msra.mxu1 %v12405_v24  ;;  %v7408_v17 = vpop.f32.mrf.mxu0  ;;  %10839 = vmatprep.subr.bf16.mxu0 %v12406_v15  ;;  %v12433_v24 = vld [vmem:[%s16769_s1 + $0x290] ss:$20 sps:$4 sm:$0xff]   ;;  %v12434_v15 = vld [vmem:[%s16769_s1 + $0x768] ss:$20 sps:$4 sm:$0xff]  }
 0x325   :  { %10861 = vmatprep.subr.bf16.mxu1 %v12407_v42  ;;  %v15608_v27 = vadd.f32 %v7408_v17, %v15503_v19  ;;  %7732 = vmatprep.mubr.bf16.mxu0 %v13051_v62  ;;  %v12414_v62 = vld [vmem:[%s16769_s1 + $0x1f0] ss:$20 sps:$4 sm:$0xff]   ;;  %v12435_v42 = vld [vmem:[%s16769_s1 + $0x9e8] ss:$20 sps:$4 sm:$0xff]   ;;  %v12439_v17 = vld [vmem:[%s16769_s1 + $0x9c0] ss:$20 sps:$4 sm:$0xff]  }
 0x326   :  { %7772 = vmatprep.mubr.bf16.mxu1 %v13062_v3  ;;  %v7410_v28 = vpop.f32.mrf.mxu0  ;;  %v12415_v3 = vld [vmem:[%s16769_s1 + $0x470] ss:$20 sps:$4 sm:$0xff]  }
 0x327   :  { %10840 = vmatpush3.bf16.msra.mxu0 %v12408_v22  ;;  %v12416_v19 = vld [vmem:[%s16769_s1 + $0xb0] ss:$20 sps:$4 sm:$0xff]   ;;  %v12437_v22 = vld [vmem:[%s16769_s1 + $0x8a8] ss:$20 sps:$4 sm:$0xff]   ;;  %v12440_v28 = vld [vmem:[%s16769_s1 + $0x600] ss:$20 sps:$4 sm:$0xff]  }
 0x328   :  { %10862 = vmatpush3.bf16.msra.mxu1 %v12409_v7  ;;  %v7411_v56 = vpop.f32.mrf.mxu0  ;;  %10841 = vmatprep.subr.bf16.mxu0 %v12410_v26  ;;  %v12438_v7 = vld [vmem:[%s16769_s1 + $0x740] ss:$20 sps:$4 sm:$0xff]  }
 0x329   :  { %10863 = vmatprep.subr.bf16.mxu1 %v12411_v11 }
 0x32b   :  { %10842 = vmatpush3.bf16.msra.mxu0 %v12412_v30  ;;  %v12441_v30 = vld [vmem:[%s16769_s1 + $0x880] ss:$20 sps:$4 sm:$0xff]  }
 0x32c   :  { %10864 = vmatpush3.bf16.msra.mxu1 %v12413_v40  ;;  %10843 = vmatprep.subr.bf16.mxu0 %v12414_v62  ;;  %v12444_v62 = vld [vmem:[%s16769_s1 + $0x5d8] ss:$20 sps:$4 sm:$0xff]  }
 0x32d   :  { %10865 = vmatprep.subr.bf16.mxu1 %v12415_v3  ;;  %v12445_v3 = vld [vmem:[%s16769_s1 + $0x858] ss:$20 sps:$4 sm:$0xff]  }
 0x32f   :  { %10844 = vmatpush3.bf16.msra.mxu0 %v12416_v19  ;;  %v12448_v19 = vld [vmem:[%s16769_s1 + $0x5b0] ss:$20 sps:$4 sm:$0xff]  }
 0x330   :  { %10866 = vmatpush3.bf16.msra.mxu1 %v12417_v41  ;;  %10845 = vmatprep.subr.bf16.mxu0 %v12418_v12  ;;  %v12449_v41 = vld [vmem:[%s16769_s1 + $0x830] ss:$20 sps:$4 sm:$0xff]   ;;  %v12450_v12 = vld [vmem:[%s16769_s1 + $0x6c8] ss:$20 sps:$4 sm:$0xff]  }
 0x331   :  { %10867 = vmatprep.subr.bf16.mxu1 %v12419_v58  ;;  %v12451_v58 = vld [vmem:[%s16769_s1 + $0x948] ss:$20 sps:$4 sm:$0xff]  }
 0x333   :  { %10846 = vmatpush3.bf16.msra.mxu0 %v12420_v23  ;;  %v12452_v23 = vld [vmem:[%s16769_s1 + $0x588] ss:$20 sps:$4 sm:$0xff]  }
 0x334   :  { %10868 = vmatpush3.bf16.msra.mxu1 %v12421_v59  ;;  %10847 = vmatprep.subr.bf16.mxu0 %v12422_v50  ;;  %v12453_v59 = vld [vmem:[%s16769_s1 + $0x808] ss:$20 sps:$4 sm:$0xff]   ;;  %v12454_v50 = vld [vmem:[%s16769_s1 + $0x6a0] ss:$20 sps:$4 sm:$0xff]  }
 0x335   :  { %10869 = vmatprep.subr.bf16.mxu1 %v12423_v55  ;;  %v12455_v55 = vld [vmem:[%s16769_s1 + $0x920] ss:$20 sps:$4 sm:$0xff]  }
 0x337   :  { %10848 = vmatpush3.bf16.msra.mxu0 %v12424_v10  ;;  %v12456_v10 = vld [vmem:[%s16769_s1 + $0x560] ss:$20 sps:$4 sm:$0xff]  }
 0x338   :  { %10870 = vmatpush3.bf16.msra.mxu1 %v12425_v25  ;;  %10849 = vmatprep.subr.bf16.mxu0 %v12426_v1  ;;  %v12457_v25 = vld [vmem:[%s16769_s1 + $0x7e0] ss:$20 sps:$4 sm:$0xff]   ;;  %v12458_v1 = vld [vmem:[%s16769_s1 + $0x678] ss:$20 sps:$4 sm:$0xff]  }
 0x339   :  { %10871 = vmatprep.subr.bf16.mxu1 %v12427_v5  ;;  %v12459_v5 = vld [vmem:[%s16769_s1 + $0x8f8] ss:$20 sps:$4 sm:$0xff]  }
 0x33b   :  { %10850 = vmatpush3.bf16.msra.mxu0 %v12428_v35  ;;  %v12460_v35 = vld [vmem:[%s16769_s1 + $0x538] ss:$20 sps:$4 sm:$0xff]  }
 0x33c   :  { %10872 = vmatpush3.bf16.msra.mxu1 %v12429_v45  ;;  %10851 = vmatprep.subr.bf16.mxu0 %v12430_v31  ;;  %v12461_v45 = vld [vmem:[%s16769_s1 + $0x7b8] ss:$20 sps:$4 sm:$0xff]   ;;  %v12462_v31 = vld [vmem:[%s16769_s1 + $0x650] ss:$20 sps:$4 sm:$0xff]  }
 0x33d   :  { %10873 = vmatprep.subr.bf16.mxu1 %v12431_v2  ;;  %v12463_v2 = vld [vmem:[%s16769_s1 + $0x8d0] ss:$20 sps:$4 sm:$0xff]  }
 0x33f   :  { %10852 = vmatpush3.bf16.msra.mxu0 %v12432_v36  ;;  %v12464_v36 = vld [vmem:[%s16769_s1 + $0x510] ss:$20 sps:$4 sm:$0xff]  }
 0x340   :  { %10874 = vmatpush3.bf16.msra.mxu1 %v12433_v24  ;;  %10881 = vmatprep.subr.bf16.mxu0 %v12434_v15  ;;  %v12465_v24 = vld [vmem:[%s16769_s1 + $0x790] ss:$20 sps:$4 sm:$0xff]   ;;  %v12466_v15 = vld [vmem:[%s16769_s1 + $0xc68] ss:$20 sps:$4 sm:$0xff]  }
 0x341   :  { %10903 = vmatprep.subr.bf16.mxu1 %v12435_v42  ;;  %v12467_v42 = vld [vmem:[%s16769_s1 + $0xee8] ss:$20 sps:$4 sm:$0xff]  }
 0x342   :  { %7733 = vmatmul.mubr.bf16.vlgmr.msra.gmra.mxu0 %v13102_v16  ;;  %v12442_v16 = vld [vmem:[%s16769_s1 + $0x718] ss:$20 sps:$4 sm:$0xff]  }
 0x343   :  { %v7447_v26 = vpop.f32.mrf.mxu1  ;;  %7773 = vmatmul.mubr.bf16.vlgmr.msra.gmra.mxu1 %v13107_v18  ;;  %10882 = vmatpush3.bf16.msra.mxu0 %v12436_v39  ;;  %v12443_v18 = vld [vmem:[%s16769_s1 + $0x998] ss:$20 sps:$4 sm:$0xff]   ;;  %v12468_v39 = vld [vmem:[%s16769_s1 + $0xb28] ss:$20 sps:$4 sm:$0xff]  }
 0x344   :  { %v15699_v11 = vadd.f32 %v7447_v26, %v15593_v21  ;;  %10904 = vmatpush3.bf16.msra.mxu1 %v12437_v22  ;;  %10883 = vmatprep.subr.bf16.mxu0 %v12438_v7  ;;  %v12469_v22 = vld [vmem:[%s16769_s1 + $0xda8] ss:$20 sps:$4 sm:$0xff]   ;;  %v12470_v7 = vld [vmem:[%s16769_s1 + $0xc40] ss:$20 sps:$4 sm:$0xff]  }
 0x345   :  { %v7449_v40 = vpop.f32.mrf.mxu1  ;;  %10905 = vmatprep.subr.bf16.mxu1 %v12439_v17  ;;  %7812 = vmatprep.mubr.bf16.mxu0 %v13203_v53  ;;  %v12447_v53 = vld [vmem:[%s16769_s1 + $0x970] ss:$20 sps:$4 sm:$0xff]   ;;  %v12471_v17 = vld [vmem:[%s16769_s1 + $0xec0] ss:$20 sps:$4 sm:$0xff]  }
 0x346   :  { %v15714_v21 = vadd.f32 %v7449_v40, %v15608_v27  ;;  %7852 = vmatprep.mubr.bf16.mxu1 %v13213_v57  ;;  %v12446_v27 = vld [vmem:[%s16769_s1 + $0x6f0] ss:$20 sps:$4 sm:$0xff]   ;;  %v12473_v40 = vld [vmem:[%s16769_s1 + $0xd80] ss:$20 sps:$4 sm:$0xff]  }
 0x347   :  { %v7451_v56 = vpop.f32.mrf.mxu1  ;;  %10884 = vmatpush3.bf16.msra.mxu0 %v12440_v28 }
 0x348   :  { %10906 = vmatpush3.bf16.msra.mxu1 %v12441_v30  ;;  %10885 = vmatprep.subr.bf16.mxu0 %v12442_v16  ;;  %v12472_v30 = vld [vmem:[%s16769_s1 + $0xb00] ss:$20 sps:$4 sm:$0xff]   ;;  %v12476_v56 = vld [vmem:[%s16769_s1 + $0xad8] ss:$20 sps:$4 sm:$0xff]  }
 0x349   :  { %10907 = vmatprep.subr.bf16.mxu1 %v12443_v18  ;;  %v7452_v57 = vpop.f32.mrf.mxu1 }
 0x34a   :  { %v12483_v57 = vld [vmem:[%s16769_s1 + $0xe48] ss:$20 sps:$4 sm:$0xff]  }
 0x34b   :  { %10886 = vmatpush3.bf16.msra.mxu0 %v12444_v62  ;;  %v12477_v62 = vld [vmem:[%s16769_s1 + $0xd58] ss:$20 sps:$4 sm:$0xff]  }
 0x34c   :  { %10908 = vmatpush3.bf16.msra.mxu1 %v12445_v3  ;;  %10887 = vmatprep.subr.bf16.mxu0 %v12446_v27  ;;  %v12481_v27 = vld [vmem:[%s16769_s1 + $0xd30] ss:$20 sps:$4 sm:$0xff]  }
 0x34d   :  { %10909 = vmatprep.subr.bf16.mxu1 %v12447_v53  ;;  %v12482_v53 = vld [vmem:[%s16769_s1 + $0xbc8] ss:$20 sps:$4 sm:$0xff]  }
 0x34f   :  { %10888 = vmatpush3.bf16.msra.mxu0 %v12448_v19  ;;  %v12484_v19 = vld [vmem:[%s16769_s1 + $0xa88] ss:$20 sps:$4 sm:$0xff]  }
 0x350   :  { %10910 = vmatpush3.bf16.msra.mxu1 %v12449_v41  ;;  %10889 = vmatprep.subr.bf16.mxu0 %v12450_v12  ;;  %v12485_v41 = vld [vmem:[%s16769_s1 + $0xd08] ss:$20 sps:$4 sm:$0xff]   ;;  %v12486_v12 = vld [vmem:[%s16769_s1 + $0xba0] ss:$20 sps:$4 sm:$0xff]  }
 0x351   :  { %10911 = vmatprep.subr.bf16.mxu1 %v12451_v58  ;;  %v12487_v58 = vld [vmem:[%s16769_s1 + $0xe20] ss:$20 sps:$4 sm:$0xff]  }
 0x353   :  { %10890 = vmatpush3.bf16.msra.mxu0 %v12452_v23  ;;  %v12488_v23 = vld [vmem:[%s16769_s1 + $0xa60] ss:$20 sps:$4 sm:$0xff]  }
 0x354   :  { %10912 = vmatpush3.bf16.msra.mxu1 %v12453_v59  ;;  %10891 = vmatprep.subr.bf16.mxu0 %v12454_v50  ;;  %v12489_v59 = vld [vmem:[%s16769_s1 + $0xce0] ss:$20 sps:$4 sm:$0xff]   ;;  %v12490_v50 = vld [vmem:[%s16769_s1 + $0xb78] ss:$20 sps:$4 sm:$0xff]  }
 0x355   :  { %10913 = vmatprep.subr.bf16.mxu1 %v12455_v55  ;;  %v12491_v55 = vld [vmem:[%s16769_s1 + $0xdf8] ss:$20 sps:$4 sm:$0xff]  }
 0x357   :  { %10892 = vmatpush3.bf16.msra.mxu0 %v12456_v10  ;;  %v12492_v10 = vld [vmem:[%s16769_s1 + $0xa38] ss:$20 sps:$4 sm:$0xff]  }
 0x358   :  { %10914 = vmatpush3.bf16.msra.mxu1 %v12457_v25  ;;  %10893 = vmatprep.subr.bf16.mxu0 %v12458_v1  ;;  %v12493_v25 = vld [vmem:[%s16769_s1 + $0xcb8] ss:$20 sps:$4 sm:$0xff]   ;;  %v12494_v1 = vld [vmem:[%s16769_s1 + $0xb50] ss:$20 sps:$4 sm:$0xff]  }
 0x359   :  { %10915 = vmatprep.subr.bf16.mxu1 %v12459_v5  ;;  %v12495_v5 = vld [vmem:[%s16769_s1 + $0xdd0] ss:$20 sps:$4 sm:$0xff]  }
 0x35b   :  { %10894 = vmatpush3.bf16.msra.mxu0 %v12460_v35  ;;  %v12496_v35 = vld [vmem:[%s16769_s1 + $0xa10] ss:$20 sps:$4 sm:$0xff]  }
 0x35c   :  { %10916 = vmatpush3.bf16.msra.mxu1 %v12461_v45  ;;  %10895 = vmatprep.subr.bf16.mxu0 %v12462_v31  ;;  %v12497_v45 = vld [vmem:[%s16769_s1 + $0xc90] ss:$20 sps:$4 sm:$0xff]   ;;  %v12498_v31 = vld [vmem:[%s16769_s1 + $0x1168] ss:$20 sps:$4 sm:$0xff]  }
 0x35d   :  { %10917 = vmatprep.subr.bf16.mxu1 %v12463_v2  ;;  %v12499_v2 = vld [vmem:[%s16769_s1 + $0x13e8] ss:$20 sps:$4 sm:$0xff]  }
 0x35f   :  { %10896 = vmatpush3.bf16.msra.mxu0 %v12464_v36  ;;  %v12500_v36 = vld [vmem:[%s16769_s1 + $0x1028] ss:$20 sps:$4 sm:$0xff]  }
 0x360   :  { %10918 = vmatpush3.bf16.msra.mxu1 %v12465_v24  ;;  %10925 = vmatprep.subr.bf16.mxu0 %v12466_v15  ;;  %v12501_v24 = vld [vmem:[%s16769_s1 + $0x12a8] ss:$20 sps:$4 sm:$0xff]   ;;  %v12502_v15 = vld [vmem:[%s16769_s1 + $0x1140] ss:$20 sps:$4 sm:$0xff]  }
 0x361   :  { %10947 = vmatprep.subr.bf16.mxu1 %v12467_v42  ;;  %v12503_v42 = vld [vmem:[%s16769_s1 + $0x13c0] ss:$20 sps:$4 sm:$0xff]  }
 0x362   :  { %v7488_v26 = vpop.f32.mrf.mxu0  ;;  %7813 = vmatmul.mubr.bf16.vlgmr.msra.gmra.mxu0 %v13321_v32  ;;  %v12474_v32 = vld [vmem:[%s16769_s1 + $0xc18] ss:$20 sps:$4 sm:$0xff]  }
 0x363   :  { %7853 = vmatmul.mubr.bf16.vlgmr.msra.gmra.mxu1 %v13328_v34  ;;  %v15805_v28 = vadd.f32 %v7488_v26, %v15699_v11  ;;  %10926 = vmatpush3.bf16.msra.mxu0 %v12468_v39  ;;  %v12475_v34 = vld [vmem:[%s16769_s1 + $0xe98] ss:$20 sps:$4 sm:$0xff]  }
 0x364   :  { %10948 = vmatpush3.bf16.msra.mxu1 %v12469_v22  ;;  %v7490_v16 = vpop.f32.mrf.mxu0  ;;  %10927 = vmatprep.subr.bf16.mxu0 %v12470_v7  ;;  %v12504_v7 = vld [vmem:[%s16769_s1 + $0x1000] ss:$20 sps:$4 sm:$0xff]  }
 0x365   :  { %10949 = vmatprep.subr.bf16.mxu1 %v12471_v17  ;;  %v15820_v11 = vadd.f32 %v7490_v16, %v15714_v21  ;;  %7892 = vmatprep.mubr.bf16.mxu0 %v13364_v48  ;;  %v12478_v48 = vld [vmem:[%s16769_s1 + $0xbf0] ss:$20 sps:$4 sm:$0xff]   ;;  %v12505_v17 = vld [vmem:[%s16769_s1 + $0x1280] ss:$20 sps:$4 sm:$0xff]   ;;  %v12509_v16 = vld [vmem:[%s16769_s1 + $0x1258] ss:$20 sps:$4 sm:$0xff]  }
 0x366   :  { %7932 = vmatprep.mubr.bf16.mxu1 %v13372_v52  ;;  %v7492_v18 = vpop.f32.mrf.mxu0  ;;  %v12479_v52 = vld [vmem:[%s16769_s1 + $0xe70] ss:$20 sps:$4 sm:$0xff]  }
 0x367   :  { %10928 = vmatpush3.bf16.msra.mxu0 %v12472_v30  ;;  %v12480_v21 = vld [vmem:[%s16769_s1 + $0xab0] ss:$20 sps:$4 sm:$0xff]   ;;  %v12514_v18 = vld [vmem:[%s16769_s1 + $0x10c8] ss:$20 sps:$4 sm:$0xff]  }
 0x368   :  { %10950 = vmatpush3.bf16.msra.mxu1 %v12473_v40  ;;  %v7493_v3 = vpop.f32.mrf.mxu0  ;;  %10929 = vmatprep.subr.bf16.mxu0 %v12474_v32  ;;  %v12508_v40 = vld [vmem:[%s16769_s1 + $0xfd8] ss:$20 sps:$4 sm:$0xff]   ;;  %v12510_v32 = vld [vmem:[%s16769_s1 + $0x10f0] ss:$20 sps:$4 sm:$0xff]  }
 0x369   :  { %10951 = vmatprep.subr.bf16.mxu1 %v12475_v34  ;;  %v12512_v34 = vld [vmem:[%s16769_s1 + $0xfb0] ss:$20 sps:$4 sm:$0xff]   ;;  %v12517_v3 = vld [vmem:[%s16769_s1 + $0x1208] ss:$20 sps:$4 sm:$0xff]  }
 0x36b   :  { %10930 = vmatpush3.bf16.msra.mxu0 %v12476_v56  ;;  %v12515_v56 = vld [vmem:[%s16769_s1 + $0x1348] ss:$20 sps:$4 sm:$0xff]  }
 0x36c   :  { %10952 = vmatpush3.bf16.msra.mxu1 %v12477_v62  ;;  %10931 = vmatprep.subr.bf16.mxu0 %v12478_v48  ;;  %v12516_v62 = vld [vmem:[%s16769_s1 + $0xf88] ss:$20 sps:$4 sm:$0xff]   ;;  %v12518_v48 = vld [vmem:[%s16769_s1 + $0x10a0] ss:$20 sps:$4 sm:$0xff]  }
 0x36d   :  { %10953 = vmatprep.subr.bf16.mxu1 %v12479_v52  ;;  %v12519_v52 = vld [vmem:[%s16769_s1 + $0x1320] ss:$20 sps:$4 sm:$0xff]  }
 0x36f   :  { %10932 = vmatpush3.bf16.msra.mxu0 %v12480_v21  ;;  %v12520_v21 = vld [vmem:[%s16769_s1 + $0xf60] ss:$20 sps:$4 sm:$0xff]  }
 0x370   :  { %10954 = vmatpush3.bf16.msra.mxu1 %v12481_v27  ;;  %10933 = vmatprep.subr.bf16.mxu0 %v12482_v53  ;;  %v12521_v27 = vld [vmem:[%s16769_s1 + $0x11e0] ss:$20 sps:$4 sm:$0xff]   ;;  %v12522_v53 = vld [vmem:[%s16769_s1 + $0x1078] ss:$20 sps:$4 sm:$0xff]  }
 0x371   :  { %10955 = vmatprep.subr.bf16.mxu1 %v12483_v57  ;;  %v12523_v57 = vld [vmem:[%s16769_s1 + $0x12f8] ss:$20 sps:$4 sm:$0xff]  }
 0x373   :  { %10934 = vmatpush3.bf16.msra.mxu0 %v12484_v19  ;;  %v12524_v19 = vld [vmem:[%s16769_s1 + $0xf38] ss:$20 sps:$4 sm:$0xff]  }
 0x374   :  { %10956 = vmatpush3.bf16.msra.mxu1 %v12485_v41  ;;  %10935 = vmatprep.subr.bf16.mxu0 %v12486_v12  ;;  %v12525_v41 = vld [vmem:[%s16769_s1 + $0x11b8] ss:$20 sps:$4 sm:$0xff]   ;;  %v12526_v12 = vld [vmem:[%s16769_s1 + $0x1050] ss:$20 sps:$4 sm:$0xff]  }
 0x375   :  { %10957 = vmatprep.subr.bf16.mxu1 %v12487_v58  ;;  %v12527_v58 = vld [vmem:[%s16769_s1 + $0x12d0] ss:$20 sps:$4 sm:$0xff]  }
 0x377   :  { %10936 = vmatpush3.bf16.msra.mxu0 %v12488_v23  ;;  %v12528_v23 = vld [vmem:[%s16769_s1 + $0xf10] ss:$20 sps:$4 sm:$0xff]  }
 0x378   :  { %10958 = vmatpush3.bf16.msra.mxu1 %v12489_v59  ;;  %10937 = vmatprep.subr.bf16.mxu0 %v12490_v50  ;;  %v12529_v59 = vld [vmem:[%s16769_s1 + $0x1190] ss:$20 sps:$4 sm:$0xff]   ;;  %v12530_v50 = vld [vmem:[%s16769_s1 + $0x1668] ss:$20 sps:$4 sm:$0xff]  }
 0x379   :  { %10959 = vmatprep.subr.bf16.mxu1 %v12491_v55  ;;  %v12531_v55 = vld [vmem:[%s16769_s1 + $0x18e8] ss:$20 sps:$4 sm:$0xff]  }
 0x37b   :  { %10938 = vmatpush3.bf16.msra.mxu0 %v12492_v10  ;;  %v12532_v10 = vld [vmem:[%s16769_s1 + $0x1528] ss:$20 sps:$4 sm:$0xff]  }
 0x37c   :  { %10960 = vmatpush3.bf16.msra.mxu1 %v12493_v25  ;;  %10939 = vmatprep.subr.bf16.mxu0 %v12494_v1  ;;  %v12533_v25 = vld [vmem:[%s16769_s1 + $0x17a8] ss:$20 sps:$4 sm:$0xff]   ;;  %v12534_v1 = vld [vmem:[%s16769_s1 + $0x1640] ss:$20 sps:$4 sm:$0xff]  }
 0x37d   :  { %10961 = vmatprep.subr.bf16.mxu1 %v12495_v5  ;;  %v12535_v5 = vld [vmem:[%s16769_s1 + $0x18c0] ss:$20 sps:$4 sm:$0xff]  }
 0x37f   :  { %10940 = vmatpush3.bf16.msra.mxu0 %v12496_v35 }
 0x380   :  { %10962 = vmatpush3.bf16.msra.mxu1 %v12497_v45  ;;  %10969 = vmatprep.subr.bf16.mxu0 %v12498_v31  ;;  %v12536_v31 = vld [vmem:[%s16769_s1 + $0x1500] ss:$20 sps:$4 sm:$0xff]  }
 0x381   :  { %10991 = vmatprep.subr.bf16.mxu1 %v12499_v2  ;;  %v12537_v2 = vld [vmem:[%s16769_s1 + $0x1780] ss:$20 sps:$4 sm:$0xff]  }
 0x382   :  { %7893 = vmatmul.mubr.bf16.vlgmr.msra.gmra.mxu0 %v13555_v4  ;;  %v12506_v4 = vld [vmem:[%s16769_s1 + $0x1118] ss:$20 sps:$4 sm:$0xff]  }
 0x383   :  { %v7529_v39 = vpop.f32.mrf.mxu1  ;;  %7933 = vmatmul.mubr.bf16.vlgmr.msra.gmra.mxu1 %v13562_v6  ;;  %10970 = vmatpush3.bf16.msra.mxu0 %v12500_v36  ;;  %v12507_v6 = vld [vmem:[%s16769_s1 + $0x1398] ss:$20 sps:$4 sm:$0xff]  }
 0x384   :  { %v15911_v22 = vadd.f32 %v7529_v39, %v15805_v28  ;;  %10992 = vmatpush3.bf16.msra.mxu1 %v12501_v24  ;;  %10971 = vmatprep.subr.bf16.mxu0 %v12502_v15  ;;  %v12541_v39 = vld [vmem:[%s16769_s1 + $0x1758] ss:$20 sps:$4 sm:$0xff]  }
 0x385   :  { %v7531_v26 = vpop.f32.mrf.mxu1  ;;  %10993 = vmatprep.subr.bf16.mxu1 %v12503_v42  ;;  %7972 = vmatprep.mubr.bf16.mxu0 %v13573_v9  ;;  %v12511_v9 = vld [vmem:[%s16769_s1 + $0x1370] ss:$20 sps:$4 sm:$0xff]   ;;  %v12540_v42 = vld [vmem:[%s16769_s1 + $0x14d8] ss:$20 sps:$4 sm:$0xff]  }
 0x386   :  { %v15926_v28 = vadd.f32 %v7531_v26, %v15820_v11  ;;  %8012 = vmatprep.mubr.bf16.mxu1 %v13575_v44  ;;  %v12513_v11 = vld [vmem:[%s16769_s1 + $0x1230] ss:$20 sps:$4 sm:$0xff]   ;;  %v12546_v26 = vld [vmem:[%s16769_s1 + $0x15c8] ss:$20 sps:$4 sm:$0xff]  }
 0x387   :  { %v7533_v30 = vpop.f32.mrf.mxu1  ;;  %10972 = vmatpush3.bf16.msra.mxu0 %v12504_v7  ;;  %v12544_v7 = vld [vmem:[%s16769_s1 + $0x14b0] ss:$20 sps:$4 sm:$0xff]  }
 0x388   :  { %10994 = vmatpush3.bf16.msra.mxu1 %v12505_v17  ;;  %10973 = vmatprep.subr.bf16.mxu0 %v12506_v4  ;;  %v12545_v17 = vld [vmem:[%s16769_s1 + $0x1730] ss:$20 sps:$4 sm:$0xff]   ;;  %v12547_v4 = vld [vmem:[%s16769_s1 + $0x1848] ss:$20 sps:$4 sm:$0xff]   ;;  %v12550_v30 = vld [vmem:[%s16769_s1 + $0x15a0] ss:$20 sps:$4 sm:$0xff]  }
 0x389   :  { %10995 = vmatprep.subr.bf16.mxu1 %v12507_v6  ;;  %v7534_v44 = vpop.f32.mrf.mxu1  ;;  %v12548_v6 = vld [vmem:[%s16769_s1 + $0x1488] ss:$20 sps:$4 sm:$0xff]  }
 0x38a   :  { %v12555_v44 = vld [vmem:[%s16769_s1 + $0x17f8] ss:$20 sps:$4 sm:$0xff]  }
 0x38b   :  { %10974 = vmatpush3.bf16.msra.mxu0 %v12508_v40  ;;  %v12551_v40 = vld [vmem:[%s16769_s1 + $0x1820] ss:$20 sps:$4 sm:$0xff]  }
 0x38c   :  { %10996 = vmatpush3.bf16.msra.mxu1 %v12509_v16  ;;  %10975 = vmatprep.subr.bf16.mxu0 %v12510_v32  ;;  %v12552_v16 = vld [vmem:[%s16769_s1 + $0x1460] ss:$20 sps:$4 sm:$0xff]  }
 0x38d   :  { %10997 = vmatprep.subr.bf16.mxu1 %v12511_v9  ;;  %v12553_v32 = vld [vmem:[%s16769_s1 + $0x16e0] ss:$20 sps:$4 sm:$0xff]   ;;  %v12554_v9 = vld [vmem:[%s16769_s1 + $0x1578] ss:$20 sps:$4 sm:$0xff]  }
 0x38f   :  { %10976 = vmatpush3.bf16.msra.mxu0 %v12512_v34  ;;  %v12556_v34 = vld [vmem:[%s16769_s1 + $0x1438] ss:$20 sps:$4 sm:$0xff]  }
 0x390   :  { %10998 = vmatpush3.bf16.msra.mxu1 %v12513_v11  ;;  %10977 = vmatprep.subr.bf16.mxu0 %v12514_v18  ;;  %v12557_v11 = vld [vmem:[%s16769_s1 + $0x16b8] ss:$20 sps:$4 sm:$0xff]   ;;  %v12558_v18 = vld [vmem:[%s16769_s1 + $0x1550] ss:$20 sps:$4 sm:$0xff]  }
 0x391   :  { %10999 = vmatprep.subr.bf16.mxu1 %v12515_v56  ;;  %v12559_v56 = vld [vmem:[%s16769_s1 + $0x17d0] ss:$20 sps:$4 sm:$0xff]  }
 0x393   :  { %10978 = vmatpush3.bf16.msra.mxu0 %v12516_v62  ;;  %v12560_v62 = vld [vmem:[%s16769_s1 + $0x1410] ss:$20 sps:$4 sm:$0xff]  }
 0x394   :  { %11000 = vmatpush3.bf16.msra.mxu1 %v12517_v3  ;;  %10979 = vmatprep.subr.bf16.mxu0 %v12518_v48  ;;  %v12561_v3 = vld [vmem:[%s16769_s1 + $0x1690] ss:$20 sps:$4 sm:$0xff]   ;;  %v12562_v48 = vld [vmem:[%s16769_s1 + $0x1b68] ss:$20 sps:$4 sm:$0xff]  }
 0x395   :  { %11001 = vmatprep.subr.bf16.mxu1 %v12519_v52  ;;  %v12563_v52 = vld [vmem:[%s16769_s1 + $0x1de8] ss:$20 sps:$4 sm:$0xff]  }
 0x397   :  { %10980 = vmatpush3.bf16.msra.mxu0 %v12520_v21  ;;  %v12564_v21 = vld [vmem:[%s16769_s1 + $0x1a28] ss:$20 sps:$4 sm:$0xff]  }
 0x398   :  { %11002 = vmatpush3.bf16.msra.mxu1 %v12521_v27  ;;  %10981 = vmatprep.subr.bf16.mxu0 %v12522_v53  ;;  %v12565_v27 = vld [vmem:[%s16769_s1 + $0x1ca8] ss:$20 sps:$4 sm:$0xff]   ;;  %v12566_v53 = vld [vmem:[%s16769_s1 + $0x1b40] ss:$20 sps:$4 sm:$0xff]  }
 0x399   :  { %11003 = vmatprep.subr.bf16.mxu1 %v12523_v57  ;;  %v12567_v57 = vld [vmem:[%s16769_s1 + $0x1dc0] ss:$20 sps:$4 sm:$0xff]  }
 0x39b   :  { %10982 = vmatpush3.bf16.msra.mxu0 %v12524_v19 }
 0x39c   :  { %11004 = vmatpush3.bf16.msra.mxu1 %v12525_v41  ;;  %10983 = vmatprep.subr.bf16.mxu0 %v12526_v12  ;;  %v12568_v12 = vld [vmem:[%s16769_s1 + $0x1a00] ss:$20 sps:$4 sm:$0xff]  }
 0x39d   :  { %11005 = vmatprep.subr.bf16.mxu1 %v12527_v58  ;;  %v12569_v58 = vld [vmem:[%s16769_s1 + $0x1c80] ss:$20 sps:$4 sm:$0xff]  }
 0x39f   :  { %10984 = vmatpush3.bf16.msra.mxu0 %v12528_v23 }
 0x3a0   :  { %11006 = vmatpush3.bf16.msra.mxu1 %v12529_v59  ;;  %11013 = vmatprep.subr.bf16.mxu0 %v12530_v50  ;;  %v12572_v50 = vld [vmem:[%s16769_s1 + $0x19d8] ss:$20 sps:$4 sm:$0xff]  }
 0x3a1   :  { %11035 = vmatprep.subr.bf16.mxu1 %v12531_v55  ;;  %v12573_v55 = vld [vmem:[%s16769_s1 + $0x1c58] ss:$20 sps:$4 sm:$0xff]  }
 0x3a2   :  { %v7570_v35 = vpop.f32.mrf.mxu0  ;;  %7973 = vmatmul.mubr.bf16.vlgmr.msra.gmra.mxu0 %v13785_v37  ;;  %v12538_v37 = vld [vmem:[%s16769_s1 + $0x1618] ss:$20 sps:$4 sm:$0xff]  }
 0x3a3   :  { %8013 = vmatmul.mubr.bf16.vlgmr.msra.gmra.mxu1 %v13789_v38  ;;  %v16017_v45 = vadd.f32 %v7570_v35, %v15911_v22  ;;  %11014 = vmatpush3.bf16.msra.mxu0 %v12532_v10  ;;  %v12539_v38 = vld [vmem:[%s16769_s1 + $0x1898] ss:$20 sps:$4 sm:$0xff]   ;;  %v12574_v10 = vld [vmem:[%s16769_s1 + $0x1af0] ss:$20 sps:$4 sm:$0xff]   ;;  %v12579_v35 = vld [vmem:[%s16769_s1 + $0x1d48] ss:$20 sps:$4 sm:$0xff]  }
 0x3a4   :  { %11036 = vmatpush3.bf16.msra.mxu1 %v12533_v25  ;;  %v7572_v36 = vpop.f32.mrf.mxu0  ;;  %11015 = vmatprep.subr.bf16.mxu0 %v12534_v1  ;;  %v12576_v25 = vld [vmem:[%s16769_s1 + $0x19b0] ss:$20 sps:$4 sm:$0xff]  }
 0x3a5   :  { %11037 = vmatprep.subr.bf16.mxu1 %v12535_v5  ;;  %v16032_v24 = vadd.f32 %v7572_v36, %v15926_v28  ;;  %8052 = vmatprep.mubr.bf16.mxu0 %v13805_v46  ;;  %v12542_v46 = vld [vmem:[%s16769_s1 + $0x15f0] ss:$20 sps:$4 sm:$0xff]   ;;  %v12549_v28 = vld [vmem:[%s16769_s1 + $0x1708] ss:$20 sps:$4 sm:$0xff]   ;;  %v12583_v36 = vld [vmem:[%s16769_s1 + $0x1d20] ss:$20 sps:$4 sm:$0xff]  }
 0x3a6   :  { %8092 = vmatprep.mubr.bf16.mxu1 %v13807_v47  ;;  %v7574_v15 = vpop.f32.mrf.mxu0  ;;  %v12543_v47 = vld [vmem:[%s16769_s1 + $0x1870] ss:$20 sps:$4 sm:$0xff]   ;;  %v12578_v5 = vld [vmem:[%s16769_s1 + $0x1ac8] ss:$20 sps:$4 sm:$0xff]  }
 0x3a7   :  { %11016 = vmatpush3.bf16.msra.mxu0 %v12536_v31  ;;  %v12577_v1 = vld [vmem:[%s16769_s1 + $0x1c30] ss:$20 sps:$4 sm:$0xff]   ;;  %v12581_v31 = vld [vmem:[%s16769_s1 + $0x1c08] ss:$20 sps:$4 sm:$0xff]   ;;  %v12586_v15 = vld [vmem:[%s16769_s1 + $0x1a78] ss:$20 sps:$4 sm:$0xff]  }
 0x3a8   :  { %11038 = vmatpush3.bf16.msra.mxu1 %v12537_v2  ;;  %v7575_v22 = vpop.f32.mrf.mxu0  ;;  %11017 = vmatprep.subr.bf16.mxu0 %v12538_v37  ;;  %v12582_v2 = vld [vmem:[%s16769_s1 + $0x1aa0] ss:$20 sps:$4 sm:$0xff]  }
 0x3a9   :  { %11039 = vmatprep.subr.bf16.mxu1 %v12539_v38  ;;  %v12584_v37 = vld [vmem:[%s16769_s1 + $0x1960] ss:$20 sps:$4 sm:$0xff]   ;;  %v12589_v22 = vld [vmem:[%s16769_s1 + $0x1bb8] ss:$20 sps:$4 sm:$0xff]  }
 0x3aa   :  { %v12585_v38 = vld [vmem:[%s16769_s1 + $0x1be0] ss:$20 sps:$4 sm:$0xff]  }
 0x3ab   :  { %11018 = vmatpush3.bf16.msra.mxu0 %v12540_v42  ;;  %v12587_v42 = vld [vmem:[%s16769_s1 + $0x1cf8] ss:$20 sps:$4 sm:$0xff]  }
 0x3ac   :  { %11040 = vmatpush3.bf16.msra.mxu1 %v12541_v39  ;;  %11019 = vmatprep.subr.bf16.mxu0 %v12542_v46  ;;  %v12588_v39 = vld [vmem:[%s16769_s1 + $0x1938] ss:$20 sps:$4 sm:$0xff]   ;;  %v12590_v46 = vld [vmem:[%s16769_s1 + $0x1a50] ss:$20 sps:$4 sm:$0xff]  }
 0x3ad   :  { %11041 = vmatprep.subr.bf16.mxu1 %v12543_v47  ;;  %v12591_v47 = vld [vmem:[%s16769_s1 + $0x1cd0] ss:$20 sps:$4 sm:$0xff]  }
 0x3af   :  { %11020 = vmatpush3.bf16.msra.mxu0 %v12544_v7  ;;  %v12592_v7 = vld [vmem:[%s16769_s1 + $0x1910] ss:$20 sps:$4 sm:$0xff]  }
 0x3b0   :  { %11042 = vmatpush3.bf16.msra.mxu1 %v12545_v17  ;;  %11021 = vmatprep.subr.bf16.mxu0 %v12546_v26  ;;  %v12593_v17 = vld [vmem:[%s16769_s1 + $0x1b90] ss:$20 sps:$4 sm:$0xff]   ;;  %v12596_v26 = vld [vmem:[%s16771_s3 + $0xac] ss:$12 sps:$4 sm:$0xff]  }
 0x3b1   :  { %11043 = vmatprep.subr.bf16.mxu1 %v12547_v4  ;;  %v8221_v4 = vmax.f32 %v14978_v14, 0.0 }
 0x3b3   :  { %11022 = vmatpush3.bf16.msra.mxu0 %v12548_v6  ;;  %v12594_v6 = vld [vmem:[%s16771_s3 + $0xa8] ss:$12 sps:$4 sm:$0xff]  }
 0x3b4   :  { %11044 = vmatpush3.bf16.msra.mxu1 %v12549_v28  ;;  %11023 = vmatprep.subr.bf16.mxu0 %v12550_v30  ;;  %v12597_v28 = vld [vmem:[%s16769_s1 + $0x1f28] ss:$20 sps:$4 sm:$0xff]   ;;  %v12835_v30 = vmov 0.0  }
 0x3b5   :  { %11045 = vmatprep.subr.bf16.mxu1 %v12551_v40  ;;  %v12600_v40 = vld [vmem:[%s16771_s3 + $0x94] ss:$12 sps:$4 sm:$0xff]  }
 0x3b7   :  { %11024 = vmatpush3.bf16.msra.mxu0 %v12552_v16  ;;  %v16221_v16 = vpack.c.bf16 %v8221_v4, %v8221_v4 }
 0x3b8   :  { %11046 = vmatpush3.bf16.msra.mxu1 %v12553_v32  ;;  %11025 = vmatprep.subr.bf16.mxu0 %v12554_v9 }
 0x3b9   :  { %11047 = vmatprep.subr.bf16.mxu1 %v12555_v44  ;;  %v12598_v44 = vld [vmem:[%s16771_s3 + $0x90] ss:$12 sps:$4 sm:$0xff]  }
 0x3bb   :  { %11026 = vmatpush3.bf16.msra.mxu0 %v12556_v34  ;;  %v12601_v34 = vld [vmem:[%s16769_s1 + $0x1f00] ss:$20 sps:$4 sm:$0xff]  }
 0x3bc   :  { %11048 = vmatpush3.bf16.msra.mxu1 %v12557_v11  ;;  %11027 = vmatprep.subr.bf16.mxu0 %v12558_v18 }
 0x3bd   :  { %11049 = vmatprep.subr.bf16.mxu1 %v12559_v56 }
 0x3bf   :  { %11028 = vmatpush3.bf16.msra.mxu0 %v12560_v62 }
 0x3c0   :  { %11050 = vmatpush3.bf16.msra.mxu1 %v12561_v3  ;;  %11057 = vmatprep.subr.bf16.mxu0 %v12562_v48  ;;  %v12602_v3 = vld [vmem:[%s16771_s3 + $0x78] ss:$12 sps:$4 sm:$0xff]  }
 0x3c1   :  { %11079 = vmatprep.subr.bf16.mxu1 %v12563_v52  ;;  %v12605_v48 = vld [vmem:[%s16769_s1 + $0x1ed8] ss:$20 sps:$4 sm:$0xff]  }
 0x3c2   :  { %8053 = vmatmul.mubr.bf16.vlgmr.msra.gmra.mxu0 %v14018_v51  ;;  %v12570_v51 = vld [vmem:[%s16769_s1 + $0x1b18] ss:$20 sps:$4 sm:$0xff]  }
 0x3c3   :  { %v7611_v19 = vpop.f32.mrf.mxu1  ;;  %8093 = vmatmul.mubr.bf16.vlgmr.msra.gmra.mxu1 %v14022_v54  ;;  %11058 = vmatpush3.bf16.msra.mxu0 %v12564_v21  ;;  %v12571_v54 = vld [vmem:[%s16769_s1 + $0x1d98] ss:$20 sps:$4 sm:$0xff]   ;;  %v12608_v21 = vld [vmem:[%s16771_s3 + $0x64] ss:$12 sps:$4 sm:$0xff]  }
 0x3c4   :  { %v16123_v41 = vadd.f32 %v7611_v19, %v16017_v45  ;;  %11080 = vmatpush3.bf16.msra.mxu1 %v12565_v27  ;;  %11059 = vmatprep.subr.bf16.mxu0 %v12566_v53  ;;  %v12580_v45 = vld [vmem:[%s16769_s1 + $0x1988] ss:$20 sps:$4 sm:$0xff]   ;;  %v12606_v53 = vld [vmem:[%s16771_s3 + $0x60] ss:$12 sps:$4 sm:$0xff]  }
 0x3c5   :  { %v16131_v23 = vpop.f32.mrf.mxu1  ;;  %11081 = vmatprep.subr.bf16.mxu1 %v12567_v57  ;;  %8132 = vmatprep.mubr.bf16.mxu0 %v14036_v60  ;;  %v12575_v60 = vld [vmem:[%s16769_s1 + $0x1d70] ss:$20 sps:$4 sm:$0xff]   ;;  %v12612_v19 = vld [vmem:[%s16771_s3 + $0x4c] ss:$12 sps:$4 sm:$0xff]  }
 0x3c6   :  { %8172 = vmatprep.mubr.bf16.mxu1 %v14038_v61  ;;  %v12609_v57 = vld [vmem:[%s16769_s1 + $0x1eb0] ss:$20 sps:$4 sm:$0xff]  }
 0x3c7   :  { %v7615_v59 = vpop.f32.mrf.mxu1  ;;  %11060 = vmatpush3.bf16.msra.mxu0 %v12568_v12  ;;  %v12613_v12 = vld [vmem:[%s16769_s1 + $0x1e88] ss:$20 sps:$4 sm:$0xff]  }
 0x3c8   :  { %11082 = vmatpush3.bf16.msra.mxu1 %v12569_v58  ;;  %11061 = vmatprep.subr.bf16.mxu0 %v12570_v51  ;;  %v12616_v58 = vld [vmem:[%s16771_s3 + $0x34] ss:$12 sps:$4 sm:$0xff]   ;;  %v12614_v51 = vld [vmem:[%s16771_s3 + $0x30] ss:$12 sps:$4 sm:$0xff]   ;;  %v7614_v59 = vadd.f32 %v16131_v23, %v16032_v24 }
 0x3c9   :  { %11083 = vmatprep.subr.bf16.mxu1 %v12571_v54  ;;  %v7616_v61 = vpop.f32.mrf.mxu1  ;;  %v12617_v54 = vld [vmem:[%s16769_s1 + $0x1e60] ss:$20 sps:$4 sm:$0xff]   ;;  %v12624_v24 = vld [vmem:[%s16771_s3 + $0x4] ss:$12 sps:$4 sm:$0xff]  }
 0x3ca   :  { %v12622_v61 = vld [vmem:[%s16771_s3] ss:$12 sps:$4 sm:$0xff]  }
 0x3cb   :  { %11062 = vmatpush3.bf16.msra.mxu0 %v12572_v50  ;;  %v12620_v50 = vld [vmem:[%s16771_s3 + $0x1c] ss:$12 sps:$4 sm:$0xff]  }
 0x3cc   :  { %11084 = vmatpush3.bf16.msra.mxu1 %v12573_v55  ;;  %11063 = vmatprep.subr.bf16.mxu0 %v12574_v10  ;;  %v12618_v10 = vld [vmem:[%s16771_s3 + $0x18] ss:$12 sps:$4 sm:$0xff]  }
 0x3cd   :  { %11085 = vmatprep.subr.bf16.mxu1 %v12575_v60  ;;  %v12621_v60 = vld [vmem:[%s16769_s1 + $0x1e38] ss:$20 sps:$4 sm:$0xff]  }
 0x3cf   :  { %11064 = vmatpush3.bf16.msra.mxu0 %v12576_v25  ;;  %v12625_v25 = vld [vmem:[%s16769_s1 + $0x1e10] ss:$20 sps:$4 sm:$0xff]  }
 0x3d0   :  { %11086 = vmatpush3.bf16.msra.mxu1 %v12577_v1  ;;  %11065 = vmatprep.subr.bf16.mxu0 %v12578_v5  ;;  %v12628_v1 = vld [vmem:[%s16771_s3 + $0x16c] ss:$12 sps:$4 sm:$0xff]  }
 0x3d1   :  { %11087 = vmatprep.subr.bf16.mxu1 %v12579_v35  ;;  %v12631_v5 = vld [vmem:[%s16771_s3 + $0x22c] ss:$12 sps:$4 sm:$0xff]  }
 0x3d3   :  { %11066 = vmatpush3.bf16.msra.mxu0 %v12580_v45  ;;  %v12626_v45 = vld [vmem:[%s16771_s3 + $0x168] ss:$12 sps:$4 sm:$0xff]  }
 0x3d4   :  { %11088 = vmatpush3.bf16.msra.mxu1 %v12581_v31  ;;  %11067 = vmatprep.subr.bf16.mxu0 %v12582_v2  ;;  %v12629_v31 = vld [vmem:[%s16771_s3 + $0x228] ss:$12 sps:$4 sm:$0xff]   ;;  %v1427_v2 = vsub.s32 4, %v13005_v43 }
 0x3d5   :  { %11089 = vmatprep.subr.bf16.mxu1 %v12583_v36  ;;  %v12634_v36 = vld [vmem:[%s16771_s3 + $0x154] ss:$12 sps:$4 sm:$0xff]  }
 0x3d6   :  { %v12801_v43 = vld [vmem:[%s16775_s7 + $0x30] sm:$0xff]  }
 0x3d7   :  { %11068 = vmatpush3.bf16.msra.mxu0 %v12584_v37  ;;  %v12637_v37 = vld [vmem:[%s16771_s3 + $0x214] ss:$12 sps:$4 sm:$0xff]  }
 0x3d8   :  { %11090 = vmatpush3.bf16.msra.mxu1 %v12585_v38  ;;  %11069 = vmatprep.subr.bf16.mxu0 %v12586_v15 }
 0x3d9   :  { %11091 = vmatprep.subr.bf16.mxu1 %v12587_v42 }
 0x3db   :  { %11070 = vmatpush3.bf16.msra.mxu0 %v12588_v39  ;;  %v12810_v39 = vld [vmem:[%s16770_s2] sm:$0x1f] }
 0x3dc   :  { %11092 = vmatpush3.bf16.msra.mxu1 %v12589_v22  ;;  %11071 = vmatprep.subr.bf16.mxu0 %v12590_v46  ;;  %v1428_v22 = vrot.slane %v12810_v39, %v1427_v2  ;;  %v12632_v46 = vld [vmem:[%s16771_s3 + $0x150] ss:$12 sps:$4 sm:$0xff]  }
 0x3dd   :  { %11093 = vmatprep.subr.bf16.mxu1 %v12591_v47  ;;  %v12635_v47 = vld [vmem:[%s16771_s3 + $0x210] ss:$12 sps:$4 sm:$0xff]  }
 0x3df   :  { %11072 = vmatpush3.bf16.msra.mxu0 %v12592_v7 }
 0x3e0   :  { %11094 = vmatpush3.bf16.msra.mxu1 %v12593_v17  ;;  %11159 = vmatprep.subr.bf16.mxu0 %v12835_v30  ;;  %v12640_v17 = vld [vmem:[%s16771_s3 + $0x13c] ss:$12 sps:$4 sm:$0xff]  }
 0x3e1   :  { %8971 = vmatprep.subr.bf16.mxu1 %v12596_v26  ;;  %v12643_v26 = vld [vmem:[%s16771_s3 + $0x1fc] ss:$12 sps:$4 sm:$0xff]  }
 0x3e2   :  { %v7652_v14 = vpop.f32.mrf.mxu0  ;;  %8133 = vmatmul.mubr.bf16.vlgmr.msra.gmra.mxu0 %v14232_v63  ;;  %v12604_v63 = vld [vmem:[%s16771_s3 + $0x7c] ss:$12 sps:$4 sm:$0xff]  }
 0x3e3   :  { %8173 = vmatmul.mubr.bf16.vlgmr.msra.gmra.mxu1 %v14236_v0  ;;  %v7693_v32 = vpop.f32.mrf.mxu1  ;;  %v7653_v9 = vadd.f32 %v7652_v14, %v16123_v41  ;;  %11160 = vmatpush3.bf16.msra.mxu0 %v12597_v28  ;;  %v12610_v41 = vld [vmem:[%s16771_s3 + $0x48] ss:$12 sps:$4 sm:$0xff]  }
 0x3e4   :  { %8972 = vmatpush1.bf16.msra.mxu1 %v12594_v6  ;;  %9003 = vmatprep.mubr.bf16.mxu1 %v16221_v16  ;;  %v7654_v11 = vpop.f32.mrf.mxu0 }
 0x3e5   :  { %v7695_v18 = vpop.f32.mrf.mxu1  ;;  %11161 = vmatprep.subr.bf16.mxu0 %v12835_v30  ;;  %v16237_v0 = vadd.f32 %v7693_v32, %v7653_v9  ;;  %8973 = vmatprep.subr.bf16.mxu1 %v12600_v40  ;;  %v7655_v55 = vadd.f32 %v7654_v11, %v7614_v59  ;;  %v12638_v32 = vld [vmem:[%s16771_s3 + $0x138] ss:$12 sps:$4 sm:$0xff]  }
 0x3e6   :  { %11175 = vmatprep.mubr.msk.bf16.mxu0 %vm12836_vm0, %v12835_v30  ;;  %v7656_v56 = vpop.f32.mrf.mxu0  ;;  %v12641_v9 = vld [vmem:[%s16771_s3 + $0x1f8] ss:$12 sps:$4 sm:$0xff]  }
 0x3e7   :  { %v7697_v62 = vpop.f32.mrf.mxu1  ;;  %11162 = vmatpush3.bf16.msra.mxu0 %v12601_v34  ;;  %v7696_v23 = vadd.f32 %v7695_v18, %v7655_v55  ;;  %v12646_v34 = vld [vmem:[%s16771_s3 + $0x124] ss:$12 sps:$4 sm:$0xff]   ;;  %v12644_v56 = vld [vmem:[%s16771_s3 + $0x120] ss:$12 sps:$4 sm:$0xff]  }
 0x3e8   :  { %8974 = vmatpush1.bf16.msra.mxu1 %v12598_v44  ;;  %v7657_v52 = vpop.f32.mrf.mxu0  ;;  %11163 = vmatprep.subr.bf16.mxu0 %v12835_v30  ;;  %v12649_v11 = vld [vmem:[%s16771_s3 + $0x1e4] ss:$12 sps:$4 sm:$0xff]   ;;  %v12647_v62 = vld [vmem:[%s16771_s3 + $0x1e0] ss:$12 sps:$4 sm:$0xff]  }
 0x3e9   :  { %8975 = vmatprep.subr.bf16.mxu1 %v12604_v63  ;;  %v7698_v27 = vpop.f32.mrf.mxu1  ;;  %v8223_v35 = vmax.f32 %v7696_v23, 0.0  ;;  %v12650_v52 = vld [vmem:[%s16771_s3 + $0x108] ss:$12 sps:$4 sm:$0xff]   ;;  %v12673_v59 = vld [vmem:[%s16771_s3 + $0x184] ss:$12 sps:$4 sm:$0xff]  }
 0x3ea   :  { %v12658_v27 = vld [vmem:[%s16771_s3 + $0xf4] ss:$12 sps:$4 sm:$0xff]  }
 0x3eb   :  { %11164 = vmatpush3.bf16.msra.mxu0 %v12605_v48  ;;  %v16319_v38 = vpack.c.bf16 %v8223_v35, %v8223_v35  ;;  %v12655_v48 = vld [vmem:[%s16771_s3 + $0x1cc] ss:$12 sps:$4 sm:$0xff]  }
 0x3ec   :  { %8976 = vmatpush1.bf16.msra.mxu1 %v12602_v3  ;;  %11165 = vmatprep.subr.bf16.mxu0 %v12835_v30  ;;  %v12652_v3 = vld [vmem:[%s16771_s3 + $0x10c] ss:$12 sps:$4 sm:$0xff]  }
 0x3ed   :  { %8977 = vmatprep.subr.bf16.mxu1 %v12608_v21  ;;  %v12653_v21 = vld [vmem:[%s16771_s3 + $0x1c8] ss:$12 sps:$4 sm:$0xff]   ;;  %v12671_v55 = vld [vmem:[%s16771_s3 + $0x180] ss:$12 sps:$4 sm:$0xff]  }
 0x3ef   :  { %11166 = vmatpush3.bf16.msra.mxu0 %v12609_v57  ;;  %v12656_v57 = vld [vmem:[%s16771_s3 + $0xf0] ss:$12 sps:$4 sm:$0xff]  }
 0x3f0   :  { %8978 = vmatpush1.bf16.msra.mxu1 %v12606_v53  ;;  %11167 = vmatprep.subr.bf16.mxu0 %v12835_v30  ;;  %v12661_v53 = vld [vmem:[%s16771_s3 + $0x1b4] ss:$12 sps:$4 sm:$0xff]  }
 0x3f1   :  { %8979 = vmatprep.subr.bf16.mxu1 %v12612_v19  ;;  %v12659_v19 = vld [vmem:[%s16771_s3 + $0x1b0] ss:$12 sps:$4 sm:$0xff]  }
 0x3f3   :  { %11168 = vmatpush3.bf16.msra.mxu0 %v12613_v12  ;;  %v12667_v12 = vld [vmem:[%s16771_s3 + $0x19c] ss:$12 sps:$4 sm:$0xff]  }
 0x3f4   :  { %8980 = vmatpush1.bf16.msra.mxu1 %v12610_v41  ;;  %11169 = vmatprep.subr.bf16.mxu0 %v12835_v30  ;;  %v12664_v41 = vld [vmem:[%s16771_s3 + $0xdc] ss:$12 sps:$4 sm:$0xff]  }
 0x3f5   :  { %8981 = vmatprep.subr.bf16.mxu1 %v12616_v58  ;;  %v12662_v58 = vld [vmem:[%s16771_s3 + $0xd8] ss:$12 sps:$4 sm:$0xff]  }
 0x3f7   :  { %11170 = vmatpush3.bf16.msra.mxu0 %v12617_v54  ;;  %v12670_v54 = vld [vmem:[%s16771_s3 + $0xc4] ss:$12 sps:$4 sm:$0xff]  }
 0x3f8   :  { %8982 = vmatpush1.bf16.msra.mxu1 %v12614_v51  ;;  %11171 = vmatprep.subr.bf16.mxu0 %v12835_v30  ;;  %v12665_v51 = vld [vmem:[%s16771_s3 + $0x198] ss:$12 sps:$4 sm:$0xff]  }
 0x3f9   :  { %8983 = vmatprep.subr.bf16.mxu1 %v12620_v50  ;;  %v12668_v50 = vld [vmem:[%s16771_s3 + $0xc0] ss:$12 sps:$4 sm:$0xff]  }
 0x3fb   :  { %11172 = vmatpush3.bf16.msra.mxu0 %v12621_v60  ;;  %v12676_v60 = vld [vmem:[%s16771_s3 + $0x2ec] ss:$12 sps:$4 sm:$0xff]  }
 0x3fc   :  { %8984 = vmatpush1.bf16.msra.mxu1 %v12618_v10  ;;  %11173 = vmatprep.subr.bf16.mxu0 %v12835_v30  ;;  %v8220_v10 = vmax.f32 %v14969_v8, 0.0 }
 0x3fd   :  { %8985 = vmatprep.subr.bf16.mxu1 %v12624_v24  ;;  %v12674_v24 = vld [vmem:[%s16771_s3 + $0x2e8] ss:$12 sps:$4 sm:$0xff]  }
 0x3fe   :  { %v16411_v23 = vpack.c.bf16 %v8220_v10, %v8220_v10  ;;  %v12704_v10 = vld [vmem:[%s16771_s3 + $0x2a8] ss:$12 sps:$4 sm:$0xff]  }
 0x3ff   :  { %11174 = vmatpush3.bf16.msra.mxu0 %v12625_v25 }
 0x400   :  { %8986 = vmatpush1.bf16.msra.mxu1 %v12622_v61  ;;  %9012 = vmatprep.subr.bf16.mxu0 %v12631_v5  ;;  %v12679_v61 = vld [vmem:[%s16771_s3 + $0x2d4] ss:$12 sps:$4 sm:$0xff]  }
 0x401   :  { %8987 = vmatprep.subr.bf16.mxu1 %v12628_v1  ;;  %v12677_v1 = vld [vmem:[%s16771_s3 + $0x2d0] ss:$12 sps:$4 sm:$0xff]  }
 0x402   :  { %v10853_v15 = vpop.f32.mrf.mxu0  ;;  %11176 = vmatmul.mubr.bf16.vlgmr.msra.gmra.mxu0 %v14347_v13 }
 0x403   :  { %v10875_v42 = vpop.f32.mrf.mxu1  ;;  %9013 = vmatpush1.bf16.msra.mxu0 %v12629_v31  ;;  %9044 = vmatprep.mubr.bf16.mxu0 %v16319_v38 }
 0x404   :  { %8988 = vmatpush2.bf16.msra.mxu1 %v12626_v45  ;;  %v10854_v7 = vpop.f32.mrf.mxu0  ;;  %9014 = vmatprep.subr.bf16.mxu0 %v12637_v37  ;;  %v12682_v45 = vld [vmem:[%s16771_s3 + $0x2bc] ss:$12 sps:$4 sm:$0xff]  }
 0x405   :  { %v10876_v13 = vpop.f32.mrf.mxu1  ;;  %8989 = vmatprep.subr.bf16.mxu1 %v12634_v36  ;;  %v10855_v4 = vadd.f32 %v10854_v7, %v10853_v15  ;;  %v12716_v7 = vld [vmem:[%s16771_s3 + $0x34c] ss:$12 sps:$4 sm:$0xff]  }
 0x406   :  { %v10877_v6 = vadd.f32 %v10876_v13, %v10875_v42  ;;  %v10856_v28 = vpop.f32.mrf.mxu0  ;;  %v12680_v42 = vld [vmem:[%s16771_s3 + $0x2b8] ss:$12 sps:$4 sm:$0xff]  }
 0x407   :  { %v10878_v40 = vpop.f32.mrf.mxu1  ;;  %v7735_v14 = vadd.f32 %v10855_v4, %v1428_v22  ;;  %9015 = vmatpush1.bf16.msra.mxu0 %v12635_v47  ;;  %v12685_v22 = vld [vmem:[%s16771_s3 + $0x2a4] ss:$12 sps:$4 sm:$0xff]   ;;  %v12714_v47 = vld [vmem:[%s16771_s3 + $0x348] ss:$12 sps:$4 sm:$0xff]  }
 0x408   :  { %8990 = vmatpush2.bf16.msra.mxu1 %v12632_v46  ;;  %v10857_v44 = vpop.f32.mrf.mxu0  ;;  %9016 = vmatprep.subr.bf16.mxu0 %v12643_v26  ;;  %v12683_v26 = vld [vmem:[%s16771_s3 + $0x2a0] ss:$12 sps:$4 sm:$0xff]   ;;  %v12717_v4 = vld [vmem:[%s16771_s3 + $0x330] ss:$12 sps:$4 sm:$0xff]   ;;  %v12686_v40 = vld [vmem:[%s16771_s3 + $0x288] ss:$12 sps:$4 sm:$0xff]  }
 0x409   :  { %8991 = vmatprep.subr.bf16.mxu1 %v12640_v17  ;;  %v10879_v18 = vpop.f32.mrf.mxu1  ;;  %v7775_v63 = vadd.f32 %v10877_v6, %v7735_v14  ;;  %v12719_v17 = vld [vmem:[%s16771_s3 + $0x334] ss:$12 sps:$4 sm:$0xff]   ;;  %v12688_v6 = vld [vmem:[%s16771_s3 + $0x28c] ss:$12 sps:$4 sm:$0xff]   ;;  %v12722_v28 = vld [vmem:[%s16771_s3 + $0x31c] ss:$12 sps:$4 sm:$0xff]  }
 0x40a   :  { %v12720_v14 = vld [vmem:[%s16771_s3 + $0x318] ss:$12 sps:$4 sm:$0xff]   ;;  %v12694_v44 = vld [vmem:[%s16771_s3 + $0x25c] ss:$12 sps:$4 sm:$0xff]   ;;  %v12695_v18 = vld [vmem:[%s16771_s3 + $0x240] ss:$12 sps:$4 sm:$0xff]  }
 0x40b   :  { %9017 = vmatpush1.bf16.msra.mxu0 %v12641_v9  ;;  %v12689_v9 = vld [vmem:[%s16771_s3 + $0x270] ss:$12 sps:$4 sm:$0xff]  }
 0x40c   :  { %8992 = vmatpush2.bf16.msra.mxu1 %v12638_v32  ;;  %9018 = vmatprep.subr.bf16.mxu0 %v12649_v11  ;;  %v12691_v32 = vld [vmem:[%s16771_s3 + $0x274] ss:$12 sps:$4 sm:$0xff]   ;;  %v12697_v11 = vld [vmem:[%s16771_s3 + $0x244] ss:$12 sps:$4 sm:$0xff]  }
 0x40d   :  { %8993 = vmatprep.subr.bf16.mxu1 %v12646_v34  ;;  %v12692_v34 = vld [vmem:[%s16771_s3 + $0x258] ss:$12 sps:$4 sm:$0xff]  }
 0x40f   :  { %9019 = vmatpush1.bf16.msra.mxu0 %v12647_v62  ;;  %v12699_v62 = vld [vmem:[%s16771_s3 + $0x230] ss:$12 sps:$4 sm:$0xff]  }
 0x410   :  { %8994 = vmatpush2.bf16.msra.mxu1 %v12644_v56  ;;  %9020 = vmatprep.subr.bf16.mxu0 %v12655_v48  ;;  %v12698_v56 = vld [vmem:[%s16771_s3 + $0x2f0] ss:$12 sps:$4 sm:$0xff]   ;;  %v12700_v48 = vld [vmem:[%s16771_s3 + $0x2d8] ss:$12 sps:$4 sm:$0xff]  }
 0x411   :  { %8995 = vmatprep.subr.bf16.mxu1 %v12652_v3 }
 0x413   :  { %9021 = vmatpush1.bf16.msra.mxu0 %v12653_v21 }
 0x414   :  { %8996 = vmatpush2.bf16.msra.mxu1 %v12650_v52  ;;  %9022 = vmatprep.subr.bf16.mxu0 %v12661_v53 }
 0x415   :  { %8997 = vmatprep.subr.bf16.mxu1 %v12658_v27  ;;  %v12725_v27 = vld [vmem:[%s16771_s3 + $0x304] ss:$12 sps:$4 sm:$0xff]  }
 0x417   :  { %9023 = vmatpush1.bf16.msra.mxu0 %v12659_v19  ;;  %v12702_v19 = vld [vmem:[%s16771_s3 + $0x2c0] ss:$12 sps:$4 sm:$0xff]  }
 0x418   :  { %8998 = vmatpush2.bf16.msra.mxu1 %v12656_v57  ;;  %9024 = vmatprep.subr.bf16.mxu0 %v12667_v12 }
 0x419   :  { %8999 = vmatprep.subr.bf16.mxu1 %v12664_v41  ;;  %v12723_v41 = vld [vmem:[%s16771_s3 + $0x300] ss:$12 sps:$4 sm:$0xff]  }
 0x41b   :  { %9025 = vmatpush1.bf16.msra.mxu0 %v12665_v51 }
 0x41c   :  { %9000 = vmatpush2.bf16.msra.mxu1 %v12662_v58  ;;  %9026 = vmatprep.subr.bf16.mxu0 %v12673_v59  ;;  %v12703_v59 = vld [vmem:[%s16771_s3 + $0x200] ss:$12 sps:$4 sm:$0xff]  }
 0x41d   :  { %9001 = vmatprep.subr.bf16.mxu1 %v12670_v54 }
 0x41f   :  { %9027 = vmatpush1.bf16.msra.mxu0 %v12671_v55 }
 0x420   :  { %9002 = vmatpush2.bf16.msra.mxu1 %v12668_v50  ;;  %9028 = vmatprep.subr.bf16.mxu0 %v12676_v60  ;;  %v12726_v50 = vld [vmem:[%s16771_s3 + $0x170] ss:$12 sps:$4 sm:$0xff]  }
 0x421   :  { %9061 = vmatprep.subr.bf16.mxu1 %v12716_v7 }
 0x422   :  { %v10897_v8 = vpop.f32.mrf.mxu0 }
 0x423   :  { %9004 = vmatmul.mubr.bf16.vlgmr.msra.gmra.mxu1 %v16411_v23  ;;  %v10919_v25 = vpop.f32.mrf.mxu1  ;;  %9029 = vmatpush2.bf16.msra.mxu0 %v12674_v24 }
 0x424   :  { %9085 = vmatprep.mubr.bf16.mxu1 %v12834_v20  ;;  %v10898_v5 = vpop.f32.mrf.mxu0  ;;  %9030 = vmatprep.subr.bf16.mxu0 %v12679_v61  ;;  %v12705_v61 = vld [vmem:[%s16771_s3 + $0x1e8] ss:$12 sps:$4 sm:$0xff]  }
 0x425   :  { %v10920_v35 = vpop.f32.mrf.mxu1  ;;  %v10899_v31 = vadd.f32 %v10898_v5, %v10897_v8  ;;  %9062 = vmatpush1.bf16.msra.mxu1 %v12714_v47  ;;  %v12706_v8 = vld [vmem:[%s16771_s3 + $0x290] ss:$12 sps:$4 sm:$0xff]   ;;  %v12709_v5 = vld [vmem:[%s16771_s3 + $0x1b8] ss:$12 sps:$4 sm:$0xff]  }
 0x426   :  { %v10921_v2 = vadd.f32 %v10920_v35, %v10919_v25  ;;  %v10900_v36 = vpop.f32.mrf.mxu0  ;;  %9063 = vmatprep.subr.bf16.mxu1 %v12719_v17  ;;  %v12707_v25 = vld [vmem:[%s16771_s3 + $0x1d0] ss:$12 sps:$4 sm:$0xff]   ;;  %v12710_v35 = vld [vmem:[%s16771_s3 + $0x260] ss:$12 sps:$4 sm:$0xff]  }
 0x427   :  { %v10922_v37 = vpop.f32.mrf.mxu1  ;;  %v7815_v15 = vadd.f32 %v10899_v31, %v7775_v63  ;;  %9031 = vmatpush2.bf16.msra.mxu0 %v12677_v1  ;;  %v8222_v63 = vmax.f32 %v16237_v0, 0.0  ;;  %v12701_v0 = vld [vmem:[%s16771_s3 + $0x218] ss:$12 sps:$4 sm:$0xff]   ;;  %v12712_v31 = vld [vmem:[%s16771_s3 + $0x248] ss:$12 sps:$4 sm:$0xff]  }
 0x428   :  { %v10901_v39 = vpop.f32.mrf.mxu0  ;;  %9032 = vmatprep.subr.bf16.mxu0 %v12682_v45  ;;  %v12708_v1 = vld [vmem:[%s16771_s3 + $0x278] ss:$12 sps:$4 sm:$0xff]   ;;  %v12711_v45 = vld [vmem:[%s16771_s3 + $0x1a0] ss:$12 sps:$4 sm:$0xff]  }
 0x429   :  { %v10923_v46 = vpop.f32.mrf.mxu1  ;;  %v7855_v13 = vadd.f32 %v10921_v2, %v7815_v15  ;;  %9064 = vmatpush1.bf16.msra.mxu1 %v12717_v4  ;;  %v8227_v3 = vpack.c.bf16 %v8222_v63, %v8222_v63  ;;  %v12713_v2 = vld [vmem:[%s16771_s3 + $0x188] ss:$12 sps:$4 sm:$0xff]  }
 0x42a   :  { %9065 = vmatprep.subr.bf16.mxu1 %v12722_v28 }
 0x42b   :  { %9033 = vmatpush2.bf16.msra.mxu0 %v12680_v42 }
 0x42c   :  { %9034 = vmatprep.subr.bf16.mxu0 %v12685_v22 }
 0x42d   :  { %9066 = vmatpush1.bf16.msra.mxu1 %v12720_v14 }
 0x42e   :  { %9067 = vmatprep.subr.bf16.mxu1 %v12725_v27  ;;  %v12749_v27 = vld [vmem:[%s16773_s5 + $0x60] ss:$8 sps:$4 sm:$0xff]  }
 0x42f   :  { %9035 = vmatpush2.bf16.msra.mxu0 %v12683_v26 }
 0x430   :  { %9036 = vmatprep.subr.bf16.mxu0 %v12688_v6 }
 0x431   :  { %9068 = vmatpush1.bf16.msra.mxu1 %v12723_v41 }
 0x432   :  { %11110 = vmatprep.subr.bf16.mxu1 %v12726_v50 }
 0x433   :  { %9037 = vmatpush2.bf16.msra.mxu0 %v12686_v40 }
 0x434   :  { %9038 = vmatprep.subr.bf16.mxu0 %v12691_v32 }
 0x437   :  { %9039 = vmatpush2.bf16.msra.mxu0 %v12689_v9 }
 0x438   :  { %9040 = vmatprep.subr.bf16.mxu0 %v12694_v44 }
 0x43b   :  { %9041 = vmatpush2.bf16.msra.mxu0 %v12692_v34 }
 0x43c   :  { %9042 = vmatprep.subr.bf16.mxu0 %v12697_v11 }
 0x43f   :  { %9043 = vmatpush2.bf16.msra.mxu0 %v12695_v18 }
 0x440   :  { %11132 = vmatprep.subr.bf16.mxu0 %v12698_v56 }
 0x442   :  { %v10941_v52 = vpop.f32.mrf.mxu0  ;;  %9045 = vmatmul.mubr.bf16.vlgmr.msra.gmra.mxu0 %v8227_v3 }
 0x443   :  { %v10963_v21 = vpop.f32.mrf.mxu1  ;;  %11133 = vmatpush3.bf16.msra.mxu0 %v12699_v62  ;;  %9166 = vmatprep.mubr.bf16.mxu0 %v16319_v38 }
 0x444   :  { %v10942_v53 = vpop.f32.mrf.mxu0  ;;  %11134 = vmatprep.subr.bf16.mxu0 %v12700_v48 }
 0x445   :  { %v10964_v57 = vpop.f32.mrf.mxu1  ;;  %v10943_v38 = vadd.f32 %v10942_v53, %v10941_v52  ;;  %v12746_v52 = vld [vmem:[%s16773_s5 + $0x70] ss:$8 sps:$4 sm:$0xff]   ;;  %v12754_v53 = vld [vmem:[%s16773_s5 + $0x54] ss:$8 sps:$4 sm:$0xff]  }
 0x446   :  { %v10965_v12 = vadd.f32 %v10964_v57, %v10963_v21  ;;  %v10944_v58 = vpop.f32.mrf.mxu0  ;;  %v12748_v21 = vld [vmem:[%s16773_s5 + $0x74] ss:$8 sps:$4 sm:$0xff]   ;;  %v12752_v57 = vld [vmem:[%s16773_s5 + $0x50] ss:$8 sps:$4 sm:$0xff]  }
 0x447   :  { %v10966_v51 = vpop.f32.mrf.mxu1  ;;  %v7895_v54 = vadd.f32 %v10943_v38, %v7855_v13  ;;  %11135 = vmatpush3.bf16.msra.mxu0 %v12701_v0  ;;  %v12751_v0 = vld [vmem:[%s16773_s5 + $0x64] ss:$8 sps:$4 sm:$0xff]   ;;  %v12755_v38 = vld [vmem:[%s16773_s5 + $0x40] ss:$8 sps:$4 sm:$0xff]  }
 0x448   :  { %v10945_v55 = vpop.f32.mrf.mxu0  ;;  %11136 = vmatprep.subr.bf16.mxu0 %v12702_v19  ;;  %v12757_v19 = vld [vmem:[%s16773_s5 + $0x44] ss:$8 sps:$4 sm:$0xff]  }
 0x449   :  { %v10967_v60 = vpop.f32.mrf.mxu1  ;;  %v7935_v24 = vadd.f32 %v10965_v12, %v7895_v54  ;;  %v12760_v12 = vld [vmem:[%s16773_s5 + $0x34] ss:$8 sps:$4 sm:$0xff]   ;;  %v12758_v54 = vld [vmem:[%s16773_s5 + $0x30] ss:$8 sps:$4 sm:$0xff]  }
 0x44a   :  { %v12766_v60 = vld [vmem:[%s16773_s5 + $0x14] ss:$8 sps:$4 sm:$0xff]  }
 0x44b   :  { %11137 = vmatpush3.bf16.msra.mxu0 %v12703_v59  ;;  %v12763_v59 = vld [vmem:[%s16773_s5 + $0x24] ss:$8 sps:$4 sm:$0xff]  }
 0x44c   :  { %11138 = vmatprep.subr.bf16.mxu0 %v12704_v10  ;;  %v12761_v10 = vld [vmem:[%s16773_s5 + $0x20] ss:$8 sps:$4 sm:$0xff]  }
 0x44f   :  { %11139 = vmatpush3.bf16.msra.mxu0 %v12705_v61 }
 0x450   :  { %11140 = vmatprep.subr.bf16.mxu0 %v12706_v8  ;;  %v12764_v8 = vld [vmem:[%s16773_s5 + $0x10] ss:$8 sps:$4 sm:$0xff]  }
 0x453   :  { %11141 = vmatpush3.bf16.msra.mxu0 %v12707_v25  ;;  %v12769_v25 = vld [vmem:[%s16773_s5 + $0x4] ss:$8 sps:$4 sm:$0xff]  }
 0x454   :  { %11142 = vmatprep.subr.bf16.mxu0 %v12708_v1 }
 0x457   :  { %11143 = vmatpush3.bf16.msra.mxu0 %v12709_v5 }
 0x458   :  { %11144 = vmatprep.subr.bf16.mxu0 %v12710_v35 }
 0x45b   :  { %11145 = vmatpush3.bf16.msra.mxu0 %v12711_v45  ;;  %v12767_v45 = vld [vmem:[%s16773_s5] ss:$8 sps:$4 sm:$0xff]  }
 0x45c   :  { %11146 = vmatprep.subr.bf16.mxu0 %v12712_v31 }
 0x45f   :  { %11147 = vmatpush3.bf16.msra.mxu0 %v12713_v2  ;;  %v12772_v2 = vld [vmem:[%s16773_s5 + $0xf4] ss:$8 sps:$4 sm:$0xff]  }
 0x460   :  { %9452 = vmatprep.subr.bf16.mxu0 %v12748_v21  ;;  %v12741_v21 = vld [vmem:[%s16771_s3 + $0x8] ss:$12 sps:$4 sm:$0xff]  }
 0x462   :  { %v10985_v36 = vpop.f32.mrf.mxu0  ;;  %9167 = vmatmul.mubr.bf16.vlgmr.msra.gmra.mxu0 %v8227_v3 }
 0x463   :  { %v11007_v37 = vpop.f32.mrf.mxu1  ;;  %9453 = vmatpush1.bf16.msra.mxu0 %v12746_v52 }
 0x464   :  { %v10986_v15 = vpop.f32.mrf.mxu0  ;;  %9454 = vmatprep.subr.bf16.mxu0 %v12751_v0 }
 0x465   :  { %v11008_v42 = vpop.f32.mrf.mxu1  ;;  %v10987_v39 = vadd.f32 %v10986_v15, %v10985_v36  ;;  %v12727_v15 = vld [vmem:[%s16771_s3 + $0xb0] ss:$12 sps:$4 sm:$0xff]  }
 0x466   :  { %v11009_v22 = vadd.f32 %v11008_v42, %v11007_v37  ;;  %v10988_v46 = vpop.f32.mrf.mxu0 }
 0x467   :  { %v11010_v47 = vpop.f32.mrf.mxu1  ;;  %v7975_v7 = vadd.f32 %v10987_v39, %v7935_v24  ;;  %9455 = vmatpush1.bf16.msra.mxu0 %v12749_v27  ;;  %v12728_v39 = vld [vmem:[%s16771_s3 + $0x158] ss:$12 sps:$4 sm:$0xff]  }
 0x468   :  { %v10989_v13 = vpop.f32.mrf.mxu0  ;;  %9456 = vmatprep.subr.bf16.mxu0 %v12754_v53  ;;  %v12775_v47 = vld [vmem:[%s16773_s5 + $0xe4] ss:$8 sps:$4 sm:$0xff]   ;;  %v12742_v53 = vld [vmem:[%s16771_s3 + $0x350] ss:$12 sps:$4 sm:$0xff]  }
 0x469   :  { %v11011_v17 = vpop.f32.mrf.mxu1  ;;  %v8015_v26 = vadd.f32 %v11009_v22, %v7975_v7  ;;  %v12770_v22 = vld [vmem:[%s16773_s5 + $0xf0] ss:$8 sps:$4 sm:$0xff]   ;;  %v12730_v13 = vld [vmem:[%s16771_s3 + $0x140] ss:$12 sps:$4 sm:$0xff]  }
 0x46a   :  { %v12729_v7 = vld [vmem:[%s16771_s3 + $0x98] ss:$12 sps:$4 sm:$0xff]   ;;  %v12773_v17 = vld [vmem:[%s16773_s5 + $0xe0] ss:$8 sps:$4 sm:$0xff]  }
 0x46b   :  { %9457 = vmatpush1.bf16.msra.mxu0 %v12752_v57 }
 0x46c   :  { %9458 = vmatprep.subr.bf16.mxu0 %v12757_v19  ;;  %v12743_v19 = vld [vmem:[%s16771_s3 + $0x338] ss:$12 sps:$4 sm:$0xff]  }
 0x46f   :  { %9459 = vmatpush1.bf16.msra.mxu0 %v12755_v38  ;;  %v8374_v38 = vld [vmem:[%s16772_s4] sm:$0x7] }
 0x470   :  { %9460 = vmatprep.subr.bf16.mxu0 %v12760_v12  ;;  %v8379_v12 = vrot.slane %v8374_v38, %v13768_v29 }
 0x473   :  { %9461 = vmatpush1.bf16.msra.mxu0 %v12758_v54 }
 0x474   :  { %9462 = vmatprep.subr.bf16.mxu0 %v12763_v59 }
 0x477   :  { %9463 = vmatpush1.bf16.msra.mxu0 %v12761_v10 }
 0x478   :  { %9464 = vmatprep.subr.bf16.mxu0 %v12766_v60 }
 0x47b   :  { %9465 = vmatpush1.bf16.msra.mxu0 %v12764_v8  ;;  %v12793_v8 = vld [vmem:[%s16773_s5 + $0x84] ss:$8 sps:$4 sm:$0xff]  }
 0x47c   :  { %9466 = vmatprep.subr.bf16.mxu0 %v12769_v25  ;;  %v12791_v25 = vld [vmem:[%s16773_s5 + $0x80] ss:$8 sps:$4 sm:$0xff]  }
 0x47f   :  { %9467 = vmatpush1.bf16.msra.mxu0 %v12767_v45 }
 0x480   :  { %9468 = vmatprep.subr.bf16.mxu0 %v12772_v2  ;;  %v12794_v2 = vld [vmem:[%s16773_s5 + $0x110] ss:$8 sps:$4 sm:$0xff]  }
 0x482   :  { %v11029_v4 = vpop.f32.mrf.mxu0 }
 0x483   :  { %v11051_v6 = vpop.f32.mrf.mxu1  ;;  %9469 = vmatpush2.bf16.msra.mxu0 %v12770_v22 }
 0x484   :  { %v11030_v28 = vpop.f32.mrf.mxu0  ;;  %9470 = vmatprep.subr.bf16.mxu0 %v12775_v47 }
 0x485   :  { %v11052_v40 = vpop.f32.mrf.mxu1  ;;  %v11031_v41 = vadd.f32 %v11030_v28, %v11029_v4  ;;  %v12732_v4 = vld [vmem:[%s16771_s3 + $0x128] ss:$12 sps:$4 sm:$0xff]   ;;  %v12781_v28 = vld [vmem:[%s16773_s5 + $0xc4] ss:$8 sps:$4 sm:$0xff]  }
 0x486   :  { %v11032_v14 = vpop.f32.mrf.mxu0  ;;  %v11053_v51 = vadd.f32 %v11052_v40, %v11051_v6  ;;  %v12776_v6 = vld [vmem:[%s16773_s5 + $0xd0] ss:$8 sps:$4 sm:$0xff]   ;;  %v12733_v40 = vld [vmem:[%s16771_s3 + $0x68] ss:$12 sps:$4 sm:$0xff]  }
 0x487   :  { %v11054_v32 = vpop.f32.mrf.mxu1  ;;  %v8055_v58 = vadd.f32 %v11031_v41, %v8015_v26  ;;  %v12778_v26 = vld [vmem:[%s16773_s5 + $0xd4] ss:$8 sps:$4 sm:$0xff]   ;;  %9471 = vmatpush2.bf16.msra.mxu0 %v12773_v17  ;;  %v12744_v41 = vld [vmem:[%s16771_s3 + $0x320] ss:$12 sps:$4 sm:$0xff]  }
 0x488   :  { %v11033_v9 = vpop.f32.mrf.mxu0  ;;  %9472 = vmatprep.subr.bf16.mxu0 %v12778_v26  ;;  %v12734_v14 = vld [vmem:[%s16771_s3 + $0x110] ss:$12 sps:$4 sm:$0xff]   ;;  %v12779_v32 = vld [vmem:[%s16773_s5 + $0xc0] ss:$8 sps:$4 sm:$0xff]  }
 0x489   :  { %v11055_v44 = vpop.f32.mrf.mxu1  ;;  %v8095_v55 = vadd.f32 %v11053_v51, %v8055_v58  ;;  %v12784_v9 = vld [vmem:[%s16773_s5 + $0xb4] ss:$8 sps:$4 sm:$0xff]   ;;  %v8383_v58 = vrot.slane %v8374_v38, %v13777_v33 }
 0x48a   :  { %v12735_v44 = vld [vmem:[%s16771_s3 + $0x50] ss:$12 sps:$4 sm:$0xff]  }
 0x48b   :  { %9473 = vmatpush2.bf16.msra.mxu0 %v12776_v6 }
 0x48c   :  { %9474 = vmatprep.subr.bf16.mxu0 %v12781_v28 }
 0x48f   :  { %9475 = vmatpush2.bf16.msra.mxu0 %v12779_v32 }
 0x490   :  { %9476 = vmatprep.subr.bf16.mxu0 %v12784_v9 }
 0x4a2   :  { %v11073_v34 = vpop.f32.mrf.mxu0 }
 0x4a3   :  { %v11095_v11 = vpop.f32.mrf.mxu1 }
 0x4a4   :  { %v11074_v18 = vpop.f32.mrf.mxu0 }
 0x4a5   :  { %v11096_v63 = vpop.f32.mrf.mxu1  ;;  %v11075_v50 = vadd.f32 %v11074_v18, %v11073_v34  ;;  %v12736_v34 = vld [vmem:[%s16771_s3 + $0xf8] ss:$12 sps:$4 sm:$0xff]  }
 0x4a6   :  { %v11076_v56 = vpop.f32.mrf.mxu0  ;;  %v11097_v61 = vadd.f32 %v11096_v63, %v11095_v11  ;;  %v12782_v11 = vld [vmem:[%s16773_s5 + $0xb0] ss:$8 sps:$4 sm:$0xff]   ;;  %v12787_v18 = vld [vmem:[%s16773_s5 + $0xa4] ss:$8 sps:$4 sm:$0xff]  }
 0x4a7   :  { %v11098_v62 = vpop.f32.mrf.mxu1  ;;  %v8135_v24 = vadd.f32 %v11075_v50, %v8095_v55  ;;  %v12737_v63 = vld [vmem:[%s16771_s3 + $0x38] ss:$12 sps:$4 sm:$0xff]   ;;  %v12738_v56 = vld [vmem:[%s16771_s3 + $0xe0] ss:$12 sps:$4 sm:$0xff]   ;;  %9477 = vmatpush2.bf16.msra.mxu0 %v12782_v11 }
 0x4a8   :  { %v11077_v3 = vpop.f32.mrf.mxu0  ;;  %v12785_v62 = vld [vmem:[%s16773_s5 + $0xa0] ss:$8 sps:$4 sm:$0xff]   ;;  %9478 = vmatprep.subr.bf16.mxu0 %v12787_v18 }
 0x4a9   :  { %v11099_v48 = vpop.f32.mrf.mxu1  ;;  %v8175_v1 = vadd.f32 %v11097_v61, %v8135_v24  ;;  %v12739_v3 = vld [vmem:[%s16771_s3 + $0x20] ss:$12 sps:$4 sm:$0xff]   ;;  %v12790_v24 = vld [vmem:[%s16773_s5 + $0x94] ss:$8 sps:$4 sm:$0xff]   ;;  %v12788_v61 = vld [vmem:[%s16773_s5 + $0x90] ss:$8 sps:$4 sm:$0xff]  }
 0x4aa   :  { %v12740_v48 = vld [vmem:[%s16771_s3 + $0xc8] ss:$12 sps:$4 sm:$0xff]  }
 0x4ab   :  { %9479 = vmatpush2.bf16.msra.mxu0 %v12785_v62 }
 0x4ac   :  { %9480 = vmatprep.subr.bf16.mxu0 %v12790_v24 }
 0x4af   :  { %9481 = vmatpush2.bf16.msra.mxu0 %v12788_v61 }
 0x4b0   :  { %9482 = vmatprep.subr.bf16.mxu0 %v12793_v8 }
 0x4b3   :  { %9483 = vmatpush2.bf16.msra.mxu0 %v12791_v25 }
 0x4c2   :  { %v8214_v5 = vpop.f32.mrf.mxu0 }
 0x4c3   :  { %v8215_v35 = vadd.f32 %v8214_v5, %v8175_v1 }
 0x4c4   :  { %v11177_v31 = vpop.f32.mrf.mxu0 }
 0x4c5   :  { %v8224_v36 = vmax.f32 %v8215_v35, 0.0 }
 0x4c6   :  { %v8217_v37 = vpop.f32.mrf.mxu0 }
 0x4c7   :  { %v16588_v42 = vpack.c.bf16 %v8224_v36, %v8224_v36  ;;  %v12796_v36 = vld [vmem:[%s16773_s5 + $0x114] ss:$8 sps:$4 sm:$0xff]   ;;  %v12799_v37 = vld [vmem:[%s16773_s5 + $0x104] ss:$8 sps:$4 sm:$0xff]  }
 0x4c8   :  { %v11178_v46 = vpop.f32.mrf.mxu0 }
 0x4c9   :  { %10787 = vmatmul.mubr.msk.bf16.vlgmr.msra.gmra.mxu1 %vm8967_vm1, %v16588_v42 }
 0x4ca   :  { %11111 = vmatpush3.bf16.msra.mxu1 %v12727_v15  ;;  %9126 = vmatprep.mubr.bf16.mxu1 %v16221_v16  ;;  %v12731_v16 = vld [vmem:[%s16771_s3 + $0x80] ss:$12 sps:$4 sm:$0xff]  }
 0x4cb   :  { %11112 = vmatprep.subr.bf16.mxu1 %v12728_v39  ;;  %v12797_v15 = vld [vmem:[%s16773_s5 + $0x100] ss:$8 sps:$4 sm:$0xff]  }
 0x4ce   :  { %11113 = vmatpush3.bf16.msra.mxu1 %v12729_v7 }
 0x4cf   :  { %11114 = vmatprep.subr.bf16.mxu1 %v12730_v13 }
 0x4d2   :  { %11115 = vmatpush3.bf16.msra.mxu1 %v12731_v16 }
 0x4d3   :  { %11116 = vmatprep.subr.bf16.mxu1 %v12732_v4 }
 0x4d6   :  { %11117 = vmatpush3.bf16.msra.mxu1 %v12733_v40 }
 0x4d7   :  { %11118 = vmatprep.subr.bf16.mxu1 %v12734_v14  ;;  %v8387_v14 = vrot.slane %v8374_v38, %v1419_v49  ;;  %v12802_v49 = vld [vmem:[%s16775_s7 + $0x28] sm:$0xff]  }
 0x4da   :  { %11119 = vmatpush3.bf16.msra.mxu1 %v12735_v44 }
 0x4db   :  { %11120 = vmatprep.subr.bf16.mxu1 %v12736_v34 }
 0x4de   :  { %11121 = vmatpush3.bf16.msra.mxu1 %v12737_v63 }
 0x4df   :  { %11122 = vmatprep.subr.bf16.mxu1 %v12738_v56 }
 0x4e2   :  { %11123 = vmatpush3.bf16.msra.mxu1 %v12739_v3 }
 0x4e3   :  { %v9005_v52 = vpop.f32.mrf.mxu1  ;;  %11124 = vmatprep.subr.bf16.mxu1 %v12740_v48  ;;  %v12800_v48 = vld [vmem:[%s16775_s7 + $0x38] sm:$0xff]  }
 0x4e4   :  { %v9006_v51 = vadd.f32 %v9005_v52, %v8379_v12  ;;  %v12803_v52 = vld [vmem:[%s16775_s7 + $0x20] sm:$0xff]  }
 0x4e5   :  { %v9007_v0 = vpop.f32.mrf.mxu1  ;;  %v9256_v12 = vld [vmem:[%s16774_s6] sm:$0x3] }
 0x4e6   :  { %11125 = vmatpush3.bf16.msra.mxu1 %v12741_v21  ;;  %v9008_v59 = vadd.f32 %v9007_v0, %v8383_v58  ;;  %v12804_v21 = vld [vmem:[%s16775_s7 + $0x18] sm:$0xff]   ;;  %v12805_v0 = vld [vmem:[%s16775_s7 + $0x10] sm:$0xff]   ;;  %v9261_v58 = vrot.slane %v9256_v12, %v13768_v29  ;;  %v10826_v29 = vld [vmem:[%s16776_s8] ss:$0 sm:$0xff] }
 0x4e7   :  { %v9009_v27 = vpop.f32.mrf.mxu1  ;;  %11179 = vmatprep.subr.bf16.mxu1 %v12835_v30 }
 0x4e8   :  { %v12806_v27 = vld [vmem:[%s16775_s7 + $0x8] sm:$0xff]  }
 0x4e9   :  { %v9010_v57 = vpop.f32.mrf.mxu1  ;;  %9127 = vmatmul.mubr.bf16.vlgmr.msra.gmra.mxu1 %v16411_v23  ;;  %v12745_v23 = vld [vmem:[%s16771_s3 + $0x308] ss:$12 sps:$4 sm:$0xff]  }
 0x4ea   :  { %11180 = vmatpush3.bf16.msra.mxu1 %v12742_v53  ;;  %11187 = vmatprep.mubr.msk.bf16.mxu1 %vm12836_vm0, %v12835_v30  ;;  %v12807_v53 = vld [vmem:[%s16775_s7] sm:$0xff]  }
 0x4eb   :  { %11181 = vmatprep.subr.bf16.mxu1 %v12835_v30  ;;  %v12808_v57 = vld [vmem:[%s16775_s7 + $0x40] sm:$0xff]  }
 0x4ee   :  { %11182 = vmatpush3.bf16.msra.mxu1 %v12743_v19 }
 0x4ef   :  { %11183 = vmatprep.subr.bf16.mxu1 %v12835_v30 }
 0x4f2   :  { %11184 = vmatpush3.bf16.msra.mxu1 %v12744_v41 }
 0x4f3   :  { %11185 = vmatprep.subr.bf16.mxu1 %v12835_v30 }
 0x4f6   :  { %11186 = vmatpush3.bf16.msra.mxu1 %v12745_v23 }
 0x4f7   :  { %9505 = vmatprep.subr.bf16.mxu1 %v12796_v36 }
 0x4f9   :  { %11188 = vmatmul.mubr.msk.bf16.vlgmr.msra.gmra.mxu1 %vm8967_vm1, %v16588_v42 }
 0x4fa   :  { %9525 = vmatprep.mubr.bf16.mxu1 %v12834_v20  ;;  %9506 = vmatpush1.bf16.msra.mxu1 %v12794_v2 }
 0x4fb   :  { %9507 = vmatprep.subr.bf16.mxu1 %v12799_v37 }
 0x4fe   :  { %9508 = vmatpush1.bf16.msra.mxu1 %v12797_v15 }
 0x4ff   :  { %9621 = vmatprep.subr.bf16.mxu1 %v12834_v20 }
 0x502   :  { %v9046_v54 = vpop.f32.mrf.mxu0 }
 0x503   :  { %v9047_v50 = vadd.f32 %v9046_v54, %v9006_v51  ;;  %v9265_v51 = vrot.slane %v9256_v12, %v13777_v33 }
 0x504   :  { %v9048_v55 = vpop.f32.mrf.mxu0 }
 0x505   :  { %v9049_v30 = vadd.f32 %v9048_v55, %v9008_v59 }
 0x506   :  { %v9050_v10 = vpop.f32.mrf.mxu0 }
 0x508   :  { %v9051_v60 = vpop.f32.mrf.mxu0 }
 0x522   :  { %v11148_v1 = vpop.f32.mrf.mxu0 }
 0x524   :  { %v11149_v5 = vpop.f32.mrf.mxu0 }
 0x525   :  { %v11150_v35 = vadd.f32 %v11149_v5, %v11148_v1 }
 0x526   :  { %v11151_v45 = vpop.f32.mrf.mxu0 }
 0x528   :  { %v11152_v31 = vpop.f32.mrf.mxu0 }
 0x589   :  { %v9087_v42 = vpop.f32.mrf.mxu1 }
 0x58a   :  { %v9088_v39 = vadd.f32 %v9087_v42, %v9047_v50 }
 0x58b   :  { %v9089_v22 = vpop.f32.mrf.mxu1 }
 0x58c   :  { %v9090_v46 = vadd.f32 %v9089_v22, %v9049_v30  ;;  %v9214_v47 = vmax.f32 %v9088_v39, 0.0 }
 0x58d   :  { %v9091_v7 = vpop.f32.mrf.mxu1 }
 0x58e   :  { %v9215_v13 = vmax.f32 %v9090_v46, 0.0  ;;  %v9217_v16 = vpack.c.bf16 %v9214_v47, %v9214_v47 }
 0x58f   :  { %v9092_v17 = vpop.f32.mrf.mxu1 }
 0x590   :  { %v9218_v26 = vpack.c.bf16 %v9215_v13, %v9215_v13 }
 0x592   :  { %9484 = vmatprep.mubr.bf16.mxu0 %v9218_v26 }
 0x593   :  { %9485 = vmatmul.mubr.bf16.vlgmr.msra.gmra.mxu0 %v9217_v16 }
 0x5a9   :  { %v11126_v4 = vpop.f32.mrf.mxu1 }
 0x5ab   :  { %v11127_v6 = vpop.f32.mrf.mxu1 }
 0x5ac   :  { %v11128_v32 = vadd.f32 %v11127_v6, %v11126_v4 }
 0x5ad   :  { %v11129_v28 = vpop.f32.mrf.mxu1 }
 0x5ae   :  { %v9129_v9 = vadd.f32 %v11128_v32, %v8387_v14 }
 0x5af   :  { %v11130_v40 = vpop.f32.mrf.mxu1 }
 0x5b0   :  { %v9169_v44 = vadd.f32 %v11150_v35, %v9129_v9 }
 0x5b9   :  { %v9208_v34 = vpop.f32.mrf.mxu1 }
 0x5ba   :  { %v9209_v11 = vadd.f32 %v9208_v34, %v9169_v44 }
 0x5bb   :  { %v11189_v18 = vpop.f32.mrf.mxu1 }
 0x5bc   :  { %v9216_v63 = vmax.f32 %v9209_v11, 0.0 }
 0x5bd   :  { %v9211_v56 = vpop.f32.mrf.mxu1 }
 0x5be   :  { %v9219_v62 = vpack.c.bf16 %v9216_v63, %v9216_v63 }
 0x5bf   :  { %v11190_v3 = vpop.f32.mrf.mxu1 }
 0x5c0   :  { %10825 = vmatmul.mubr.msk.bf16.vlgmr.msra.gmra.mxu1 %vm9448_vm2, %v9219_v62 }
 0x5c1   :  { %9622 = vmatpush1.bf16.msra.mxu1 %v12800_v48 }
 0x5c2   :  { %9623 = vmatprep.subr.bf16.mxu1 %v12834_v20 }
 0x5c5   :  { %9624 = vmatpush1.bf16.msra.mxu1 %v12801_v43 }
 0x5c6   :  { %9625 = vmatprep.subr.bf16.mxu1 %v12834_v20 }
 0x5c9   :  { %9626 = vmatpush1.bf16.msra.mxu1 %v12802_v49 }
 0x5ca   :  { %9627 = vmatprep.subr.bf16.mxu1 %v12834_v20 }
 0x5cd   :  { %9628 = vmatpush1.bf16.msra.mxu1 %v12803_v52 }
 0x5ce   :  { %9629 = vmatprep.subr.bf16.mxu1 %v12834_v20 }
 0x5d1   :  { %9630 = vmatpush1.bf16.msra.mxu1 %v12804_v21 }
 0x5d2   :  { %9631 = vmatprep.subr.bf16.mxu1 %v12834_v20 }
 0x5d5   :  { %9632 = vmatpush1.bf16.msra.mxu1 %v12805_v0 }
 0x5d6   :  { %9633 = vmatprep.subr.bf16.mxu1 %v12834_v20 }
 0x5d9   :  { %9634 = vmatpush1.bf16.msra.mxu1 %v12806_v27 }
 0x5da   :  { %9635 = vmatprep.subr.bf16.mxu1 %v12834_v20 }
 0x5dd   :  { %9636 = vmatpush1.bf16.msra.mxu1 %v12807_v53 }
 0x5de   :  { %9651 = vmatprep.subr.bf16.mxu1 %v12834_v20 }
 0x5e1   :  { %9652 = vmatpush2.bf16.msra.mxu1 %v12808_v57 }
 0x653   :  { %v9486_v19 = vpop.f32.mrf.mxu0 }
 0x654   :  { %v9487_v54 = vadd.f32 %v9486_v19, %v9261_v58 }
 0x655   :  { %v9488_v41 = vpop.f32.mrf.mxu0 }
 0x656   :  { %v9489_v20 = vadd.f32 %v9488_v41, %v9265_v51 }
 0x657   :  { %v9490_v23 = vpop.f32.mrf.mxu0 }
 0x659   :  { %v9491_v38 = vpop.f32.mrf.mxu0 }
 0x680   :  { %v9527_v59 = vpop.f32.mrf.mxu1 }
 0x681   :  { %v9528_v50 = vadd.f32 %v9527_v59, %v9487_v54 }
 0x682   :  { %v9529_v55 = vpop.f32.mrf.mxu1 }
 0x683   :  { %v9530_v30 = vadd.f32 %v9529_v55, %v9489_v20  ;;  %v9534_v10 = vmax.f32 %v9528_v50, 0.0 }
 0x684   :  { %v9531_v60 = vpop.f32.mrf.mxu1 }
 0x685   :  { %v9535_v24 = vmax.f32 %v9530_v30, 0.0  ;;  %v9536_v25 = vpack.c.bf16 %v9534_v10, %v9534_v10 }
 0x686   :  { %v9532_v61 = vpop.f32.mrf.mxu1 }
 0x687   :  { %v9537_v8 = vpack.c.bf16 %v9535_v24, %v9535_v24 }
 0x689   :  { %10836 = vmatprep.mubr.msk.bf16.mxu1 %vm9617_vm3, %v9537_v8 }
 0x68a   :  { %9654 = vmatmul.mubr.bf16.vlgmr.msra.gmra.mxu1 %v9536_v25 }
 0x74a   :  { %v9655_v33 = vpop.f32.mrf.mxu1 }
 0x74b   :  { %v9656_v1 = vadd.f32 %v10826_v29, %v9655_v33 }
 0x74c   :  { %v9657_v5 = vpop.f32.mrf.mxu1 }
 0x74d   :  { %v9661_v35 = vmax.f32 %v9656_v1, 0.0 }
 0x74e   :  { %v9658_v45 = vpop.f32.mrf.mxu1 }
 0x74f   :  { %9663 = vst.msk [vmem:[#allocation2] sm:$0x3] %vm9662_vm4, %v9661_v35 }
 0x750   :  { %v9659_v31 = vpop.f32.mrf.mxu1 }
 0x751   :  { %12822 = shalt.err (!%p12819_p4)
}
 0x752   :  { %9673 = dma.vmem_to_hbm [thread:$0]  %s9671_s20, 32, %s16777_s9, [#allocation3]  }
 0x753   :  { %12831 = dma.done.wait [#allocation3], 32  }
 0x754   :  { %12832 = vsyncadd [#allocation3], 4294967264 }
 0x755   :  { %9677 = vsyncpa [#allocation3], 1 }

</bundles_post_ra>
